<compile_context>
chip_gen: v7x
topology: tpu7x:2x2x1
jax: 0.10.0
libtpu: 0.0.40
codegen_flags: <defaults>
</compile_context>

<pallas_src>
import jax
import jax.numpy as jnp
import numpy as np
from jax import lax
from jax.experimental import pallas as pl
from jax.experimental.pallas import tpu as pltpu

NUM_SLOTS = 3     # ModelSlotAttention uses num_slots=3
S_PAD = 8         # slot axis padded to one sublane tile
ITERS = 7         # SlotAttention default iters
EPS = 1e-8        # SlotAttention eps
LN_EPS = 1e-5     # nn.LayerNorm default eps


def _layer_norm(x, g, b):
    m = jnp.mean(x, axis=-1, keepdims=True)
    v = jnp.mean(jnp.square(x - m), axis=-1, keepdims=True)
    return (x - m) * lax.rsqrt(v + LN_EPS) * g + b


def slot_attention_kernel(
    x_ref, noise_ref,
    wkv_ref, wq_ref, w_ih_ref, w_hh_ref, w1_ref, w2_ref,
    vecd_ref, vecw_ref,
    out_ref,
):
    bt, n, d = x_ref.shape
    s_pad = noise_ref.shape[1]
    hidden = w1_ref.shape[1]
    mm_dtype = wkv_ref.dtype                      # bf16 (perf) or f32 (exact)
    scale = d ** (-0.5)

    # ---- hoisted, loop-invariant parameter loads ---------------------------
    vd = vecd_ref[...]                            # (12, D) packed row vectors
    mu, sigma = vd[0:1], vd[1:2]
    ln_in_g, ln_in_b = vd[2:3], vd[3:4]
    ln_s_g, ln_s_b = vd[4:5], vd[5:6]
    bq = vd[6:7]
    ln_f_g, ln_f_b = vd[7:8], vd[8:9]
    b2 = vd[9:10]
    wl = vd[10:11]
    bl = vd[11:12, 0:1]                           # (1, 1)

    vw = vecw_ref[...]                            # (4, max(3D, hidden)) packed
    bkv = vw[0:1, :2 * d]
    b_ih = vw[1:2, :3 * d]
    b_hh = vw[2:3, :3 * d]
    b1 = vw[3:4, :hidden]

    w_kv = wkv_ref[...]                           # weights already in mm_dtype
    w_q = wq_ref[...]
    w_ih = w_ih_ref[...]
    w_hh = w_hh_ref[...]
    w_1 = w1_ref[...]
    w_2 = w2_ref[...]

    # padded slots get -1e30 dots so the slot-axis softmax (torch dim=1) is
    # identical to the un-padded 3-slot computation.
    slot_ids = lax.broadcasted_iota(jnp.int32, (1, s_pad, 1), 1)
    slot_mask = jnp.where(slot_ids < NUM_SLOTS, 0.0, -1e30).astype(jnp.float32)

    # ---- shared projections (outside the iteration loop) -------------------
    x = x_ref[...].reshape(bt * n, d)             # free: N % 8 == 0
    noise = noise_ref[...].reshape(bt * s_pad, d)  # free: S_PAD == 8

    # slots = Normal(mu, sigma) reparameterized: mu + sigma * eps
    slots0 = mu + sigma * noise                   # (bt*S_PAD, D) f32

    inp = _layer_norm(x, ln_in_g, ln_in_b)
    kv = jnp.dot(inp.astype(mm_dtype), w_kv,
                 preferred_element_type=jnp.float32) + bkv      # (bt*N, 2D)
    k3 = kv[:, :d].reshape(bt, n, d).astype(mm_dtype)
    v3 = kv[:, d:].reshape(bt, n, d).astype(mm_dtype)

    def body(_, slots):
        slots_prev = slots                                       # (bt*S_PAD, D)

        s_n = _layer_norm(slots, ln_s_g, ln_s_b)
        q = jnp.dot(s_n.astype(mm_dtype), w_q,
                    preferred_element_type=jnp.float32) + bq
        q3 = q.reshape(bt, s_pad, d).astype(mm_dtype)            # free reshape

        # dots: (bt, S_PAD, N); softmax over the SLOT axis (torch dim=1)
        # TODO(synk): on v5e these tiny batched matmuls could be re-expressed
        # as VPU broadcast-multiply + lane reductions if MXU pops serialize.
        dots = jnp.einsum("bid,bjd->bij", q3, k3,
                          preferred_element_type=jnp.float32) * scale
        dots = dots + slot_mask
        dots = dots - jnp.max(dots, axis=1, keepdims=True)
        e = jnp.exp(dots)
        attn = e / jnp.sum(e, axis=1, keepdims=True) + EPS        # exact div
        attn = attn / jnp.sum(attn, axis=-1, keepdims=True)       # exact div

        # updates = einsum('bjd,bij->bid', v, attn)
        updates = jnp.einsum("bij,bjd->bid", attn.astype(mm_dtype), v3,
                             preferred_element_type=jnp.float32)
        updates = updates.reshape(bt * s_pad, d)                  # free reshape

        # GRUCell(updates, slots_prev) with fused (D, 3D) [r|z|n] gate weights
        gi = jnp.dot(updates.astype(mm_dtype), w_ih,
                     preferred_element_type=jnp.float32) + b_ih
        gh = jnp.dot(slots_prev.astype(mm_dtype), w_hh,
                     preferred_element_type=jnp.float32) + b_hh
        r = jax.nn.sigmoid(gi[:, 0 * d:1 * d] + gh[:, 0 * d:1 * d])
        z = jax.nn.sigmoid(gi[:, 1 * d:2 * d] + gh[:, 1 * d:2 * d])
        n_gate = jnp.tanh(gi[:, 2 * d:3 * d] + r * gh[:, 2 * d:3 * d])
        slots = (1.0 - z) * n_gate + z * slots_prev

        # residual MLP
        pre = _layer_norm(slots, ln_f_g, ln_f_b)
        h = jnp.maximum(
            jnp.dot(pre.astype(mm_dtype), w_1,
                    preferred_element_type=jnp.float32) + b1, 0.0)
        mlp = jnp.dot(h.astype(mm_dtype), w_2,
                      preferred_element_type=jnp.float32) + b2
        return slots + mlp

    slots = lax.fori_loop(0, ITERS, body, slots0, unroll=True)

    # final head: Linear(D -> 1) as a VPU multiply + lane reduction
    logits = jnp.sum(slots.reshape(bt, s_pad, d) * wl.reshape(1, 1, d),
                     axis=-1) + bl                                # (bt, S_PAD)
    out_ref[...] = logits.reshape(bt, 1, s_pad)


def _pick_batch_tile(b, n, d, hidden, mm_bytes, *, target=64,
                     vmem_budget_bytes=40 * 1024 * 1024):
    """Largest divisor of b that fits a conservative VMEM budget (sized for
    v7x's 64 MiB/TC), is <= target, and leaves a grid of >= 2 steps when
    possible so both v7x TensorCores get work."""
    f32 = 4
    per_elem = (
        2 * (n * d) * f32 * 2                      # x tile, double-buffered
        + 2 * (S_PAD * d) * f32 * 2                # noise tile, double-buffered
        + n * 2 * d * (f32 + mm_bytes)             # kv (f32) + k/v (mm dtype)
        + n * d * f32                              # normalized inputs
        + S_PAD * (16 * d + 2 * hidden) * f32      # slot-side temporaries
    )
    weights = 2 * (d * 2 * d + d * d + 2 * d * 3 * d
                   + d * hidden + hidden * d) * mm_bytes
    vecs = 2 * (12 * d + 4 * max(3 * d, hidden)) * f32
    budget = max(vmem_budget_bytes - weights - vecs, per_elem)
    cap = max(1, min(target, budget // per_elem))
    divisors = [t for t in range(1, b + 1) if b % t == 0]
    ok = [t for t in divisors if t <= cap]
    pref = [t for t in ok if b // t >= 2]
    return max(pref) if pref else max(ok)


def model_slot_attention_forward(x, noise, params, *, batch_tile=None,
                                 matmul_dtype=jnp.bfloat16,
                                 vmem_limit_bytes=64 * 1024 * 1024):
    """x: (B, N, D) encoder hidden states; noise: (B, NUM_SLOTS, D).
    Returns (B, NUM_SLOTS) logits."""
    b, n, d = x.shape
    hidden = params["w1"].shape[1]
    mm_bytes = jnp.dtype(matmul_dtype).itemsize
    if batch_tile is None:
        bt = _pick_batch_tile(b, n, d, hidden, mm_bytes)
    else:
        bt = min(batch_tile, b)
    assert b % bt == 0, "batch must be divisible by the batch tile"

    # pad slot axis 3 -> 8 (padded slots = mu; masked out of the softmax)
    noise_p = jnp.pad(noise.astype(jnp.float32),
                      ((0, 0), (0, S_PAD - NUM_SLOTS), (0, 0)))

    # big matmul weights pre-cast to the matmul dtype (halves weight DMA/VMEM
    # for bf16 on v6e/v7x); all elementwise params stay f32.
    weights = [params[kk].astype(matmul_dtype)
               for kk in ("wkv", "wq", "w_ih", "w_hh", "w1", "w2")]

    # pack the small (1, D)-ish parameters into two replicated arrays
    vec_d = jnp.concatenate([
        params["mu"], params["sigma"],
        params["ln_in_g"], params["ln_in_b"],
        params["ln_s_g"], params["ln_s_b"],
        params["bq"],
        params["ln_f_g"], params["ln_f_b"],
        params["b2"], params["wl"],
        jnp.broadcast_to(params["bl"], (1, d)),
    ], axis=0).astype(jnp.float32)                              # (12, D)

    wide = max(3 * d, hidden)
    pad_row = lambda v: jnp.pad(v, ((0, 0), (0, wide - v.shape[1])))
    vec_w = jnp.concatenate([
        pad_row(params["bkv"]), pad_row(params["b_ih"]),
        pad_row(params["b_hh"]), pad_row(params["b1"]),
    ], axis=0).astype(jnp.float32)                               # (4, wide)

    # NOTE: replicated specs could additionally use pipeline_mode=pl.Buffered(1)
    # (weights never change across grid steps) to halve their VMEM footprint.
    repl = lambda a: pl.BlockSpec(a.shape, lambda i, _nd=a.ndim: (0,) * _nd)
    in_specs = [
        pl.BlockSpec((bt, n, d), lambda i: (i, 0, 0)),           # x tile
        pl.BlockSpec((bt, S_PAD, d), lambda i: (i, 0, 0)),       # noise tile
    ] + [repl(w) for w in weights] + [repl(vec_d), repl(vec_w)]

    out = pl.pallas_call(
        slot_attention_kernel,
        out_shape=jax.ShapeDtypeStruct((b, 1, S_PAD), jnp.float32),
        grid_spec=pltpu.PrefetchScalarGridSpec(
            num_scalar_prefetch=0,
            grid=(b // bt,),
            in_specs=in_specs,
            out_specs=pl.BlockSpec((bt, 1, S_PAD), lambda i: (i, 0, 0)),
        ),
        compiler_params=pltpu.CompilerParams(
            dimension_semantics=("parallel",),
            vmem_limit_bytes=vmem_limit_bytes),
    )(x.astype(jnp.float32), noise_p, *weights, vec_d, vec_w)
    return out[:, 0, :NUM_SLOTS]


def reference_forward(x, noise, p):
    """Pure-JAX f32 reference of the same math (for correctness check)."""
    d = x.shape[-1]
    scale = d ** (-0.5)

    def ln(t, g, b):
        m = t.mean(-1, keepdims=True)
        v = ((t - m) ** 2).mean(-1, keepdims=True)
        return (t - m) / jnp.sqrt(v + LN_EPS) * g + b

    slots = p["mu"] + p["sigma"] * noise                         # (B, S, D)
    inp = ln(x, p["ln_in_g"], p["ln_in_b"])
    kv = inp @ p["wkv"] + p["bkv"]
    k, v = kv[..., :d], kv[..., d:]
    for _ in range(ITERS):
        slots_prev = slots
        q = ln(slots, p["ln_s_g"], p["ln_s_b"]) @ p["wq"] + p["bq"]
        dots = jnp.einsum("bid,bjd->bij", q, k) * scale
        attn = jax.nn.softmax(dots, axis=1) + EPS
        attn = attn / attn.sum(-1, keepdims=True)
        updates = jnp.einsum("bjd,bij->bid", v, attn)
        gi = updates @ p["w_ih"] + p["b_ih"]
        gh = slots_prev @ p["w_hh"] + p["b_hh"]
        r = jax.nn.sigmoid(gi[..., :d] + gh[..., :d])
        z = jax.nn.sigmoid(gi[..., d:2 * d] + gh[..., d:2 * d])
        ng = jnp.tanh(gi[..., 2 * d:] + r * gh[..., 2 * d:])
        slots = (1.0 - z) * ng + z * slots_prev
        pre = ln(slots, p["ln_f_g"], p["ln_f_b"])
        mlp = jnp.maximum(pre @ p["w1"] + p["b1"], 0.0) @ p["w2"] + p["b2"]
        slots = slots + mlp
    return (slots * p["wl"]).sum(-1) + p["bl"][0, 0]             # (B, S)


def init_params(key, d, hidden):
    """Deterministic synthetic parameters (weights stored as (in, out), fused)."""
    ks = iter(jax.random.split(key, 32))

    def w(shape, scale=0.05):
        return (scale * jax.random.normal(next(ks), shape)).astype(jnp.float32)

    ones = lambda shape: jnp.ones(shape, jnp.float32)
    zeros = lambda shape: jnp.zeros(shape, jnp.float32)

    return {
        "mu": w((1, d), 1.0),
        "sigma": w((1, d), 0.5),
        "ln_in_g": ones((1, d)), "ln_in_b": zeros((1, d)),
        "wkv": w((d, 2 * d)), "bkv": zeros((1, 2 * d)),        # fused K|V proj
        "ln_s_g": ones((1, d)), "ln_s_b": zeros((1, d)),
        "wq": w((d, d)), "bq": zeros((1, d)),
        # GRUCell weights fused per side: [r | z | n] gates, (in, 3*out) layout
        "w_ih": w((d, 3 * d)), "b_ih": w((1, 3 * d), 0.01),
        "w_hh": w((d, 3 * d)), "b_hh": w((1, 3 * d), 0.01),
        "ln_f_g": ones((1, d)), "ln_f_b": zeros((1, d)),
        "w1": w((d, hidden)), "b1": zeros((1, hidden)),
        "w2": w((hidden, d)), "b2": zeros((1, d)),
        # head Linear(dim -> 1) as a (1, D) row (VPU multiply + lane reduce)
        "wl": w((1, d)), "bl": zeros((1, 1)),
    }


if __name__ == "__main__":
    B, N, D = 8, 16, 128          # batch, seq, embedding_dim (scaled down)
    HIDDEN = max(D, 256)          # max(dim, slot_attention_hidden_dim)

    key = jax.random.PRNGKey(0)
    kx, kn, kp = jax.random.split(key, 3)

    # x = encoder(tokens, attention_mask)[0]  -> supplied directly (see TODO)
    x = jax.random.normal(kx, (B, N, D), dtype=jnp.float32)
    noise = jax.random.normal(kn, (B, NUM_SLOTS, D), dtype=jnp.float32)
    params = init_params(kp, D, HIDDEN)

    ref = jax.block_until_ready(reference_forward(x, noise, params))

    # exact path: f32 matmul operands, exact softmax division -> tight check
    out_f32 = jax.block_until_ready(
        model_slot_attention_forward(x, noise, params, matmul_dtype=jnp.float32))
    assert out_f32.shape == (B, NUM_SLOTS)
    np.testing.assert_allclose(np.asarray(out_f32), np.asarray(ref),
                               rtol=1e-3, atol=1e-3)

    # performance path: bf16 matmul operands with f32 accumulation
    out_bf16 = jax.block_until_ready(
        model_slot_attention_forward(x, noise, params, matmul_dtype=jnp.bfloat16))
    assert out_bf16.shape == (B, NUM_SLOTS)
    np.testing.assert_allclose(np.asarray(out_bf16), np.asarray(ref),
                               rtol=5e-2, atol=5e-2)

    print("KERNEL_OK")
</pallas_src>

<mosaic_0001>
module attributes {stable_mosaic.version = 11 : i64} {
  func.func @slot_attention_kernel(%arg0: i32, %arg1: memref<4x16x128xf32, #tpu.memory_space<vmem>>, %arg2: memref<4x8x128xf32, #tpu.memory_space<vmem>>, %arg3: memref<128x256xf32, #tpu.memory_space<vmem>>, %arg4: memref<128x128xf32, #tpu.memory_space<vmem>>, %arg5: memref<128x384xf32, #tpu.memory_space<vmem>>, %arg6: memref<128x384xf32, #tpu.memory_space<vmem>>, %arg7: memref<128x256xf32, #tpu.memory_space<vmem>>, %arg8: memref<256x128xf32, #tpu.memory_space<vmem>>, %arg9: memref<12x128xf32, #tpu.memory_space<vmem>>, %arg10: memref<4x384xf32, #tpu.memory_space<vmem>>, %arg11: memref<4x1x8xf32, #tpu.memory_space<vmem>>) attributes {dimension_semantics = [#tpu.dimension_semantics<parallel>], iteration_bounds = array<i64: 2>, scalar_prefetch = 0 : i64, scratch_operands = 0 : i64, tpu.core_type = #tpu.core_type<tc>, window_params = [{transform_indices = @transform_0, window_bounds = array<i64: 4, 16, 128>}, {transform_indices = @transform_1, window_bounds = array<i64: 4, 8, 128>}, {pipeline_mode = #tpu.pipeline_mode<synchronous>, transform_indices = @transform_2, window_bounds = array<i64: 128, 256>}, {pipeline_mode = #tpu.pipeline_mode<synchronous>, transform_indices = @transform_3, window_bounds = array<i64: 128, 128>}, {pipeline_mode = #tpu.pipeline_mode<synchronous>, transform_indices = @transform_4, window_bounds = array<i64: 128, 384>}, {pipeline_mode = #tpu.pipeline_mode<synchronous>, transform_indices = @transform_5, window_bounds = array<i64: 128, 384>}, {pipeline_mode = #tpu.pipeline_mode<synchronous>, transform_indices = @transform_6, window_bounds = array<i64: 128, 256>}, {pipeline_mode = #tpu.pipeline_mode<synchronous>, transform_indices = @transform_7, window_bounds = array<i64: 256, 128>}, {pipeline_mode = #tpu.pipeline_mode<synchronous>, transform_indices = @transform_8, window_bounds = array<i64: 12, 128>}, {pipeline_mode = #tpu.pipeline_mode<synchronous>, transform_indices = @transform_9, window_bounds = array<i64: 4, 384>}, {transform_indices = @transform_10, window_bounds = array<i64: 4, 1, 8>}]} {
    %c0 = arith.constant 0 : index
    %c0_0 = arith.constant 0 : index
    %0 = vector.load %arg9[%c0, %c0_0] : memref<12x128xf32, #tpu.memory_space<vmem>>, vector<12x128xf32>
    %1 = vector.extract_strided_slice %0 {offsets = [0, 0], sizes = [1, 128], strides = [1, 1]} : vector<12x128xf32> to vector<1x128xf32>
    %2 = vector.extract_strided_slice %0 {offsets = [1, 0], sizes = [1, 128], strides = [1, 1]} : vector<12x128xf32> to vector<1x128xf32>
    %3 = vector.extract_strided_slice %0 {offsets = [2, 0], sizes = [1, 128], strides = [1, 1]} : vector<12x128xf32> to vector<1x128xf32>
    %4 = vector.extract_strided_slice %0 {offsets = [3, 0], sizes = [1, 128], strides = [1, 1]} : vector<12x128xf32> to vector<1x128xf32>
    %5 = vector.extract_strided_slice %0 {offsets = [4, 0], sizes = [1, 128], strides = [1, 1]} : vector<12x128xf32> to vector<1x128xf32>
    %6 = vector.extract_strided_slice %0 {offsets = [5, 0], sizes = [1, 128], strides = [1, 1]} : vector<12x128xf32> to vector<1x128xf32>
    %7 = vector.extract_strided_slice %0 {offsets = [6, 0], sizes = [1, 128], strides = [1, 1]} : vector<12x128xf32> to vector<1x128xf32>
    %8 = vector.extract_strided_slice %0 {offsets = [7, 0], sizes = [1, 128], strides = [1, 1]} : vector<12x128xf32> to vector<1x128xf32>
    %9 = vector.extract_strided_slice %0 {offsets = [8, 0], sizes = [1, 128], strides = [1, 1]} : vector<12x128xf32> to vector<1x128xf32>
    %10 = vector.extract_strided_slice %0 {offsets = [9, 0], sizes = [1, 128], strides = [1, 1]} : vector<12x128xf32> to vector<1x128xf32>
    %11 = vector.extract_strided_slice %0 {offsets = [10, 0], sizes = [1, 128], strides = [1, 1]} : vector<12x128xf32> to vector<1x128xf32>
    %12 = vector.extract_strided_slice %0 {offsets = [11, 0], sizes = [1, 1], strides = [1, 1]} : vector<12x128xf32> to vector<1x1xf32>
    %c0_1 = arith.constant 0 : index
    %c0_2 = arith.constant 0 : index
    %13 = vector.load %arg10[%c0_1, %c0_2] : memref<4x384xf32, #tpu.memory_space<vmem>>, vector<4x384xf32>
    %14 = vector.extract_strided_slice %13 {offsets = [0, 0], sizes = [1, 256], strides = [1, 1]} : vector<4x384xf32> to vector<1x256xf32>
    %15 = vector.extract_strided_slice %13 {offsets = [1, 0], sizes = [1, 384], strides = [1, 1]} : vector<4x384xf32> to vector<1x384xf32>
    %16 = vector.extract_strided_slice %13 {offsets = [2, 0], sizes = [1, 384], strides = [1, 1]} : vector<4x384xf32> to vector<1x384xf32>
    %17 = vector.extract_strided_slice %13 {offsets = [3, 0], sizes = [1, 256], strides = [1, 1]} : vector<4x384xf32> to vector<1x256xf32>
    %c0_3 = arith.constant 0 : index
    %c0_4 = arith.constant 0 : index
    %18 = vector.load %arg3[%c0_3, %c0_4] : memref<128x256xf32, #tpu.memory_space<vmem>>, vector<128x256xf32>
    %c0_5 = arith.constant 0 : index
    %c0_6 = arith.constant 0 : index
    %19 = vector.load %arg4[%c0_5, %c0_6] : memref<128x128xf32, #tpu.memory_space<vmem>>, vector<128x128xf32>
    %c0_7 = arith.constant 0 : index
    %c0_8 = arith.constant 0 : index
    %20 = vector.load %arg5[%c0_7, %c0_8] : memref<128x384xf32, #tpu.memory_space<vmem>>, vector<128x384xf32>
    %c0_9 = arith.constant 0 : index
    %c0_10 = arith.constant 0 : index
    %21 = vector.load %arg6[%c0_9, %c0_10] : memref<128x384xf32, #tpu.memory_space<vmem>>, vector<128x384xf32>
    %c0_11 = arith.constant 0 : index
    %c0_12 = arith.constant 0 : index
    %22 = vector.load %arg7[%c0_11, %c0_12] : memref<128x256xf32, #tpu.memory_space<vmem>>, vector<128x256xf32>
    %c0_13 = arith.constant 0 : index
    %c0_14 = arith.constant 0 : index
    %23 = vector.load %arg8[%c0_13, %c0_14] : memref<256x128xf32, #tpu.memory_space<vmem>>, vector<256x128xf32>
    %24 = tpu.iota {dimensions = array<i32: 1>} : vector<1x8x1xi32>
    %c3_i32 = arith.constant 3 : i32
    %25 = vector.broadcast %c3_i32 : i32 to vector<1x8x1xi32>
    %26 = arith.cmpi slt, %24, %25 : vector<1x8x1xi32>
    %cst = arith.constant 0.000000e+00 : f32
    %cst_15 = arith.constant -1.000000e+30 : f32
    %27 = vector.broadcast %cst : f32 to vector<1x8x1xf32>
    %28 = vector.broadcast %cst_15 : f32 to vector<1x8x1xf32>
    %29 = arith.select %26, %27, %28 : vector<1x8x1xi1>, vector<1x8x1xf32>
    %c0_16 = arith.constant 0 : index
    %c0_17 = arith.constant 0 : index
    %c0_18 = arith.constant 0 : index
    %30 = vector.load %arg1[%c0_16, %c0_17, %c0_18] : memref<4x16x128xf32, #tpu.memory_space<vmem>>, vector<4x16x128xf32>
    %31 = vector.shape_cast %30 : vector<4x16x128xf32> to vector<64x128xf32>
    %c0_19 = arith.constant 0 : index
    %c0_20 = arith.constant 0 : index
    %c0_21 = arith.constant 0 : index
    %32 = vector.load %arg2[%c0_19, %c0_20, %c0_21] : memref<4x8x128xf32, #tpu.memory_space<vmem>>, vector<4x8x128xf32>
    %33 = vector.shape_cast %32 : vector<4x8x128xf32> to vector<32x128xf32>
    %34 = vector.broadcast %2 : vector<1x128xf32> to vector<32x128xf32>
    %35 = arith.mulf %34, %33 : vector<32x128xf32>
    %36 = vector.broadcast %1 : vector<1x128xf32> to vector<32x128xf32>
    %37 = arith.addf %36, %35 : vector<32x128xf32>
    %cst_22 = arith.constant dense<0.000000e+00> : vector<64xf32>
    %38 = vector.multi_reduction <add>, %31, %cst_22 [1] : vector<64x128xf32> to vector<64xf32>
    %39 = vector.shape_cast %38 : vector<64xf32> to vector<64x1xf32>
    %cst_23 = arith.constant 1.280000e+02 : f32
    %40 = vector.broadcast %cst_23 : f32 to vector<64x1xf32>
    %41 = arith.divf %39, %40 : vector<64x1xf32>
    %42 = vector.broadcast %41 : vector<64x1xf32> to vector<64x128xf32>
    %43 = arith.subf %31, %42 : vector<64x128xf32>
    %44 = arith.mulf %43, %43 : vector<64x128xf32>
    %cst_24 = arith.constant dense<0.000000e+00> : vector<64xf32>
    %45 = vector.multi_reduction <add>, %44, %cst_24 [1] : vector<64x128xf32> to vector<64xf32>
    %46 = vector.shape_cast %45 : vector<64xf32> to vector<64x1xf32>
    %cst_25 = arith.constant 1.280000e+02 : f32
    %47 = vector.broadcast %cst_25 : f32 to vector<64x1xf32>
    %48 = arith.divf %46, %47 : vector<64x1xf32>
    %49 = vector.broadcast %41 : vector<64x1xf32> to vector<64x128xf32>
    %50 = arith.subf %31, %49 : vector<64x128xf32>
    %cst_26 = arith.constant 9.99999974E-6 : f32
    %51 = vector.broadcast %cst_26 : f32 to vector<64x1xf32>
    %52 = arith.addf %48, %51 : vector<64x1xf32>
    %53 = math.rsqrt %52 : vector<64x1xf32>
    %54 = vector.broadcast %53 : vector<64x1xf32> to vector<64x128xf32>
    %55 = arith.mulf %50, %54 : vector<64x128xf32>
    %56 = vector.broadcast %3 : vector<1x128xf32> to vector<64x128xf32>
    %57 = arith.mulf %55, %56 : vector<64x128xf32>
    %58 = vector.broadcast %4 : vector<1x128xf32> to vector<64x128xf32>
    %59 = arith.addf %57, %58 : vector<64x128xf32>
    %cst_27 = arith.constant dense<0.000000e+00> : vector<64x256xf32>
    %60 = tpu.matmul %59, %18, %cst_27 {dimension_numbers = #tpu.dot_dimension_numbers<[1], [0], [0], [1], [0, 0, 1, 1], [], []>} : vector<64x128xf32>, vector<128x256xf32>, vector<64x256xf32> -> vector<64x256xf32>
    %61 = vector.broadcast %14 : vector<1x256xf32> to vector<64x256xf32>
    %62 = arith.addf %60, %61 : vector<64x256xf32>
    %63 = vector.extract_strided_slice %62 {offsets = [0, 0], sizes = [64, 128], strides = [1, 1]} : vector<64x256xf32> to vector<64x128xf32>
    %64 = vector.shape_cast %63 : vector<64x128xf32> to vector<4x16x128xf32>
    %65 = vector.extract_strided_slice %62 {offsets = [0, 128], sizes = [64, 128], strides = [1, 1]} : vector<64x256xf32> to vector<64x128xf32>
    %66 = vector.shape_cast %65 : vector<64x128xf32> to vector<4x16x128xf32>
    %c0_i32 = arith.constant 0 : i32
    %cst_28 = arith.constant dense<0.000000e+00> : vector<32xf32>
    %67 = vector.multi_reduction <add>, %37, %cst_28 [1] : vector<32x128xf32> to vector<32xf32>
    %68 = vector.shape_cast %67 : vector<32xf32> to vector<32x1xf32>
    %cst_29 = arith.constant 1.280000e+02 : f32
    %69 = vector.broadcast %cst_29 : f32 to vector<32x1xf32>
    %70 = arith.divf %68, %69 : vector<32x1xf32>
    %71 = vector.broadcast %70 : vector<32x1xf32> to vector<32x128xf32>
    %72 = arith.subf %37, %71 : vector<32x128xf32>
    %73 = arith.mulf %72, %72 : vector<32x128xf32>
    %cst_30 = arith.constant dense<0.000000e+00> : vector<32xf32>
    %74 = vector.multi_reduction <add>, %73, %cst_30 [1] : vector<32x128xf32> to vector<32xf32>
    %75 = vector.shape_cast %74 : vector<32xf32> to vector<32x1xf32>
    %cst_31 = arith.constant 1.280000e+02 : f32
    %76 = vector.broadcast %cst_31 : f32 to vector<32x1xf32>
    %77 = arith.divf %75, %76 : vector<32x1xf32>
    %78 = vector.broadcast %70 : vector<32x1xf32> to vector<32x128xf32>
    %79 = arith.subf %37, %78 : vector<32x128xf32>
    %cst_32 = arith.constant 9.99999974E-6 : f32
    %80 = vector.broadcast %cst_32 : f32 to vector<32x1xf32>
    %81 = arith.addf %77, %80 : vector<32x1xf32>
    %82 = math.rsqrt %81 : vector<32x1xf32>
    %83 = vector.broadcast %82 : vector<32x1xf32> to vector<32x128xf32>
    %84 = arith.mulf %79, %83 : vector<32x128xf32>
    %85 = vector.broadcast %5 : vector<1x128xf32> to vector<32x128xf32>
    %86 = arith.mulf %84, %85 : vector<32x128xf32>
    %87 = vector.broadcast %6 : vector<1x128xf32> to vector<32x128xf32>
    %88 = arith.addf %86, %87 : vector<32x128xf32>
    %cst_33 = arith.constant dense<0.000000e+00> : vector<32x128xf32>
    %89 = tpu.matmul %88, %19, %cst_33 {dimension_numbers = #tpu.dot_dimension_numbers<[1], [0], [0], [1], [0, 0, 1, 1], [], []>} : vector<32x128xf32>, vector<128x128xf32>, vector<32x128xf32> -> vector<32x128xf32>
    %90 = vector.broadcast %7 : vector<1x128xf32> to vector<32x128xf32>
    %91 = arith.addf %89, %90 : vector<32x128xf32>
    %92 = vector.shape_cast %91 : vector<32x128xf32> to vector<4x8x128xf32>
    "tpu.trace_start"() <{level = 10 : i32, message = "bid,bjd->bij"}> : () -> ()
    %cst_34 = arith.constant dense<0.000000e+00> : vector<4x8x16xf32>
    %93 = tpu.matmul %92, %64, %cst_34 {dimension_numbers = #tpu.dot_dimension_numbers<[2], [2], [1], [1], [0, 0, 0, 1, 1, 1], [0], [0]>} : vector<4x8x128xf32>, vector<4x16x128xf32>, vector<4x8x16xf32> -> vector<4x8x16xf32>
    "tpu.trace_stop"() : () -> ()
    %cst_35 = arith.constant 0.0883883461 : f32
    %94 = vector.broadcast %cst_35 : f32 to vector<4x8x16xf32>
    %95 = arith.mulf %93, %94 : vector<4x8x16xf32>
    %96 = vector.broadcast %29 : vector<1x8x1xf32> to vector<4x8x16xf32>
    %97 = arith.addf %95, %96 : vector<4x8x16xf32>
    %cst_36 = arith.constant dense<0xFF800000> : vector<4x16xf32>
    %98 = vector.multi_reduction <maximumf>, %97, %cst_36 [1] : vector<4x8x16xf32> to vector<4x16xf32>
    %99 = vector.shape_cast %98 : vector<4x16xf32> to vector<4x1x16xf32>
    %100 = vector.broadcast %99 : vector<4x1x16xf32> to vector<4x8x16xf32>
    %101 = arith.subf %97, %100 : vector<4x8x16xf32>
    %102 = math.exp %101 : vector<4x8x16xf32>
    %cst_37 = arith.constant dense<0.000000e+00> : vector<4x16xf32>
    %103 = vector.multi_reduction <add>, %102, %cst_37 [1] : vector<4x8x16xf32> to vector<4x16xf32>
    %104 = vector.shape_cast %103 : vector<4x16xf32> to vector<4x1x16xf32>
    %105 = vector.broadcast %104 : vector<4x1x16xf32> to vector<4x8x16xf32>
    %106 = arith.divf %102, %105 : vector<4x8x16xf32>
    %cst_38 = arith.constant 9.99999993E-9 : f32
    %107 = vector.broadcast %cst_38 : f32 to vector<4x8x16xf32>
    %108 = arith.addf %106, %107 : vector<4x8x16xf32>
    %cst_39 = arith.constant dense<0.000000e+00> : vector<4x8xf32>
    %109 = vector.multi_reduction <add>, %108, %cst_39 [2] : vector<4x8x16xf32> to vector<4x8xf32>
    %110 = vector.shape_cast %109 : vector<4x8xf32> to vector<4x8x1xf32>
    %111 = vector.broadcast %110 : vector<4x8x1xf32> to vector<4x8x16xf32>
    %112 = arith.divf %108, %111 : vector<4x8x16xf32>
    "tpu.trace_start"() <{level = 10 : i32, message = "bij,bjd->bid"}> : () -> ()
    %cst_40 = arith.constant dense<0.000000e+00> : vector<4x8x128xf32>
    %113 = tpu.matmul %112, %66, %cst_40 {dimension_numbers = #tpu.dot_dimension_numbers<[2], [1], [1], [2], [0, 0, 0, 1, 1, 2], [0], [0]>} : vector<4x8x16xf32>, vector<4x16x128xf32>, vector<4x8x128xf32> -> vector<4x8x128xf32>
    "tpu.trace_stop"() : () -> ()
    %114 = vector.shape_cast %113 : vector<4x8x128xf32> to vector<32x128xf32>
    %cst_41 = arith.constant dense<0.000000e+00> : vector<32x384xf32>
    %115 = tpu.matmul %114, %20, %cst_41 {dimension_numbers = #tpu.dot_dimension_numbers<[1], [0], [0], [1], [0, 0, 1, 1], [], []>} : vector<32x128xf32>, vector<128x384xf32>, vector<32x384xf32> -> vector<32x384xf32>
    %116 = vector.broadcast %15 : vector<1x384xf32> to vector<32x384xf32>
    %117 = arith.addf %115, %116 : vector<32x384xf32>
    %cst_42 = arith.constant dense<0.000000e+00> : vector<32x384xf32>
    %118 = tpu.matmul %37, %21, %cst_42 {dimension_numbers = #tpu.dot_dimension_numbers<[1], [0], [0], [1], [0, 0, 1, 1], [], []>} : vector<32x128xf32>, vector<128x384xf32>, vector<32x384xf32> -> vector<32x384xf32>
    %119 = vector.broadcast %16 : vector<1x384xf32> to vector<32x384xf32>
    %120 = arith.addf %118, %119 : vector<32x384xf32>
    %121 = vector.extract_strided_slice %117 {offsets = [0, 0], sizes = [32, 128], strides = [1, 1]} : vector<32x384xf32> to vector<32x128xf32>
    %122 = vector.extract_strided_slice %120 {offsets = [0, 0], sizes = [32, 128], strides = [1, 1]} : vector<32x384xf32> to vector<32x128xf32>
    %123 = arith.addf %121, %122 : vector<32x128xf32>
    %124 = arith.negf %123 : vector<32x128xf32>
    %125 = math.exp %124 : vector<32x128xf32>
    %cst_43 = arith.constant 1.000000e+00 : f32
    %126 = vector.broadcast %cst_43 : f32 to vector<32x128xf32>
    %127 = arith.addf %126, %125 : vector<32x128xf32>
    %128 = arith.divf %126, %127 : vector<32x128xf32>
    %129 = vector.extract_strided_slice %117 {offsets = [0, 128], sizes = [32, 128], strides = [1, 1]} : vector<32x384xf32> to vector<32x128xf32>
    %130 = vector.extract_strided_slice %120 {offsets = [0, 128], sizes = [32, 128], strides = [1, 1]} : vector<32x384xf32> to vector<32x128xf32>
    %131 = arith.addf %129, %130 : vector<32x128xf32>
    %132 = arith.negf %131 : vector<32x128xf32>
    %133 = math.exp %132 : vector<32x128xf32>
    %cst_44 = arith.constant 1.000000e+00 : f32
    %134 = vector.broadcast %cst_44 : f32 to vector<32x128xf32>
    %135 = arith.addf %134, %133 : vector<32x128xf32>
    %136 = arith.divf %134, %135 : vector<32x128xf32>
    %137 = vector.extract_strided_slice %117 {offsets = [0, 256], sizes = [32, 128], strides = [1, 1]} : vector<32x384xf32> to vector<32x128xf32>
    %138 = vector.extract_strided_slice %120 {offsets = [0, 256], sizes = [32, 128], strides = [1, 1]} : vector<32x384xf32> to vector<32x128xf32>
    %139 = arith.mulf %128, %138 : vector<32x128xf32>
    %140 = arith.addf %137, %139 : vector<32x128xf32>
    %141 = math.tanh %140 : vector<32x128xf32>
    %cst_45 = arith.constant 1.000000e+00 : f32
    %142 = vector.broadcast %cst_45 : f32 to vector<32x128xf32>
    %143 = arith.subf %142, %136 : vector<32x128xf32>
    %144 = arith.mulf %143, %141 : vector<32x128xf32>
    %145 = arith.mulf %136, %37 : vector<32x128xf32>
    %146 = arith.addf %144, %145 : vector<32x128xf32>
    %cst_46 = arith.constant dense<0.000000e+00> : vector<32xf32>
    %147 = vector.multi_reduction <add>, %146, %cst_46 [1] : vector<32x128xf32> to vector<32xf32>
    %148 = vector.shape_cast %147 : vector<32xf32> to vector<32x1xf32>
    %cst_47 = arith.constant 1.280000e+02 : f32
    %149 = vector.broadcast %cst_47 : f32 to vector<32x1xf32>
    %150 = arith.divf %148, %149 : vector<32x1xf32>
    %151 = vector.broadcast %150 : vector<32x1xf32> to vector<32x128xf32>
    %152 = arith.subf %146, %151 : vector<32x128xf32>
    %153 = arith.mulf %152, %152 : vector<32x128xf32>
    %cst_48 = arith.constant dense<0.000000e+00> : vector<32xf32>
    %154 = vector.multi_reduction <add>, %153, %cst_48 [1] : vector<32x128xf32> to vector<32xf32>
    %155 = vector.shape_cast %154 : vector<32xf32> to vector<32x1xf32>
    %cst_49 = arith.constant 1.280000e+02 : f32
    %156 = vector.broadcast %cst_49 : f32 to vector<32x1xf32>
    %157 = arith.divf %155, %156 : vector<32x1xf32>
    %158 = vector.broadcast %150 : vector<32x1xf32> to vector<32x128xf32>
    %159 = arith.subf %146, %158 : vector<32x128xf32>
    %cst_50 = arith.constant 9.99999974E-6 : f32
    %160 = vector.broadcast %cst_50 : f32 to vector<32x1xf32>
    %161 = arith.addf %157, %160 : vector<32x1xf32>
    %162 = math.rsqrt %161 : vector<32x1xf32>
    %163 = vector.broadcast %162 : vector<32x1xf32> to vector<32x128xf32>
    %164 = arith.mulf %159, %163 : vector<32x128xf32>
    %165 = vector.broadcast %8 : vector<1x128xf32> to vector<32x128xf32>
    %166 = arith.mulf %164, %165 : vector<32x128xf32>
    %167 = vector.broadcast %9 : vector<1x128xf32> to vector<32x128xf32>
    %168 = arith.addf %166, %167 : vector<32x128xf32>
    %cst_51 = arith.constant dense<0.000000e+00> : vector<32x256xf32>
    %169 = tpu.matmul %168, %22, %cst_51 {dimension_numbers = #tpu.dot_dimension_numbers<[1], [0], [0], [1], [0, 0, 1, 1], [], []>} : vector<32x128xf32>, vector<128x256xf32>, vector<32x256xf32> -> vector<32x256xf32>
    %170 = vector.broadcast %17 : vector<1x256xf32> to vector<32x256xf32>
    %171 = arith.addf %169, %170 : vector<32x256xf32>
    %cst_52 = arith.constant 0.000000e+00 : f32
    %172 = vector.broadcast %cst_52 : f32 to vector<32x256xf32>
    %173 = arith.maximumf %171, %172 : vector<32x256xf32>
    %cst_53 = arith.constant dense<0.000000e+00> : vector<32x128xf32>
    %174 = tpu.matmul %173, %23, %cst_53 {dimension_numbers = #tpu.dot_dimension_numbers<[1], [0], [0], [1], [0, 0, 1, 1], [], []>} : vector<32x256xf32>, vector<256x128xf32>, vector<32x128xf32> -> vector<32x128xf32>
    %175 = vector.broadcast %10 : vector<1x128xf32> to vector<32x128xf32>
    %176 = arith.addf %174, %175 : vector<32x128xf32>
    %177 = arith.addf %146, %176 : vector<32x128xf32>
    %c1_i32 = arith.constant 1 : i32
    %cst_54 = arith.constant dense<0.000000e+00> : vector<32xf32>
    %178 = vector.multi_reduction <add>, %177, %cst_54 [1] : vector<32x128xf32> to vector<32xf32>
    %179 = vector.shape_cast %178 : vector<32xf32> to vector<32x1xf32>
    %cst_55 = arith.constant 1.280000e+02 : f32
    %180 = vector.broadcast %cst_55 : f32 to vector<32x1xf32>
    %181 = arith.divf %179, %180 : vector<32x1xf32>
    %182 = vector.broadcast %181 : vector<32x1xf32> to vector<32x128xf32>
    %183 = arith.subf %177, %182 : vector<32x128xf32>
    %184 = arith.mulf %183, %183 : vector<32x128xf32>
    %cst_56 = arith.constant dense<0.000000e+00> : vector<32xf32>
    %185 = vector.multi_reduction <add>, %184, %cst_56 [1] : vector<32x128xf32> to vector<32xf32>
    %186 = vector.shape_cast %185 : vector<32xf32> to vector<32x1xf32>
    %cst_57 = arith.constant 1.280000e+02 : f32
    %187 = vector.broadcast %cst_57 : f32 to vector<32x1xf32>
    %188 = arith.divf %186, %187 : vector<32x1xf32>
    %189 = vector.broadcast %181 : vector<32x1xf32> to vector<32x128xf32>
    %190 = arith.subf %177, %189 : vector<32x128xf32>
    %cst_58 = arith.constant 9.99999974E-6 : f32
    %191 = vector.broadcast %cst_58 : f32 to vector<32x1xf32>
    %192 = arith.addf %188, %191 : vector<32x1xf32>
    %193 = math.rsqrt %192 : vector<32x1xf32>
    %194 = vector.broadcast %193 : vector<32x1xf32> to vector<32x128xf32>
    %195 = arith.mulf %190, %194 : vector<32x128xf32>
    %196 = vector.broadcast %5 : vector<1x128xf32> to vector<32x128xf32>
    %197 = arith.mulf %195, %196 : vector<32x128xf32>
    %198 = vector.broadcast %6 : vector<1x128xf32> to vector<32x128xf32>
    %199 = arith.addf %197, %198 : vector<32x128xf32>
    %cst_59 = arith.constant dense<0.000000e+00> : vector<32x128xf32>
    %200 = tpu.matmul %199, %19, %cst_59 {dimension_numbers = #tpu.dot_dimension_numbers<[1], [0], [0], [1], [0, 0, 1, 1], [], []>} : vector<32x128xf32>, vector<128x128xf32>, vector<32x128xf32> -> vector<32x128xf32>
    %201 = vector.broadcast %7 : vector<1x128xf32> to vector<32x128xf32>
    %202 = arith.addf %200, %201 : vector<32x128xf32>
    %203 = vector.shape_cast %202 : vector<32x128xf32> to vector<4x8x128xf32>
    "tpu.trace_start"() <{level = 10 : i32, message = "bid,bjd->bij"}> : () -> ()
    %cst_60 = arith.constant dense<0.000000e+00> : vector<4x8x16xf32>
    %204 = tpu.matmul %203, %64, %cst_60 {dimension_numbers = #tpu.dot_dimension_numbers<[2], [2], [1], [1], [0, 0, 0, 1, 1, 1], [0], [0]>} : vector<4x8x128xf32>, vector<4x16x128xf32>, vector<4x8x16xf32> -> vector<4x8x16xf32>
    "tpu.trace_stop"() : () -> ()
    %cst_61 = arith.constant 0.0883883461 : f32
    %205 = vector.broadcast %cst_61 : f32 to vector<4x8x16xf32>
    %206 = arith.mulf %204, %205 : vector<4x8x16xf32>
    %207 = vector.broadcast %29 : vector<1x8x1xf32> to vector<4x8x16xf32>
    %208 = arith.addf %206, %207 : vector<4x8x16xf32>
    %cst_62 = arith.constant dense<0xFF800000> : vector<4x16xf32>
    %209 = vector.multi_reduction <maximumf>, %208, %cst_62 [1] : vector<4x8x16xf32> to vector<4x16xf32>
    %210 = vector.shape_cast %209 : vector<4x16xf32> to vector<4x1x16xf32>
    %211 = vector.broadcast %210 : vector<4x1x16xf32> to vector<4x8x16xf32>
    %212 = arith.subf %208, %211 : vector<4x8x16xf32>
    %213 = math.exp %212 : vector<4x8x16xf32>
    %cst_63 = arith.constant dense<0.000000e+00> : vector<4x16xf32>
    %214 = vector.multi_reduction <add>, %213, %cst_63 [1] : vector<4x8x16xf32> to vector<4x16xf32>
    %215 = vector.shape_cast %214 : vector<4x16xf32> to vector<4x1x16xf32>
    %216 = vector.broadcast %215 : vector<4x1x16xf32> to vector<4x8x16xf32>
    %217 = arith.divf %213, %216 : vector<4x8x16xf32>
    %cst_64 = arith.constant 9.99999993E-9 : f32
    %218 = vector.broadcast %cst_64 : f32 to vector<4x8x16xf32>
    %219 = arith.addf %217, %218 : vector<4x8x16xf32>
    %cst_65 = arith.constant dense<0.000000e+00> : vector<4x8xf32>
    %220 = vector.multi_reduction <add>, %219, %cst_65 [2] : vector<4x8x16xf32> to vector<4x8xf32>
    %221 = vector.shape_cast %220 : vector<4x8xf32> to vector<4x8x1xf32>
    %222 = vector.broadcast %221 : vector<4x8x1xf32> to vector<4x8x16xf32>
    %223 = arith.divf %219, %222 : vector<4x8x16xf32>
    "tpu.trace_start"() <{level = 10 : i32, message = "bij,bjd->bid"}> : () -> ()
    %cst_66 = arith.constant dense<0.000000e+00> : vector<4x8x128xf32>
    %224 = tpu.matmul %223, %66, %cst_66 {dimension_numbers = #tpu.dot_dimension_numbers<[2], [1], [1], [2], [0, 0, 0, 1, 1, 2], [0], [0]>} : vector<4x8x16xf32>, vector<4x16x128xf32>, vector<4x8x128xf32> -> vector<4x8x128xf32>
    "tpu.trace_stop"() : () -> ()
    %225 = vector.shape_cast %224 : vector<4x8x128xf32> to vector<32x128xf32>
    %cst_67 = arith.constant dense<0.000000e+00> : vector<32x384xf32>
    %226 = tpu.matmul %225, %20, %cst_67 {dimension_numbers = #tpu.dot_dimension_numbers<[1], [0], [0], [1], [0, 0, 1, 1], [], []>} : vector<32x128xf32>, vector<128x384xf32>, vector<32x384xf32> -> vector<32x384xf32>
    %227 = vector.broadcast %15 : vector<1x384xf32> to vector<32x384xf32>
    %228 = arith.addf %226, %227 : vector<32x384xf32>
    %cst_68 = arith.constant dense<0.000000e+00> : vector<32x384xf32>
    %229 = tpu.matmul %177, %21, %cst_68 {dimension_numbers = #tpu.dot_dimension_numbers<[1], [0], [0], [1], [0, 0, 1, 1], [], []>} : vector<32x128xf32>, vector<128x384xf32>, vector<32x384xf32> -> vector<32x384xf32>
    %230 = vector.broadcast %16 : vector<1x384xf32> to vector<32x384xf32>
    %231 = arith.addf %229, %230 : vector<32x384xf32>
    %232 = vector.extract_strided_slice %228 {offsets = [0, 0], sizes = [32, 128], strides = [1, 1]} : vector<32x384xf32> to vector<32x128xf32>
    %233 = vector.extract_strided_slice %231 {offsets = [0, 0], sizes = [32, 128], strides = [1, 1]} : vector<32x384xf32> to vector<32x128xf32>
    %234 = arith.addf %232, %233 : vector<32x128xf32>
    %235 = arith.negf %234 : vector<32x128xf32>
    %236 = math.exp %235 : vector<32x128xf32>
    %cst_69 = arith.constant 1.000000e+00 : f32
    %237 = vector.broadcast %cst_69 : f32 to vector<32x128xf32>
    %238 = arith.addf %237, %236 : vector<32x128xf32>
    %239 = arith.divf %237, %238 : vector<32x128xf32>
    %240 = vector.extract_strided_slice %228 {offsets = [0, 128], sizes = [32, 128], strides = [1, 1]} : vector<32x384xf32> to vector<32x128xf32>
    %241 = vector.extract_strided_slice %231 {offsets = [0, 128], sizes = [32, 128], strides = [1, 1]} : vector<32x384xf32> to vector<32x128xf32>
    %242 = arith.addf %240, %241 : vector<32x128xf32>
    %243 = arith.negf %242 : vector<32x128xf32>
    %244 = math.exp %243 : vector<32x128xf32>
    %cst_70 = arith.constant 1.000000e+00 : f32
    %245 = vector.broadcast %cst_70 : f32 to vector<32x128xf32>
    %246 = arith.addf %245, %244 : vector<32x128xf32>
    %247 = arith.divf %245, %246 : vector<32x128xf32>
    %248 = vector.extract_strided_slice %228 {offsets = [0, 256], sizes = [32, 128], strides = [1, 1]} : vector<32x384xf32> to vector<32x128xf32>
    %249 = vector.extract_strided_slice %231 {offsets = [0, 256], sizes = [32, 128], strides = [1, 1]} : vector<32x384xf32> to vector<32x128xf32>
    %250 = arith.mulf %239, %249 : vector<32x128xf32>
    %251 = arith.addf %248, %250 : vector<32x128xf32>
    %252 = math.tanh %251 : vector<32x128xf32>
    %cst_71 = arith.constant 1.000000e+00 : f32
    %253 = vector.broadcast %cst_71 : f32 to vector<32x128xf32>
    %254 = arith.subf %253, %247 : vector<32x128xf32>
    %255 = arith.mulf %254, %252 : vector<32x128xf32>
    %256 = arith.mulf %247, %177 : vector<32x128xf32>
    %257 = arith.addf %255, %256 : vector<32x128xf32>
    %cst_72 = arith.constant dense<0.000000e+00> : vector<32xf32>
    %258 = vector.multi_reduction <add>, %257, %cst_72 [1] : vector<32x128xf32> to vector<32xf32>
    %259 = vector.shape_cast %258 : vector<32xf32> to vector<32x1xf32>
    %cst_73 = arith.constant 1.280000e+02 : f32
    %260 = vector.broadcast %cst_73 : f32 to vector<32x1xf32>
    %261 = arith.divf %259, %260 : vector<32x1xf32>
    %262 = vector.broadcast %261 : vector<32x1xf32> to vector<32x128xf32>
    %263 = arith.subf %257, %262 : vector<32x128xf32>
    %264 = arith.mulf %263, %263 : vector<32x128xf32>
    %cst_74 = arith.constant dense<0.000000e+00> : vector<32xf32>
    %265 = vector.multi_reduction <add>, %264, %cst_74 [1] : vector<32x128xf32> to vector<32xf32>
    %266 = vector.shape_cast %265 : vector<32xf32> to vector<32x1xf32>
    %cst_75 = arith.constant 1.280000e+02 : f32
    %267 = vector.broadcast %cst_75 : f32 to vector<32x1xf32>
    %268 = arith.divf %266, %267 : vector<32x1xf32>
    %269 = vector.broadcast %261 : vector<32x1xf32> to vector<32x128xf32>
    %270 = arith.subf %257, %269 : vector<32x128xf32>
    %cst_76 = arith.constant 9.99999974E-6 : f32
    %271 = vector.broadcast %cst_76 : f32 to vector<32x1xf32>
    %272 = arith.addf %268, %271 : vector<32x1xf32>
    %273 = math.rsqrt %272 : vector<32x1xf32>
    %274 = vector.broadcast %273 : vector<32x1xf32> to vector<32x128xf32>
    %275 = arith.mulf %270, %274 : vector<32x128xf32>
    %276 = vector.broadcast %8 : vector<1x128xf32> to vector<32x128xf32>
    %277 = arith.mulf %275, %276 : vector<32x128xf32>
    %278 = vector.broadcast %9 : vector<1x128xf32> to vector<32x128xf32>
    %279 = arith.addf %277, %278 : vector<32x128xf32>
    %cst_77 = arith.constant dense<0.000000e+00> : vector<32x256xf32>
    %280 = tpu.matmul %279, %22, %cst_77 {dimension_numbers = #tpu.dot_dimension_numbers<[1], [0], [0], [1], [0, 0, 1, 1], [], []>} : vector<32x128xf32>, vector<128x256xf32>, vector<32x256xf32> -> vector<32x256xf32>
    %281 = vector.broadcast %17 : vector<1x256xf32> to vector<32x256xf32>
    %282 = arith.addf %280, %281 : vector<32x256xf32>
    %cst_78 = arith.constant 0.000000e+00 : f32
    %283 = vector.broadcast %cst_78 : f32 to vector<32x256xf32>
    %284 = arith.maximumf %282, %283 : vector<32x256xf32>
    %cst_79 = arith.constant dense<0.000000e+00> : vector<32x128xf32>
    %285 = tpu.matmul %284, %23, %cst_79 {dimension_numbers = #tpu.dot_dimension_numbers<[1], [0], [0], [1], [0, 0, 1, 1], [], []>} : vector<32x256xf32>, vector<256x128xf32>, vector<32x128xf32> -> vector<32x128xf32>
    %286 = vector.broadcast %10 : vector<1x128xf32> to vector<32x128xf32>
    %287 = arith.addf %285, %286 : vector<32x128xf32>
    %288 = arith.addf %257, %287 : vector<32x128xf32>
    %c2_i32 = arith.constant 2 : i32
    %cst_80 = arith.constant dense<0.000000e+00> : vector<32xf32>
    %289 = vector.multi_reduction <add>, %288, %cst_80 [1] : vector<32x128xf32> to vector<32xf32>
    %290 = vector.shape_cast %289 : vector<32xf32> to vector<32x1xf32>
    %cst_81 = arith.constant 1.280000e+02 : f32
    %291 = vector.broadcast %cst_81 : f32 to vector<32x1xf32>
    %292 = arith.divf %290, %291 : vector<32x1xf32>
    %293 = vector.broadcast %292 : vector<32x1xf32> to vector<32x128xf32>
    %294 = arith.subf %288, %293 : vector<32x128xf32>
    %295 = arith.mulf %294, %294 : vector<32x128xf32>
    %cst_82 = arith.constant dense<0.000000e+00> : vector<32xf32>
    %296 = vector.multi_reduction <add>, %295, %cst_82 [1] : vector<32x128xf32> to vector<32xf32>
    %297 = vector.shape_cast %296 : vector<32xf32> to vector<32x1xf32>
    %cst_83 = arith.constant 1.280000e+02 : f32
    %298 = vector.broadcast %cst_83 : f32 to vector<32x1xf32>
    %299 = arith.divf %297, %298 : vector<32x1xf32>
    %300 = vector.broadcast %292 : vector<32x1xf32> to vector<32x128xf32>
    %301 = arith.subf %288, %300 : vector<32x128xf32>
    %cst_84 = arith.constant 9.99999974E-6 : f32
    %302 = vector.broadcast %cst_84 : f32 to vector<32x1xf32>
    %303 = arith.addf %299, %302 : vector<32x1xf32>
    %304 = math.rsqrt %303 : vector<32x1xf32>
    %305 = vector.broadcast %304 : vector<32x1xf32> to vector<32x128xf32>
    %306 = arith.mulf %301, %305 : vector<32x128xf32>
    %307 = vector.broadcast %5 : vector<1x128xf32> to vector<32x128xf32>
    %308 = arith.mulf %306, %307 : vector<32x128xf32>
    %309 = vector.broadcast %6 : vector<1x128xf32> to vector<32x128xf32>
    %310 = arith.addf %308, %309 : vector<32x128xf32>
    %cst_85 = arith.constant dense<0.000000e+00> : vector<32x128xf32>
    %311 = tpu.matmul %310, %19, %cst_85 {dimension_numbers = #tpu.dot_dimension_numbers<[1], [0], [0], [1], [0, 0, 1, 1], [], []>} : vector<32x128xf32>, vector<128x128xf32>, vector<32x128xf32> -> vector<32x128xf32>
    %312 = vector.broadcast %7 : vector<1x128xf32> to vector<32x128xf32>
    %313 = arith.addf %311, %312 : vector<32x128xf32>
    %314 = vector.shape_cast %313 : vector<32x128xf32> to vector<4x8x128xf32>
    "tpu.trace_start"() <{level = 10 : i32, message = "bid,bjd->bij"}> : () -> ()
    %cst_86 = arith.constant dense<0.000000e+00> : vector<4x8x16xf32>
    %315 = tpu.matmul %314, %64, %cst_86 {dimension_numbers = #tpu.dot_dimension_numbers<[2], [2], [1], [1], [0, 0, 0, 1, 1, 1], [0], [0]>} : vector<4x8x128xf32>, vector<4x16x128xf32>, vector<4x8x16xf32> -> vector<4x8x16xf32>
    "tpu.trace_stop"() : () -> ()
    %cst_87 = arith.constant 0.0883883461 : f32
    %316 = vector.broadcast %cst_87 : f32 to vector<4x8x16xf32>
    %317 = arith.mulf %315, %316 : vector<4x8x16xf32>
    %318 = vector.broadcast %29 : vector<1x8x1xf32> to vector<4x8x16xf32>
    %319 = arith.addf %317, %318 : vector<4x8x16xf32>
    %cst_88 = arith.constant dense<0xFF800000> : vector<4x16xf32>
    %320 = vector.multi_reduction <maximumf>, %319, %cst_88 [1] : vector<4x8x16xf32> to vector<4x16xf32>
    %321 = vector.shape_cast %320 : vector<4x16xf32> to vector<4x1x16xf32>
    %322 = vector.broadcast %321 : vector<4x1x16xf32> to vector<4x8x16xf32>
    %323 = arith.subf %319, %322 : vector<4x8x16xf32>
    %324 = math.exp %323 : vector<4x8x16xf32>
    %cst_89 = arith.constant dense<0.000000e+00> : vector<4x16xf32>
    %325 = vector.multi_reduction <add>, %324, %cst_89 [1] : vector<4x8x16xf32> to vector<4x16xf32>
    %326 = vector.shape_cast %325 : vector<4x16xf32> to vector<4x1x16xf32>
    %327 = vector.broadcast %326 : vector<4x1x16xf32> to vector<4x8x16xf32>
    %328 = arith.divf %324, %327 : vector<4x8x16xf32>
    %cst_90 = arith.constant 9.99999993E-9 : f32
    %329 = vector.broadcast %cst_90 : f32 to vector<4x8x16xf32>
    %330 = arith.addf %328, %329 : vector<4x8x16xf32>
    %cst_91 = arith.constant dense<0.000000e+00> : vector<4x8xf32>
    %331 = vector.multi_reduction <add>, %330, %cst_91 [2] : vector<4x8x16xf32> to vector<4x8xf32>
    %332 = vector.shape_cast %331 : vector<4x8xf32> to vector<4x8x1xf32>
    %333 = vector.broadcast %332 : vector<4x8x1xf32> to vector<4x8x16xf32>
    %334 = arith.divf %330, %333 : vector<4x8x16xf32>
    "tpu.trace_start"() <{level = 10 : i32, message = "bij,bjd->bid"}> : () -> ()
    %cst_92 = arith.constant dense<0.000000e+00> : vector<4x8x128xf32>
    %335 = tpu.matmul %334, %66, %cst_92 {dimension_numbers = #tpu.dot_dimension_numbers<[2], [1], [1], [2], [0, 0, 0, 1, 1, 2], [0], [0]>} : vector<4x8x16xf32>, vector<4x16x128xf32>, vector<4x8x128xf32> -> vector<4x8x128xf32>
    "tpu.trace_stop"() : () -> ()
    %336 = vector.shape_cast %335 : vector<4x8x128xf32> to vector<32x128xf32>
    %cst_93 = arith.constant dense<0.000000e+00> : vector<32x384xf32>
    %337 = tpu.matmul %336, %20, %cst_93 {dimension_numbers = #tpu.dot_dimension_numbers<[1], [0], [0], [1], [0, 0, 1, 1], [], []>} : vector<32x128xf32>, vector<128x384xf32>, vector<32x384xf32> -> vector<32x384xf32>
    %338 = vector.broadcast %15 : vector<1x384xf32> to vector<32x384xf32>
    %339 = arith.addf %337, %338 : vector<32x384xf32>
    %cst_94 = arith.constant dense<0.000000e+00> : vector<32x384xf32>
    %340 = tpu.matmul %288, %21, %cst_94 {dimension_numbers = #tpu.dot_dimension_numbers<[1], [0], [0], [1], [0, 0, 1, 1], [], []>} : vector<32x128xf32>, vector<128x384xf32>, vector<32x384xf32> -> vector<32x384xf32>
    %341 = vector.broadcast %16 : vector<1x384xf32> to vector<32x384xf32>
    %342 = arith.addf %340, %341 : vector<32x384xf32>
    %343 = vector.extract_strided_slice %339 {offsets = [0, 0], sizes = [32, 128], strides = [1, 1]} : vector<32x384xf32> to vector<32x128xf32>
    %344 = vector.extract_strided_slice %342 {offsets = [0, 0], sizes = [32, 128], strides = [1, 1]} : vector<32x384xf32> to vector<32x128xf32>
    %345 = arith.addf %343, %344 : vector<32x128xf32>
    %346 = arith.negf %345 : vector<32x128xf32>
    %347 = math.exp %346 : vector<32x128xf32>
    %cst_95 = arith.constant 1.000000e+00 : f32
    %348 = vector.broadcast %cst_95 : f32 to vector<32x128xf32>
    %349 = arith.addf %348, %347 : vector<32x128xf32>
    %350 = arith.divf %348, %349 : vector<32x128xf32>
    %351 = vector.extract_strided_slice %339 {offsets = [0, 128], sizes = [32, 128], strides = [1, 1]} : vector<32x384xf32> to vector<32x128xf32>
    %352 = vector.extract_strided_slice %342 {offsets = [0, 128], sizes = [32, 128], strides = [1, 1]} : vector<32x384xf32> to vector<32x128xf32>
    %353 = arith.addf %351, %352 : vector<32x128xf32>
    %354 = arith.negf %353 : vector<32x128xf32>
    %355 = math.exp %354 : vector<32x128xf32>
    %cst_96 = arith.constant 1.000000e+00 : f32
    %356 = vector.broadcast %cst_96 : f32 to vector<32x128xf32>
    %357 = arith.addf %356, %355 : vector<32x128xf32>
    %358 = arith.divf %356, %357 : vector<32x128xf32>
    %359 = vector.extract_strided_slice %339 {offsets = [0, 256], sizes = [32, 128], strides = [1, 1]} : vector<32x384xf32> to vector<32x128xf32>
    %360 = vector.extract_strided_slice %342 {offsets = [0, 256], sizes = [32, 128], strides = [1, 1]} : vector<32x384xf32> to vector<32x128xf32>
    %361 = arith.mulf %350, %360 : vector<32x128xf32>
    %362 = arith.addf %359, %361 : vector<32x128xf32>
    %363 = math.tanh %362 : vector<32x128xf32>
    %cst_97 = arith.constant 1.000000e+00 : f32
    %364 = vector.broadcast %cst_97 : f32 to vector<32x128xf32>
    %365 = arith.subf %364, %358 : vector<32x128xf32>
    %366 = arith.mulf %365, %363 : vector<32x128xf32>
    %367 = arith.mulf %358, %288 : vector<32x128xf32>
    %368 = arith.addf %366, %367 : vector<32x128xf32>
    %cst_98 = arith.constant dense<0.000000e+00> : vector<32xf32>
    %369 = vector.multi_reduction <add>, %368, %cst_98 [1] : vector<32x128xf32> to vector<32xf32>
    %370 = vector.shape_cast %369 : vector<32xf32> to vector<32x1xf32>
    %cst_99 = arith.constant 1.280000e+02 : f32
    %371 = vector.broadcast %cst_99 : f32 to vector<32x1xf32>
    %372 = arith.divf %370, %371 : vector<32x1xf32>
    %373 = vector.broadcast %372 : vector<32x1xf32> to vector<32x128xf32>
    %374 = arith.subf %368, %373 : vector<32x128xf32>
    %375 = arith.mulf %374, %374 : vector<32x128xf32>
    %cst_100 = arith.constant dense<0.000000e+00> : vector<32xf32>
    %376 = vector.multi_reduction <add>, %375, %cst_100 [1] : vector<32x128xf32> to vector<32xf32>
    %377 = vector.shape_cast %376 : vector<32xf32> to vector<32x1xf32>
    %cst_101 = arith.constant 1.280000e+02 : f32
    %378 = vector.broadcast %cst_101 : f32 to vector<32x1xf32>
    %379 = arith.divf %377, %378 : vector<32x1xf32>
    %380 = vector.broadcast %372 : vector<32x1xf32> to vector<32x128xf32>
    %381 = arith.subf %368, %380 : vector<32x128xf32>
    %cst_102 = arith.constant 9.99999974E-6 : f32
    %382 = vector.broadcast %cst_102 : f32 to vector<32x1xf32>
    %383 = arith.addf %379, %382 : vector<32x1xf32>
    %384 = math.rsqrt %383 : vector<32x1xf32>
    %385 = vector.broadcast %384 : vector<32x1xf32> to vector<32x128xf32>
    %386 = arith.mulf %381, %385 : vector<32x128xf32>
    %387 = vector.broadcast %8 : vector<1x128xf32> to vector<32x128xf32>
    %388 = arith.mulf %386, %387 : vector<32x128xf32>
    %389 = vector.broadcast %9 : vector<1x128xf32> to vector<32x128xf32>
    %390 = arith.addf %388, %389 : vector<32x128xf32>
    %cst_103 = arith.constant dense<0.000000e+00> : vector<32x256xf32>
    %391 = tpu.matmul %390, %22, %cst_103 {dimension_numbers = #tpu.dot_dimension_numbers<[1], [0], [0], [1], [0, 0, 1, 1], [], []>} : vector<32x128xf32>, vector<128x256xf32>, vector<32x256xf32> -> vector<32x256xf32>
    %392 = vector.broadcast %17 : vector<1x256xf32> to vector<32x256xf32>
    %393 = arith.addf %391, %392 : vector<32x256xf32>
    %cst_104 = arith.constant 0.000000e+00 : f32
    %394 = vector.broadcast %cst_104 : f32 to vector<32x256xf32>
    %395 = arith.maximumf %393, %394 : vector<32x256xf32>
    %cst_105 = arith.constant dense<0.000000e+00> : vector<32x128xf32>
    %396 = tpu.matmul %395, %23, %cst_105 {dimension_numbers = #tpu.dot_dimension_numbers<[1], [0], [0], [1], [0, 0, 1, 1], [], []>} : vector<32x256xf32>, vector<256x128xf32>, vector<32x128xf32> -> vector<32x128xf32>
    %397 = vector.broadcast %10 : vector<1x128xf32> to vector<32x128xf32>
    %398 = arith.addf %396, %397 : vector<32x128xf32>
    %399 = arith.addf %368, %398 : vector<32x128xf32>
    %c3_i32_106 = arith.constant 3 : i32
    %cst_107 = arith.constant dense<0.000000e+00> : vector<32xf32>
    %400 = vector.multi_reduction <add>, %399, %cst_107 [1] : vector<32x128xf32> to vector<32xf32>
    %401 = vector.shape_cast %400 : vector<32xf32> to vector<32x1xf32>
    %cst_108 = arith.constant 1.280000e+02 : f32
    %402 = vector.broadcast %cst_108 : f32 to vector<32x1xf32>
    %403 = arith.divf %401, %402 : vector<32x1xf32>
    %404 = vector.broadcast %403 : vector<32x1xf32> to vector<32x128xf32>
    %405 = arith.subf %399, %404 : vector<32x128xf32>
    %406 = arith.mulf %405, %405 : vector<32x128xf32>
    %cst_109 = arith.constant dense<0.000000e+00> : vector<32xf32>
    %407 = vector.multi_reduction <add>, %406, %cst_109 [1] : vector<32x128xf32> to vector<32xf32>
    %408 = vector.shape_cast %407 : vector<32xf32> to vector<32x1xf32>
    %cst_110 = arith.constant 1.280000e+02 : f32
    %409 = vector.broadcast %cst_110 : f32 to vector<32x1xf32>
    %410 = arith.divf %408, %409 : vector<32x1xf32>
    %411 = vector.broadcast %403 : vector<32x1xf32> to vector<32x128xf32>
    %412 = arith.subf %399, %411 : vector<32x128xf32>
    %cst_111 = arith.constant 9.99999974E-6 : f32
    %413 = vector.broadcast %cst_111 : f32 to vector<32x1xf32>
    %414 = arith.addf %410, %413 : vector<32x1xf32>
    %415 = math.rsqrt %414 : vector<32x1xf32>
    %416 = vector.broadcast %415 : vector<32x1xf32> to vector<32x128xf32>
    %417 = arith.mulf %412, %416 : vector<32x128xf32>
    %418 = vector.broadcast %5 : vector<1x128xf32> to vector<32x128xf32>
    %419 = arith.mulf %417, %418 : vector<32x128xf32>
    %420 = vector.broadcast %6 : vector<1x128xf32> to vector<32x128xf32>
    %421 = arith.addf %419, %420 : vector<32x128xf32>
    %cst_112 = arith.constant dense<0.000000e+00> : vector<32x128xf32>
    %422 = tpu.matmul %421, %19, %cst_112 {dimension_numbers = #tpu.dot_dimension_numbers<[1], [0], [0], [1], [0, 0, 1, 1], [], []>} : vector<32x128xf32>, vector<128x128xf32>, vector<32x128xf32> -> vector<32x128xf32>
    %423 = vector.broadcast %7 : vector<1x128xf32> to vector<32x128xf32>
    %424 = arith.addf %422, %423 : vector<32x128xf32>
    %425 = vector.shape_cast %424 : vector<32x128xf32> to vector<4x8x128xf32>
    "tpu.trace_start"() <{level = 10 : i32, message = "bid,bjd->bij"}> : () -> ()
    %cst_113 = arith.constant dense<0.000000e+00> : vector<4x8x16xf32>
    %426 = tpu.matmul %425, %64, %cst_113 {dimension_numbers = #tpu.dot_dimension_numbers<[2], [2], [1], [1], [0, 0, 0, 1, 1, 1], [0], [0]>} : vector<4x8x128xf32>, vector<4x16x128xf32>, vector<4x8x16xf32> -> vector<4x8x16xf32>
    "tpu.trace_stop"() : () -> ()
    %cst_114 = arith.constant 0.0883883461 : f32
    %427 = vector.broadcast %cst_114 : f32 to vector<4x8x16xf32>
    %428 = arith.mulf %426, %427 : vector<4x8x16xf32>
    %429 = vector.broadcast %29 : vector<1x8x1xf32> to vector<4x8x16xf32>
    %430 = arith.addf %428, %429 : vector<4x8x16xf32>
    %cst_115 = arith.constant dense<0xFF800000> : vector<4x16xf32>
    %431 = vector.multi_reduction <maximumf>, %430, %cst_115 [1] : vector<4x8x16xf32> to vector<4x16xf32>
    %432 = vector.shape_cast %431 : vector<4x16xf32> to vector<4x1x16xf32>
    %433 = vector.broadcast %432 : vector<4x1x16xf32> to vector<4x8x16xf32>
    %434 = arith.subf %430, %433 : vector<4x8x16xf32>
    %435 = math.exp %434 : vector<4x8x16xf32>
    %cst_116 = arith.constant dense<0.000000e+00> : vector<4x16xf32>
    %436 = vector.multi_reduction <add>, %435, %cst_116 [1] : vector<4x8x16xf32> to vector<4x16xf32>
    %437 = vector.shape_cast %436 : vector<4x16xf32> to vector<4x1x16xf32>
    %438 = vector.broadcast %437 : vector<4x1x16xf32> to vector<4x8x16xf32>
    %439 = arith.divf %435, %438 : vector<4x8x16xf32>
    %cst_117 = arith.constant 9.99999993E-9 : f32
    %440 = vector.broadcast %cst_117 : f32 to vector<4x8x16xf32>
    %441 = arith.addf %439, %440 : vector<4x8x16xf32>
    %cst_118 = arith.constant dense<0.000000e+00> : vector<4x8xf32>
    %442 = vector.multi_reduction <add>, %441, %cst_118 [2] : vector<4x8x16xf32> to vector<4x8xf32>
    %443 = vector.shape_cast %442 : vector<4x8xf32> to vector<4x8x1xf32>
    %444 = vector.broadcast %443 : vector<4x8x1xf32> to vector<4x8x16xf32>
    %445 = arith.divf %441, %444 : vector<4x8x16xf32>
    "tpu.trace_start"() <{level = 10 : i32, message = "bij,bjd->bid"}> : () -> ()
    %cst_119 = arith.constant dense<0.000000e+00> : vector<4x8x128xf32>
    %446 = tpu.matmul %445, %66, %cst_119 {dimension_numbers = #tpu.dot_dimension_numbers<[2], [1], [1], [2], [0, 0, 0, 1, 1, 2], [0], [0]>} : vector<4x8x16xf32>, vector<4x16x128xf32>, vector<4x8x128xf32> -> vector<4x8x128xf32>
    "tpu.trace_stop"() : () -> ()
    %447 = vector.shape_cast %446 : vector<4x8x128xf32> to vector<32x128xf32>
    %cst_120 = arith.constant dense<0.000000e+00> : vector<32x384xf32>
    %448 = tpu.matmul %447, %20, %cst_120 {dimension_numbers = #tpu.dot_dimension_numbers<[1], [0], [0], [1], [0, 0, 1, 1], [], []>} : vector<32x128xf32>, vector<128x384xf32>, vector<32x384xf32> -> vector<32x384xf32>
    %449 = vector.broadcast %15 : vector<1x384xf32> to vector<32x384xf32>
    %450 = arith.addf %448, %449 : vector<32x384xf32>
    %cst_121 = arith.constant dense<0.000000e+00> : vector<32x384xf32>
    %451 = tpu.matmul %399, %21, %cst_121 {dimension_numbers = #tpu.dot_dimension_numbers<[1], [0], [0], [1], [0, 0, 1, 1], [], []>} : vector<32x128xf32>, vector<128x384xf32>, vector<32x384xf32> -> vector<32x384xf32>
    %452 = vector.broadcast %16 : vector<1x384xf32> to vector<32x384xf32>
    %453 = arith.addf %451, %452 : vector<32x384xf32>
    %454 = vector.extract_strided_slice %450 {offsets = [0, 0], sizes = [32, 128], strides = [1, 1]} : vector<32x384xf32> to vector<32x128xf32>
    %455 = vector.extract_strided_slice %453 {offsets = [0, 0], sizes = [32, 128], strides = [1, 1]} : vector<32x384xf32> to vector<32x128xf32>
    %456 = arith.addf %454, %455 : vector<32x128xf32>
    %457 = arith.negf %456 : vector<32x128xf32>
    %458 = math.exp %457 : vector<32x128xf32>
    %cst_122 = arith.constant 1.000000e+00 : f32
    %459 = vector.broadcast %cst_122 : f32 to vector<32x128xf32>
    %460 = arith.addf %459, %458 : vector<32x128xf32>
    %461 = arith.divf %459, %460 : vector<32x128xf32>
    %462 = vector.extract_strided_slice %450 {offsets = [0, 128], sizes = [32, 128], strides = [1, 1]} : vector<32x384xf32> to vector<32x128xf32>
    %463 = vector.extract_strided_slice %453 {offsets = [0, 128], sizes = [32, 128], strides = [1, 1]} : vector<32x384xf32> to vector<32x128xf32>
    %464 = arith.addf %462, %463 : vector<32x128xf32>
    %465 = arith.negf %464 : vector<32x128xf32>
    %466 = math.exp %465 : vector<32x128xf32>
    %cst_123 = arith.constant 1.000000e+00 : f32
    %467 = vector.broadcast %cst_123 : f32 to vector<32x128xf32>
    %468 = arith.addf %467, %466 : vector<32x128xf32>
    %469 = arith.divf %467, %468 : vector<32x128xf32>
    %470 = vector.extract_strided_slice %450 {offsets = [0, 256], sizes = [32, 128], strides = [1, 1]} : vector<32x384xf32> to vector<32x128xf32>
    %471 = vector.extract_strided_slice %453 {offsets = [0, 256], sizes = [32, 128], strides = [1, 1]} : vector<32x384xf32> to vector<32x128xf32>
    %472 = arith.mulf %461, %471 : vector<32x128xf32>
    %473 = arith.addf %470, %472 : vector<32x128xf32>
    %474 = math.tanh %473 : vector<32x128xf32>
    %cst_124 = arith.constant 1.000000e+00 : f32
    %475 = vector.broadcast %cst_124 : f32 to vector<32x128xf32>
    %476 = arith.subf %475, %469 : vector<32x128xf32>
    %477 = arith.mulf %476, %474 : vector<32x128xf32>
    %478 = arith.mulf %469, %399 : vector<32x128xf32>
    %479 = arith.addf %477, %478 : vector<32x128xf32>
    %cst_125 = arith.constant dense<0.000000e+00> : vector<32xf32>
    %480 = vector.multi_reduction <add>, %479, %cst_125 [1] : vector<32x128xf32> to vector<32xf32>
    %481 = vector.shape_cast %480 : vector<32xf32> to vector<32x1xf32>
    %cst_126 = arith.constant 1.280000e+02 : f32
    %482 = vector.broadcast %cst_126 : f32 to vector<32x1xf32>
    %483 = arith.divf %481, %482 : vector<32x1xf32>
    %484 = vector.broadcast %483 : vector<32x1xf32> to vector<32x128xf32>
    %485 = arith.subf %479, %484 : vector<32x128xf32>
    %486 = arith.mulf %485, %485 : vector<32x128xf32>
    %cst_127 = arith.constant dense<0.000000e+00> : vector<32xf32>
    %487 = vector.multi_reduction <add>, %486, %cst_127 [1] : vector<32x128xf32> to vector<32xf32>
    %488 = vector.shape_cast %487 : vector<32xf32> to vector<32x1xf32>
    %cst_128 = arith.constant 1.280000e+02 : f32
    %489 = vector.broadcast %cst_128 : f32 to vector<32x1xf32>
    %490 = arith.divf %488, %489 : vector<32x1xf32>
    %491 = vector.broadcast %483 : vector<32x1xf32> to vector<32x128xf32>
    %492 = arith.subf %479, %491 : vector<32x128xf32>
    %cst_129 = arith.constant 9.99999974E-6 : f32
    %493 = vector.broadcast %cst_129 : f32 to vector<32x1xf32>
    %494 = arith.addf %490, %493 : vector<32x1xf32>
    %495 = math.rsqrt %494 : vector<32x1xf32>
    %496 = vector.broadcast %495 : vector<32x1xf32> to vector<32x128xf32>
    %497 = arith.mulf %492, %496 : vector<32x128xf32>
    %498 = vector.broadcast %8 : vector<1x128xf32> to vector<32x128xf32>
    %499 = arith.mulf %497, %498 : vector<32x128xf32>
    %500 = vector.broadcast %9 : vector<1x128xf32> to vector<32x128xf32>
    %501 = arith.addf %499, %500 : vector<32x128xf32>
    %cst_130 = arith.constant dense<0.000000e+00> : vector<32x256xf32>
    %502 = tpu.matmul %501, %22, %cst_130 {dimension_numbers = #tpu.dot_dimension_numbers<[1], [0], [0], [1], [0, 0, 1, 1], [], []>} : vector<32x128xf32>, vector<128x256xf32>, vector<32x256xf32> -> vector<32x256xf32>
    %503 = vector.broadcast %17 : vector<1x256xf32> to vector<32x256xf32>
    %504 = arith.addf %502, %503 : vector<32x256xf32>
    %cst_131 = arith.constant 0.000000e+00 : f32
    %505 = vector.broadcast %cst_131 : f32 to vector<32x256xf32>
    %506 = arith.maximumf %504, %505 : vector<32x256xf32>
    %cst_132 = arith.constant dense<0.000000e+00> : vector<32x128xf32>
    %507 = tpu.matmul %506, %23, %cst_132 {dimension_numbers = #tpu.dot_dimension_numbers<[1], [0], [0], [1], [0, 0, 1, 1], [], []>} : vector<32x256xf32>, vector<256x128xf32>, vector<32x128xf32> -> vector<32x128xf32>
    %508 = vector.broadcast %10 : vector<1x128xf32> to vector<32x128xf32>
    %509 = arith.addf %507, %508 : vector<32x128xf32>
    %510 = arith.addf %479, %509 : vector<32x128xf32>
    %c4_i32 = arith.constant 4 : i32
    %cst_133 = arith.constant dense<0.000000e+00> : vector<32xf32>
    %511 = vector.multi_reduction <add>, %510, %cst_133 [1] : vector<32x128xf32> to vector<32xf32>
    %512 = vector.shape_cast %511 : vector<32xf32> to vector<32x1xf32>
    %cst_134 = arith.constant 1.280000e+02 : f32
    %513 = vector.broadcast %cst_134 : f32 to vector<32x1xf32>
    %514 = arith.divf %512, %513 : vector<32x1xf32>
    %515 = vector.broadcast %514 : vector<32x1xf32> to vector<32x128xf32>
    %516 = arith.subf %510, %515 : vector<32x128xf32>
    %517 = arith.mulf %516, %516 : vector<32x128xf32>
    %cst_135 = arith.constant dense<0.000000e+00> : vector<32xf32>
    %518 = vector.multi_reduction <add>, %517, %cst_135 [1] : vector<32x128xf32> to vector<32xf32>
    %519 = vector.shape_cast %518 : vector<32xf32> to vector<32x1xf32>
    %cst_136 = arith.constant 1.280000e+02 : f32
    %520 = vector.broadcast %cst_136 : f32 to vector<32x1xf32>
    %521 = arith.divf %519, %520 : vector<32x1xf32>
    %522 = vector.broadcast %514 : vector<32x1xf32> to vector<32x128xf32>
    %523 = arith.subf %510, %522 : vector<32x128xf32>
    %cst_137 = arith.constant 9.99999974E-6 : f32
    %524 = vector.broadcast %cst_137 : f32 to vector<32x1xf32>
    %525 = arith.addf %521, %524 : vector<32x1xf32>
    %526 = math.rsqrt %525 : vector<32x1xf32>
    %527 = vector.broadcast %526 : vector<32x1xf32> to vector<32x128xf32>
    %528 = arith.mulf %523, %527 : vector<32x128xf32>
    %529 = vector.broadcast %5 : vector<1x128xf32> to vector<32x128xf32>
    %530 = arith.mulf %528, %529 : vector<32x128xf32>
    %531 = vector.broadcast %6 : vector<1x128xf32> to vector<32x128xf32>
    %532 = arith.addf %530, %531 : vector<32x128xf32>
    %cst_138 = arith.constant dense<0.000000e+00> : vector<32x128xf32>
    %533 = tpu.matmul %532, %19, %cst_138 {dimension_numbers = #tpu.dot_dimension_numbers<[1], [0], [0], [1], [0, 0, 1, 1], [], []>} : vector<32x128xf32>, vector<128x128xf32>, vector<32x128xf32> -> vector<32x128xf32>
    %534 = vector.broadcast %7 : vector<1x128xf32> to vector<32x128xf32>
    %535 = arith.addf %533, %534 : vector<32x128xf32>
    %536 = vector.shape_cast %535 : vector<32x128xf32> to vector<4x8x128xf32>
    "tpu.trace_start"() <{level = 10 : i32, message = "bid,bjd->bij"}> : () -> ()
    %cst_139 = arith.constant dense<0.000000e+00> : vector<4x8x16xf32>
    %537 = tpu.matmul %536, %64, %cst_139 {dimension_numbers = #tpu.dot_dimension_numbers<[2], [2], [1], [1], [0, 0, 0, 1, 1, 1], [0], [0]>} : vector<4x8x128xf32>, vector<4x16x128xf32>, vector<4x8x16xf32> -> vector<4x8x16xf32>
    "tpu.trace_stop"() : () -> ()
    %cst_140 = arith.constant 0.0883883461 : f32
    %538 = vector.broadcast %cst_140 : f32 to vector<4x8x16xf32>
    %539 = arith.mulf %537, %538 : vector<4x8x16xf32>
    %540 = vector.broadcast %29 : vector<1x8x1xf32> to vector<4x8x16xf32>
    %541 = arith.addf %539, %540 : vector<4x8x16xf32>
    %cst_141 = arith.constant dense<0xFF800000> : vector<4x16xf32>
    %542 = vector.multi_reduction <maximumf>, %541, %cst_141 [1] : vector<4x8x16xf32> to vector<4x16xf32>
    %543 = vector.shape_cast %542 : vector<4x16xf32> to vector<4x1x16xf32>
    %544 = vector.broadcast %543 : vector<4x1x16xf32> to vector<4x8x16xf32>
    %545 = arith.subf %541, %544 : vector<4x8x16xf32>
    %546 = math.exp %545 : vector<4x8x16xf32>
    %cst_142 = arith.constant dense<0.000000e+00> : vector<4x16xf32>
    %547 = vector.multi_reduction <add>, %546, %cst_142 [1] : vector<4x8x16xf32> to vector<4x16xf32>
    %548 = vector.shape_cast %547 : vector<4x16xf32> to vector<4x1x16xf32>
    %549 = vector.broadcast %548 : vector<4x1x16xf32> to vector<4x8x16xf32>
    %550 = arith.divf %546, %549 : vector<4x8x16xf32>
    %cst_143 = arith.constant 9.99999993E-9 : f32
    %551 = vector.broadcast %cst_143 : f32 to vector<4x8x16xf32>
    %552 = arith.addf %550, %551 : vector<4x8x16xf32>
    %cst_144 = arith.constant dense<0.000000e+00> : vector<4x8xf32>
    %553 = vector.multi_reduction <add>, %552, %cst_144 [2] : vector<4x8x16xf32> to vector<4x8xf32>
    %554 = vector.shape_cast %553 : vector<4x8xf32> to vector<4x8x1xf32>
    %555 = vector.broadcast %554 : vector<4x8x1xf32> to vector<4x8x16xf32>
    %556 = arith.divf %552, %555 : vector<4x8x16xf32>
    "tpu.trace_start"() <{level = 10 : i32, message = "bij,bjd->bid"}> : () -> ()
    %cst_145 = arith.constant dense<0.000000e+00> : vector<4x8x128xf32>
    %557 = tpu.matmul %556, %66, %cst_145 {dimension_numbers = #tpu.dot_dimension_numbers<[2], [1], [1], [2], [0, 0, 0, 1, 1, 2], [0], [0]>} : vector<4x8x16xf32>, vector<4x16x128xf32>, vector<4x8x128xf32> -> vector<4x8x128xf32>
    "tpu.trace_stop"() : () -> ()
    %558 = vector.shape_cast %557 : vector<4x8x128xf32> to vector<32x128xf32>
    %cst_146 = arith.constant dense<0.000000e+00> : vector<32x384xf32>
    %559 = tpu.matmul %558, %20, %cst_146 {dimension_numbers = #tpu.dot_dimension_numbers<[1], [0], [0], [1], [0, 0, 1, 1], [], []>} : vector<32x128xf32>, vector<128x384xf32>, vector<32x384xf32> -> vector<32x384xf32>
    %560 = vector.broadcast %15 : vector<1x384xf32> to vector<32x384xf32>
    %561 = arith.addf %559, %560 : vector<32x384xf32>
    %cst_147 = arith.constant dense<0.000000e+00> : vector<32x384xf32>
    %562 = tpu.matmul %510, %21, %cst_147 {dimension_numbers = #tpu.dot_dimension_numbers<[1], [0], [0], [1], [0, 0, 1, 1], [], []>} : vector<32x128xf32>, vector<128x384xf32>, vector<32x384xf32> -> vector<32x384xf32>
    %563 = vector.broadcast %16 : vector<1x384xf32> to vector<32x384xf32>
    %564 = arith.addf %562, %563 : vector<32x384xf32>
    %565 = vector.extract_strided_slice %561 {offsets = [0, 0], sizes = [32, 128], strides = [1, 1]} : vector<32x384xf32> to vector<32x128xf32>
    %566 = vector.extract_strided_slice %564 {offsets = [0, 0], sizes = [32, 128], strides = [1, 1]} : vector<32x384xf32> to vector<32x128xf32>
    %567 = arith.addf %565, %566 : vector<32x128xf32>
    %568 = arith.negf %567 : vector<32x128xf32>
    %569 = math.exp %568 : vector<32x128xf32>
    %cst_148 = arith.constant 1.000000e+00 : f32
    %570 = vector.broadcast %cst_148 : f32 to vector<32x128xf32>
    %571 = arith.addf %570, %569 : vector<32x128xf32>
    %572 = arith.divf %570, %571 : vector<32x128xf32>
    %573 = vector.extract_strided_slice %561 {offsets = [0, 128], sizes = [32, 128], strides = [1, 1]} : vector<32x384xf32> to vector<32x128xf32>
    %574 = vector.extract_strided_slice %564 {offsets = [0, 128], sizes = [32, 128], strides = [1, 1]} : vector<32x384xf32> to vector<32x128xf32>
    %575 = arith.addf %573, %574 : vector<32x128xf32>
    %576 = arith.negf %575 : vector<32x128xf32>
    %577 = math.exp %576 : vector<32x128xf32>
    %cst_149 = arith.constant 1.000000e+00 : f32
    %578 = vector.broadcast %cst_149 : f32 to vector<32x128xf32>
    %579 = arith.addf %578, %577 : vector<32x128xf32>
    %580 = arith.divf %578, %579 : vector<32x128xf32>
    %581 = vector.extract_strided_slice %561 {offsets = [0, 256], sizes = [32, 128], strides = [1, 1]} : vector<32x384xf32> to vector<32x128xf32>
    %582 = vector.extract_strided_slice %564 {offsets = [0, 256], sizes = [32, 128], strides = [1, 1]} : vector<32x384xf32> to vector<32x128xf32>
    %583 = arith.mulf %572, %582 : vector<32x128xf32>
    %584 = arith.addf %581, %583 : vector<32x128xf32>
    %585 = math.tanh %584 : vector<32x128xf32>
    %cst_150 = arith.constant 1.000000e+00 : f32
    %586 = vector.broadcast %cst_150 : f32 to vector<32x128xf32>
    %587 = arith.subf %586, %580 : vector<32x128xf32>
    %588 = arith.mulf %587, %585 : vector<32x128xf32>
    %589 = arith.mulf %580, %510 : vector<32x128xf32>
    %590 = arith.addf %588, %589 : vector<32x128xf32>
    %cst_151 = arith.constant dense<0.000000e+00> : vector<32xf32>
    %591 = vector.multi_reduction <add>, %590, %cst_151 [1] : vector<32x128xf32> to vector<32xf32>
    %592 = vector.shape_cast %591 : vector<32xf32> to vector<32x1xf32>
    %cst_152 = arith.constant 1.280000e+02 : f32
    %593 = vector.broadcast %cst_152 : f32 to vector<32x1xf32>
    %594 = arith.divf %592, %593 : vector<32x1xf32>
    %595 = vector.broadcast %594 : vector<32x1xf32> to vector<32x128xf32>
    %596 = arith.subf %590, %595 : vector<32x128xf32>
    %597 = arith.mulf %596, %596 : vector<32x128xf32>
    %cst_153 = arith.constant dense<0.000000e+00> : vector<32xf32>
    %598 = vector.multi_reduction <add>, %597, %cst_153 [1] : vector<32x128xf32> to vector<32xf32>
    %599 = vector.shape_cast %598 : vector<32xf32> to vector<32x1xf32>
    %cst_154 = arith.constant 1.280000e+02 : f32
    %600 = vector.broadcast %cst_154 : f32 to vector<32x1xf32>
    %601 = arith.divf %599, %600 : vector<32x1xf32>
    %602 = vector.broadcast %594 : vector<32x1xf32> to vector<32x128xf32>
    %603 = arith.subf %590, %602 : vector<32x128xf32>
    %cst_155 = arith.constant 9.99999974E-6 : f32
    %604 = vector.broadcast %cst_155 : f32 to vector<32x1xf32>
    %605 = arith.addf %601, %604 : vector<32x1xf32>
    %606 = math.rsqrt %605 : vector<32x1xf32>
    %607 = vector.broadcast %606 : vector<32x1xf32> to vector<32x128xf32>
    %608 = arith.mulf %603, %607 : vector<32x128xf32>
    %609 = vector.broadcast %8 : vector<1x128xf32> to vector<32x128xf32>
    %610 = arith.mulf %608, %609 : vector<32x128xf32>
    %611 = vector.broadcast %9 : vector<1x128xf32> to vector<32x128xf32>
    %612 = arith.addf %610, %611 : vector<32x128xf32>
    %cst_156 = arith.constant dense<0.000000e+00> : vector<32x256xf32>
    %613 = tpu.matmul %612, %22, %cst_156 {dimension_numbers = #tpu.dot_dimension_numbers<[1], [0], [0], [1], [0, 0, 1, 1], [], []>} : vector<32x128xf32>, vector<128x256xf32>, vector<32x256xf32> -> vector<32x256xf32>
    %614 = vector.broadcast %17 : vector<1x256xf32> to vector<32x256xf32>
    %615 = arith.addf %613, %614 : vector<32x256xf32>
    %cst_157 = arith.constant 0.000000e+00 : f32
    %616 = vector.broadcast %cst_157 : f32 to vector<32x256xf32>
    %617 = arith.maximumf %615, %616 : vector<32x256xf32>
    %cst_158 = arith.constant dense<0.000000e+00> : vector<32x128xf32>
    %618 = tpu.matmul %617, %23, %cst_158 {dimension_numbers = #tpu.dot_dimension_numbers<[1], [0], [0], [1], [0, 0, 1, 1], [], []>} : vector<32x256xf32>, vector<256x128xf32>, vector<32x128xf32> -> vector<32x128xf32>
    %619 = vector.broadcast %10 : vector<1x128xf32> to vector<32x128xf32>
    %620 = arith.addf %618, %619 : vector<32x128xf32>
    %621 = arith.addf %590, %620 : vector<32x128xf32>
    %c5_i32 = arith.constant 5 : i32
    %cst_159 = arith.constant dense<0.000000e+00> : vector<32xf32>
    %622 = vector.multi_reduction <add>, %621, %cst_159 [1] : vector<32x128xf32> to vector<32xf32>
    %623 = vector.shape_cast %622 : vector<32xf32> to vector<32x1xf32>
    %cst_160 = arith.constant 1.280000e+02 : f32
    %624 = vector.broadcast %cst_160 : f32 to vector<32x1xf32>
    %625 = arith.divf %623, %624 : vector<32x1xf32>
    %626 = vector.broadcast %625 : vector<32x1xf32> to vector<32x128xf32>
    %627 = arith.subf %621, %626 : vector<32x128xf32>
    %628 = arith.mulf %627, %627 : vector<32x128xf32>
    %cst_161 = arith.constant dense<0.000000e+00> : vector<32xf32>
    %629 = vector.multi_reduction <add>, %628, %cst_161 [1] : vector<32x128xf32> to vector<32xf32>
    %630 = vector.shape_cast %629 : vector<32xf32> to vector<32x1xf32>
    %cst_162 = arith.constant 1.280000e+02 : f32
    %631 = vector.broadcast %cst_162 : f32 to vector<32x1xf32>
    %632 = arith.divf %630, %631 : vector<32x1xf32>
    %633 = vector.broadcast %625 : vector<32x1xf32> to vector<32x128xf32>
    %634 = arith.subf %621, %633 : vector<32x128xf32>
    %cst_163 = arith.constant 9.99999974E-6 : f32
    %635 = vector.broadcast %cst_163 : f32 to vector<32x1xf32>
    %636 = arith.addf %632, %635 : vector<32x1xf32>
    %637 = math.rsqrt %636 : vector<32x1xf32>
    %638 = vector.broadcast %637 : vector<32x1xf32> to vector<32x128xf32>
    %639 = arith.mulf %634, %638 : vector<32x128xf32>
    %640 = vector.broadcast %5 : vector<1x128xf32> to vector<32x128xf32>
    %641 = arith.mulf %639, %640 : vector<32x128xf32>
    %642 = vector.broadcast %6 : vector<1x128xf32> to vector<32x128xf32>
    %643 = arith.addf %641, %642 : vector<32x128xf32>
    %cst_164 = arith.constant dense<0.000000e+00> : vector<32x128xf32>
    %644 = tpu.matmul %643, %19, %cst_164 {dimension_numbers = #tpu.dot_dimension_numbers<[1], [0], [0], [1], [0, 0, 1, 1], [], []>} : vector<32x128xf32>, vector<128x128xf32>, vector<32x128xf32> -> vector<32x128xf32>
    %645 = vector.broadcast %7 : vector<1x128xf32> to vector<32x128xf32>
    %646 = arith.addf %644, %645 : vector<32x128xf32>
    %647 = vector.shape_cast %646 : vector<32x128xf32> to vector<4x8x128xf32>
    "tpu.trace_start"() <{level = 10 : i32, message = "bid,bjd->bij"}> : () -> ()
    %cst_165 = arith.constant dense<0.000000e+00> : vector<4x8x16xf32>
    %648 = tpu.matmul %647, %64, %cst_165 {dimension_numbers = #tpu.dot_dimension_numbers<[2], [2], [1], [1], [0, 0, 0, 1, 1, 1], [0], [0]>} : vector<4x8x128xf32>, vector<4x16x128xf32>, vector<4x8x16xf32> -> vector<4x8x16xf32>
    "tpu.trace_stop"() : () -> ()
    %cst_166 = arith.constant 0.0883883461 : f32
    %649 = vector.broadcast %cst_166 : f32 to vector<4x8x16xf32>
    %650 = arith.mulf %648, %649 : vector<4x8x16xf32>
    %651 = vector.broadcast %29 : vector<1x8x1xf32> to vector<4x8x16xf32>
    %652 = arith.addf %650, %651 : vector<4x8x16xf32>
    %cst_167 = arith.constant dense<0xFF800000> : vector<4x16xf32>
    %653 = vector.multi_reduction <maximumf>, %652, %cst_167 [1] : vector<4x8x16xf32> to vector<4x16xf32>
    %654 = vector.shape_cast %653 : vector<4x16xf32> to vector<4x1x16xf32>
    %655 = vector.broadcast %654 : vector<4x1x16xf32> to vector<4x8x16xf32>
    %656 = arith.subf %652, %655 : vector<4x8x16xf32>
    %657 = math.exp %656 : vector<4x8x16xf32>
    %cst_168 = arith.constant dense<0.000000e+00> : vector<4x16xf32>
    %658 = vector.multi_reduction <add>, %657, %cst_168 [1] : vector<4x8x16xf32> to vector<4x16xf32>
    %659 = vector.shape_cast %658 : vector<4x16xf32> to vector<4x1x16xf32>
    %660 = vector.broadcast %659 : vector<4x1x16xf32> to vector<4x8x16xf32>
    %661 = arith.divf %657, %660 : vector<4x8x16xf32>
    %cst_169 = arith.constant 9.99999993E-9 : f32
    %662 = vector.broadcast %cst_169 : f32 to vector<4x8x16xf32>
    %663 = arith.addf %661, %662 : vector<4x8x16xf32>
    %cst_170 = arith.constant dense<0.000000e+00> : vector<4x8xf32>
    %664 = vector.multi_reduction <add>, %663, %cst_170 [2] : vector<4x8x16xf32> to vector<4x8xf32>
    %665 = vector.shape_cast %664 : vector<4x8xf32> to vector<4x8x1xf32>
    %666 = vector.broadcast %665 : vector<4x8x1xf32> to vector<4x8x16xf32>
    %667 = arith.divf %663, %666 : vector<4x8x16xf32>
    "tpu.trace_start"() <{level = 10 : i32, message = "bij,bjd->bid"}> : () -> ()
    %cst_171 = arith.constant dense<0.000000e+00> : vector<4x8x128xf32>
    %668 = tpu.matmul %667, %66, %cst_171 {dimension_numbers = #tpu.dot_dimension_numbers<[2], [1], [1], [2], [0, 0, 0, 1, 1, 2], [0], [0]>} : vector<4x8x16xf32>, vector<4x16x128xf32>, vector<4x8x128xf32> -> vector<4x8x128xf32>
    "tpu.trace_stop"() : () -> ()
    %669 = vector.shape_cast %668 : vector<4x8x128xf32> to vector<32x128xf32>
    %cst_172 = arith.constant dense<0.000000e+00> : vector<32x384xf32>
    %670 = tpu.matmul %669, %20, %cst_172 {dimension_numbers = #tpu.dot_dimension_numbers<[1], [0], [0], [1], [0, 0, 1, 1], [], []>} : vector<32x128xf32>, vector<128x384xf32>, vector<32x384xf32> -> vector<32x384xf32>
    %671 = vector.broadcast %15 : vector<1x384xf32> to vector<32x384xf32>
    %672 = arith.addf %670, %671 : vector<32x384xf32>
    %cst_173 = arith.constant dense<0.000000e+00> : vector<32x384xf32>
    %673 = tpu.matmul %621, %21, %cst_173 {dimension_numbers = #tpu.dot_dimension_numbers<[1], [0], [0], [1], [0, 0, 1, 1], [], []>} : vector<32x128xf32>, vector<128x384xf32>, vector<32x384xf32> -> vector<32x384xf32>
    %674 = vector.broadcast %16 : vector<1x384xf32> to vector<32x384xf32>
    %675 = arith.addf %673, %674 : vector<32x384xf32>
    %676 = vector.extract_strided_slice %672 {offsets = [0, 0], sizes = [32, 128], strides = [1, 1]} : vector<32x384xf32> to vector<32x128xf32>
    %677 = vector.extract_strided_slice %675 {offsets = [0, 0], sizes = [32, 128], strides = [1, 1]} : vector<32x384xf32> to vector<32x128xf32>
    %678 = arith.addf %676, %677 : vector<32x128xf32>
    %679 = arith.negf %678 : vector<32x128xf32>
    %680 = math.exp %679 : vector<32x128xf32>
    %cst_174 = arith.constant 1.000000e+00 : f32
    %681 = vector.broadcast %cst_174 : f32 to vector<32x128xf32>
    %682 = arith.addf %681, %680 : vector<32x128xf32>
    %683 = arith.divf %681, %682 : vector<32x128xf32>
    %684 = vector.extract_strided_slice %672 {offsets = [0, 128], sizes = [32, 128], strides = [1, 1]} : vector<32x384xf32> to vector<32x128xf32>
    %685 = vector.extract_strided_slice %675 {offsets = [0, 128], sizes = [32, 128], strides = [1, 1]} : vector<32x384xf32> to vector<32x128xf32>
    %686 = arith.addf %684, %685 : vector<32x128xf32>
    %687 = arith.negf %686 : vector<32x128xf32>
    %688 = math.exp %687 : vector<32x128xf32>
    %cst_175 = arith.constant 1.000000e+00 : f32
    %689 = vector.broadcast %cst_175 : f32 to vector<32x128xf32>
    %690 = arith.addf %689, %688 : vector<32x128xf32>
    %691 = arith.divf %689, %690 : vector<32x128xf32>
    %692 = vector.extract_strided_slice %672 {offsets = [0, 256], sizes = [32, 128], strides = [1, 1]} : vector<32x384xf32> to vector<32x128xf32>
    %693 = vector.extract_strided_slice %675 {offsets = [0, 256], sizes = [32, 128], strides = [1, 1]} : vector<32x384xf32> to vector<32x128xf32>
    %694 = arith.mulf %683, %693 : vector<32x128xf32>
    %695 = arith.addf %692, %694 : vector<32x128xf32>
    %696 = math.tanh %695 : vector<32x128xf32>
    %cst_176 = arith.constant 1.000000e+00 : f32
    %697 = vector.broadcast %cst_176 : f32 to vector<32x128xf32>
    %698 = arith.subf %697, %691 : vector<32x128xf32>
    %699 = arith.mulf %698, %696 : vector<32x128xf32>
    %700 = arith.mulf %691, %621 : vector<32x128xf32>
    %701 = arith.addf %699, %700 : vector<32x128xf32>
    %cst_177 = arith.constant dense<0.000000e+00> : vector<32xf32>
    %702 = vector.multi_reduction <add>, %701, %cst_177 [1] : vector<32x128xf32> to vector<32xf32>
    %703 = vector.shape_cast %702 : vector<32xf32> to vector<32x1xf32>
    %cst_178 = arith.constant 1.280000e+02 : f32
    %704 = vector.broadcast %cst_178 : f32 to vector<32x1xf32>
    %705 = arith.divf %703, %704 : vector<32x1xf32>
    %706 = vector.broadcast %705 : vector<32x1xf32> to vector<32x128xf32>
    %707 = arith.subf %701, %706 : vector<32x128xf32>
    %708 = arith.mulf %707, %707 : vector<32x128xf32>
    %cst_179 = arith.constant dense<0.000000e+00> : vector<32xf32>
    %709 = vector.multi_reduction <add>, %708, %cst_179 [1] : vector<32x128xf32> to vector<32xf32>
    %710 = vector.shape_cast %709 : vector<32xf32> to vector<32x1xf32>
    %cst_180 = arith.constant 1.280000e+02 : f32
    %711 = vector.broadcast %cst_180 : f32 to vector<32x1xf32>
    %712 = arith.divf %710, %711 : vector<32x1xf32>
    %713 = vector.broadcast %705 : vector<32x1xf32> to vector<32x128xf32>
    %714 = arith.subf %701, %713 : vector<32x128xf32>
    %cst_181 = arith.constant 9.99999974E-6 : f32
    %715 = vector.broadcast %cst_181 : f32 to vector<32x1xf32>
    %716 = arith.addf %712, %715 : vector<32x1xf32>
    %717 = math.rsqrt %716 : vector<32x1xf32>
    %718 = vector.broadcast %717 : vector<32x1xf32> to vector<32x128xf32>
    %719 = arith.mulf %714, %718 : vector<32x128xf32>
    %720 = vector.broadcast %8 : vector<1x128xf32> to vector<32x128xf32>
    %721 = arith.mulf %719, %720 : vector<32x128xf32>
    %722 = vector.broadcast %9 : vector<1x128xf32> to vector<32x128xf32>
    %723 = arith.addf %721, %722 : vector<32x128xf32>
    %cst_182 = arith.constant dense<0.000000e+00> : vector<32x256xf32>
    %724 = tpu.matmul %723, %22, %cst_182 {dimension_numbers = #tpu.dot_dimension_numbers<[1], [0], [0], [1], [0, 0, 1, 1], [], []>} : vector<32x128xf32>, vector<128x256xf32>, vector<32x256xf32> -> vector<32x256xf32>
    %725 = vector.broadcast %17 : vector<1x256xf32> to vector<32x256xf32>
    %726 = arith.addf %724, %725 : vector<32x256xf32>
    %cst_183 = arith.constant 0.000000e+00 : f32
    %727 = vector.broadcast %cst_183 : f32 to vector<32x256xf32>
    %728 = arith.maximumf %726, %727 : vector<32x256xf32>
    %cst_184 = arith.constant dense<0.000000e+00> : vector<32x128xf32>
    %729 = tpu.matmul %728, %23, %cst_184 {dimension_numbers = #tpu.dot_dimension_numbers<[1], [0], [0], [1], [0, 0, 1, 1], [], []>} : vector<32x256xf32>, vector<256x128xf32>, vector<32x128xf32> -> vector<32x128xf32>
    %730 = vector.broadcast %10 : vector<1x128xf32> to vector<32x128xf32>
    %731 = arith.addf %729, %730 : vector<32x128xf32>
    %732 = arith.addf %701, %731 : vector<32x128xf32>
    %c6_i32 = arith.constant 6 : i32
    %cst_185 = arith.constant dense<0.000000e+00> : vector<32xf32>
    %733 = vector.multi_reduction <add>, %732, %cst_185 [1] : vector<32x128xf32> to vector<32xf32>
    %734 = vector.shape_cast %733 : vector<32xf32> to vector<32x1xf32>
    %cst_186 = arith.constant 1.280000e+02 : f32
    %735 = vector.broadcast %cst_186 : f32 to vector<32x1xf32>
    %736 = arith.divf %734, %735 : vector<32x1xf32>
    %737 = vector.broadcast %736 : vector<32x1xf32> to vector<32x128xf32>
    %738 = arith.subf %732, %737 : vector<32x128xf32>
    %739 = arith.mulf %738, %738 : vector<32x128xf32>
    %cst_187 = arith.constant dense<0.000000e+00> : vector<32xf32>
    %740 = vector.multi_reduction <add>, %739, %cst_187 [1] : vector<32x128xf32> to vector<32xf32>
    %741 = vector.shape_cast %740 : vector<32xf32> to vector<32x1xf32>
    %cst_188 = arith.constant 1.280000e+02 : f32
    %742 = vector.broadcast %cst_188 : f32 to vector<32x1xf32>
    %743 = arith.divf %741, %742 : vector<32x1xf32>
    %744 = vector.broadcast %736 : vector<32x1xf32> to vector<32x128xf32>
    %745 = arith.subf %732, %744 : vector<32x128xf32>
    %cst_189 = arith.constant 9.99999974E-6 : f32
    %746 = vector.broadcast %cst_189 : f32 to vector<32x1xf32>
    %747 = arith.addf %743, %746 : vector<32x1xf32>
    %748 = math.rsqrt %747 : vector<32x1xf32>
    %749 = vector.broadcast %748 : vector<32x1xf32> to vector<32x128xf32>
    %750 = arith.mulf %745, %749 : vector<32x128xf32>
    %751 = vector.broadcast %5 : vector<1x128xf32> to vector<32x128xf32>
    %752 = arith.mulf %750, %751 : vector<32x128xf32>
    %753 = vector.broadcast %6 : vector<1x128xf32> to vector<32x128xf32>
    %754 = arith.addf %752, %753 : vector<32x128xf32>
    %cst_190 = arith.constant dense<0.000000e+00> : vector<32x128xf32>
    %755 = tpu.matmul %754, %19, %cst_190 {dimension_numbers = #tpu.dot_dimension_numbers<[1], [0], [0], [1], [0, 0, 1, 1], [], []>} : vector<32x128xf32>, vector<128x128xf32>, vector<32x128xf32> -> vector<32x128xf32>
    %756 = vector.broadcast %7 : vector<1x128xf32> to vector<32x128xf32>
    %757 = arith.addf %755, %756 : vector<32x128xf32>
    %758 = vector.shape_cast %757 : vector<32x128xf32> to vector<4x8x128xf32>
    "tpu.trace_start"() <{level = 10 : i32, message = "bid,bjd->bij"}> : () -> ()
    %cst_191 = arith.constant dense<0.000000e+00> : vector<4x8x16xf32>
    %759 = tpu.matmul %758, %64, %cst_191 {dimension_numbers = #tpu.dot_dimension_numbers<[2], [2], [1], [1], [0, 0, 0, 1, 1, 1], [0], [0]>} : vector<4x8x128xf32>, vector<4x16x128xf32>, vector<4x8x16xf32> -> vector<4x8x16xf32>
    "tpu.trace_stop"() : () -> ()
    %cst_192 = arith.constant 0.0883883461 : f32
    %760 = vector.broadcast %cst_192 : f32 to vector<4x8x16xf32>
    %761 = arith.mulf %759, %760 : vector<4x8x16xf32>
    %762 = vector.broadcast %29 : vector<1x8x1xf32> to vector<4x8x16xf32>
    %763 = arith.addf %761, %762 : vector<4x8x16xf32>
    %cst_193 = arith.constant dense<0xFF800000> : vector<4x16xf32>
    %764 = vector.multi_reduction <maximumf>, %763, %cst_193 [1] : vector<4x8x16xf32> to vector<4x16xf32>
    %765 = vector.shape_cast %764 : vector<4x16xf32> to vector<4x1x16xf32>
    %766 = vector.broadcast %765 : vector<4x1x16xf32> to vector<4x8x16xf32>
    %767 = arith.subf %763, %766 : vector<4x8x16xf32>
    %768 = math.exp %767 : vector<4x8x16xf32>
    %cst_194 = arith.constant dense<0.000000e+00> : vector<4x16xf32>
    %769 = vector.multi_reduction <add>, %768, %cst_194 [1] : vector<4x8x16xf32> to vector<4x16xf32>
    %770 = vector.shape_cast %769 : vector<4x16xf32> to vector<4x1x16xf32>
    %771 = vector.broadcast %770 : vector<4x1x16xf32> to vector<4x8x16xf32>
    %772 = arith.divf %768, %771 : vector<4x8x16xf32>
    %cst_195 = arith.constant 9.99999993E-9 : f32
    %773 = vector.broadcast %cst_195 : f32 to vector<4x8x16xf32>
    %774 = arith.addf %772, %773 : vector<4x8x16xf32>
    %cst_196 = arith.constant dense<0.000000e+00> : vector<4x8xf32>
    %775 = vector.multi_reduction <add>, %774, %cst_196 [2] : vector<4x8x16xf32> to vector<4x8xf32>
    %776 = vector.shape_cast %775 : vector<4x8xf32> to vector<4x8x1xf32>
    %777 = vector.broadcast %776 : vector<4x8x1xf32> to vector<4x8x16xf32>
    %778 = arith.divf %774, %777 : vector<4x8x16xf32>
    "tpu.trace_start"() <{level = 10 : i32, message = "bij,bjd->bid"}> : () -> ()
    %cst_197 = arith.constant dense<0.000000e+00> : vector<4x8x128xf32>
    %779 = tpu.matmul %778, %66, %cst_197 {dimension_numbers = #tpu.dot_dimension_numbers<[2], [1], [1], [2], [0, 0, 0, 1, 1, 2], [0], [0]>} : vector<4x8x16xf32>, vector<4x16x128xf32>, vector<4x8x128xf32> -> vector<4x8x128xf32>
    "tpu.trace_stop"() : () -> ()
    %780 = vector.shape_cast %779 : vector<4x8x128xf32> to vector<32x128xf32>
    %cst_198 = arith.constant dense<0.000000e+00> : vector<32x384xf32>
    %781 = tpu.matmul %780, %20, %cst_198 {dimension_numbers = #tpu.dot_dimension_numbers<[1], [0], [0], [1], [0, 0, 1, 1], [], []>} : vector<32x128xf32>, vector<128x384xf32>, vector<32x384xf32> -> vector<32x384xf32>
    %782 = vector.broadcast %15 : vector<1x384xf32> to vector<32x384xf32>
    %783 = arith.addf %781, %782 : vector<32x384xf32>
    %cst_199 = arith.constant dense<0.000000e+00> : vector<32x384xf32>
    %784 = tpu.matmul %732, %21, %cst_199 {dimension_numbers = #tpu.dot_dimension_numbers<[1], [0], [0], [1], [0, 0, 1, 1], [], []>} : vector<32x128xf32>, vector<128x384xf32>, vector<32x384xf32> -> vector<32x384xf32>
    %785 = vector.broadcast %16 : vector<1x384xf32> to vector<32x384xf32>
    %786 = arith.addf %784, %785 : vector<32x384xf32>
    %787 = vector.extract_strided_slice %783 {offsets = [0, 0], sizes = [32, 128], strides = [1, 1]} : vector<32x384xf32> to vector<32x128xf32>
    %788 = vector.extract_strided_slice %786 {offsets = [0, 0], sizes = [32, 128], strides = [1, 1]} : vector<32x384xf32> to vector<32x128xf32>
    %789 = arith.addf %787, %788 : vector<32x128xf32>
    %790 = arith.negf %789 : vector<32x128xf32>
    %791 = math.exp %790 : vector<32x128xf32>
    %cst_200 = arith.constant 1.000000e+00 : f32
    %792 = vector.broadcast %cst_200 : f32 to vector<32x128xf32>
    %793 = arith.addf %792, %791 : vector<32x128xf32>
    %794 = arith.divf %792, %793 : vector<32x128xf32>
    %795 = vector.extract_strided_slice %783 {offsets = [0, 128], sizes = [32, 128], strides = [1, 1]} : vector<32x384xf32> to vector<32x128xf32>
    %796 = vector.extract_strided_slice %786 {offsets = [0, 128], sizes = [32, 128], strides = [1, 1]} : vector<32x384xf32> to vector<32x128xf32>
    %797 = arith.addf %795, %796 : vector<32x128xf32>
    %798 = arith.negf %797 : vector<32x128xf32>
    %799 = math.exp %798 : vector<32x128xf32>
    %cst_201 = arith.constant 1.000000e+00 : f32
    %800 = vector.broadcast %cst_201 : f32 to vector<32x128xf32>
    %801 = arith.addf %800, %799 : vector<32x128xf32>
    %802 = arith.divf %800, %801 : vector<32x128xf32>
    %803 = vector.extract_strided_slice %783 {offsets = [0, 256], sizes = [32, 128], strides = [1, 1]} : vector<32x384xf32> to vector<32x128xf32>
    %804 = vector.extract_strided_slice %786 {offsets = [0, 256], sizes = [32, 128], strides = [1, 1]} : vector<32x384xf32> to vector<32x128xf32>
    %805 = arith.mulf %794, %804 : vector<32x128xf32>
    %806 = arith.addf %803, %805 : vector<32x128xf32>
    %807 = math.tanh %806 : vector<32x128xf32>
    %cst_202 = arith.constant 1.000000e+00 : f32
    %808 = vector.broadcast %cst_202 : f32 to vector<32x128xf32>
    %809 = arith.subf %808, %802 : vector<32x128xf32>
    %810 = arith.mulf %809, %807 : vector<32x128xf32>
    %811 = arith.mulf %802, %732 : vector<32x128xf32>
    %812 = arith.addf %810, %811 : vector<32x128xf32>
    %cst_203 = arith.constant dense<0.000000e+00> : vector<32xf32>
    %813 = vector.multi_reduction <add>, %812, %cst_203 [1] : vector<32x128xf32> to vector<32xf32>
    %814 = vector.shape_cast %813 : vector<32xf32> to vector<32x1xf32>
    %cst_204 = arith.constant 1.280000e+02 : f32
    %815 = vector.broadcast %cst_204 : f32 to vector<32x1xf32>
    %816 = arith.divf %814, %815 : vector<32x1xf32>
    %817 = vector.broadcast %816 : vector<32x1xf32> to vector<32x128xf32>
    %818 = arith.subf %812, %817 : vector<32x128xf32>
    %819 = arith.mulf %818, %818 : vector<32x128xf32>
    %cst_205 = arith.constant dense<0.000000e+00> : vector<32xf32>
    %820 = vector.multi_reduction <add>, %819, %cst_205 [1] : vector<32x128xf32> to vector<32xf32>
    %821 = vector.shape_cast %820 : vector<32xf32> to vector<32x1xf32>
    %cst_206 = arith.constant 1.280000e+02 : f32
    %822 = vector.broadcast %cst_206 : f32 to vector<32x1xf32>
    %823 = arith.divf %821, %822 : vector<32x1xf32>
    %824 = vector.broadcast %816 : vector<32x1xf32> to vector<32x128xf32>
    %825 = arith.subf %812, %824 : vector<32x128xf32>
    %cst_207 = arith.constant 9.99999974E-6 : f32
    %826 = vector.broadcast %cst_207 : f32 to vector<32x1xf32>
    %827 = arith.addf %823, %826 : vector<32x1xf32>
    %828 = math.rsqrt %827 : vector<32x1xf32>
    %829 = vector.broadcast %828 : vector<32x1xf32> to vector<32x128xf32>
    %830 = arith.mulf %825, %829 : vector<32x128xf32>
    %831 = vector.broadcast %8 : vector<1x128xf32> to vector<32x128xf32>
    %832 = arith.mulf %830, %831 : vector<32x128xf32>
    %833 = vector.broadcast %9 : vector<1x128xf32> to vector<32x128xf32>
    %834 = arith.addf %832, %833 : vector<32x128xf32>
    %cst_208 = arith.constant dense<0.000000e+00> : vector<32x256xf32>
    %835 = tpu.matmul %834, %22, %cst_208 {dimension_numbers = #tpu.dot_dimension_numbers<[1], [0], [0], [1], [0, 0, 1, 1], [], []>} : vector<32x128xf32>, vector<128x256xf32>, vector<32x256xf32> -> vector<32x256xf32>
    %836 = vector.broadcast %17 : vector<1x256xf32> to vector<32x256xf32>
    %837 = arith.addf %835, %836 : vector<32x256xf32>
    %cst_209 = arith.constant 0.000000e+00 : f32
    %838 = vector.broadcast %cst_209 : f32 to vector<32x256xf32>
    %839 = arith.maximumf %837, %838 : vector<32x256xf32>
    %cst_210 = arith.constant dense<0.000000e+00> : vector<32x128xf32>
    %840 = tpu.matmul %839, %23, %cst_210 {dimension_numbers = #tpu.dot_dimension_numbers<[1], [0], [0], [1], [0, 0, 1, 1], [], []>} : vector<32x256xf32>, vector<256x128xf32>, vector<32x128xf32> -> vector<32x128xf32>
    %841 = vector.broadcast %10 : vector<1x128xf32> to vector<32x128xf32>
    %842 = arith.addf %840, %841 : vector<32x128xf32>
    %843 = arith.addf %812, %842 : vector<32x128xf32>
    %844 = vector.shape_cast %843 : vector<32x128xf32> to vector<4x8x128xf32>
    %845 = vector.shape_cast %11 : vector<1x128xf32> to vector<1x1x128xf32>
    %846 = vector.broadcast %845 : vector<1x1x128xf32> to vector<4x8x128xf32>
    %847 = arith.mulf %844, %846 : vector<4x8x128xf32>
    %cst_211 = arith.constant dense<0.000000e+00> : vector<4x8xf32>
    %848 = vector.multi_reduction <add>, %847, %cst_211 [2] : vector<4x8x128xf32> to vector<4x8xf32>
    %849 = vector.broadcast %12 : vector<1x1xf32> to vector<4x8xf32>
    %850 = arith.addf %848, %849 : vector<4x8xf32>
    %851 = vector.shape_cast %850 : vector<4x8xf32> to vector<4x1x8xf32>
    %c0_212 = arith.constant 0 : index
    %c0_213 = arith.constant 0 : index
    %c0_214 = arith.constant 0 : index
    %852 = vector.load %arg11[%c0_212, %c0_213, %c0_214] : memref<4x1x8xf32, #tpu.memory_space<vmem>>, vector<4x1x8xf32>
    tpu.vector_store %arg11[%c0_212, %c0_213, %c0_214], %851 {strides = array<i32>} : memref<4x1x8xf32, #tpu.memory_space<vmem>>, vector<4x1x8xf32>,
    return
  }
  func.func @transform_0(%arg0: i32) -> (i32, i32, i32) {
    %c0_i32 = arith.constant 0 : i32
    %c0_i32_0 = arith.constant 0 : i32
    %c0_i32_1 = arith.constant 0 : i32
    return %arg0, %c0_i32, %c0_i32_0 : i32, i32, i32
  }
  func.func @transform_1(%arg0: i32) -> (i32, i32, i32) {
    %c0_i32 = arith.constant 0 : i32
    %c0_i32_0 = arith.constant 0 : i32
    %c0_i32_1 = arith.constant 0 : i32
    return %arg0, %c0_i32, %c0_i32_0 : i32, i32, i32
  }
  func.func @transform_2(%arg0: i32) -> (i32, i32) {
    %c0_i32 = arith.constant 0 : i32
    %c0_i32_0 = arith.constant 0 : i32
    %c0_i32_1 = arith.constant 0 : i32
    return %c0_i32, %c0_i32_0 : i32, i32
  }
  func.func @transform_3(%arg0: i32) -> (i32, i32) {
    %c0_i32 = arith.constant 0 : i32
    %c0_i32_0 = arith.constant 0 : i32
    %c0_i32_1 = arith.constant 0 : i32
    return %c0_i32, %c0_i32_0 : i32, i32
  }
  func.func @transform_4(%arg0: i32) -> (i32, i32) {
    %c0_i32 = arith.constant 0 : i32
    %c0_i32_0 = arith.constant 0 : i32
    %c0_i32_1 = arith.constant 0 : i32
    return %c0_i32, %c0_i32_0 : i32, i32
  }
  func.func @transform_5(%arg0: i32) -> (i32, i32) {
    %c0_i32 = arith.constant 0 : i32
    %c0_i32_0 = arith.constant 0 : i32
    %c0_i32_1 = arith.constant 0 : i32
    return %c0_i32, %c0_i32_0 : i32, i32
  }
  func.func @transform_6(%arg0: i32) -> (i32, i32) {
    %c0_i32 = arith.constant 0 : i32
    %c0_i32_0 = arith.constant 0 : i32
    %c0_i32_1 = arith.constant 0 : i32
    return %c0_i32, %c0_i32_0 : i32, i32
  }
  func.func @transform_7(%arg0: i32) -> (i32, i32) {
    %c0_i32 = arith.constant 0 : i32
    %c0_i32_0 = arith.constant 0 : i32
    %c0_i32_1 = arith.constant 0 : i32
    return %c0_i32, %c0_i32_0 : i32, i32
  }
  func.func @transform_8(%arg0: i32) -> (i32, i32) {
    %c0_i32 = arith.constant 0 : i32
    %c0_i32_0 = arith.constant 0 : i32
    %c0_i32_1 = arith.constant 0 : i32
    return %c0_i32, %c0_i32_0 : i32, i32
  }
  func.func @transform_9(%arg0: i32) -> (i32, i32) {
    %c0_i32 = arith.constant 0 : i32
    %c0_i32_0 = arith.constant 0 : i32
    %c0_i32_1 = arith.constant 0 : i32
    return %c0_i32, %c0_i32_0 : i32, i32
  }
  func.func @transform_10(%arg0: i32) -> (i32, i32, i32) {
    %c0_i32 = arith.constant 0 : i32
    %c0_i32_0 = arith.constant 0 : i32
    %c0_i32_1 = arith.constant 0 : i32
    return %arg0, %c0_i32, %c0_i32_0 : i32, i32, i32
  }
}

</mosaic_0001>

<bundles_post_ra>
// kernel: tpu_custom_call.1
= control target key start
LH: loop header
LB: loop body
LE: loop exit
PB: predicated region body
PF: predicated region fallthrough
CT: control target
= control target key end

     0   :  { %s19984_s0 = inlined_call_operand.hbm [shape: f32[8,16,128], index: 0, kind: input, shape index: {}]   ;;  %s19985_s1 = inlined_call_operand.hbm [shape: f32[8,8,128], index: 1, kind: input, shape index: {}]   ;;  %s19986_s2 = inlined_call_operand.hbm [shape: f32[128,256], index: 2, kind: input, shape index: {}]   ;;  %s19987_s3 = inlined_call_operand.hbm [shape: f32[128,128], index: 3, kind: input, shape index: {}]   ;;  %s19988_s4 = inlined_call_operand.hbm [shape: f32[128,384], index: 4, kind: input, shape index: {}]   ;;  %s19989_s5 = inlined_call_operand.hbm [shape: f32[128,384], index: 5, kind: input, shape index: {}]   ;;  %s19990_s6 = inlined_call_operand.hbm [shape: f32[128,256], index: 6, kind: input, shape index: {}]   ;;  %s19991_s7 = inlined_call_operand.hbm [shape: f32[256,128], index: 7, kind: input, shape index: {}]   ;;  %s19992_s8 = inlined_call_operand.hbm [shape: f32[12,128], index: 8, kind: input, shape index: {}]   ;;  %s19993_s9 = inlined_call_operand.hbm [shape: f32[4,384], index: 9, kind: input, shape index: {}]   ;;  %s19994_s10 = inlined_call_operand.hbm [shape: f32[8,1,8], index: 10, kind: output, shape index: {}]  }
   0x1   :  { %20264 = sst [smem:[#allocation118_spill]] %s19984_s0 }
   0x2   :  { %20265 = sst [smem:[#allocation119_spill]] %s19986_s2 }
   0x3   :  { %20266 = sst [smem:[#allocation120_spill]] %s19987_s3 }
   0x4   :  { %20267 = sst [smem:[#allocation121_spill]] %s19988_s4 }
   0x5   :  { %20268 = sst [smem:[#allocation122_spill]] %s19989_s5 }
   0x6   :  { %20269 = sst [smem:[#allocation123_spill]] %s19990_s6 }
   0x7   :  { %20270 = sst [smem:[#allocation124_spill]] %s19991_s7 }
   0x8   :  { %20271 = sst [smem:[#allocation125_spill]] %s19994_s10 }
   0x9   :  { %15 = vsyncpa [#allocation3], 0 }
   0xa   :  { %17 = vsyncpa [#allocation3 + $0x1], 0 }
   0xb   :  { %18 = vsyncpa [#allocation6], 0 }
   0xc   :  { %20 = vsyncpa [#allocation6 + $0x1], 0 }
   0xd   :  { %21 = vsyncpa [#allocation9], 0 }
   0xe   :  { %22 = vsyncpa [#allocation12], 0 }
   0xf   :  { %23 = vsyncpa [#allocation15], 0 }
  0x10   :  { %24 = vsyncpa [#allocation18], 0 }
  0x11   :  { %25 = vsyncpa [#allocation4], 0 }
  0x12   :  { %27 = vsyncpa [#allocation4 + $0x1], 0  ;;  %s17098_s13 = smov 0   ;;  %s17100_s14 = smov 0  }
  0x13   :  { %s17102_s15 = smov 0   ;;  %s17104_s16 = smov 0  }
  0x14 LB: > { %s17020_s17 = smov [#allocation7]   ;;  %s17119_s19 = sadd.s32 4294967295, %s17018_s16   ;;  %s17018_s16 = sphi %s17104_s16, %s20859_s16   ;;  %s17014_s15 = sphi %s17102_s15, %s20858_s15   ;;  %s17010_s14 = sphi %s17100_s14, %s20857_s14   ;;  %s17006_s13 = sphi %s17098_s13, %s20856_s13  }
  0x15   : > { %s296_s18 = sshll.u32 %s17020_s17, 4  ;;  %p11775_p0 = scmp.ge.s32.totalorder %s17018_s16, 1  ;;  %s17124_s18 = int_to_ptr.vmem [resolvable:$true] %s296_s18 }
  0x16   : > { %p19998_p1 = scmp.eq.s32.totalorder %s17119_s19, 0  ;;  %p284_p2 = scmp.lt.s32.totalorder %s17018_s16, 3 }
  0x17   : > { %s17021_s21 = smov [#allocation8]   ;;  %s20274_s2 = sld [smem:[#allocation119_spill]] }
  0x18   : > { %p17126_p3 = pnand %p11775_p0, %p284_p2  ;;  %s309_s22 = sshll.u32 %s17021_s21, 4  ;;  %s17139_s22 = int_to_ptr.vmem [resolvable:$true] %s309_s22 }
  0x1a   : > { %s20272_s20 = scalar_select %p17126_p3, 1, 0 }
  0x1b   : > { %p15959_p5 = pneg %p17126_p3 }
  0x1d   : > { %p17135_p6 = pnand %p15959_p5, %p19998_p1  ;;  %s16644_s26 = scalar_lea.hbm %s20274_s2, 4096 }
  0x1e   : > { %p16645_p7 = scmp.ne.s32.totalorder %s20274_s2, %s16644_s26  ;;  %p16651_p11 = scmp.lt.u32.totalorder %s16644_s26, %s20274_s2 }
  0x1f   : > { %p17149_p8 = pneg %p17135_p6 }
  0x21   : > { %p16647_p9 = pnand %p17149_p8, %p16645_p7 }
  0x23   : > { %p16648_p10 = pneg %p16647_p9 }
  0x25   : > { %p16653_p12 = pnand %p16651_p11, %p16648_p10 }
  0x27   : > { %16656 = shalt.err (!%p16653_p12)
}
  0x28   : > { %s16657_s12 = scalar_lea.vmem %s17124_s18, 4096  ;;  %p16665_p5 = scmp.lt.s32.totalorder %s17124_s18, %s17124_s18 }
  0x29   : > { %p16658_p13 = scmp.ne.s32.totalorder %s17124_s18, %s16657_s12  ;;  %p16666_p4 = scmp.lt.s32.totalorder %s16657_s12, %s16657_s12 }
  0x2b   : > { %p16660_p0 = pnand %p16658_p13, %p17149_p8  ;;  %p16667_p7 = por %p16666_p4, %p16665_p5 }
  0x2d   : > { %p16661_p2 = pneg %p16660_p0 }
  0x2f   : > { %p16668_p9 = pnand %p16667_p7, %p16661_p2 }
  0x31   : > { %16671 = shalt.err (!%p16668_p9)
}
  0x32   : > { %s19996_s17 = smov 256   ;;  %s19997_s21 = smov 16  }
  0x33   : > { %15962 = dma.hbm_to_vmem [thread:$0]  (!%p17135_p6), %s20274_s2, 4096, %s17124_s18, [#allocation6], %s19996_s17, %s19996_s17, %s19997_s21  }
  0x34   : > { %s20276_s3 = sld [smem:[#allocation120_spill]] }
  0x3a   : > { %s16672_s28 = scalar_lea.hbm %s20276_s3, 2048 }
  0x3b   : > { %p16673_p4 = scmp.ne.s32.totalorder %s20276_s3, %s16672_s28  ;;  %p16679_p12 = scmp.lt.u32.totalorder %s16672_s28, %s20276_s3 }
  0x3d   : > { %p16675_p10 = pnand %p16673_p4, %p17149_p8 }
  0x3f   : > { %p16676_p11 = pneg %p16675_p10 }
  0x41   : > { %p16681_p13 = pnand %p16679_p12, %p16676_p11 }
  0x43   : > { %16684 = shalt.err (!%p16681_p13)
}
  0x44   : > { %s16685_s18 = scalar_lea.vmem %s17139_s22, 2048  ;;  %p16693_p7 = scmp.lt.s32.totalorder %s17139_s22, %s17139_s22 }
  0x45   : > { %p16686_p0 = scmp.ne.s32.totalorder %s17139_s22, %s16685_s18  ;;  %p16694_p9 = scmp.lt.s32.totalorder %s16685_s18, %s16685_s18 }
  0x47   : > { %p16688_p2 = pnand %p16686_p0, %p17149_p8  ;;  %p16695_p4 = por %p16694_p9, %p16693_p7 }
  0x49   : > { %p16689_p5 = pneg %p16688_p2 }
  0x4b   : > { %p16696_p10 = pnand %p16695_p4, %p16689_p5 }
  0x4d   : > { %16699 = shalt.err (!%p16696_p10)
}
  0x4e   : > { %s20000_s24 = smov 128   ;;  %s20004_s10 = smov 8  }
  0x4f   : > { %15965 = dma.hbm_to_vmem [thread:$0]  (!%p17135_p6), %s20276_s3, 2048, %s17139_s22, [#allocation9], %s20000_s24, %s20000_s24, %s20004_s10  }
  0x50   : > { %s17026_s27 = smov [#allocation11]   ;;  %s17027_s30 = smov [#allocation14]  }
  0x51   : > { %s335_s28 = sshll.u32 %s17026_s27, 4  ;;  %s361_s11 = sshll.u32 %s17027_s30, 4  ;;  %s336_s28 = int_to_ptr.vmem [resolvable:$true] %s335_s28  ;;  %s17199_s11 = int_to_ptr.vmem [resolvable:$true] %s361_s11 }
  0x52   : > { %s20277_s5 = sld [smem:[#allocation122_spill]] }
  0x58   : > { %s16700_s17 = scalar_lea.hbm %s20277_s5, 6144 }
  0x59   : > { %p16701_p11 = scmp.ne.s32.totalorder %s20277_s5, %s16700_s17  ;;  %p16707_p0 = scmp.lt.u32.totalorder %s16700_s17, %s20277_s5 }
  0x5b   : > { %p16703_p12 = pnand %p16701_p11, %p17149_p8 }
  0x5d   : > { %p16704_p13 = pneg %p16703_p12 }
  0x5f   : > { %p16709_p2 = pnand %p16707_p0, %p16704_p13 }
  0x61   : > { %16712 = shalt.err (!%p16709_p2)
}
  0x62   : > { %s16713_s26 = scalar_lea.vmem %s336_s28, 6144  ;;  %p16721_p4 = scmp.lt.s32.totalorder %s336_s28, %s336_s28 }
  0x63   : > { %p16714_p5 = scmp.ne.s32.totalorder %s336_s28, %s16713_s26  ;;  %p16722_p10 = scmp.lt.s32.totalorder %s16713_s26, %s16713_s26 }
  0x65   : > { %p16716_p7 = pnand %p16714_p5, %p17149_p8  ;;  %p16723_p1 = por %p16722_p10, %p16721_p4 }
  0x67   : > { %p16717_p9 = pneg %p16716_p7 }
  0x69   : > { %p16724_p3 = pnand %p16723_p1, %p16717_p9 }
  0x6b   : > { %16727 = shalt.err (!%p16724_p3)
}
  0x6c   : > { %s20002_s2 = smov 384   ;;  %s20003_s21 = smov 24  }
  0x6d   : > { %15971 = dma.hbm_to_vmem [thread:$0]  (!%p17135_p6), %s20277_s5, 6144, %s336_s28, [#allocation12], %s20002_s2, %s20002_s2, %s20003_s21  }
  0x6e   : > { %s20278_s7 = sld [smem:[#allocation124_spill]] }
  0x74   : > { %s16728_s18 = scalar_lea.hbm %s20278_s7, 4096 }
  0x75   : > { %p16729_p1 = scmp.ne.s32.totalorder %s20278_s7, %s16728_s18  ;;  %p16735_p12 = scmp.lt.u32.totalorder %s16728_s18, %s20278_s7 }
  0x77   : > { %p16731_p3 = pnand %p16729_p1, %p17149_p8 }
  0x79   : > { %p16732_p11 = pneg %p16731_p3 }
  0x7b   : > { %p16737_p13 = pnand %p16735_p12, %p16732_p11 }
  0x7d   : > { %16740 = shalt.err (!%p16737_p13)
}
  0x7e   : > { %s16741_s28 = scalar_lea.vmem %s17199_s11, 4096  ;;  %p16749_p7 = scmp.lt.s32.totalorder %s17199_s11, %s17199_s11 }
  0x7f   : > { %p16742_p0 = scmp.ne.s32.totalorder %s17199_s11, %s16741_s28  ;;  %p16750_p9 = scmp.lt.s32.totalorder %s16741_s28, %s16741_s28 }
  0x81   : > { %p16744_p2 = pnand %p16742_p0, %p17149_p8  ;;  %p16751_p4 = por %p16750_p9, %p16749_p7 }
  0x83   : > { %p16745_p5 = pneg %p16744_p2 }
  0x85   : > { %p16752_p10 = pnand %p16751_p4, %p16745_p5 }
  0x87   : > { %16755 = shalt.err (!%p16752_p10)
}
  0x88   : > { %s20279_s24 = smov 128   ;;  %s17030_s30 = smov [#allocation10]  }
  0x89   : > { %15977 = dma.hbm_to_vmem [thread:$0]  (!%p17135_p6), %s20278_s7, 4096, %s17199_s11, [#allocation15], %s20279_s24, %s20279_s24, %s20004_s10  }
  0x8a   : > { %s322_s12 = sshll.u32 %s17030_s30, 4  ;;  %s17031_s18 = smov [#allocation13]   ;;  %s323_s12 = int_to_ptr.vmem [resolvable:$true] %s322_s12 }
  0x8b   : > { %s348_s25 = sshll.u32 %s17031_s18, 4  ;;  %s20280_s4 = sld [smem:[#allocation121_spill]]  ;;  %s17248_s25 = int_to_ptr.vmem [resolvable:$true] %s348_s25 }
  0x91   : > { %s16756_s28 = scalar_lea.hbm %s20280_s4, 6144 }
  0x92   : > { %p16757_p1 = scmp.ne.s32.totalorder %s20280_s4, %s16756_s28  ;;  %p16763_p12 = scmp.lt.u32.totalorder %s16756_s28, %s20280_s4 }
  0x94   : > { %p16759_p3 = pnand %p16757_p1, %p17149_p8 }
  0x96   : > { %p16760_p11 = pneg %p16759_p3 }
  0x98   : > { %p16765_p13 = pnand %p16763_p12, %p16760_p11 }
  0x9a   : > { %16768 = shalt.err (!%p16765_p13)
}
  0x9b   : > { %s16769_s27 = scalar_lea.vmem %s323_s12, 6144  ;;  %p16777_p7 = scmp.lt.s32.totalorder %s323_s12, %s323_s12 }
  0x9c   : > { %p16770_p0 = scmp.ne.s32.totalorder %s323_s12, %s16769_s27  ;;  %p16778_p9 = scmp.lt.s32.totalorder %s16769_s27, %s16769_s27 }
  0x9e   : > { %p16772_p2 = pnand %p16770_p0, %p17149_p8  ;;  %p16779_p4 = por %p16778_p9, %p16777_p7 }
  0xa0   : > { %p16773_p5 = pneg %p16772_p2 }
  0xa2   : > { %p16780_p10 = pnand %p16779_p4, %p16773_p5 }
  0xa4   : > { %16783 = shalt.err (!%p16780_p10)
}
  0xa5   : > { %s20281_s2 = smov 24   ;;  %s20282_s21 = smov 384  }
  0xa6   : > { %15968 = dma.hbm_to_vmem [thread:$0]  (!%p17135_p6), %s20280_s4, 6144, %s323_s12, [#allocation9], %s20282_s21, %s20282_s21, %s20281_s2  }
  0xa7   : > { %s20283_s6 = sld [smem:[#allocation123_spill]] }
  0xad   : > { %s16784_s28 = scalar_lea.hbm %s20283_s6, 4096 }
  0xae   : > { %p16785_p1 = scmp.ne.s32.totalorder %s20283_s6, %s16784_s28  ;;  %p16791_p12 = scmp.lt.u32.totalorder %s16784_s28, %s20283_s6 }
  0xb0   : > { %p16787_p3 = pnand %p16785_p1, %p17149_p8 }
  0xb2   : > { %p16788_p11 = pneg %p16787_p3 }
  0xb4   : > { %p16793_p13 = pnand %p16791_p12, %p16788_p11 }
  0xb6   : > { %16796 = shalt.err (!%p16793_p13)
}
  0xb7   : > { %s16797_s12 = scalar_lea.vmem %s17248_s25, 4096  ;;  %p16805_p7 = scmp.lt.s32.totalorder %s17248_s25, %s17248_s25 }
  0xb8   : > { %p16798_p0 = scmp.ne.s32.totalorder %s17248_s25, %s16797_s12  ;;  %p16806_p9 = scmp.lt.s32.totalorder %s16797_s12, %s16797_s12 }
  0xba   : > { %p16800_p2 = pnand %p16798_p0, %p17149_p8  ;;  %p16807_p4 = por %p16806_p9, %p16805_p7 }
  0xbc   : > { %p16801_p5 = pneg %p16800_p2 }
  0xbe   : > { %p16808_p10 = pnand %p16807_p4, %p16801_p5 }
  0xc0   : > { %16811 = shalt.err (!%p16808_p10)
}
  0xc1   : > { %s20284_s10 = smov 16   ;;  %s20285_s2 = smov 256  }
  0xc2   : > { %15974 = dma.hbm_to_vmem [thread:$0]  (!%p17135_p6), %s20283_s6, 4096, %s17248_s25, [#allocation12], %s20285_s2, %s20285_s2, %s20284_s10  }
  0xc3   : > { %s17032_s18 = smov [#allocation16]   ;;  %s17033_s26 = smov [#allocation17]  }
  0xc4   : > { %s374_s22 = sshll.u32 %s17032_s18, 4  ;;  %s388_s28 = sshll.u32 %s17033_s26, 4  ;;  %s375_s22 = int_to_ptr.vmem [resolvable:$true] %s374_s22  ;;  %s17297_s28 = int_to_ptr.vmem [resolvable:$true] %s388_s28 }
  0xc5   : > { %s16812_s27 = scalar_lea.hbm %s19992_s8, 256 }
  0xc6   : > { %p16813_p1 = scmp.ne.s32.totalorder %s19992_s8, %s16812_s27  ;;  %p16819_p12 = scmp.lt.u32.totalorder %s16812_s27, %s19992_s8 }
  0xc8   : > { %p16815_p3 = pnand %p16813_p1, %p17149_p8 }
  0xca   : > { %p16816_p11 = pneg %p16815_p3 }
  0xcc   : > { %p16821_p13 = pnand %p16819_p12, %p16816_p11 }
  0xce   : > { %16824 = shalt.err (!%p16821_p13)
}
  0xcf   : > { %s16825_s10 = scalar_lea.vmem %s375_s22, 256  ;;  %p16833_p7 = scmp.lt.s32.totalorder %s375_s22, %s375_s22 }
  0xd0   : > { %p16826_p0 = scmp.ne.s32.totalorder %s375_s22, %s16825_s10  ;;  %p16834_p9 = scmp.lt.s32.totalorder %s16825_s10, %s16825_s10 }
  0xd2   : > { %p16828_p2 = pnand %p16826_p0, %p17149_p8  ;;  %p16835_p4 = por %p16834_p9, %p16833_p7 }
  0xd4   : > { %p16829_p5 = pneg %p16828_p2 }
  0xd6   : > { %p16836_p10 = pnand %p16835_p4, %p16829_p5 }
  0xd8   : > { %16839 = shalt.err (!%p16836_p10)
}
  0xd9   : > { %s20286_s3 = smov 8   ;;  %s16840_s17 = scalar_lea.hbm %s19993_s9, 192 }
  0xda   : > { %15980 = dma.hbm_to_vmem [thread:$0]  (!%p17135_p6), %s19992_s8, 256, %s375_s22, [#allocation15], %s20279_s24, %s20279_s24, %s20286_s3  }
  0xdb   : > { %p16841_p1 = scmp.ne.s32.totalorder %s19993_s9, %s16840_s17  ;;  %p16847_p12 = scmp.lt.u32.totalorder %s16840_s17, %s19993_s9 }
  0xdd   : > { %p16843_p3 = pnand %p16841_p1, %p17149_p8 }
  0xdf   : > { %p16844_p11 = pneg %p16843_p3 }
  0xe1   : > { %p16849_p13 = pnand %p16847_p12, %p16844_p11 }
  0xe3   : > { %16852 = shalt.err (!%p16849_p13)
}
  0xe4   : > { %s16853_s22 = scalar_lea.vmem %s17297_s28, 192  ;;  %p16861_p7 = scmp.lt.s32.totalorder %s17297_s28, %s17297_s28 }
  0xe5   : > { %p16854_p0 = scmp.ne.s32.totalorder %s17297_s28, %s16853_s22  ;;  %p16862_p9 = scmp.lt.s32.totalorder %s16853_s22, %s16853_s22 }
  0xe7   : > { %p16856_p2 = pnand %p16854_p0, %p17149_p8  ;;  %p16863_p4 = por %p16862_p9, %p16861_p7 }
  0xe9   : > { %p16857_p5 = pneg %p16856_p2 }
  0xeb   : > { %p16864_p10 = pnand %p16863_p4, %p16857_p5 }
  0xed   : > { %16867 = shalt.err (!%p16864_p10)
}
  0xee   : > { %15983 = dma.hbm_to_vmem [thread:$0]  (!%p17135_p6), %s19993_s9, 192, %s17297_s28, [#allocation18]  }
  0xef   : > { %s11774_s23 = sadd.s32 4294967294, %s17018_s16   ;;  %s17345_s29 = sadd.s32 1, %s17018_s16  }
  0xf0   : > { %s37_s2 = ssub.s32 %s17018_s16, %s17345_s29  ;;  %s40_s30 = sadd.s32 1, %s17014_s15 }
  0xf1   : > { %p38_p8 = scmp.eq.s32.totalorder %s37_s2, 0  ;;  %p47_p1 = scmp.ne.s32.totalorder %s17014_s15, %s17010_s14 }
  0xf2   : > { %p48_p3 = scmp.eq.s32.totalorder %s17018_s16, 0  ;;  %p53_p11 = scmp.ne.s32.totalorder %s17010_s14, %s17006_s13 }
  0xf3   : > { %s17356_s18 = scalar_select %p38_p8, %s17014_s15, %s40_s30  }
  0xf4   : > { %p17358_p12 = por %p48_p3, %p47_p1  ;;  %p20288_p13 = scmp.eq.s32.totalorder %s17119_s19, 0 }
  0xf5   : > { %p271_p0 = scmp.eq.s32.totalorder %s17119_s19, 1  ;;  %p277_p2 = scmp.eq.s32.totalorder %s11774_s23, 1 }
  0xf6   : > { %p17364_p6 = por %p20288_p13, %p53_p11  ;;  %p16003_p5 = scmp.lt.s32.totalorder %s17018_s16, 2 }
  0xf7   : > { %s17371_s17 = sand.u32 1, %s17014_s15   ;;  %p17373_p7 = por %p271_p0, %p47_p1 }
  0xf8   : > { %p17377_p9 = por %p277_p2, %p53_p11  ;;  %s11785_s12 = sshll.u32 %s17371_s17, 6 }
  0xf9   : > { %s20290_s11 = scalar_select %p17373_p7, 1, 0 }
  0xfa   : > { %s20291_s27 = scalar_select %p17377_p9, 1, 0 }
  0xfb   : > { %s11894_s21 = sshll.u32 %s17018_s16, 10  ;;  %s20292_s0 = sld [smem:[#allocation118_spill]] }
  0xfc   : > { %s403_s23 = scalar_lea.vmem [#allocation2], %s11785_s12  ;;  %p17392_p4 = pnand %p16003_p5, %p17358_p12 }
  0xfd   : > { %s411_s2 = sshll.u32 %s403_s23, 4  ;;  %s11789_s5 = sshll.u32 %s17371_s17, 5  ;;  %s17388_s2 = int_to_ptr.vmem [resolvable:$true] %s411_s2 }
  0xfe   : > { %s400_s22 = scalar_lea.sflag [#allocation3], %s17371_s17  ;;  %p16870_p8 = pneg %p17392_p4 }
 0x101   : > { %s17386_s10 = scalar_lea.hbm %s20292_s0, %s11894_s21  ;;  %s16873_s26 = scalar_lea.hbm %s20292_s0, 2048 }
 0x102   : > { %s16868_s21 = scalar_lea.hbm %s17386_s10, 1024  ;;  %p16874_p11 = scmp.lt.u32.totalorder %s17386_s10, %s20292_s0 }
 0x103   : > { %p16869_p10 = scmp.ne.s32.totalorder %s17386_s10, %s16868_s21  ;;  %p16875_p12 = scmp.lt.u32.totalorder %s16873_s26, %s16868_s21 }
 0x104   : > { %p16877_p0 = scmp.lt.u32.totalorder %s16868_s21, %s17386_s10 }
 0x105   : > { %p16871_p1 = pnand %p16870_p8, %p16869_p10  ;;  %p16876_p13 = por %p16875_p12, %p16874_p11 }
 0x107   : > { %p16872_p3 = pneg %p16871_p1  ;;  %p16878_p2 = por %p16877_p0, %p16876_p13 }
 0x109   : > { %p16879_p5 = pnand %p16878_p2, %p16872_p3 }
 0x10b   : > { %16882 = shalt.err (!%p16879_p5)
}
 0x10c   : > { %s16883_s4 = scalar_lea.vmem %s17388_s2, 1024  ;;  %s17034_s12 = smov [#allocation2]  }
 0x10d   : > { %p16884_p10 = scmp.ne.s32.totalorder %s17388_s2, %s16883_s4  ;;  %s16888_s25 = sshll.u32 %s17034_s12, 4  ;;  %s16889_s25 = int_to_ptr.vmem [resolvable:$false] %s16888_s25 }
 0x10e   : > { %s16890_s6 = scalar_lea.vmem %s16889_s25, 2048  ;;  %p16891_p7 = scmp.lt.s32.totalorder %s17388_s2, %s16889_s25 }
 0x10f   : > { %p16886_p1 = pnand %p16884_p10, %p16870_p8  ;;  %p16892_p11 = scmp.lt.s32.totalorder %s16890_s6, %s16883_s4 }
 0x111   : > { %p16887_p9 = pneg %p16886_p1  ;;  %p16893_p12 = por %p16892_p11, %p16891_p7 }
 0x113   : > { %p16894_p13 = pnand %p16893_p12, %p16887_p9 }
 0x115   : > { %16897 = shalt.err (!%p16894_p13)
}
 0x116   : > { %15987 = dma.hbm_to_vmem [thread:$0]  (!%p17392_p4), %s17386_s10, 1024, %s17388_s2, %s400_s22, %s20279_s24, %s20279_s24, %s20286_s3  }
 0x117   : > { %s11895_s21 = sshll.u32 %s17018_s16, 9  ;;  %s425_s12 = scalar_lea.vmem [#allocation5], %s11789_s5 }
 0x118   : > { %s17433_s23 = scalar_lea.hbm %s19985_s1, %s11895_s21  ;;  %s432_s25 = sshll.u32 %s425_s12, 4  ;;  %s17437_s25 = int_to_ptr.vmem [resolvable:$true] %s432_s25 }
 0x119   : > { %s20294_s6 = sand.u32 1, %s17018_s16   ;;  %s16898_s7 = scalar_lea.hbm %s17433_s23, 512 }
 0x11a   : > { %s17441_s0 = scalar_lea.sflag [#allocation6], %s20294_s6  ;;  %p16899_p7 = scmp.ne.s32.totalorder %s17433_s23, %s16898_s7 }
 0x11b   : > { %s16903_s17 = scalar_lea.hbm %s19985_s1, 1024  ;;  %p16904_p0 = scmp.lt.u32.totalorder %s17433_s23, %s19985_s1 }
 0x11c   : > { %p16901_p9 = pnand %p16899_p7, %p16870_p8  ;;  %p16905_p2 = scmp.lt.u32.totalorder %s16903_s17, %s16898_s7 }
 0x11d   : > { %p16907_p10 = scmp.lt.u32.totalorder %s16898_s7, %s17433_s23 }
 0x11e   : > { %p16902_p3 = pneg %p16901_p9  ;;  %p16906_p5 = por %p16905_p2, %p16904_p0 }
 0x120   : > { %p16908_p1 = por %p16907_p10, %p16906_p5 }
 0x122   : > { %p16909_p11 = pnand %p16908_p1, %p16902_p3 }
 0x124   : > { %16912 = shalt.err (!%p16909_p11)
}
 0x125   : > { %s16913_s5 = scalar_lea.vmem %s17437_s25, 512  ;;  %s17035_s26 = smov [#allocation5]  }
 0x126   : > { %p16914_p12 = scmp.ne.s32.totalorder %s17437_s25, %s16913_s5  ;;  %s16918_s4 = sshll.u32 %s17035_s26, 4  ;;  %s16919_s4 = int_to_ptr.vmem [resolvable:$false] %s16918_s4 }
 0x127   : > { %s16920_s12 = scalar_lea.vmem %s16919_s4, 1024  ;;  %p16921_p9 = scmp.lt.s32.totalorder %s17437_s25, %s16919_s4 }
 0x128   : > { %p16916_p13 = pnand %p16914_p12, %p16870_p8  ;;  %p16922_p0 = scmp.lt.s32.totalorder %s16920_s12, %s16913_s5 }
 0x12a   : > { %p16917_p7 = pneg %p16916_p13  ;;  %p16923_p2 = por %p16922_p0, %p16921_p9 }
 0x12c   : > { %p16924_p5 = pnand %p16923_p2, %p16917_p7 }
 0x12e   : > { %16927 = shalt.err (!%p16924_p5)
}
 0x12f   : > { %15990 = dma.hbm_to_vmem [thread:$0]  (!%p17392_p4), %s17433_s23, 512, %s17437_s25, %s17441_s0, %s20279_s24, %s20279_s24, %s20286_s3  }
 0x130   : > { %p20295_p8 = scmp.ne.s32.totalorder %s20272_s20, 0 }
 0x132   : > { %444 = sbr.rel (%p20295_p8) target bundleno = 15988 (0x3e74), region = 60 }
 0x139   : > { %s17473_s7 = sand.u32 1, %s17010_s14  }
 0x13a   : > { %s11793_s6 = sshll.u32 %s17473_s7, 6  ;;  %s447_s10 = scalar_lea.sflag [#allocation3], %s17473_s7 }
 0x13b   : > { %s17477_s2 = scalar_lea.vmem [#allocation2], %s11793_s6 }
 0x13c   : > { %16973 = dma.done.wait (%p17364_p6), %s447_s10, 1024  }
 0x13d   : > { %16975 = vsyncadd (%p17364_p6), %s447_s10, 4294966272  ;;  %s455_s0 = sand.u32 1, %s17119_s19   ;;  %s11794_s20 = sshll.u32 %s17473_s7, 5 }
 0x13e   : > { %s456_s24 = scalar_lea.sflag [#allocation6], %s455_s0  ;;  %s17485_s3 = scalar_lea.vmem [#allocation5], %s11794_s20 }
 0x13f   : > { %16977 = dma.done.wait (%p17364_p6), %s456_s24, 512  }
 0x140   : > { %16979 = vsyncadd (%p17364_p6), %s456_s24, 4294966784  ;;  %p20296_p4 = scmp.eq.s32.totalorder %s17119_s19, 0 }
 0x142   : > { %16981 = dma.done.wait (%p20296_p4), [#allocation6], 4096   ;;  %p20297_p3 = pmov %p20296_p4 }
 0x144   : > { %16983 = vsyncadd (%p20297_p3), [#allocation6], 4294963200  ;;  %p20298_p10 = pmov %p20297_p3 }
 0x145   : > { %p20299_p1 = pmov %p20297_p3 }
 0x146   : > { %16985 = dma.done.wait (%p20298_p10), [#allocation9], 8192  }
 0x147   : > { %16987 = vsyncadd (%p20299_p1), [#allocation9], 4294959104  ;;  %p20300_p11 = pmov %p20299_p1 }
 0x148   : > { %p20301_p12 = pmov %p20299_p1 }
 0x149   : > { %16989 = dma.done.wait (%p20300_p11), [#allocation12], 10240  }
 0x14a   : > { %16991 = vsyncadd (%p20301_p12), [#allocation12], 4294957056  ;;  %p20302_p6 = pmov %p20299_p1 }
 0x14b   : > { %p20303_p13 = pmov %p20299_p1 }
 0x14c   : > { %16993 = dma.done.wait (%p20302_p6), [#allocation15], 4352  }
 0x14d   : > { %16995 = vsyncadd (%p20303_p13), [#allocation15], 4294962944  ;;  %p20304_p7 = pmov %p20299_p1 }
 0x14e   : > { %p20305_p9 = pmov %p20299_p1 }
 0x14f   : > { %16997 = dma.done.wait (%p20304_p7), [#allocation18], 192  }
 0x150   : > { %16999 = vsyncadd (%p20305_p9), [#allocation18], 4294967104  ;;  %v20007_v0 = vlaneseq  ;;  %v17521_v4 = vld [vmem:[%s17477_s2] sm:$0xff]  ;;  %v17524_v5 = vld [vmem:[%s17477_s2 + $0x10] sm:$0xff]  ;;  %vm17038_vm0 = vmmov 0   ;;  %vm1462_vm2 = vcmask 130048  }
 0x151   : > { %780 = vadd.xlane.f32.xlu0 %v17521_v4  ;;  %784 = vadd.xlane.f32.xlu1 %v17524_v5  ;;  %v17528_v6 = vld [vmem:[#allocation16] sm:$0xff]  ;;  %v17531_v7 = vld [vmem:[%s17477_s2 + $0x8] sm:$0xff]  ;;  %v17547_v16 = vld [vmem:[%s17477_s2 + $0x18] sm:$0xff]  ;;  %s11803_s30 = sshll.u32 %s17473_s7, 2  ;;  %vm11583_vm3 = vcmask 57344   ;;  %s11896_s17 = sshll.u32 %s17119_s19, 6 }
 0x152   : > { %v17512_v1 = vshrl.u32 %v20007_v0, 7  ;;  %v761_v8 = vld [vmem:[%s17485_s3 + $0x8] sm:$0xff]  ;;  %v760_v11 = vld [vmem:[%s17485_s3] sm:$0xff]  ;;  %v762_v18 = vld [vmem:[%s17485_s3 + $0x10] sm:$0xff]  ;;  %s532_s23 = scalar_lea.vmem [#allocation19], %s11803_s30  ;;  %s20852_s5 = sld [smem:[#allocation125_spill]] }
 0x153   : > { %v17550_v17 = vld [vmem:[%s17477_s2 + $0x20] sm:$0xff]  ;;  %v17556_v19 = vld [vmem:[%s17477_s2 + $0x28] sm:$0xff]  ;;  %v763_v21 = vld [vmem:[%s17485_s3 + $0x18] sm:$0xff]  ;;  %s11602_s25 = sshll.u32 %s532_s23, 4  ;;  %s11589_s4 = scalar_lea.sflag [#allocation4], %s17473_s7  ;;  %s19933_s25 = int_to_ptr.vmem [resolvable:$true] %s11602_s25 }
 0x154   : > { %20306 = vst [vmem:[#allocation28_spill] sm:$0xff] %v17512_v1  ;;  %v17515_v2 = vsub.s32 1, %v17512_v1  ;;  %v17518_v3 = vsub.s32 0, %v17512_v1  ;;  %v17560_v22 = vld [vmem:[%s17477_s2 + $0x30] sm:$0xff]  ;;  %v17567_v25 = vld [vmem:[%s17477_s2 + $0x38] sm:$0xff]  ;;  %v541_v27 = vld [vmem:[#allocation7 + $0x8] sm:$0xff] }
 0x155   : > { %782 = vadd.xlane.f32.xlu0 %v17531_v7  ;;  %v543_v28 = vld [vmem:[#allocation7 + $0x18] sm:$0xff]  ;;  %v540_v29 = vld [vmem:[#allocation7] sm:$0xff]  ;;  %v542_v31 = vld [vmem:[#allocation7 + $0x10] sm:$0xff]  ;;  %vm750_vm1 = vcmp.lt.s32.totalorder %v17512_v1, 3  ;;  %s16928_s12 = scalar_lea.vmem %s19933_s25, 64  ;;  %p20853_p2 = scmp.ne.s32.totalorder %s20290_s11, 0 }
 0x156   : > { %v767_v9 = vrot.slane %v17528_v6, %v17515_v2  ;;  %v775_v10 = vrot.slane %v17528_v6, %v17518_v3  ;;  %v13983_v30 = vpack.c.bf16 %v543_v28, %v541_v27  ;;  %v545_v32 = vld [vmem:[#allocation7 + $0x28] sm:$0xff]  ;;  %v547_v33 = vld [vmem:[#allocation7 + $0x38] sm:$0xff]  ;;  %v13985_v34 = vpack.c.bf16 %v542_v31, %v540_v29  ;;  %v544_v36 = vld [vmem:[#allocation7 + $0x20] sm:$0xff]  ;;  %p16929_p0 = scmp.ne.s32.totalorder %s19933_s25, %s16928_s12  ;;  %s17040_s19 = smov [#allocation19]  }
 0x157   : > { %v13987_v35 = vpack.c.bf16 %v547_v33, %v545_v32  ;;  %v546_v37 = vld [vmem:[#allocation7 + $0x30] sm:$0xff]  ;;  %v549_v38 = vld [vmem:[#allocation7 + $0x48] sm:$0xff]  ;;  %v551_v39 = vld [vmem:[#allocation7 + $0x58] sm:$0xff]  ;;  %s16932_s6 = sshll.u32 %s17040_s19, 4  ;;  %s16933_s6 = int_to_ptr.vmem [resolvable:$false] %s16932_s6 }
 0x158   : > { %v769_v12 = vmul.f32 %v767_v9, %v761_v8  ;;  %v768_v13 = vmul.f32 %v767_v9, %v760_v11  ;;  %v770_v20 = vmul.f32 %v767_v9, %v762_v18  ;;  %v771_v23 = vmul.f32 %v767_v9, %v763_v21  ;;  %13984 = vmatprep.subr.bf16.mxu0 %v13983_v30  ;;  %v572_v41 = vld [vmem:[#allocation8] sm:$0xff]  ;;  %v573_v42 = vld [vmem:[#allocation8 + $0x8] sm:$0xff]  ;;  %v550_v45 = vld [vmem:[#allocation7 + $0x50] sm:$0xff]  ;;  %s19939_s26 = scalar_lea.hbm %s20852_s5, %s11896_s17  ;;  %p16930_p5 = pnand %p16929_p0, %p20853_p2 }
 0x159   : > { %13986 = vmatpush1.bf16.msra.mxu0 %v13985_v34  ;;  %v13989_v40 = vpack.c.bf16 %v546_v37, %v544_v36  ;;  %v13991_v43 = vpack.c.bf16 %v551_v39, %v549_v38  ;;  %v548_v44 = vld [vmem:[#allocation7 + $0x40] sm:$0xff]  ;;  %v17574_v46 = vpack.c.bf16 %v573_v42, %v572_v41  ;;  %v555_v32 = vld [vmem:[#allocation7 + $0x78] sm:$0xff]  ;;  %v554_v38 = vld [vmem:[#allocation7 + $0x70] sm:$0xff]  ;;  %s16934_s10 = scalar_lea.vmem %s16933_s6, 128  ;;  %p16935_p4 = scmp.lt.s32.totalorder %s19933_s25, %s16933_s6 }
 0x15a   : > { %v17540_v14 = vadd.f32 %v775_v10, %v769_v12  ;;  %v17542_v15 = vadd.f32 %v775_v10, %v768_v13  ;;  %v17564_v24 = vadd.f32 %v775_v10, %v770_v20  ;;  %v17570_v26 = vadd.f32 %v775_v10, %v771_v23  ;;  %13988 = vmatprep.subr.bf16.mxu0 %v13987_v35  ;;  %v552_v37 = vld [vmem:[#allocation7 + $0x60] sm:$0xff]  ;;  %v574_v39 = vld [vmem:[#allocation8 + $0x10] sm:$0xff]  ;;  %v575_v42 = vld [vmem:[#allocation8 + $0x18] sm:$0xff]  ;;  %p16931_p8 = pneg %p16930_p5  ;;  %p16936_p3 = scmp.lt.s32.totalorder %s16934_s10, %s16928_s12 }
 0x15b   : > { %14016 = vmatprep.subr.bf16.mxu1 %v17574_v46  ;;  %v13993_v47 = vpack.c.bf16 %v550_v45, %v548_v44  ;;  %v13997_v41 = vpack.c.bf16 %v554_v38, %v552_v37  ;;  %v568_v38 = vld [vmem:[#allocation7 + $0xe0] sm:$0xff]  ;;  %v623_v0 = vld [vmem:[#allocation10 + $0x118] sm:$0xff] }
 0x15c   : > { %1025 = vadd.xlane.f32.xlu1 %v17542_v15  ;;  %1027 = vadd.xlane.f32.xlu0 %v17540_v14  ;;  %p16937_p10 = por %p16936_p3, %p16935_p4 }
 0x15d   : > { %13990 = vmatpush1.bf16.msra.mxu0 %v13989_v40  ;;  %14018 = vmatpush3.bf16.msra.mxu1 %v17574_v46 }
 0x15e   : > { %13992 = vmatprep.subr.bf16.mxu0 %v13991_v43  ;;  %v17626_v43 = vpack.c.bf16 %v575_v42, %v574_v39  ;;  %v570_v39 = vld [vmem:[#allocation7 + $0xf0] sm:$0xff]  ;;  %p16938_p1 = pnand %p16937_p10, %p16931_p8 }
 0x160   : > { %786 = vadd.xlane.f32.xlu1 %v17547_v16  ;;  %788 = vadd.xlane.f32.xlu0 %v17550_v17 }
 0x161   : > { %13994 = vmatpush1.bf16.msra.mxu0 %v13993_v47  ;;  %14020 = vmatprep.subr.bf16.mxu1 %v17626_v43 }
 0x162   : > { %14022 = vmatpush3.bf16.msra.mxu1 %v17626_v43 }
 0x164   : > { %790 = vadd.xlane.f32.xlu1 %v17556_v19  ;;  %792 = vadd.xlane.f32.xlu0 %v17560_v22 }
 0x168   : > { %794 = vadd.xlane.f32.xlu1 %v17567_v25  ;;  %1029 = vadd.xlane.f32.xlu0 %v17564_v24 }
 0x16c   : > { %1031 = vadd.xlane.f32.xlu1 %v17570_v26 }
 0x1de   : > { %v781_v48 = vpop.xlane.xlu0 %780  ;;  %v785_v49 = vpop.xlane.xlu1 %784 }
 0x1df   : > { %v797_v50 = vmul.f32 0.0078125, %v781_v48  ;;  %v799_v51 = vmul.f32 0.0078125, %v785_v49  ;;  %v557_v49 = vld [vmem:[#allocation7 + $0x88] sm:$0xff] }
 0x1e1   : > { %v17579_v52 = vsub.f32 %v17521_v4, %v797_v50  ;;  %v17582_v53 = vsub.f32 %v17524_v5, %v799_v51  ;;  %v559_v50 = vld [vmem:[#allocation7 + $0x98] sm:$0xff] }
 0x1e2   : > { %v783_v54 = vpop.xlane.xlu0 %782  ;;  %v13999_v51 = vpack.c.bf16 %v559_v50, %v557_v49  ;;  %v586_v50 = vld [vmem:[#allocation8 + $0x70] sm:$0xff] }
 0x1e3   : > { %v798_v55 = vmul.f32 0.0078125, %v783_v54  ;;  %v813_v56 = vmul.f32 %v17579_v52, %v17579_v52  ;;  %v815_v58 = vmul.f32 %v17582_v53, %v17582_v53  ;;  %v556_v54 = vld [vmem:[#allocation7 + $0x80] sm:$0xff] }
 0x1e5   : > { %821 = vadd.xlane.f32.xlu0 %v813_v56  ;;  %v17589_v59 = vsub.f32 %v17531_v7, %v798_v55  ;;  %v558_v55 = vld [vmem:[#allocation7 + $0x90] sm:$0xff]  ;;  %v576_v56 = vld [vmem:[#allocation8 + $0x20] sm:$0xff] }
 0x1e7   : > { %v814_v63 = vmul.f32 %v17589_v59, %v17589_v59 }
 0x1e9   : > { %v1026_v57 = vpop.xlane.xlu1 %1025  ;;  %v1028_v60 = vpop.xlane.xlu0 %1027  ;;  %825 = vadd.xlane.f32.xlu0 %v815_v58  ;;  %823 = vadd.xlane.f32.xlu1 %v814_v63  ;;  %v14001_v58 = vpack.c.bf16 %v558_v55, %v556_v54  ;;  %v561_v63 = vld [vmem:[#allocation7 + $0xa8] sm:$0xff] }
 0x1ea   : > { %v1033_v61 = vmul.f32 0.0078125, %v1026_v57  ;;  %v1034_v62 = vmul.f32 0.0078125, %v1028_v60  ;;  %v577_v60 = vld [vmem:[#allocation8 + $0x28] sm:$0xff] }
 0x1ec   : > { %v17594_v4 = vsub.f32 %v17542_v15, %v1033_v61  ;;  %v17597_v8 = vsub.f32 %v17540_v14, %v1034_v62  ;;  %v17640_v61 = vpack.c.bf16 %v577_v60, %v576_v56 }
 0x1ed   : > { %v787_v5 = vpop.xlane.xlu1 %786  ;;  %v789_v9 = vpop.xlane.xlu0 %788 }
 0x1ee   : > { %v800_v10 = vmul.f32 0.0078125, %v787_v5  ;;  %v1041_v7 = vmul.f32 %v17594_v4, %v17594_v4  ;;  %v801_v11 = vmul.f32 0.0078125, %v789_v9  ;;  %v1042_v12 = vmul.f32 %v17597_v8, %v17597_v8  ;;  %v563_v5 = vld [vmem:[#allocation7 + $0xb8] sm:$0xff]  ;;  %14024 = vmatprep.subr.bf16.mxu1 %v17640_v61 }
 0x1ef   : > { %v14003_v9 = vpack.c.bf16 %v563_v5, %v561_v63  ;;  %14026 = vmatpush3.bf16.msra.mxu1 %v17640_v61 }
 0x1f0   : > { %v17604_v13 = vsub.f32 %v17547_v16, %v800_v10  ;;  %1047 = vadd.xlane.f32.xlu0 %v1042_v12  ;;  %1045 = vadd.xlane.f32.xlu1 %v1041_v7  ;;  %v17607_v20 = vsub.f32 %v17550_v17, %v801_v11  ;;  %v553_v17 = vld [vmem:[#allocation7 + $0x68] sm:$0xff]  ;;  %v560_v10 = vld [vmem:[#allocation7 + $0xa0] sm:$0xff]  ;;  %v562_v7 = vld [vmem:[#allocation7 + $0xb0] sm:$0xff] }
 0x1f1   : > { %v791_v18 = vpop.xlane.xlu1 %790  ;;  %v793_v21 = vpop.xlane.xlu0 %792  ;;  %v13995_v36 = vpack.c.bf16 %v555_v32, %v553_v17  ;;  %v578_v11 = vld [vmem:[#allocation8 + $0x30] sm:$0xff]  ;;  %v14005_v12 = vpack.c.bf16 %v562_v7, %v560_v10  ;;  %v580_v17 = vld [vmem:[#allocation8 + $0x40] sm:$0xff] }
 0x1f2   : > { %v802_v23 = vmul.f32 0.0078125, %v791_v18  ;;  %v816_v27 = vmul.f32 %v17604_v13, %v17604_v13  ;;  %v803_v28 = vmul.f32 0.0078125, %v793_v21  ;;  %v817_v29 = vmul.f32 %v17607_v20, %v17607_v20  ;;  %v579_v18 = vld [vmem:[#allocation8 + $0x38] sm:$0xff] }
 0x1f3   : > { %13996 = vmatprep.subr.bf16.mxu0 %v13995_v36  ;;  %v17646_v21 = vpack.c.bf16 %v579_v18, %v578_v11  ;;  %v571_v36 = vld [vmem:[#allocation7 + $0xf8] sm:$0xff]  ;;  %v17668_v18 = vsub.s32 2, %v17512_v1 }
 0x1f4   : > { %v17614_v30 = vsub.f32 %v17556_v19, %v802_v23  ;;  %829 = vadd.xlane.f32.xlu0 %v817_v29  ;;  %827 = vadd.xlane.f32.xlu1 %v816_v27  ;;  %v17617_v31 = vsub.f32 %v17560_v22, %v803_v28  ;;  %v565_v23 = vld [vmem:[#allocation7 + $0xc8] sm:$0xff]  ;;  %v567_v27 = vld [vmem:[#allocation7 + $0xd8] sm:$0xff]  ;;  %v564_v29 = vld [vmem:[#allocation7 + $0xc0] sm:$0xff] }
 0x1f5   : > { %v795_v16 = vpop.xlane.xlu1 %794  ;;  %v1030_v33 = vpop.xlane.xlu0 %1029  ;;  %13998 = vmatpush1.bf16.msra.mxu0 %v13997_v41  ;;  %14028 = vmatprep.subr.bf16.mxu1 %v17646_v21  ;;  %v14007_v28 = vpack.c.bf16 %v567_v27, %v565_v23  ;;  %v583_v41 = vld [vmem:[#allocation8 + $0x58] sm:$0xff]  ;;  %20307 = vst [vmem:[#allocation29_spill] sm:$0xff] %v17668_v18 }
 0x1f6   : > { %v804_v34 = vmul.f32 0.0078125, %v795_v16  ;;  %v818_v35 = vmul.f32 %v17614_v30, %v17614_v30  ;;  %v1035_v40 = vmul.f32 0.0078125, %v1030_v33  ;;  %v819_v19 = vmul.f32 %v17617_v31, %v17617_v31  ;;  %14000 = vmatprep.subr.bf16.mxu0 %v13999_v51  ;;  %v566_v16 = vld [vmem:[#allocation7 + $0xd0] sm:$0xff]  ;;  %14030 = vmatpush3.bf16.msra.mxu1 %v17646_v21  ;;  %v581_v33 = vld [vmem:[#allocation8 + $0x48] sm:$0xff] }
 0x1f7   : > { %v14009_v32 = vpack.c.bf16 %v566_v16, %v564_v29  ;;  %v17671_v16 = vsub.s32 3, %v17512_v1 }
 0x1f8   : > { %v17624_v22 = vsub.f32 %v17567_v25, %v804_v34  ;;  %833 = vadd.xlane.f32.xlu0 %v819_v19  ;;  %831 = vadd.xlane.f32.xlu1 %v818_v35  ;;  %v17629_v45 = vsub.f32 %v17564_v24, %v1035_v40  ;;  %v17650_v34 = vpack.c.bf16 %v581_v33, %v580_v17  ;;  %v569_v35 = vld [vmem:[#allocation7 + $0xe8] sm:$0xff]  ;;  %v582_v40 = vld [vmem:[#allocation8 + $0x50] sm:$0xff] }
 0x1f9   : > { %v1032_v44 = vpop.xlane.xlu1 %1031  ;;  %14002 = vmatpush1.bf16.msra.mxu0 %v14001_v58  ;;  %v14011_v37 = vpack.c.bf16 %v571_v36, %v569_v35  ;;  %v14013_v19 = vpack.c.bf16 %v570_v39, %v568_v38  ;;  %v17654_v42 = vpack.c.bf16 %v583_v41, %v582_v40  ;;  %v17675_v33 = vrot.slane %v17528_v6, %v17668_v18 }
 0x1fa   : > { %v1036_v47 = vmul.f32 0.0078125, %v1032_v44  ;;  %v820_v48 = vmul.f32 %v17624_v22, %v17624_v22  ;;  %v1043_v25 = vmul.f32 %v17629_v45, %v17629_v45  ;;  %14004 = vmatprep.subr.bf16.mxu0 %v14003_v9  ;;  %14032 = vmatprep.subr.bf16.mxu1 %v17650_v34  ;;  %v584_v44 = vld [vmem:[#allocation8 + $0x60] sm:$0xff] }
 0x1fb   : > { %14034 = vmatpush3.bf16.msra.mxu1 %v17650_v34 }
 0x1fc   : > { %v17638_v57 = vsub.f32 %v17570_v26, %v1036_v47  ;;  %1049 = vadd.xlane.f32.xlu0 %v1043_v25  ;;  %835 = vadd.xlane.f32.xlu1 %v820_v48  ;;  %v585_v47 = vld [vmem:[#allocation8 + $0x68] sm:$0xff]  ;;  %v20012_v48 = vmov 0.0   ;;  %v587_v25 = vld [vmem:[#allocation8 + $0x78] sm:$0xff] }
 0x1fd   : > { %14006 = vmatpush1.bf16.msra.mxu0 %v14005_v12  ;;  %14036 = vmatprep.subr.bf16.mxu1 %v17654_v42  ;;  %v17659_v49 = vpack.c.bf16 %v585_v47, %v584_v44  ;;  %v17663_v51 = vpack.c.bf16 %v587_v25, %v586_v50  ;;  %v900_v47 = vsub.s32 4, %v17512_v1 }
 0x1fe   : > { %v1044_v62 = vmul.f32 %v17638_v57, %v17638_v57  ;;  %14008 = vmatprep.subr.bf16.mxu0 %v14007_v28  ;;  %976 = vmatprep.mubr.f32.mxu0 %v20012_v48 }
 0x1ff   : > { %14038 = vmatpush3.bf16.msra.mxu1 %v17654_v42 }
 0x200   : > { %1051 = vadd.xlane.f32.xlu1 %v1044_v62  ;;  %14040 = vmatprep.subr.bf16.mxu1 %v17659_v49 }
 0x201   : > { %14010 = vmatpush1.bf16.msra.mxu0 %v14009_v32 }
 0x202   : > { %14012 = vmatprep.subr.bf16.mxu0 %v14011_v37 }
 0x203   : > { %14042 = vmatpush3.bf16.msra.mxu1 %v17659_v49 }
 0x204   : > { %14044 = vmatprep.subr.bf16.mxu1 %v17663_v51 }
 0x205   : > { %14014 = vmatpush1.bf16.msra.mxu0 %v14013_v19  ;;  %v17680_v19 = vrot.slane %v17528_v6, %v17671_v16 }
 0x207   : > { %14046 = vmatpush3.bf16.msra.mxu1 %v17663_v51 }
 0x272   : > { %v822_v54 = vpop.xlane.xlu0 %821 }
 0x273   : > { %v837_v55 = vmul.f32 0.0078125, %v822_v54  ;;  %v20011_v54 = vsub.s32 5, %v17512_v1 }
 0x275   : > { %v845_v56 = vadd.f32 1e-05, %v837_v55 }
 0x276   : > { %v826_v58 = vpop.xlane.xlu0 %825  ;;  %v824_v60 = vpop.xlane.xlu1 %823 }
 0x277   : > { %16065 = vrsqrt.f32 %v845_v56  ;;  %v839_v62 = vmul.f32 0.0078125, %v826_v58  ;;  %v838_v63 = vmul.f32 0.0078125, %v824_v60 }
 0x279   : > { %v847_v5 = vadd.f32 1e-05, %v839_v62  ;;  %v846_v9 = vadd.f32 1e-05, %v838_v63 }
 0x27b   : > { %16067 = vrsqrt.f32 %v847_v5 }
 0x27c   : > { %16069 = vrsqrt.f32 %v846_v9 }
 0x27d   : > { %v1048_v10 = vpop.xlane.xlu0 %1047  ;;  %v1046_v7 = vpop.xlane.xlu1 %1045 }
 0x27e   : > { %v1054_v11 = vmul.f32 0.0078125, %v1048_v10  ;;  %v1053_v12 = vmul.f32 0.0078125, %v1046_v7  ;;  %v17691_v7 = vrot.slane %v17528_v6, %v900_v47 }
 0x280   : > { %v1058_v23 = vadd.f32 1e-05, %v1054_v11  ;;  %v1057_v27 = vadd.f32 1e-05, %v1053_v12  ;;  %20308 = vst [vmem:[#allocation30_spill] sm:$0xff] %v17691_v7  ;;  %v17696_v12 = vrot.slane %v17528_v6, %v20011_v54  ;;  %v643_v54 = vld [vmem:[#allocation11 + $0x38] sm:$0xff] }
 0x281   : > { %v830_v28 = vpop.xlane.xlu0 %829  ;;  %v828_v29 = vpop.xlane.xlu1 %827 }
 0x282   : > { %16071 = vrsqrt.f32 %v1058_v23  ;;  %v841_v17 = vmul.f32 0.0078125, %v830_v28  ;;  %v840_v32 = vmul.f32 0.0078125, %v828_v29  ;;  %v16066_v35 = vpop.eup %16065  ;;  %20309 = vst [vmem:[#allocation31_spill] sm:$0xff] %v17696_v12 }
 0x283   : > { %16073 = vrsqrt.f32 %v1057_v27  ;;  %v861_v40 = vmul.f32 %v16066_v35, %v17579_v52 }
 0x284   : > { %v849_v36 = vadd.f32 1e-05, %v841_v17  ;;  %v848_v37 = vadd.f32 1e-05, %v840_v32 }
 0x285   : > { %v834_v38 = vpop.xlane.xlu0 %833  ;;  %v832_v39 = vpop.xlane.xlu1 %831  ;;  %v873_v50 = vmul.f32 %v17675_v33, %v861_v40 }
 0x286   : > { %16075 = vrsqrt.f32 %v849_v36  ;;  %v843_v41 = vmul.f32 0.0078125, %v834_v38  ;;  %v842_v44 = vmul.f32 0.0078125, %v832_v39  ;;  %v16068_v25 = vpop.eup %16067 }
 0x287   : > { %16077 = vrsqrt.f32 %v848_v37  ;;  %v16070_v56 = vpop.eup %16069  ;;  %v885_v62 = vadd.f32 %v17680_v19, %v873_v50  ;;  %v863_v63 = vmul.f32 %v16068_v25, %v17582_v53 }
 0x288   : > { %v850_v55 = vadd.f32 1e-05, %v842_v44  ;;  %v851_v58 = vadd.f32 1e-05, %v843_v41  ;;  %v862_v10 = vmul.f32 %v16070_v56, %v17589_v59 }
 0x289   : > { %v1050_v60 = vpop.xlane.xlu0 %1049  ;;  %v836_v52 = vpop.xlane.xlu1 %835  ;;  %977 = vmatmul.mubr.f32.vlgmr.msra.gmra.mrb[0].mxu0 %v885_v62  ;;  %v875_v29 = vmul.f32 %v17675_v33, %v863_v63 }
 0x28a   : > { %v1055_v5 = vmul.f32 0.0078125, %v1050_v60  ;;  %v844_v9 = vmul.f32 0.0078125, %v836_v52  ;;  %16079 = vrsqrt.f32 %v850_v55  ;;  %982 = vmatprep.mubr.f32.mxu0 %v20012_v48  ;;  %v874_v53 = vmul.f32 %v17675_v33, %v862_v10 }
 0x28b   : > { %16081 = vrsqrt.f32 %v851_v58  ;;  %v887_v44 = vadd.f32 %v17680_v19, %v875_v29 }
 0x28c   : > { %v16072_v11 = vpop.eup %16071  ;;  %v1059_v23 = vadd.f32 1e-05, %v1055_v5  ;;  %v852_v59 = vadd.f32 1e-05, %v844_v9  ;;  %v886_v35 = vadd.f32 %v17680_v19, %v874_v53 }
 0x28d   : > { %v16074_v27 = vpop.eup %16073  ;;  %v1052_v28 = vpop.xlane.xlu1 %1051  ;;  %v1066_v17 = vmul.f32 %v16072_v11, %v17597_v8 }
 0x28e   : > { %16083 = vrsqrt.f32 %v1059_v23  ;;  %v1056_v32 = vmul.f32 0.0078125, %v1052_v28  ;;  %v1065_v36 = vmul.f32 %v16074_v27, %v17594_v4  ;;  %983 = vmatmul.mubr.f32.gmra.mrb[2].mxu0 %v886_v35 }
 0x28f   : > { %v1074_v37 = vmul.f32 %v17691_v7, %v1066_v17  ;;  %16085 = vrsqrt.f32 %v852_v59  ;;  %988 = vmatprep.mubr.f32.mxu0 %v20012_v48 }
 0x290   : > { %v16076_v38 = vpop.eup %16075  ;;  %v1060_v39 = vadd.f32 1e-05, %v1056_v32  ;;  %v1073_v40 = vmul.f32 %v17691_v7, %v1065_v36 }
 0x291   : > { %v16078_v41 = vpop.eup %16077  ;;  %v1082_v8 = vadd.f32 %v17696_v12, %v1074_v37  ;;  %v865_v25 = vmul.f32 %v16076_v38, %v17607_v20 }
 0x292   : > { %16087 = vrsqrt.f32 %v1060_v39  ;;  %v1081_v50 = vadd.f32 %v17696_v12, %v1073_v40  ;;  %v864_v4 = vmul.f32 %v16078_v41, %v17604_v13  ;;  %989 = vmatmul.mubr.f32.gmra.mrb[4].mxu0 %v887_v44 }
 0x293   : > { %994 = vmatprep.mubr.f32.mxu0 %v20012_v48  ;;  %v877_v60 = vmul.f32 %v17675_v33, %v865_v25 }
 0x294   : > { %12825 = vmatprep.mubr.f32.mxu1 %v1081_v50  ;;  %v876_v55 = vmul.f32 %v17675_v33, %v864_v4  ;;  %v16080_v56 = vpop.eup %16079 }
 0x295   : > { %12826 = vmatmul.mubr.f32.vlgmr.msra.gmra.mrb[0].mxu1 %v1082_v8  ;;  %v866_v52 = vmul.f32 %v16080_v56, %v17614_v30  ;;  %v16082_v62 = vpop.eup %16081  ;;  %v889_v20 = vadd.f32 %v17680_v19, %v877_v60  ;;  %v20010_v8 = vsub.s32 6, %v17512_v1 }
 0x296   : > { %v888_v58 = vadd.f32 %v17680_v19, %v876_v55  ;;  %v867_v9 = vmul.f32 %v16082_v62, %v17617_v31 }
 0x297   : > { %v878_v5 = vmul.f32 %v17675_v33, %v866_v52  ;;  %v17760_v60 = vrot.slane %v17528_v6, %v20010_v8 }
 0x298   : > { %v16084_v63 = vpop.eup %16083  ;;  %995 = vmatmul.mubr.f32.gmra.mrb[6].mxu0 %v888_v58 }
 0x299   : > { %1000 = vmatprep.mubr.f32.mxu0 %v20012_v48  ;;  %v1067_v13 = vmul.f32 %v16084_v63, %v17629_v45  ;;  %v16086_v10 = vpop.eup %16085  ;;  %v890_v27 = vadd.f32 %v17680_v19, %v878_v5  ;;  %v879_v45 = vmul.f32 %v17675_v33, %v867_v9  ;;  %20312 = vst [vmem:[#allocation34_spill] sm:$0xff] %v17760_v60 }
 0x29a   : > { %v868_v59 = vmul.f32 %v16086_v10, %v17624_v22  ;;  %v20008_v22 = vmov 0.0|0.0  }
 0x29b   : > { %v1075_v11 = vmul.f32 %v17691_v7, %v1067_v13  ;;  %v891_v29 = vadd.f32 %v17680_v19, %v879_v45  ;;  %14047 = vmatprep.subr.bf16.mxu1 %v20008_v22  ;;  %14056 = vmatprep.subr.bf16.mxu0 %v20008_v22 }
 0x29c   : > { %v16088_v23 = vpop.eup %16087  ;;  %1001 = vmatmul.mubr.f32.gmra.mrb[8].mxu0 %v889_v20  ;;  %v880_v17 = vmul.f32 %v17675_v33, %v868_v59  ;;  %v17742_v33 = vld [vmem:[#allocation17] sm:$0xff] }
 0x29d   : > { %1006 = vmatprep.mubr.f32.mxu0 %v20012_v48  ;;  %v1083_v30 = vadd.f32 %v17696_v12, %v1075_v11  ;;  %v1068_v53 = vmul.f32 %v16088_v23, %v17638_v57  ;;  %v897_v32 = vrot.slane %v17742_v33, %v17518_v3 }
 0x29e   : > { %v892_v57 = vadd.f32 %v17680_v19, %v880_v17  ;;  %v901_v19 = vrot.slane %v17742_v33, %v900_v47 }
 0x29f   : > { %12828 = vmatprep.mubr.f32.mxu1 %v1083_v30  ;;  %v1076_v31 = vmul.f32 %v17691_v7, %v1068_v53  ;;  %v907_v37 = vrot.slane %v897_v32, %v17518_v3 }
 0x2a0   : > { %1007 = vmatmul.mubr.f32.gmra.mrb[10].mxu0 %v890_v27  ;;  %v911_v38 = vrot.slane %v901_v19, %v17518_v3 }
 0x2a1   : > { %1012 = vmatprep.mubr.f32.mxu0 %v20012_v48  ;;  %v1084_v28 = vadd.f32 %v17696_v12, %v1076_v31 }
 0x2a3   : > { %12829 = vmatmul.mubr.f32.gmra.mrb[2].mxu1 %v1084_v28 }
 0x2a4   : > { %1013 = vmatmul.mubr.f32.gmra.mrb[12].mxu0 %v891_v29  ;;  %12835 = vmatprep.mubr.msk.f32.mxu1 %vm17038_vm0, %v20012_v48 }
 0x2a5   : > { %1018 = vmatprep.mubr.f32.mxu0 %v20012_v48 }
 0x2a8   : > { %1019 = vmatmul.mubr.f32.gmra.mrb[14].mxu0 %v892_v57 }
 0x2a9   : > { %12856 = vmatprep.mubr.msk.f32.mxu0 %vm17038_vm0, %v20012_v48 }
 0x35c   : > { %v978_v35 = vpop.f32.mrb[0].mxu0 }
 0x35d   : > { %v980_v36 = vpop.f32.mrb[1].mxu0  ;;  %v979_v40 = vadd.f32 %v978_v35, %v907_v37 }
 0x35e   : > { %v981_v50 = vadd.f32 %v980_v36, %v911_v38 }
 0x361   : > { %v984_v39 = vpop.f32.mrb[2].mxu0 }
 0x362   : > { %v985_v41 = vadd.f32 %v984_v39, %v907_v37  ;;  %v986_v44 = vpop.f32.mrb[3].mxu0 }
 0x363   : > { %v987_v4 = vadd.f32 %v986_v44, %v911_v38 }
 0x364   : > { %v17752_v25 = vpack.c.bf16 %v985_v41, %v979_v40 }
 0x365   : > { %v17754_v55 = vpack.c.bf16 %v987_v4, %v981_v50  ;;  %v990_v56 = vpop.f32.mrb[4].mxu0 }
 0x366   : > { %20310 = vst [vmem:[#allocation32_spill] sm:$0xff] %v17752_v25  ;;  %v992_v47 = vpop.f32.mrb[5].mxu0  ;;  %14049 = vmatpush3.bf16.xpose.msra.mxu1 %v17752_v25  ;;  %v991_v13 = vadd.f32 %v990_v56, %v907_v37 }
 0x367   : > { %20311 = vst [vmem:[#allocation33_spill] sm:$0xff] %v17754_v55  ;;  %v993_v52 = vadd.f32 %v992_v47, %v911_v38  ;;  %14050 = vmatprep.subr.bf16.mxu1 %v20008_v22 }
 0x368   : > { %v12827_v58 = vpop.f32.mrb[0].mxu1 }
 0x369   : > { %v1155_v62 = vpop.f32.mrb[1].mxu1  ;;  %v1161_v31 = vadd.f32 %v12827_v58, %v17760_v60 }
 0x36a   : > { %v1156_v9 = vadd.f32 %v1155_v62, %v17760_v60 }
 0x36b   : > { %v996_v63 = vpop.f32.mrb[6].mxu0 }
 0x36c   : > { %v997_v20 = vadd.f32 %v996_v63, %v907_v37  ;;  %v998_v5 = vpop.f32.mrb[7].mxu0 }
 0x36d   : > { %v999_v10 = vadd.f32 %v998_v5, %v911_v38  ;;  %12836 = vmatmul.mubr.f32.vlgmr.msra.gmra.mrb[4].mxu1 %v1156_v9 }
 0x36e   : > { %v17764_v11 = vpack.c.bf16 %v997_v20, %v991_v13  ;;  %12842 = vmatprep.mubr.msk.f32.mxu1 %vm17038_vm0, %v20012_v48 }
 0x36f   : > { %v17766_v23 = vpack.c.bf16 %v999_v10, %v993_v52  ;;  %v1002_v30 = vpop.f32.mrb[8].mxu0 }
 0x370   : > { %20313 = vst [vmem:[#allocation35_spill] sm:$0xff] %v17764_v11  ;;  %v1004_v53 = vpop.f32.mrb[9].mxu0  ;;  %14052 = vmatpush3.bf16.xpose.msra.mxu1 %v17764_v11  ;;  %v1003_v27 = vadd.f32 %v1002_v30, %v907_v37 }
 0x371   : > { %14053 = vmatprep.subr.bf16.mxu1 %v20008_v22  ;;  %v1005_v28 = vadd.f32 %v1004_v53, %v911_v38 }
 0x373   : > { %v1008_v6 = vpop.f32.mrb[10].mxu0 }
 0x374   : > { %v1009_v45 = vadd.f32 %v1008_v6, %v907_v37  ;;  %v1010_v59 = vpop.f32.mrb[11].mxu0 }
 0x375   : > { %v1011_v29 = vadd.f32 %v1010_v59, %v911_v38 }
 0x376   : > { %v17773_v17 = vpack.c.bf16 %v1009_v45, %v1003_v27  ;;  %v12830_v57 = vpop.f32.mrb[2].mxu1 }
 0x377   : > { %v17775_v32 = vpack.c.bf16 %v1011_v29, %v1005_v28  ;;  %v1014_v19 = vpop.f32.mrb[12].mxu0  ;;  %12843 = vmatmul.mubr.f32.vlgmr.msra.gmra.mrb[6].mxu1 %v1161_v31  ;;  %v1165_v35 = vpop.f32.mrb[3].mxu1 }
 0x378   : > { %20314 = vst [vmem:[#allocation36_spill] sm:$0xff] %v17773_v17  ;;  %v1016_v36 = vpop.f32.mrb[13].mxu0  ;;  %14055 = vmatpush3.bf16.xpose.msra.mxu1 %v17773_v17  ;;  %12849 = vmatprep.mubr.msk.f32.mxu1 %vm17038_vm0, %v20012_v48  ;;  %v1015_v41 = vadd.f32 %v1014_v19, %v907_v37  ;;  %v1166_v4 = vadd.f32 %v1165_v35, %v17760_v60 }
 0x379   : > { %20315 = vst [vmem:[#allocation37_spill] sm:$0xff] %v17775_v32  ;;  %v1017_v39 = vadd.f32 %v1016_v36, %v911_v38  ;;  %14059 = vmatprep.subr.bf16.mxu1 %v20008_v22 }
 0x37b   : > { %v1020_v40 = vpop.f32.mrb[14].mxu0 }
 0x37c   : > { %v1021_v44 = vadd.f32 %v1020_v40, %v907_v37  ;;  %v1022_v50 = vpop.f32.mrb[15].mxu0  ;;  %v1171_v37 = vadd.f32 %v12830_v57, %v17760_v60 }
 0x37d   : > { %v1023_v56 = vadd.f32 %v1022_v50, %v911_v38  ;;  %v17039_v38 = vmov -1e+30  }
 0x37e   : > { %v17782_v47 = vpack.c.bf16 %v1021_v44, %v1015_v41  ;;  %v17797_v52 = vsel %vm750_vm1, 0.0, %v17039_v38 }
 0x37f   : > { %v17784_v58 = vpack.c.bf16 %v1023_v56, %v1017_v39  ;;  %12850 = vmatmul.mubr.f32.vlgmr.msra.gmra.mrb[8].mxu1 %v1166_v4 }
 0x380   : > { %20316 = vst [vmem:[#allocation38_spill] sm:$0xff] %v17782_v47  ;;  %14058 = vmatpush3.bf16.xpose.msra.mxu0 %v17782_v47  ;;  %14061 = vmatpush3.bf16.msra.mxu1 %v17754_v55 }
 0x381   : > { %14065 = vmatprep.subr.bf16.mxu0 %v20008_v22  ;;  %12863 = vmatprep.mubr.msk.f32.mxu1 %vm17038_vm0, %v20012_v48 }
 0x382   : > { %14062 = vmatprep.subr.bf16.mxu1 %v20008_v22 }
 0x387   : > { %12857 = vmatmul.mubr.f32.vlgmr.msra.gmra.mrb[16].mxu0 %v1171_v37 }
 0x388   : > { %14067 = vmatpush3.bf16.msra.mxu0 %v17775_v32  ;;  %12877 = vmatprep.mubr.msk.f32.mxu0 %vm17038_vm0, %v20012_v48 }
 0x440   : > { %v1240_v62 = vpop.f32.mrb[4].mxu1 }
 0x441   : > { %v1454_v63 = vmul.f32 0.088388346, %v1240_v62  ;;  %v12837_v13 = vpop.f32.mrb[5].mxu1 }
 0x443   : > { %v1458_v20 = vadd.f32 %v1454_v63, %v17797_v52 }
 0x445   : > { %v1463_v5 = vsel %vm1462_vm2, %v1458_v20, -inf }
 0x446   : > { %v1464_v9 = vrot.slane %v1463_v5, 4 }
 0x448   : > { %v1465_v10 = vmax.f32 %v1463_v5, %v1464_v9 }
 0x44a   : > { %v1310_v30 = vpop.f32.mrb[6].mxu1  ;;  %v1466_v27 = vrot.slane %v1465_v10, 2 }
 0x44b   : > { %v1455_v53 = vmul.f32 0.088388346, %v1310_v30  ;;  %v12844_v6 = vpop.f32.mrb[7].mxu1 }
 0x44c   : > { %v1467_v59 = vmax.f32 %v1465_v10, %v1466_v27 }
 0x44d   : > { %v1459_v45 = vadd.f32 %v1455_v53, %v17797_v52 }
 0x44e   : > { %v1468_v28 = vrot.slane %v1467_v59, 1 }
 0x44f   : > { %v1470_v31 = vsel %vm1462_vm2, %v1459_v45, -inf }
 0x450   : > { %v1471_v29 = vrot.slane %v1470_v31, 4  ;;  %v1469_v57 = vmax.f32 %v1467_v59, %v1468_v28 }
 0x452   : > { %v1472_v19 = vmax.f32 %v1470_v31, %v1471_v29  ;;  %v1380_v35 = vpop.f32.mrb[8].mxu1  ;;  %v1491_v40 = vsub.f32 %v1458_v20, %v1469_v57 }
 0x453   : > { %v1456_v36 = vmul.f32 0.088388346, %v1380_v35  ;;  %v12851_v39 = vpop.f32.mrb[9].mxu1 }
 0x454   : > { %v1473_v41 = vrot.slane %v1472_v19, 2  ;;  %v1495_v50 = vmul.f32 1.442695, %v1491_v40 }
 0x455   : > { %v1460_v44 = vadd.f32 %v1456_v36, %v17797_v52 }
 0x456   : > { %v1474_v4 = vmax.f32 %v1472_v19, %v1473_v41  ;;  %16089 = vpow2.f32 %v1495_v50 }
 0x457   : > { %v1477_v56 = vsel %vm1462_vm2, %v1460_v44, -inf }
 0x458   : > { %v1475_v37 = vrot.slane %v1474_v4, 1  ;;  %v1478_v38 = vrot.slane %v1477_v56, 4 }
 0x45a   : > { %v1476_v62 = vmax.f32 %v1474_v4, %v1475_v37  ;;  %v1479_v63 = vmax.f32 %v1477_v56, %v1478_v38  ;;  %v1450_v13 = vpop.f32.mrb[16].mxu0 }
 0x45b   : > { %v1457_v5 = vmul.f32 0.088388346, %v1450_v13  ;;  %v12858_v9 = vpop.f32.mrb[17].mxu0 }
 0x45c   : > { %v1492_v10 = vsub.f32 %v1459_v45, %v1476_v62  ;;  %v1480_v30 = vrot.slane %v1479_v63, 2 }
 0x45d   : > { %v1461_v53 = vadd.f32 %v1457_v5, %v17797_v52 }
 0x45e   : > { %v1497_v20 = vmul.f32 1.442695, %v1492_v10  ;;  %v1481_v6 = vmax.f32 %v1479_v63, %v1480_v30 }
 0x45f   : > { %v1484_v27 = vsel %vm1462_vm2, %v1461_v53, -inf }
 0x460   : > { %16091 = vpow2.f32 %v1497_v20  ;;  %v1482_v59 = vrot.slane %v1481_v6, 1  ;;  %v1485_v31 = vrot.slane %v1484_v27, 4  ;;  %v16090_v28 = vpop.eup %16089 }
 0x461   : > { %v1503_v19 = vsel %vm1462_vm2, %v16090_v28, 0.0 }
 0x462   : > { %v1483_v29 = vmax.f32 %v1481_v6, %v1482_v59  ;;  %v1486_v57 = vmax.f32 %v1484_v27, %v1485_v31  ;;  %v1504_v35 = vrot.slane %v1503_v19, 4 }
 0x464   : > { %v1493_v36 = vsub.f32 %v1460_v44, %v1483_v29  ;;  %v1487_v39 = vrot.slane %v1486_v57, 2  ;;  %v1505_v40 = vadd.f32 %v1504_v35, %v1503_v19 }
 0x466   : > { %v1499_v45 = vmul.f32 1.442695, %v1493_v36  ;;  %v1488_v41 = vmax.f32 %v1486_v57, %v1487_v39  ;;  %v1506_v4 = vrot.slane %v1505_v40, 2 }
 0x468   : > { %16093 = vpow2.f32 %v1499_v45  ;;  %v1489_v50 = vrot.slane %v1488_v41, 1  ;;  %v1507_v38 = vadd.f32 %v1506_v4, %v1505_v40 }
 0x46a   : > { %v16092_v56 = vpop.eup %16091  ;;  %v1490_v37 = vmax.f32 %v1488_v41, %v1489_v50  ;;  %v1508_v5 = vrot.slane %v1507_v38, 1 }
 0x46b   : > { %v1510_v62 = vsel %vm1462_vm2, %v16092_v56, 0.0 }
 0x46c   : > { %v1511_v63 = vrot.slane %v1510_v62, 4  ;;  %v1494_v13 = vsub.f32 %v1461_v53, %v1490_v37  ;;  %v1509_v30 = vadd.f32 %v1508_v5, %v1507_v38 }
 0x46e   : > { %v1512_v9 = vadd.f32 %v1511_v63, %v1510_v62  ;;  %v1501_v10 = vmul.f32 1.442695, %v1494_v13 }
 0x470   : > { %16095 = vpow2.f32 %v1501_v10  ;;  %v1513_v44 = vrot.slane %v1512_v9, 2 }
 0x471   : > { %16097 = vrcp.f32 %v1509_v30 }
 0x472   : > { %v16094_v20 = vpop.eup %16093  ;;  %v1514_v6 = vadd.f32 %v1513_v44, %v1512_v9 }
 0x473   : > { %v1517_v27 = vsel %vm1462_vm2, %v16094_v20, 0.0 }
 0x474   : > { %v1518_v59 = vrot.slane %v1517_v27, 4  ;;  %v1515_v31 = vrot.slane %v1514_v6, 1 }
 0x476   : > { %v1519_v29 = vadd.f32 %v1518_v59, %v1517_v27  ;;  %v1516_v57 = vadd.f32 %v1515_v31, %v1514_v6 }
 0x478   : > { %16099 = vrcp.f32 %v1516_v57  ;;  %v1520_v19 = vrot.slane %v1519_v29, 2 }
 0x47a   : > { %v16096_v35 = vpop.eup %16095  ;;  %v1521_v36 = vadd.f32 %v1520_v19, %v1519_v29 }
 0x47b   : > { %v16098_v53 = vpop.eup %16097  ;;  %v1524_v39 = vsel %vm1462_vm2, %v16096_v35, 0.0 }
 0x47c   : > { %v1525_v40 = vrot.slane %v1524_v39, 4  ;;  %v1532_v45 = vmul.f32 %v16098_v53, %v16090_v28  ;;  %v1522_v41 = vrot.slane %v1521_v36, 1 }
 0x47e   : > { %v1526_v50 = vadd.f32 %v1525_v40, %v1524_v39  ;;  %v1539_v4 = vadd.f32 1e-08, %v1532_v45  ;;  %v1523_v37 = vadd.f32 %v1522_v41, %v1521_v36  ;;  %v592_v36 = vld [vmem:[#allocation10 + $0x20] sm:$0xff]  ;;  %v590_v41 = vld [vmem:[#allocation10 + $0x10] sm:$0xff] }
 0x480   : > { %v1543_v38 = vsel %vm1462_vm2, %v1539_v4, 0.0  ;;  %16101 = vrcp.f32 %v1523_v37  ;;  %v1527_v62 = vrot.slane %v1526_v50, 2 }
 0x481   : > { %1544 = vadd.xlane.f32.xlu0 %v1543_v38 }
 0x482   : > { %v16100_v63 = vpop.eup %16099  ;;  %v1528_v13 = vadd.f32 %v1527_v62, %v1526_v50  ;;  %v593_v50 = vld [vmem:[#allocation10 + $0x28] sm:$0xff] }
 0x483   : > { %v1534_v5 = vmul.f32 %v16100_v63, %v16092_v56  ;;  %v589_v56 = vld [vmem:[#allocation10 + $0x8] sm:$0xff]  ;;  %v17823_v62 = vpack.c.bf16 %v593_v50, %v590_v41  ;;  %v588_v63 = vld [vmem:[#allocation10] sm:$0xff] }
 0x484   : > { %v1529_v9 = vrot.slane %v1528_v13, 1  ;;  %v17815_v53 = vpack.c.bf16 %v592_v36, %v589_v56  ;;  %v600_v36 = vld [vmem:[#allocation10 + $0x60] sm:$0xff] }
 0x485   : > { %v1540_v10 = vadd.f32 1e-08, %v1534_v5  ;;  %v595_v5 = vld [vmem:[#allocation10 + $0x38] sm:$0xff] }
 0x486   : > { %v1530_v30 = vadd.f32 %v1529_v9, %v1528_v13  ;;  %20317 = vst [vmem:[#allocation39_spill] sm:$0xff] %v17815_v53  ;;  %14072 = vmatprep.subr.bf16.mxu0 %v17815_v53  ;;  %v591_v13 = vld [vmem:[#allocation10 + $0x18] sm:$0xff]  ;;  %v598_v9 = vld [vmem:[#allocation10 + $0x50] sm:$0xff] }
 0x487   : > { %v1546_v44 = vsel %vm1462_vm2, %v1540_v10, 0.0 }
 0x488   : > { %1547 = vadd.xlane.f32.xlu1 %v1546_v44  ;;  %16103 = vrcp.f32 %v1530_v30  ;;  %v17830_v44 = vpack.c.bf16 %v591_v13, %v588_v63  ;;  %v613_v13 = vld [vmem:[#allocation10 + $0xc8] sm:$0xff] }
 0x48a   : > { %v16102_v28 = vpop.eup %16101 }
 0x48b   : > { %v1536_v6 = vmul.f32 %v16102_v28, %v16094_v20  ;;  %v17832_v28 = vpack.c.bf16 %v598_v9, %v595_v5  ;;  %v616_v5 = vld [vmem:[#allocation10 + $0xe0] sm:$0xff]  ;;  %v602_v9 = vld [vmem:[#allocation10 + $0x70] sm:$0xff] }
 0x48d   : > { %v1541_v27 = vadd.f32 1e-08, %v1536_v6  ;;  %v594_v6 = vld [vmem:[#allocation10 + $0x30] sm:$0xff] }
 0x48f   : > { %v1549_v59 = vsel %vm1462_vm2, %v1541_v27, 0.0 }
 0x490   : > { %1550 = vadd.xlane.f32.xlu0 %v1549_v59  ;;  %v597_v59 = vld [vmem:[#allocation10 + $0x48] sm:$0xff] }
 0x492   : > { %v16104_v31 = vpop.eup %16103 }
 0x493   : > { %v1538_v29 = vmul.f32 %v16104_v31, %v16096_v35  ;;  %v601_v31 = vld [vmem:[#allocation10 + $0x68] sm:$0xff] }
 0x495   : > { %v1542_v57 = vadd.f32 1e-08, %v1538_v29  ;;  %v604_v29 = vld [vmem:[#allocation10 + $0x80] sm:$0xff] }
 0x496   : > { %v17840_v56 = vpack.c.bf16 %v604_v29, %v601_v31  ;;  %v619_v29 = vld [vmem:[#allocation10 + $0xf8] sm:$0xff] }
 0x497   : > { %v1552_v19 = vsel %vm1462_vm2, %v1542_v57, 0.0 }
 0x498   : > { %1553 = vadd.xlane.f32.xlu1 %v1552_v19  ;;  %v17836_v19 = vpack.c.bf16 %v597_v59, %v594_v6  ;;  %v612_v6 = vld [vmem:[#allocation10 + $0xc0] sm:$0xff]  ;;  %v615_v59 = vld [vmem:[#allocation10 + $0xd8] sm:$0xff] }
 0x50e   : > { %v1545_v39 = vpop.xlane.xlu0 %1544 }
 0x50f   : > { %16105 = vrcp.f32 %v1545_v39  ;;  %v607_v39 = vld [vmem:[#allocation10 + $0x98] sm:$0xff] }
 0x515   : > { %v1548_v40 = vpop.xlane.xlu1 %1547 }
 0x516   : > { %16107 = vrcp.f32 %v1548_v40  ;;  %v610_v40 = vld [vmem:[#allocation10 + $0xb0] sm:$0xff] }
 0x519   : > { %v16106_v20 = vpop.eup %16105 }
 0x51a   : > { %v1556_v45 = vmul.f32 %v16106_v20, %v1539_v4  ;;  %v596_v20 = vld [vmem:[#allocation10 + $0x40] sm:$0xff] }
 0x51c   : > { %12864 = vmatmul.mubr.msk.f32.vlgmr.msra.gmra.mrb[10].mxu1 %vm1462_vm2, %v1556_v45  ;;  %v599_v45 = vld [vmem:[#allocation10 + $0x58] sm:$0xff] }
 0x51d   : > { %14064 = vmatpush3.bf16.msra.mxu1 %v17766_v23  ;;  %v1551_v35 = vpop.xlane.xlu0 %1550  ;;  %12870 = vmatprep.mubr.msk.f32.mxu1 %vm17038_vm0, %v20012_v48  ;;  %v17848_v63 = vpack.c.bf16 %v599_v45, %v596_v20  ;;  %v618_v45 = vld [vmem:[#allocation10 + $0xf0] sm:$0xff] }
 0x51e   : > { %16109 = vrcp.f32 %v1551_v35  ;;  %14068 = vmatprep.subr.bf16.mxu1 %v20008_v22 }
 0x520   : > { %v16108_v37 = vpop.eup %16107 }
 0x521   : > { %v1558_v38 = vmul.f32 %v16108_v37, %v1540_v10  ;;  %v17846_v37 = vpack.c.bf16 %v610_v40, %v607_v39  ;;  %v611_v39 = vld [vmem:[#allocation10 + $0xb8] sm:$0xff]  ;;  %v17863_v40 = vpack.c.bf16 %v615_v59, %v612_v6  ;;  %v624_v6 = vld [vmem:[#allocation10 + $0x120] sm:$0xff] }
 0x522   : > { %v627_v59 = vld [vmem:[#allocation10 + $0x138] sm:$0xff] }
 0x523   : > { %12871 = vmatmul.mubr.msk.f32.vlgmr.msra.gmra.mrb[12].mxu1 %vm1462_vm2, %v1558_v38  ;;  %20319 = vst [vmem:[#allocation41_spill] sm:$0xff] %v17846_v37  ;;  %v606_v38 = vld [vmem:[#allocation10 + $0x90] sm:$0xff]  ;;  %20322 = vst [vmem:[#allocation44_spill] sm:$0xff] %v17863_v40 }
 0x524   : > { %14070 = vmatpush3.bf16.msra.mxu1 %v17784_v58  ;;  %12884 = vmatprep.mubr.msk.f32.mxu1 %vm17038_vm0, %v20012_v48 }
 0x525   : > { %v1554_v4 = vpop.xlane.xlu1 %1553  ;;  %14104 = vmatprep.subr.bf16.mxu1 %v17823_v62 }
 0x526   : > { %16111 = vrcp.f32 %v1554_v4  ;;  %v609_v4 = vld [vmem:[#allocation10 + $0xa8] sm:$0xff] }
 0x528   : > { %v16110_v30 = vpop.eup %16109 }
 0x529   : > { %v1560_v10 = vmul.f32 %v16110_v30, %v1541_v27  ;;  %v603_v27 = vld [vmem:[#allocation10 + $0x78] sm:$0xff]  ;;  %v605_v30 = vld [vmem:[#allocation10 + $0x88] sm:$0xff] }
 0x52a   : > { %v17843_v41 = vpack.c.bf16 %v603_v27, %v600_v36  ;;  %v17859_v31 = vpack.c.bf16 %v605_v30, %v602_v9  ;;  %v622_v36 = vld [vmem:[#allocation10 + $0x110] sm:$0xff]  ;;  %v608_v27 = vld [vmem:[#allocation10 + $0xa0] sm:$0xff] }
 0x52b   : > { %12878 = vmatmul.mubr.msk.f32.vlgmr.msra.gmra.mrb[18].mxu0 %vm1462_vm2, %v1560_v10  ;;  %v17853_v10 = vpack.c.bf16 %v609_v4, %v606_v38  ;;  %v17867_v20 = vpack.c.bf16 %v622_v36, %v619_v29  ;;  %v625_v38 = vld [vmem:[#allocation10 + $0x128] sm:$0xff]  ;;  %v628_v4 = vld [vmem:[#allocation10 + $0x140] sm:$0xff]  ;;  %v631_v36 = vld [vmem:[#allocation10 + $0x158] sm:$0xff] }
 0x52c   : > { %14074 = vmatpush1.bf16.msra.mxu0 %v17830_v44  ;;  %1947 = vmatprep.mubr.f32.mxu0 %v20012_v48  ;;  %20318 = vst [vmem:[#allocation40_spill] sm:$0xff] %v17843_v41  ;;  %v17877_v30 = vpack.c.bf16 %v628_v4, %v625_v38  ;;  %v630_v38 = vld [vmem:[#allocation10 + $0x150] sm:$0xff]  ;;  %v633_v4 = vld [vmem:[#allocation10 + $0x168] sm:$0xff] }
 0x52d   : > { %14076 = vmatprep.subr.bf16.mxu0 %v17832_v28  ;;  %20320 = vst [vmem:[#allocation42_spill] sm:$0xff] %v17853_v10  ;;  %20323 = vst [vmem:[#allocation45_spill] sm:$0xff] %v17867_v20  ;;  %v646_v48 = vld [vmem:[#allocation11 + $0x50] sm:$0xff] }
 0x52e   : > { %20326 = vst [vmem:[#allocation48_spill] sm:$0xff] %v17877_v30 }
 0x530   : > { %v16112_v35 = vpop.eup %16111  ;;  %14078 = vmatpush1.bf16.msra.mxu0 %v17836_v19 }
 0x531   : > { %v1562_v50 = vmul.f32 %v16112_v35, %v1542_v57  ;;  %14080 = vmatprep.subr.bf16.mxu0 %v17840_v56  ;;  %v17857_v57 = vpack.c.bf16 %v616_v5, %v613_v13  ;;  %v621_v35 = vld [vmem:[#allocation10 + $0x108] sm:$0xff]  ;;  %v614_v13 = vld [vmem:[#allocation10 + $0xd0] sm:$0xff] }
 0x532   : > { %v617_v5 = vld [vmem:[#allocation10 + $0xe8] sm:$0xff]  ;;  %v17873_v9 = vpack.c.bf16 %v621_v35, %v618_v45  ;;  %v17883_v45 = vpack.c.bf16 %v627_v59, %v624_v6  ;;  %v640_v59 = vld [vmem:[#allocation11 + $0x20] sm:$0xff] }
 0x533   : > { %12885 = vmatmul.mubr.msk.f32.vlgmr.msra.gmra.mrb[14].mxu1 %vm1462_vm2, %v1562_v50  ;;  %20321 = vst [vmem:[#allocation43_spill] sm:$0xff] %v17857_v57  ;;  %v17869_v50 = vpack.c.bf16 %v611_v39, %v608_v27  ;;  %v17879_v29 = vpack.c.bf16 %v617_v5, %v614_v13  ;;  %v634_v27 = vld [vmem:[#allocation10 + $0x170] sm:$0xff]  ;;  %v620_v39 = vld [vmem:[#allocation10 + $0x100] sm:$0xff]  ;;  %v17893_v5 = vpack.c.bf16 %v633_v4, %v630_v38  ;;  %v637_v6 = vld [vmem:[#allocation11 + $0x8] sm:$0xff] }
 0x534   : > { %14082 = vmatpush1.bf16.msra.mxu0 %v17843_v41  ;;  %14106 = vmatpush3.bf16.msra.mxu1 %v17823_v62  ;;  %20325 = vst [vmem:[#allocation47_spill] sm:$0xff] %v17873_v9  ;;  %20328 = vst [vmem:[#allocation50_spill] sm:$0xff] %v17883_v45  ;;  %v17887_v35 = vpack.c.bf16 %v634_v27, %v631_v36  ;;  %v17889_v13 = vpack.c.bf16 %v623_v0, %v620_v39  ;;  %v626_v0 = vld [vmem:[#allocation10 + $0x130] sm:$0xff]  ;;  %v629_v27 = vld [vmem:[#allocation10 + $0x148] sm:$0xff] }
 0x535   : > { %14084 = vmatprep.subr.bf16.mxu0 %v17846_v37  ;;  %14108 = vmatprep.subr.bf16.mxu1 %v17848_v63  ;;  %20324 = vst [vmem:[#allocation46_spill] sm:$0xff] %v17869_v50  ;;  %20327 = vst [vmem:[#allocation49_spill] sm:$0xff] %v17879_v29  ;;  %v17899_v36 = vpack.c.bf16 %v640_v59, %v637_v6  ;;  %v17901_v39 = vpack.c.bf16 %v629_v27, %v626_v0  ;;  %v632_v38 = vld [vmem:[#allocation10 + $0x160] sm:$0xff]  ;;  %v635_v4 = vld [vmem:[#allocation10 + $0x178] sm:$0xff] }
 0x536   : > { %20329 = vst [vmem:[#allocation51_spill] sm:$0xff] %v17887_v35  ;;  %20330 = vst [vmem:[#allocation52_spill] sm:$0xff] %v17889_v13  ;;  %v17906_v22 = vpack.c.bf16 %v635_v4, %v632_v38  ;;  %v638_v6 = vld [vmem:[#allocation11 + $0x10] sm:$0xff]  ;;  %v641_v59 = vld [vmem:[#allocation11 + $0x28] sm:$0xff] }
 0x537   : > { %20331 = vst [vmem:[#allocation53_spill] sm:$0xff] %v17893_v5  ;;  %20332 = vst [vmem:[#allocation54_spill] sm:$0xff] %v17899_v36  ;;  %v17910_v8 = vpack.c.bf16 %v641_v59, %v638_v6  ;;  %v636_v0 = vld [vmem:[#allocation11] sm:$0xff]  ;;  %v639_v27 = vld [vmem:[#allocation11 + $0x18] sm:$0xff]  ;;  %v20339_v59 = vmov 0.0  }
 0x538   : > { %14086 = vmatpush1.bf16.msra.mxu0 %v17853_v10  ;;  %14110 = vmatpush3.bf16.msra.mxu1 %v17848_v63  ;;  %20333 = vst [vmem:[#allocation55_spill] sm:$0xff] %v17901_v39  ;;  %20334 = vst [vmem:[#allocation56_spill] sm:$0xff] %v17906_v22  ;;  %v642_v38 = vld [vmem:[#allocation11 + $0x30] sm:$0xff]  ;;  %v645_v4 = vld [vmem:[#allocation11 + $0x48] sm:$0xff] }
 0x539   : > { %14088 = vmatprep.subr.bf16.mxu0 %v17857_v57  ;;  %14112 = vmatprep.subr.bf16.mxu1 %v17859_v31  ;;  %20335 = vst [vmem:[#allocation57_spill] sm:$0xff] %v17910_v8  ;;  %v17918_v6 = vpack.c.bf16 %v645_v4, %v642_v38  ;;  %v664_v57 = vld [vmem:[#allocation11 + $0xe0] sm:$0xff] }
 0x53b   : > { %20338 = vst [vmem:[#allocation60_spill] sm:$0xff] %v17918_v6 }
 0x53c   : > { %14090 = vmatpush1.bf16.msra.mxu0 %v17863_v40  ;;  %14114 = vmatpush3.bf16.msra.mxu1 %v17859_v31 }
 0x53d   : > { %14092 = vmatprep.subr.bf16.mxu0 %v17867_v20  ;;  %14116 = vmatprep.subr.bf16.mxu1 %v17869_v50  ;;  %v658_v20 = vld [vmem:[#allocation11 + $0xb0] sm:$0xff] }
 0x540   : > { %14094 = vmatpush1.bf16.msra.mxu0 %v17873_v9  ;;  %14118 = vmatpush3.bf16.msra.mxu1 %v17869_v50  ;;  %v648_v9 = vld [vmem:[#allocation11 + $0x60] sm:$0xff]  ;;  %v539_v50 = vld [vmem:[#allocation17 + $0x8] sm:$0xf] }
 0x541   : > { %14096 = vmatprep.subr.bf16.mxu0 %v17877_v30  ;;  %14120 = vmatprep.subr.bf16.mxu1 %v17879_v29  ;;  %v652_v30 = vld [vmem:[#allocation11 + $0x80] sm:$0xff] }
 0x544   : > { %14098 = vmatpush1.bf16.msra.mxu0 %v17883_v45  ;;  %14122 = vmatpush3.bf16.msra.mxu1 %v17879_v29  ;;  %v649_v45 = vld [vmem:[#allocation11 + $0x68] sm:$0xff] }
 0x545   : > { %14100 = vmatprep.subr.bf16.mxu0 %v17887_v35  ;;  %14124 = vmatprep.subr.bf16.mxu1 %v17889_v13 }
 0x548   : > { %14102 = vmatpush1.bf16.msra.mxu0 %v17893_v5  ;;  %14126 = vmatpush3.bf16.msra.mxu1 %v17889_v13  ;;  %v17915_v5 = vpack.c.bf16 %v646_v48, %v643_v54  ;;  %v651_v48 = vld [vmem:[#allocation11 + $0x78] sm:$0xff]  ;;  %v644_v54 = vld [vmem:[#allocation11 + $0x40] sm:$0xff]  ;;  %v661_v13 = vld [vmem:[#allocation11 + $0xc8] sm:$0xff] }
 0x549   : > { %14136 = vmatprep.subr.bf16.mxu0 %v17899_v36  ;;  %14128 = vmatprep.subr.bf16.mxu1 %v17901_v39  ;;  %v17913_v36 = vpack.c.bf16 %v639_v27, %v636_v0  ;;  %v17922_v0 = vpack.c.bf16 %v652_v30, %v649_v45  ;;  %v647_v27 = vld [vmem:[#allocation11 + $0x58] sm:$0xff]  ;;  %v650_v30 = vld [vmem:[#allocation11 + $0x70] sm:$0xff]  ;;  %v653_v45 = vld [vmem:[#allocation11 + $0x88] sm:$0xff] }
 0x54a   : > { %20337 = vst [vmem:[#allocation59_spill] sm:$0xff] %v17915_v5 }
 0x54b   : > { %20336 = vst [vmem:[#allocation58_spill] sm:$0xff] %v17913_v36  ;;  %20340 = vst [vmem:[#allocation61_spill] sm:$0xff] %v17922_v0 }
 0x54c   : > { %14130 = vmatpush3.bf16.msra.mxu1 %v17901_v39  ;;  %v655_v39 = vld [vmem:[#allocation11 + $0x98] sm:$0xff] }
 0x54d   : > { %14132 = vmatprep.subr.bf16.mxu1 %v17906_v22  ;;  %v17930_v4 = vpack.c.bf16 %v658_v20, %v655_v39  ;;  %v17938_v20 = vpack.c.bf16 %v653_v45, %v650_v30  ;;  %v663_v39 = vld [vmem:[#allocation11 + $0xd8] sm:$0xff] }
 0x54f   : > { %20343 = vst [vmem:[#allocation64_spill] sm:$0xff] %v17930_v4  ;;  %20345 = vst [vmem:[#allocation66_spill] sm:$0xff] %v17938_v20 }
 0x550   : > { %14134 = vmatpush3.bf16.msra.mxu1 %v17906_v22 }
 0x551   : > { %14168 = vmatprep.subr.bf16.mxu1 %v17910_v8 }
 0x5ef   : > { %v1632_v35 = vpop.f32.mrb[10].mxu1 }
 0x5f0   : > { %v12865_v22 = vpop.f32.mrb[11].mxu1  ;;  %1948 = vmatmul.mubr.f32.vlgmr.msra.gmra.mrb[20].mxu0 %v1632_v35  ;;  %12919 = vmatprep.mubr.f32.mxu1 %v1632_v35  ;;  %v654_v35 = vld [vmem:[#allocation11 + $0x90] sm:$0xff] }
 0x5f1   : > { %14138 = vmatpush1.bf16.msra.mxu0 %v17913_v36  ;;  %1953 = vmatprep.mubr.f32.mxu0 %v20339_v59  ;;  %v17925_v22 = vpack.c.bf16 %v651_v48, %v648_v9  ;;  %v17927_v36 = vpack.c.bf16 %v647_v27, %v644_v54  ;;  %v660_v48 = vld [vmem:[#allocation11 + $0xc0] sm:$0xff]  ;;  %v659_v27 = vld [vmem:[#allocation11 + $0xb8] sm:$0xff] }
 0x5f2   : > { %14140 = vmatprep.subr.bf16.mxu0 %v17915_v5  ;;  %v657_v5 = vld [vmem:[#allocation11 + $0xa8] sm:$0xff]  ;;  %v656_v54 = vld [vmem:[#allocation11 + $0xa0] sm:$0xff] }
 0x5f3   : > { %20341 = vst [vmem:[#allocation62_spill] sm:$0xff] %v17925_v22  ;;  %20342 = vst [vmem:[#allocation63_spill] sm:$0xff] %v17927_v36  ;;  %v17935_v9 = vpack.c.bf16 %v657_v5, %v654_v35  ;;  %v17945_v5 = vpack.c.bf16 %v663_v39, %v660_v48  ;;  %v666_v35 = vld [vmem:[#allocation11 + $0xf0] sm:$0xff]  ;;  %v17948_v30 = vpack.c.bf16 %v659_v27, %v656_v54  ;;  %v672_v39 = vld [vmem:[#allocation11 + $0x120] sm:$0xff] }
 0x5f4   : > { %v675_v54 = vld [vmem:[#allocation11 + $0x138] sm:$0xff]  ;;  %v668_v27 = vld [vmem:[#allocation11 + $0x100] sm:$0xff] }
 0x5f5   : > { %14142 = vmatpush1.bf16.msra.mxu0 %v17918_v6  ;;  %20344 = vst [vmem:[#allocation65_spill] sm:$0xff] %v17935_v9  ;;  %20347 = vst [vmem:[#allocation68_spill] sm:$0xff] %v17945_v5 }
 0x5f6   : > { %v1705_v38 = vpop.f32.mrb[12].mxu1  ;;  %14144 = vmatprep.subr.bf16.mxu0 %v17922_v0  ;;  %v670_v0 = vld [vmem:[#allocation11 + $0x110] sm:$0xff]  ;;  %20348 = vst [vmem:[#allocation69_spill] sm:$0xff] %v17948_v30 }
 0x5f7   : > { %v12872_v40 = vpop.f32.mrb[13].mxu1  ;;  %1954 = vmatmul.mubr.f32.gmra.mrb[22].mxu0 %v1705_v38  ;;  %12920 = vmatmul.mubr.f32.vlgmr.msra.gmra.mrb[16].mxu1 %v1705_v38  ;;  %v667_v38 = vld [vmem:[#allocation11 + $0xf8] sm:$0xff] }
 0x5f8   : > { %1959 = vmatprep.mubr.f32.mxu0 %v20339_v59  ;;  %14170 = vmatpush3.bf16.msra.mxu1 %v17910_v8  ;;  %v17941_v40 = vpack.c.bf16 %v664_v57, %v661_v13  ;;  %v17951_v57 = vpack.c.bf16 %v670_v0, %v667_v38  ;;  %v669_v13 = vld [vmem:[#allocation11 + $0x108] sm:$0xff]  ;;  %v671_v38 = vld [vmem:[#allocation11 + $0x118] sm:$0xff] }
 0x5f9   : > { %14146 = vmatpush1.bf16.msra.mxu0 %v17925_v22  ;;  %14172 = vmatprep.subr.bf16.mxu1 %v17927_v36  ;;  %v665_v22 = vld [vmem:[#allocation11 + $0xe8] sm:$0xff]  ;;  %v17956_v48 = vpack.c.bf16 %v669_v13, %v666_v35  ;;  %v17966_v35 = vpack.c.bf16 %v675_v54, %v672_v39  ;;  %v678_v13 = vld [vmem:[#allocation11 + $0x150] sm:$0xff] }
 0x5fa   : > { %14148 = vmatprep.subr.bf16.mxu0 %v17930_v4  ;;  %20346 = vst [vmem:[#allocation67_spill] sm:$0xff] %v17941_v40  ;;  %20349 = vst [vmem:[#allocation70_spill] sm:$0xff] %v17951_v57  ;;  %v662_v4 = vld [vmem:[#allocation11 + $0xd0] sm:$0xff] }
 0x5fb   : > { %20350 = vst [vmem:[#allocation71_spill] sm:$0xff] %v17956_v48  ;;  %v17959_v0 = vpack.c.bf16 %v665_v22, %v662_v4  ;;  %20353 = vst [vmem:[#allocation74_spill] sm:$0xff] %v17966_v35  ;;  %v17969_v22 = vpack.c.bf16 %v671_v38, %v668_v27  ;;  %v683_v27 = vld [vmem:[#allocation11 + $0x178] sm:$0xff]  ;;  %v1859_v38 = vrot.slane %v17742_v33, %v17515_v2 }
 0x5fc   : > { %14174 = vmatpush3.bf16.msra.mxu1 %v17927_v36  ;;  %v673_v36 = vld [vmem:[#allocation11 + $0x128] sm:$0xff] }
 0x5fd   : > { %14150 = vmatpush1.bf16.msra.mxu0 %v17935_v9  ;;  %14176 = vmatprep.subr.bf16.mxu1 %v17938_v20  ;;  %v676_v9 = vld [vmem:[#allocation11 + $0x140] sm:$0xff]  ;;  %20351 = vst [vmem:[#allocation72_spill] sm:$0xff] %v17959_v0  ;;  %20354 = vst [vmem:[#allocation75_spill] sm:$0xff] %v17969_v22 }
 0x5fe   : > { %v1778_v45 = vpop.f32.mrb[18].mxu0  ;;  %14152 = vmatprep.subr.bf16.mxu0 %v17941_v40  ;;  %v682_v40 = vld [vmem:[#allocation11 + $0x170] sm:$0xff] }
 0x5ff   : > { %v12879_v6 = vpop.f32.mrb[19].mxu0  ;;  %1960 = vmatmul.mubr.f32.gmra.mrb[24].mxu0 %v1778_v45  ;;  %12922 = vmatprep.mubr.f32.mxu1 %v1778_v45  ;;  %v679_v45 = vld [vmem:[#allocation11 + $0x158] sm:$0xff] }
 0x600   : > { %1965 = vmatprep.mubr.f32.mxu0 %v20339_v59  ;;  %14178 = vmatpush3.bf16.msra.mxu1 %v17938_v20  ;;  %v17962_v6 = vpack.c.bf16 %v676_v9, %v673_v36  ;;  %v17972_v36 = vpack.c.bf16 %v682_v40, %v679_v45  ;;  %v681_v9 = vld [vmem:[#allocation11 + $0x168] sm:$0xff]  ;;  %v680_v40 = vld [vmem:[#allocation11 + $0x160] sm:$0xff]  ;;  %v2060_v45 = vrot.slane %v17742_v33, %v17668_v18 }
 0x601   : > { %14154 = vmatpush1.bf16.msra.mxu0 %v17945_v5  ;;  %14180 = vmatprep.subr.bf16.mxu1 %v17948_v30  ;;  %v677_v5 = vld [vmem:[#allocation11 + $0x148] sm:$0xff]  ;;  %v17977_v39 = vpack.c.bf16 %v681_v9, %v678_v13 }
 0x602   : > { %14156 = vmatprep.subr.bf16.mxu0 %v17951_v57  ;;  %20352 = vst [vmem:[#allocation73_spill] sm:$0xff] %v17962_v6  ;;  %20355 = vst [vmem:[#allocation76_spill] sm:$0xff] %v17972_v36  ;;  %v674_v57 = vld [vmem:[#allocation11 + $0x130] sm:$0xff] }
 0x603   : > { %20356 = vst [vmem:[#allocation77_spill] sm:$0xff] %v17977_v39  ;;  %v17980_v54 = vpack.c.bf16 %v677_v5, %v674_v57 }
 0x604   : > { %14182 = vmatpush3.bf16.msra.mxu1 %v17948_v30 }
 0x605   : > { %14158 = vmatpush1.bf16.msra.mxu0 %v17956_v48  ;;  %14184 = vmatprep.subr.bf16.mxu1 %v17959_v0  ;;  %20357 = vst [vmem:[#allocation78_spill] sm:$0xff] %v17980_v54 }
 0x606   : > { %v1851_v4 = vpop.f32.mrb[14].mxu1  ;;  %14160 = vmatprep.subr.bf16.mxu0 %v17962_v6 }
 0x607   : > { %v12886_v20 = vpop.f32.mrb[15].mxu1  ;;  %1966 = vmatmul.mubr.f32.gmra.mrb[26].mxu0 %v1851_v4  ;;  %12923 = vmatmul.mubr.f32.gmra.mrb[18].mxu1 %v1851_v4  ;;  %v20359_v4 = vsub.s32 5, %v17512_v1 }
 0x608   : > { %2148 = vmatprep.mubr.f32.mxu0 %v20339_v59  ;;  %14186 = vmatpush3.bf16.msra.mxu1 %v17959_v0  ;;  %v17987_v20 = vpack.c.bf16 %v683_v27, %v680_v40  ;;  %v20360_v40 = vsub.s32 6, %v17512_v1 }
 0x609   : > { %14162 = vmatpush1.bf16.msra.mxu0 %v17966_v35  ;;  %14188 = vmatprep.subr.bf16.mxu1 %v17969_v22  ;;  %v1863_v9 = vrot.slane %v17742_v33, %v20359_v4 }
 0x60a   : > { %14164 = vmatprep.subr.bf16.mxu0 %v17972_v36  ;;  %12957 = vmatprep.mubr.f32.mxu1 %v17542_v15  ;;  %20358 = vst [vmem:[#allocation79_spill] sm:$0xff] %v17987_v20  ;;  %v2064_v27 = vrot.slane %v17742_v33, %v20360_v40 }
 0x60b   : > { %v1878_v36 = vrot.slane %v1863_v9, %v17515_v2 }
 0x60c   : > { %14190 = vmatpush3.bf16.msra.mxu1 %v17969_v22  ;;  %v2079_v22 = vrot.slane %v2064_v27, %v17668_v18 }
 0x60d   : > { %14166 = vmatpush1.bf16.msra.mxu0 %v17977_v39  ;;  %14192 = vmatprep.subr.bf16.mxu1 %v17980_v54  ;;  %v2075_v39 = vrot.slane %v2060_v45, %v17668_v18 }
 0x60e   : > { %v18027_v6 = vadd.f32 %v2079_v22, %v1878_v36 }
 0x610   : > { %2149 = vmatmul.mubr.f32.vlgmr.msra.gmra.mrb[20].mxu0 %v17542_v15  ;;  %14194 = vmatpush3.bf16.msra.mxu1 %v17980_v54  ;;  %v1874_v54 = vrot.slane %v1859_v38, %v17515_v2  ;;  %20362 = vst [vmem:[#allocation81_spill] sm:$0xff] %v18027_v6 }
 0x611   : > { %2154 = vmatprep.mubr.f32.mxu0 %v20339_v59  ;;  %14196 = vmatprep.subr.bf16.mxu1 %v17987_v20 }
 0x612   : > { %v18025_v35 = vadd.f32 %v2075_v39, %v1874_v54 }
 0x614   : > { %2155 = vmatmul.mubr.f32.gmra.mrb[22].mxu0 %v17540_v14  ;;  %14198 = vmatpush3.bf16.msra.mxu1 %v17987_v20  ;;  %20361 = vst [vmem:[#allocation80_spill] sm:$0xff] %v18025_v35 }
 0x615   : > { %2160 = vmatprep.mubr.f32.mxu0 %v20339_v59 }
 0x617   : > { %12958 = vmatmul.mubr.f32.vlgmr.msra.gmra.mrb[20].mxu1 %v17540_v14 }
 0x618   : > { %2161 = vmatmul.mubr.f32.gmra.mrb[24].mxu0 %v17564_v24  ;;  %12960 = vmatprep.mubr.f32.mxu1 %v17564_v24 }
 0x619   : > { %2166 = vmatprep.mubr.f32.mxu0 %v20339_v59 }
 0x61b   : > { %12961 = vmatmul.mubr.f32.gmra.mrb[22].mxu1 %v17570_v26 }
 0x61c   : > { %2167 = vmatmul.mubr.f32.gmra.mrb[26].mxu0 %v17570_v26 }
 0x61d   : > { %2484 = vmatprep.mubr.f32.mxu0 %v20339_v59 }
 0x6ca   : > { %v18003_v5 = vpop.f32.mrb[16].mxu1 }
 0x6cb   : > { %v18005_v57 = vpop.f32.mrb[17].mxu1 }
 0x6da   : > { %v18011_v13 = vpop.f32.mrb[18].mxu1 }
 0x6db   : > { %v18019_v20 = vpop.f32.mrb[19].mxu1 }
 0x6e3   : > { %v2150_v0 = vpop.f32.mrb[20].mxu0 }
 0x6e4   : > { %v15752_v4 = vadd.f32 %v18025_v35, %v2150_v0  ;;  %v2152_v48 = vpop.f32.mrb[21].mxu0 }
 0x6e5   : > { %v15754_v33 = vadd.f32 %v18027_v6, %v2152_v48 }
 0x6e6   : > { %v11808_v30 = vmul.f32 -1.442695, %v15752_v4 }
 0x6e7   : > { %v2156_v40 = vpop.f32.mrb[22].mxu0  ;;  %v11812_v10 = vmul.f32 -1.442695, %v15754_v33 }
 0x6e8   : > { %16113 = vpow2.f32 %v11808_v30  ;;  %v15756_v38 = vadd.f32 %v18025_v35, %v2156_v40  ;;  %v2158_v45 = vpop.f32.mrb[23].mxu0 }
 0x6e9   : > { %v15758_v39 = vadd.f32 %v18027_v6, %v2158_v45 }
 0x6ea   : > { %v11809_v8 = vmul.f32 -1.442695, %v15756_v38  ;;  %v12959_v9 = vpop.f32.mrb[20].mxu1 }
 0x6eb   : > { %v2162_v54 = vpop.f32.mrb[24].mxu0  ;;  %v2239_v22 = vpop.f32.mrb[21].mxu1  ;;  %v11813_v30 = vmul.f32 -1.442695, %v15758_v39 }
 0x6ec   : > { %16115 = vpow2.f32 %v11809_v8  ;;  %v15760_v36 = vadd.f32 %v18025_v35, %v2162_v54  ;;  %v2164_v0 = vpop.f32.mrb[25].mxu0 }
 0x6ed   : > { %v15762_v4 = vadd.f32 %v18027_v6, %v2164_v0  ;;  %16117 = vpow2.f32 %v11812_v10 }
 0x6ee   : > { %v11810_v27 = vmul.f32 -1.442695, %v15760_v36  ;;  %v12962_v48 = vpop.f32.mrb[22].mxu1  ;;  %v2068_v36 = vrot.slane %v539_v50, %v17668_v18 }
 0x6ef   : > { %v2168_v29 = vpop.f32.mrb[26].mxu0  ;;  %v2249_v40 = vpop.f32.mrb[23].mxu1  ;;  %v11814_v45 = vmul.f32 -1.442695, %v15762_v4 }
 0x6f0   : > { %16119 = vpow2.f32 %v11810_v27  ;;  %v15764_v38 = vadd.f32 %v18025_v35, %v2168_v29  ;;  %v2170_v33 = vpop.f32.mrb[27].mxu0  ;;  %v1867_v27 = vrot.slane %v539_v50, %v17515_v2  ;;  %v18040_v29 = vrot.slane %v2068_v36, %v17668_v18 }
 0x6f1   : > { %v15766_v8 = vadd.f32 %v18027_v6, %v2170_v33  ;;  %16121 = vpow2.f32 %v11813_v30 }
 0x6f2   : > { %v16114_v37 = vpop.eup %16113  ;;  %v11811_v41 = vmul.f32 -1.442695, %v15764_v38  ;;  %20363 = vst [vmem:[#allocation82_spill] sm:$0xff] %v18040_v29 }
 0x6f3   : > { %v2274_v54 = vadd.f32 1.0, %v16114_v37  ;;  %v11815_v39 = vmul.f32 -1.442695, %v15766_v8  ;;  %v18043_v37 = vrot.slane %v1867_v27, %v17515_v2 }
 0x6f4   : > { %16123 = vpow2.f32 %v11811_v41  ;;  %v2240_v41 = vadd.f32 %v2239_v22, %v18040_v29 }
 0x6f5   : > { %16125 = vrcp.f32 %v2274_v54  ;;  %20364 = vst [vmem:[#allocation83_spill] sm:$0xff] %v18043_v37  ;;  %v2039_v36 = vadd.f32 %v18005_v57, %v18043_v37  ;;  %v2044_v22 = vadd.f32 %v18003_v5, %v18043_v37  ;;  %v2054_v5 = vadd.f32 %v18011_v13, %v18043_v37 }
 0x6f6   : > { %v16116_v10 = vpop.eup %16115  ;;  %16127 = vpow2.f32 %v11814_v45 }
 0x6f7   : > { %v2275_v0 = vadd.f32 1.0, %v16116_v10  ;;  %v16118_v4 = vpop.eup %16117 }
 0x6f8   : > { %v2302_v30 = vadd.f32 1.0, %v16118_v4 }
 0x6f9   : > { %16129 = vrcp.f32 %v2275_v0 }
 0x6fa   : > { %v16120_v38 = vpop.eup %16119  ;;  %16131 = vpow2.f32 %v11815_v39  ;;  %v2245_v39 = vadd.f32 %v12959_v9, %v18040_v29 }
 0x6fb   : > { %v2276_v33 = vadd.f32 1.0, %v16120_v38  ;;  %v16122_v54 = vpop.eup %16121 }
 0x6fc   : > { %v2303_v0 = vadd.f32 1.0, %v16122_v54 }
 0x6fd   : > { %16133 = vrcp.f32 %v2276_v33 }
 0x6fe   : > { %v16124_v45 = vpop.eup %16123  ;;  %16135 = vrcp.f32 %v2302_v30 }
 0x6ff   : > { %v16126_v8 = vpop.eup %16125  ;;  %v2277_v10 = vadd.f32 1.0, %v16124_v45  ;;  %v2250_v45 = vadd.f32 %v2249_v40, %v18040_v29 }
 0x700   : > { %v16128_v50 = vpop.eup %16127  ;;  %v2314_v18 = vmul.f32 %v16126_v8, %v2240_v41  ;;  %v2049_v41 = vadd.f32 %v18019_v20, %v18043_v37 }
 0x701   : > { %16137 = vrcp.f32 %v2277_v10  ;;  %v2304_v4 = vadd.f32 1.0, %v16128_v50 }
 0x702   : > { %v2318_v27 = vadd.f32 %v2314_v18, %v2039_v36  ;;  %16139 = vrcp.f32 %v2303_v0  ;;  %v2255_v18 = vadd.f32 %v12962_v48, %v18040_v29  ;;  %v714_v29 = vld [vmem:[#allocation13 + $0xf0] sm:$0xff] }
 0x703   : > { %v16130_v38 = vpop.eup %16129 }
 0x704   : > { %v16132_v6 = vpop.eup %16131  ;;  %v2315_v33 = vmul.f32 %v16130_v38, %v2245_v39  ;;  %16141 = vtanh.f32 %v2318_v27 }
 0x705   : > { %16143 = vrcp.f32 %v2304_v4  ;;  %v2305_v30 = vadd.f32 1.0, %v16132_v6 }
 0x706   : > { %v2319_v35 = vadd.f32 %v2315_v33, %v2044_v22 }
 0x707   : > { %v16134_v57 = vpop.eup %16133 }
 0x708   : > { %16145 = vtanh.f32 %v2319_v35  ;;  %v2316_v9 = vmul.f32 %v16134_v57, %v2250_v45  ;;  %v16136_v54 = vpop.eup %16135 }
 0x709   : > { %16147 = vrcp.f32 %v2305_v30  ;;  %v2326_v0 = vsub.f32 1.0, %v16136_v54  ;;  %v2334_v35 = vmul.f32 %v16136_v54, %v17542_v15 }
 0x70a   : > { %v2320_v8 = vadd.f32 %v2316_v9, %v2049_v41 }
 0x70b   : > { %v16138_v10 = vpop.eup %16137 }
 0x70c   : > { %v2317_v40 = vmul.f32 %v16138_v10, %v2255_v18  ;;  %16149 = vtanh.f32 %v2320_v8  ;;  %v16140_v50 = vpop.eup %16139  ;;  %v685_v10 = vld [vmem:[#allocation13 + $0x8] sm:$0xff] }
 0x70d   : > { %v2327_v48 = vsub.f32 1.0, %v16140_v50  ;;  %v2335_v22 = vmul.f32 %v16140_v50, %v17540_v14 }
 0x70e   : > { %v2321_v36 = vadd.f32 %v2317_v40, %v2054_v5  ;;  %v16142_v6 = vpop.eup %16141  ;;  %v687_v5 = vld [vmem:[#allocation13 + $0x18] sm:$0xff]  ;;  %v684_v40 = vld [vmem:[#allocation13] sm:$0xff] }
 0x70f   : > { %v2330_v39 = vmul.f32 %v16142_v6, %v2326_v0  ;;  %v16144_v20 = vpop.eup %16143  ;;  %v18073_v50 = vpack.c.bf16 %v687_v5, %v685_v10  ;;  %v691_v0 = vld [vmem:[#allocation13 + $0x38] sm:$0xff] }
 0x710   : > { %16151 = vtanh.f32 %v2321_v36  ;;  %v2328_v45 = vsub.f32 1.0, %v16144_v20  ;;  %v2336_v15 = vmul.f32 %v16144_v20, %v17564_v24  ;;  %v686_v36 = vld [vmem:[#allocation13 + $0x10] sm:$0xff]  ;;  %v689_v24 = vld [vmem:[#allocation13 + $0x28] sm:$0xff] }
 0x711   : > { %v18058_v38 = vadd.f32 %v2334_v35, %v2330_v39  ;;  %20365 = vst [vmem:[#allocation84_spill] sm:$0xff] %v18073_v50  ;;  %v18075_v6 = vpack.c.bf16 %v686_v36, %v684_v40  ;;  %v18077_v39 = vpack.c.bf16 %v691_v0, %v689_v24  ;;  %v688_v35 = vld [vmem:[#allocation13 + $0x20] sm:$0xff]  ;;  %v690_v20 = vld [vmem:[#allocation13 + $0x30] sm:$0xff]  ;;  %14200 = vmatprep.subr.bf16.mxu0 %v18073_v50 }
 0x712   : > { %v16146_v27 = vpop.eup %16145 }
 0x713   : > { %v2331_v4 = vmul.f32 %v16146_v27, %v2327_v48  ;;  %2342 = vadd.xlane.f32.xlu0 %v18058_v38  ;;  %v16148_v13 = vpop.eup %16147  ;;  %20366 = vst [vmem:[#allocation85_spill] sm:$0xff] %v18075_v6  ;;  %20367 = vst [vmem:[#allocation86_spill] sm:$0xff] %v18077_v39  ;;  %v693_v48 = vld [vmem:[#allocation13 + $0x48] sm:$0xff]  ;;  %14202 = vmatpush1.bf16.msra.mxu0 %v18075_v6  ;;  %v18081_v27 = vpack.c.bf16 %v690_v20, %v688_v35 }
 0x714   : > { %v2329_v18 = vsub.f32 1.0, %v16148_v13  ;;  %v2337_v14 = vmul.f32 %v16148_v13, %v17570_v26  ;;  %v695_v26 = vld [vmem:[#allocation13 + $0x58] sm:$0xff]  ;;  %14204 = vmatprep.subr.bf16.mxu0 %v18077_v39  ;;  %v694_v13 = vld [vmem:[#allocation13 + $0x50] sm:$0xff] }
 0x715   : > { %v18062_v33 = vadd.f32 %v2335_v22, %v2331_v4  ;;  %20368 = vst [vmem:[#allocation87_spill] sm:$0xff] %v18081_v27  ;;  %v18084_v4 = vpack.c.bf16 %v695_v26, %v693_v48  ;;  %v692_v22 = vld [vmem:[#allocation13 + $0x40] sm:$0xff]  ;;  %v697_v26 = vld [vmem:[#allocation13 + $0x68] sm:$0xff] }
 0x716   : > { %v16150_v57 = vpop.eup %16149 }
 0x717   : > { %2344 = vadd.xlane.f32.xlu1 %v18062_v33  ;;  %v2332_v30 = vmul.f32 %v16150_v57, %v2328_v45  ;;  %20369 = vst [vmem:[#allocation88_spill] sm:$0xff] %v18084_v4  ;;  %14206 = vmatpush1.bf16.msra.mxu0 %v18081_v27  ;;  %v18087_v45 = vpack.c.bf16 %v694_v13, %v692_v22  ;;  %v699_v22 = vld [vmem:[#allocation13 + $0x78] sm:$0xff] }
 0x718   : > { %14208 = vmatprep.subr.bf16.mxu0 %v18084_v4  ;;  %v18111_v13 = vpack.c.bf16 %v699_v22, %v697_v26  ;;  %v704_v26 = vld [vmem:[#allocation13 + $0xa0] sm:$0xff]  ;;  %v706_v22 = vld [vmem:[#allocation13 + $0xb0] sm:$0xff] }
 0x719   : > { %v18066_v41 = vadd.f32 %v2336_v15, %v2332_v30  ;;  %20370 = vst [vmem:[#allocation89_spill] sm:$0xff] %v18087_v45 }
 0x71a   : > { %v16152_v9 = vpop.eup %16151  ;;  %20371 = vst [vmem:[#allocation90_spill] sm:$0xff] %v18111_v13 }
 0x71b   : > { %2346 = vadd.xlane.f32.xlu0 %v18066_v41  ;;  %v2333_v54 = vmul.f32 %v16152_v9, %v2329_v18  ;;  %14210 = vmatpush1.bf16.msra.mxu0 %v18087_v45 }
 0x71c   : > { %14212 = vmatprep.subr.bf16.mxu0 %v18111_v13  ;;  %v723_v13 = vld [vmem:[#allocation14 + $0x38] sm:$0xff] }
 0x71d   : > { %v18070_v8 = vadd.f32 %v2337_v14, %v2333_v54 }
 0x71f   : > { %2348 = vadd.xlane.f32.xlu1 %v18070_v8 }
 0x7a0   : > { %v2343_v57 = vpop.xlane.xlu0 %2342 }
 0x7a1   : > { %v2350_v30 = vmul.f32 0.0078125, %v2343_v57  ;;  %v696_v57 = vld [vmem:[#allocation13 + $0x60] sm:$0xff] }
 0x7a3   : > { %v18092_v18 = vsub.f32 %v18058_v38, %v2350_v30  ;;  %v698_v30 = vld [vmem:[#allocation13 + $0x70] sm:$0xff] }
 0x7a4   : > { %v2345_v15 = vpop.xlane.xlu1 %2344 }
 0x7a5   : > { %v2351_v9 = vmul.f32 0.0078125, %v2345_v15  ;;  %v2358_v54 = vmul.f32 %v18092_v18, %v18092_v18  ;;  %v18113_v15 = vpack.c.bf16 %v698_v30, %v696_v57  ;;  %v18125_v57 = vpack.c.bf16 %v706_v22, %v704_v26  ;;  %v709_v30 = vld [vmem:[#allocation13 + $0xc8] sm:$0xff]  ;;  %v712_v26 = vld [vmem:[#allocation13 + $0xe0] sm:$0xff] }
 0x7a7   : > { %v18097_v14 = vsub.f32 %v18062_v33, %v2351_v9  ;;  %2362 = vadd.xlane.f32.xlu0 %v2358_v54  ;;  %20372 = vst [vmem:[#allocation91_spill] sm:$0xff] %v18113_v15  ;;  %14214 = vmatpush1.bf16.msra.mxu0 %v18113_v15  ;;  %v701_v9 = vld [vmem:[#allocation13 + $0x88] sm:$0xff]  ;;  %v703_v54 = vld [vmem:[#allocation13 + $0x98] sm:$0xff]  ;;  %20376 = vst [vmem:[#allocation95_spill] sm:$0xff] %v18125_v57 }
 0x7a8   : > { %v2347_v10 = vpop.xlane.xlu0 %2346  ;;  %v722_v15 = vld [vmem:[#allocation14 + $0x30] sm:$0xff] }
 0x7a9   : > { %v2352_v5 = vmul.f32 0.0078125, %v2347_v10  ;;  %v2359_v40 = vmul.f32 %v18097_v14, %v18097_v14  ;;  %v18117_v10 = vpack.c.bf16 %v703_v54, %v701_v9  ;;  %v711_v9 = vld [vmem:[#allocation13 + $0xd8] sm:$0xff] }
 0x7aa   : > { %v18129_v54 = vpack.c.bf16 %v711_v9, %v709_v30  ;;  %v732_v30 = vld [vmem:[#allocation14 + $0x80] sm:$0xff]  ;;  %v733_v9 = vld [vmem:[#allocation14 + $0x88] sm:$0xff] }
 0x7ab   : > { %2364 = vadd.xlane.f32.xlu1 %v2359_v40  ;;  %v18102_v36 = vsub.f32 %v18066_v41, %v2352_v5  ;;  %20373 = vst [vmem:[#allocation92_spill] sm:$0xff] %v18117_v10  ;;  %v700_v5 = vld [vmem:[#allocation13 + $0x80] sm:$0xff]  ;;  %v702_v40 = vld [vmem:[#allocation13 + $0x90] sm:$0xff]  ;;  %14216 = vmatprep.subr.bf16.mxu0 %v18117_v10  ;;  %v721_v10 = vld [vmem:[#allocation14 + $0x28] sm:$0xff] }
 0x7ac   : > { %v2349_v24 = vpop.xlane.xlu1 %2348  ;;  %20377 = vst [vmem:[#allocation96_spill] sm:$0xff] %v18129_v54 }
 0x7ad   : > { %v2353_v0 = vmul.f32 0.0078125, %v2349_v24  ;;  %v2360_v35 = vmul.f32 %v18102_v36, %v18102_v36  ;;  %v18119_v24 = vpack.c.bf16 %v702_v40, %v700_v5  ;;  %v708_v5 = vld [vmem:[#allocation13 + $0xc0] sm:$0xff]  ;;  %v710_v40 = vld [vmem:[#allocation13 + $0xd0] sm:$0xff] }
 0x7ae   : > { %v18131_v37 = vpack.c.bf16 %v710_v40, %v708_v5  ;;  %v716_v5 = vld [vmem:[#allocation14] sm:$0xff]  ;;  %v18142_v40 = vpack.c.bf16 %v733_v9, %v732_v30 }
 0x7af   : > { %2366 = vadd.xlane.f32.xlu0 %v2360_v35  ;;  %v18107_v20 = vsub.f32 %v18070_v8, %v2353_v0  ;;  %20374 = vst [vmem:[#allocation93_spill] sm:$0xff] %v18119_v24  ;;  %14218 = vmatpush1.bf16.msra.mxu0 %v18119_v24  ;;  %v705_v0 = vld [vmem:[#allocation13 + $0xa8] sm:$0xff]  ;;  %v707_v35 = vld [vmem:[#allocation13 + $0xb8] sm:$0xff]  ;;  %v720_v9 = vld [vmem:[#allocation14 + $0x20] sm:$0xff] }
 0x7b0   : > { %20378 = vst [vmem:[#allocation97_spill] sm:$0xff] %v18131_v37  ;;  %20381 = vst [vmem:[#allocation100_spill] sm:$0xff] %v18142_v40  ;;  %14232 = vmatprep.subr.bf16.mxu1 %v18142_v40 }
 0x7b1   : > { %v2361_v48 = vmul.f32 %v18107_v20, %v18107_v20 }
 0x7b3   : > { %2368 = vadd.xlane.f32.xlu1 %v2361_v48  ;;  %v18123_v48 = vpack.c.bf16 %v707_v35, %v705_v0  ;;  %v713_v0 = vld [vmem:[#allocation13 + $0xe8] sm:$0xff]  ;;  %v715_v35 = vld [vmem:[#allocation13 + $0xf8] sm:$0xff] }
 0x7b4   : > { %v18135_v22 = vpack.c.bf16 %v715_v35, %v713_v0  ;;  %v719_v35 = vld [vmem:[#allocation14 + $0x18] sm:$0xff] }
 0x7b5   : > { %20375 = vst [vmem:[#allocation94_spill] sm:$0xff] %v18123_v48  ;;  %14220 = vmatprep.subr.bf16.mxu0 %v18123_v48  ;;  %v18137_v48 = vpack.c.bf16 %v714_v29, %v712_v26  ;;  %v718_v29 = vld [vmem:[#allocation14 + $0x10] sm:$0xff]  ;;  %v736_v26 = vld [vmem:[#allocation14 + $0xa0] sm:$0xff] }
 0x7b6   : > { %14222 = vmatpush1.bf16.msra.mxu0 %v18125_v57  ;;  %20379 = vst [vmem:[#allocation98_spill] sm:$0xff] %v18135_v22  ;;  %v735_v57 = vld [vmem:[#allocation14 + $0x98] sm:$0xff] }
 0x7b7   : > { %14224 = vmatprep.subr.bf16.mxu0 %v18129_v54  ;;  %20380 = vst [vmem:[#allocation99_spill] sm:$0xff] %v18137_v48  ;;  %v734_v54 = vld [vmem:[#allocation14 + $0x90] sm:$0xff] }
 0x7b8   : > { %v18146_v0 = vpack.c.bf16 %v735_v57, %v734_v54  ;;  %v18156_v57 = vpack.c.bf16 %v721_v10, %v720_v9  ;;  %v742_v10 = vld [vmem:[#allocation14 + $0xd0] sm:$0xff]  ;;  %v743_v9 = vld [vmem:[#allocation14 + $0xd8] sm:$0xff] }
 0x7ba   : > { %14226 = vmatpush1.bf16.msra.mxu0 %v18131_v37  ;;  %v717_v37 = vld [vmem:[#allocation14 + $0x8] sm:$0xff]  ;;  %20383 = vst [vmem:[#allocation102_spill] sm:$0xff] %v18146_v0  ;;  %20386 = vst [vmem:[#allocation105_spill] sm:$0xff] %v18156_v57 }
 0x7bb   : > { %14228 = vmatprep.subr.bf16.mxu0 %v18135_v22  ;;  %v18144_v24 = vpack.c.bf16 %v717_v37, %v716_v5  ;;  %v18150_v22 = vpack.c.bf16 %v719_v35, %v718_v29  ;;  %v738_v37 = vld [vmem:[#allocation14 + $0xb0] sm:$0xff]  ;;  %v739_v5 = vld [vmem:[#allocation14 + $0xb8] sm:$0xff]  ;;  %v740_v29 = vld [vmem:[#allocation14 + $0xc0] sm:$0xff] }
 0x7bc   : > { %v18159_v54 = vpack.c.bf16 %v739_v5, %v738_v37  ;;  %v741_v35 = vld [vmem:[#allocation14 + $0xc8] sm:$0xff]  ;;  %v18171_v5 = vpack.c.bf16 %v743_v9, %v742_v10 }
 0x7bd   : > { %20382 = vst [vmem:[#allocation101_spill] sm:$0xff] %v18144_v24  ;;  %14234 = vmatpush3.bf16.msra.mxu1 %v18144_v24  ;;  %20384 = vst [vmem:[#allocation103_spill] sm:$0xff] %v18150_v22 }
 0x7be   : > { %14230 = vmatpush1.bf16.msra.mxu0 %v18137_v48  ;;  %v737_v48 = vld [vmem:[#allocation14 + $0xa8] sm:$0xff]  ;;  %14236 = vmatprep.subr.bf16.mxu1 %v18146_v0  ;;  %20387 = vst [vmem:[#allocation106_spill] sm:$0xff] %v18159_v54  ;;  %v724_v0 = vld [vmem:[#allocation14 + $0x40] sm:$0xff]  ;;  %20391 = vst [vmem:[#allocation110_spill] sm:$0xff] %v18171_v5 }
 0x7bf   : > { %14264 = vmatprep.subr.bf16.mxu0 %v17574_v46  ;;  %v18153_v30 = vpack.c.bf16 %v737_v48, %v736_v26  ;;  %v18162_v48 = vpack.c.bf16 %v723_v13, %v722_v15  ;;  %v18165_v26 = vpack.c.bf16 %v741_v35, %v740_v29  ;;  %v744_v13 = vld [vmem:[#allocation14 + $0xe0] sm:$0xff]  ;;  %v745_v15 = vld [vmem:[#allocation14 + $0xe8] sm:$0xff] }
 0x7c0   : > { %v18177_v35 = vpack.c.bf16 %v745_v15, %v744_v13 }
 0x7c1   : > { %20385 = vst [vmem:[#allocation104_spill] sm:$0xff] %v18153_v30  ;;  %14238 = vmatpush3.bf16.msra.mxu1 %v18150_v22  ;;  %20388 = vst [vmem:[#allocation107_spill] sm:$0xff] %v18162_v48  ;;  %v725_v22 = vld [vmem:[#allocation14 + $0x48] sm:$0xff] }
 0x7c2   : > { %14240 = vmatprep.subr.bf16.mxu1 %v18153_v30  ;;  %20389 = vst [vmem:[#allocation108_spill] sm:$0xff] %v18165_v26  ;;  %v18168_v37 = vpack.c.bf16 %v725_v22, %v724_v0  ;;  %v726_v30 = vld [vmem:[#allocation14 + $0x50] sm:$0xff]  ;;  %20393 = vst [vmem:[#allocation112_spill] sm:$0xff] %v18177_v35  ;;  %v747_v0 = vld [vmem:[#allocation14 + $0xf8] sm:$0xff] }
 0x7c3   : > { %v746_v22 = vld [vmem:[#allocation14 + $0xf0] sm:$0xff] }
 0x7c4   : > { %20390 = vst [vmem:[#allocation109_spill] sm:$0xff] %v18168_v37  ;;  %v18183_v9 = vpack.c.bf16 %v747_v0, %v746_v22 }
 0x7c5   : > { %14242 = vmatpush3.bf16.msra.mxu1 %v18156_v57  ;;  %v727_v57 = vld [vmem:[#allocation14 + $0x58] sm:$0xff] }
 0x7c6   : > { %14244 = vmatprep.subr.bf16.mxu1 %v18159_v54  ;;  %v18174_v29 = vpack.c.bf16 %v727_v57, %v726_v30  ;;  %v728_v54 = vld [vmem:[#allocation14 + $0x60] sm:$0xff]  ;;  %20395 = vst [vmem:[#allocation114_spill] sm:$0xff] %v18183_v9  ;;  %v20397_v57 = vmov 0.0|0.0  }
 0x7c8   : > { %20392 = vst [vmem:[#allocation111_spill] sm:$0xff] %v18174_v29 }
 0x7c9   : > { %14246 = vmatpush3.bf16.msra.mxu1 %v18162_v48  ;;  %v729_v48 = vld [vmem:[#allocation14 + $0x68] sm:$0xff] }
 0x7ca   : > { %14248 = vmatprep.subr.bf16.mxu1 %v18165_v26  ;;  %v18180_v10 = vpack.c.bf16 %v729_v48, %v728_v54  ;;  %v730_v26 = vld [vmem:[#allocation14 + $0x70] sm:$0xff] }
 0x7cc   : > { %20394 = vst [vmem:[#allocation113_spill] sm:$0xff] %v18180_v10 }
 0x7cd   : > { %14250 = vmatpush3.bf16.msra.mxu1 %v18168_v37  ;;  %v731_v37 = vld [vmem:[#allocation14 + $0x78] sm:$0xff] }
 0x7ce   : > { %14252 = vmatprep.subr.bf16.mxu1 %v18171_v5  ;;  %v18186_v30 = vpack.c.bf16 %v731_v37, %v730_v26  ;;  %v18192_v5 = vld [vmem:[#allocation16 + $0x8] sm:$0xf] }
 0x7d0   : > { %20396 = vst [vmem:[#allocation115_spill] sm:$0xff] %v18186_v30 }
 0x7d1   : > { %14254 = vmatpush3.bf16.msra.mxu1 %v18174_v29 }
 0x7d2   : > { %14256 = vmatprep.subr.bf16.mxu1 %v18177_v35 }
 0x7d5   : > { %14258 = vmatpush3.bf16.msra.mxu1 %v18180_v10  ;;  %v2388_v10 = vsub.s32 7, %v17512_v1 }
 0x7d6   : > { %14260 = vmatprep.subr.bf16.mxu1 %v18183_v9 }
 0x7d9   : > { %14262 = vmatpush3.bf16.msra.mxu1 %v18186_v30  ;;  %v16641_v30 = vld [vmem:[#allocation16] sm:$0xff] }
 0x7da   : > { %14295 = vmatprep.subr.bf16.mxu1 %v20397_v57  ;;  %v18194_v24 = vrot.slane %v16641_v30, %v2388_v10 }
 0x834   : > { %v2363_v13 = vpop.xlane.xlu0 %2362 }
 0x835   : > { %v2370_v15 = vmul.f32 0.0078125, %v2363_v13 }
 0x837   : > { %v2374_v54 = vadd.f32 1e-05, %v2370_v15 }
 0x838   : > { %v2365_v48 = vpop.xlane.xlu1 %2364 }
 0x839   : > { %v2371_v29 = vmul.f32 0.0078125, %v2365_v48  ;;  %16153 = vrsqrt.f32 %v2374_v54  ;;  %v18198_v54 = vrot.slane %v18192_v5, %v17518_v3 }
 0x83b   : > { %v2375_v22 = vadd.f32 1e-05, %v2371_v29 }
 0x83c   : > { %v2367_v0 = vpop.xlane.xlu0 %2366 }
 0x83d   : > { %16155 = vrsqrt.f32 %v2375_v22  ;;  %v2372_v35 = vmul.f32 0.0078125, %v2367_v0 }
 0x83f   : > { %v2376_v26 = vadd.f32 1e-05, %v2372_v35 }
 0x840   : > { %v2369_v37 = vpop.xlane.xlu1 %2368 }
 0x841   : > { %16157 = vrsqrt.f32 %v2376_v26  ;;  %v2373_v9 = vmul.f32 0.0078125, %v2369_v37 }
 0x843   : > { %v2377_v13 = vadd.f32 1e-05, %v2373_v9  ;;  %v16154_v15 = vpop.eup %16153 }
 0x844   : > { %v2382_v29 = vmul.f32 %v16154_v15, %v18092_v18 }
 0x845   : > { %16159 = vrsqrt.f32 %v2377_v13 }
 0x846   : > { %v2390_v35 = vmul.f32 %v18194_v24, %v2382_v29 }
 0x847   : > { %v16156_v48 = vpop.eup %16155 }
 0x848   : > { %v2383_v22 = vmul.f32 %v16156_v48, %v18097_v14  ;;  %v2398_v0 = vadd.f32 %v18198_v54, %v2390_v35 }
 0x84a   : > { %v2391_v26 = vmul.f32 %v18194_v24, %v2383_v22  ;;  %2485 = vmatmul.mubr.f32.vlgmr.msra.gmra.mrb[28].mxu0 %v2398_v0 }
 0x84b   : > { %v16158_v30 = vpop.eup %16157  ;;  %2490 = vmatprep.mubr.f32.mxu0 %v20339_v59  ;;  %14266 = vmatpush3.bf16.msra.mxu0 %v17574_v46 }
 0x84c   : > { %v2399_v9 = vadd.f32 %v18198_v54, %v2391_v26  ;;  %v2384_v3 = vmul.f32 %v16158_v30, %v18102_v36  ;;  %14268 = vmatprep.subr.bf16.mxu0 %v17626_v43 }
 0x84e   : > { %v2392_v18 = vmul.f32 %v18194_v24, %v2384_v3  ;;  %2491 = vmatmul.mubr.f32.gmra.mrb[30].mxu0 %v2399_v9 }
 0x84f   : > { %v16160_v37 = vpop.eup %16159  ;;  %2496 = vmatprep.mubr.f32.mxu0 %v20339_v59  ;;  %14270 = vmatpush3.bf16.msra.mxu0 %v17626_v43 }
 0x850   : > { %v2400_v14 = vadd.f32 %v18198_v54, %v2392_v18  ;;  %v2385_v13 = vmul.f32 %v16160_v37, %v18107_v20  ;;  %14272 = vmatprep.subr.bf16.mxu0 %v17640_v61  ;;  %v16642_v20 = vld [vmem:[#allocation17] sm:$0xff] }
 0x851   : > { %v2405_v29 = vrot.slane %v16642_v20, %v17671_v16  ;;  %v2409_v48 = vrot.slane %v16642_v20, %v2388_v10 }
 0x852   : > { %v2393_v36 = vmul.f32 %v18194_v24, %v2385_v13  ;;  %2497 = vmatmul.mubr.f32.gmra.mrb[32].mxu0 %v2400_v14 }
 0x853   : > { %2502 = vmatprep.mubr.f32.mxu0 %v20339_v59  ;;  %14274 = vmatpush3.bf16.msra.mxu0 %v17640_v61  ;;  %v18233_v35 = vrot.slane %v2405_v29, %v17671_v16  ;;  %v18236_v22 = vrot.slane %v2409_v48, %v17671_v16 }
 0x854   : > { %v2401_v15 = vadd.f32 %v18198_v54, %v2393_v36  ;;  %14276 = vmatprep.subr.bf16.mxu0 %v17646_v21 }
 0x855   : > { %20398 = vst [vmem:[#allocation116_spill] sm:$0xff] %v18236_v22 }
 0x856   : > { %2503 = vmatmul.mubr.f32.gmra.mrb[34].mxu0 %v2401_v15 }
 0x857   : > { %14278 = vmatpush3.bf16.msra.mxu0 %v17646_v21 }
 0x858   : > { %14280 = vmatprep.subr.bf16.mxu0 %v17650_v34 }
 0x85b   : > { %14282 = vmatpush3.bf16.msra.mxu0 %v17650_v34 }
 0x85c   : > { %14284 = vmatprep.subr.bf16.mxu0 %v17654_v42 }
 0x85f   : > { %14286 = vmatpush3.bf16.msra.mxu0 %v17654_v42 }
 0x860   : > { %14288 = vmatprep.subr.bf16.mxu0 %v17659_v49 }
 0x863   : > { %14290 = vmatpush3.bf16.msra.mxu0 %v17659_v49 }
 0x864   : > { %14292 = vmatprep.subr.bf16.mxu0 %v17663_v51 }
 0x867   : > { %14294 = vmatpush3.bf16.msra.mxu0 %v17663_v51 }
 0x868   : > { %14304 = vmatprep.subr.bf16.mxu0 %v20397_v57 }
 0x91d   : > { %v2486_v0 = vpop.f32.mrb[28].mxu0 }
 0x91e   : > { %v2487_v26 = vadd.f32 %v2486_v0, %v18233_v35  ;;  %v2488_v30 = vpop.f32.mrb[29].mxu0 }
 0x91f   : > { %v2489_v9 = vadd.f32 %v2488_v30, %v18236_v22 }
 0x920   : > { %v2509_v37 = vmax.f32 %v2487_v26, 0.0 }
 0x921   : > { %v2510_v3 = vmax.f32 %v2489_v9, 0.0  ;;  %v2492_v18 = vpop.f32.mrb[30].mxu0 }
 0x922   : > { %v2493_v14 = vadd.f32 %v2492_v18, %v18233_v35  ;;  %v2494_v13 = vpop.f32.mrb[31].mxu0 }
 0x923   : > { %v2495_v10 = vadd.f32 %v2494_v13, %v18236_v22  ;;  %2585 = vmatprep.mubr.f32.mxu1 %v2510_v3  ;;  %v18252_v13 = vrot.slane %v18192_v5, %v17515_v2 }
 0x924   : > { %2586 = vmatmul.mubr.f32.vlgmr.msra.gmra.mrb[24].mxu1 %v2509_v37  ;;  %v2511_v15 = vmax.f32 %v2493_v14, 0.0 }
 0x925   : > { %v2512_v36 = vmax.f32 %v2495_v10, 0.0  ;;  %14297 = vmatpush3.bf16.xpose.msra.mxu1 %v17752_v25  ;;  %v2498_v16 = vpop.f32.mrb[32].mxu0  ;;  %20399 = vst [vmem:[#allocation117_spill] sm:$0xff] %v18252_v13 }
 0x926   : > { %v2499_v20 = vadd.f32 %v2498_v16, %v18233_v35  ;;  %v2500_v29 = vpop.f32.mrb[33].mxu0  ;;  %14298 = vmatprep.subr.bf16.mxu1 %v20397_v57 }
 0x927   : > { %v2501_v48 = vadd.f32 %v2500_v29, %v18236_v22  ;;  %2590 = vmatprep.mubr.f32.mxu1 %v2512_v36 }
 0x928   : > { %2591 = vmatmul.mubr.f32.gmra.mrb[26].mxu1 %v2511_v15  ;;  %v2513_v30 = vmax.f32 %v2499_v20, 0.0 }
 0x929   : > { %v2514_v0 = vmax.f32 %v2501_v48, 0.0  ;;  %v2504_v26 = vpop.f32.mrb[34].mxu0 }
 0x92a   : > { %v2505_v9 = vadd.f32 %v2504_v26, %v18233_v35  ;;  %v2506_v3 = vpop.f32.mrb[35].mxu0 }
 0x92b   : > { %v2507_v18 = vadd.f32 %v2506_v3, %v18236_v22  ;;  %2595 = vmatprep.mubr.f32.mxu1 %v2514_v0 }
 0x92c   : > { %2596 = vmatmul.mubr.f32.gmra.mrb[28].mxu1 %v2513_v30  ;;  %v2515_v14 = vmax.f32 %v2505_v9, 0.0 }
 0x92d   : > { %v2516_v37 = vmax.f32 %v2507_v18, 0.0 }
 0x92f   : > { %2600 = vmatprep.mubr.f32.mxu1 %v2516_v37 }
 0x930   : > { %2601 = vmatmul.mubr.f32.gmra.mrb[30].mxu1 %v2515_v14 }
 0x931   : > { %13005 = vmatprep.mubr.msk.f32.mxu1 %vm17038_vm0, %v20339_v59 }
 0x9f7   : > { %v12013_v10 = vpop.f32.mrb[24].mxu1 }
 0x9f8   : > { %v12014_v36 = vpop.f32.mrb[25].mxu1 }
 0x9f9   : > { %v12015_v16 = vadd.f32 %v12014_v36, %v12013_v10 }
 0x9fb   : > { %v2588_v15 = vadd.f32 %v12015_v16, %v18252_v13  ;;  %v12016_v20 = vpop.f32.mrb[26].mxu1 }
 0x9fc   : > { %v12017_v29 = vpop.f32.mrb[27].mxu1 }
 0x9fd   : > { %v18256_v48 = vadd.f32 %v2588_v15, %v18058_v38  ;;  %v12018_v0 = vadd.f32 %v12017_v29, %v12016_v20 }
 0x9ff   : > { %v2593_v26 = vadd.f32 %v12018_v0, %v18252_v13  ;;  %2610 = vadd.xlane.f32.xlu0 %v18256_v48  ;;  %v12019_v30 = vpop.f32.mrb[28].mxu1 }
 0xa00   : > { %v12020_v9 = vpop.f32.mrb[29].mxu1 }
 0xa01   : > { %v18261_v2 = vadd.f32 %v2593_v26, %v18062_v33  ;;  %v12021_v5 = vadd.f32 %v12020_v9, %v12019_v30 }
 0xa03   : > { %v2598_v3 = vadd.f32 %v12021_v5, %v18252_v13  ;;  %2612 = vadd.xlane.f32.xlu1 %v18261_v2  ;;  %v12022_v18 = vpop.f32.mrb[30].mxu1 }
 0xa04   : > { %v12023_v37 = vpop.f32.mrb[31].mxu1 }
 0xa05   : > { %v18266_v38 = vadd.f32 %v2598_v3, %v18066_v41  ;;  %v12024_v14 = vadd.f32 %v12023_v37, %v12022_v18 }
 0xa07   : > { %v2603_v10 = vadd.f32 %v12024_v14, %v18252_v13  ;;  %2614 = vadd.xlane.f32.xlu0 %v18266_v38 }
 0xa09   : > { %v18271_v36 = vadd.f32 %v2603_v10, %v18070_v8 }
 0xa0b   : > { %2616 = vadd.xlane.f32.xlu1 %v18271_v36 }
 0xa8c   : > { %v2611_v33 = vpop.xlane.xlu0 %2610 }
 0xa8d   : > { %v2618_v16 = vmul.f32 0.0078125, %v2611_v33 }
 0xa8f   : > { %v2622_v15 = vsub.f32 %v18256_v48, %v2618_v16 }
 0xa90   : > { %v2613_v20 = vpop.xlane.xlu1 %2612 }
 0xa91   : > { %v2619_v29 = vmul.f32 0.0078125, %v2613_v20  ;;  %v2626_v0 = vmul.f32 %v2622_v15, %v2622_v15 }
 0xa93   : > { %2630 = vadd.xlane.f32.xlu0 %v2626_v0  ;;  %v2623_v41 = vsub.f32 %v18261_v2, %v2619_v29 }
 0xa94   : > { %v2615_v26 = vpop.xlane.xlu0 %2614 }
 0xa95   : > { %v2620_v30 = vmul.f32 0.0078125, %v2615_v26  ;;  %v2627_v9 = vmul.f32 %v2623_v41, %v2623_v41 }
 0xa97   : > { %2632 = vadd.xlane.f32.xlu1 %v2627_v9  ;;  %v2624_v5 = vsub.f32 %v18266_v38, %v2620_v30 }
 0xa98   : > { %v2617_v8 = vpop.xlane.xlu1 %2616 }
 0xa99   : > { %v2621_v3 = vmul.f32 0.0078125, %v2617_v8  ;;  %v2628_v18 = vmul.f32 %v2624_v5, %v2624_v5 }
 0xa9b   : > { %2634 = vadd.xlane.f32.xlu0 %v2628_v18  ;;  %v2625_v37 = vsub.f32 %v18271_v36, %v2621_v3 }
 0xa9d   : > { %v2629_v14 = vmul.f32 %v2625_v37, %v2625_v37 }
 0xa9f   : > { %2636 = vadd.xlane.f32.xlu1 %v2629_v14 }
 0xb20   : > { %v2631_v10 = vpop.xlane.xlu0 %2630 }
 0xb21   : > { %v2638_v33 = vmul.f32 0.0078125, %v2631_v10 }
 0xb23   : > { %v2642_v16 = vadd.f32 1e-05, %v2638_v33 }
 0xb24   : > { %v2633_v20 = vpop.xlane.xlu1 %2632 }
 0xb25   : > { %16161 = vrsqrt.f32 %v2642_v16  ;;  %v2639_v29 = vmul.f32 0.0078125, %v2633_v20 }
 0xb27   : > { %v2643_v0 = vadd.f32 1e-05, %v2639_v29 }
 0xb28   : > { %v2635_v26 = vpop.xlane.xlu0 %2634 }
 0xb29   : > { %16163 = vrsqrt.f32 %v2643_v0  ;;  %v2640_v9 = vmul.f32 0.0078125, %v2635_v26 }
 0xb2b   : > { %v2644_v1 = vadd.f32 1e-05, %v2640_v9 }
 0xb2c   : > { %v2637_v30 = vpop.xlane.xlu1 %2636 }
 0xb2d   : > { %16165 = vrsqrt.f32 %v2644_v1  ;;  %v2641_v8 = vmul.f32 0.0078125, %v2637_v30 }
 0xb2f   : > { %v16162_v13 = vpop.eup %16161  ;;  %v2645_v18 = vadd.f32 1e-05, %v2641_v8 }
 0xb30   : > { %v2650_v25 = vmul.f32 %v16162_v13, %v2622_v15 }
 0xb31   : > { %16167 = vrsqrt.f32 %v2645_v18 }
 0xb32   : > { %v2654_v3 = vmul.f32 %v2650_v25, %v17691_v7 }
 0xb33   : > { %v16164_v14 = vpop.eup %16163 }
 0xb34   : > { %v2651_v10 = vmul.f32 %v16164_v14, %v2623_v41  ;;  %v2658_v33 = vadd.f32 %v2654_v3, %v17696_v12 }
 0xb36   : > { %12995 = vmatprep.mubr.f32.mxu0 %v2658_v33  ;;  %v2655_v16 = vmul.f32 %v2651_v10, %v17691_v7 }
 0xb37   : > { %v16166_v20 = vpop.eup %16165 }
 0xb38   : > { %v2659_v29 = vadd.f32 %v2655_v16, %v17696_v12  ;;  %v2652_v0 = vmul.f32 %v16166_v20, %v2624_v5 }
 0xb3a   : > { %12996 = vmatmul.mubr.f32.vlgmr.msra.gmra.mrb[36].mxu0 %v2659_v29  ;;  %v2656_v1 = vmul.f32 %v2652_v0, %v17691_v7 }
 0xb3b   : > { %v16168_v26 = vpop.eup %16167  ;;  %14306 = vmatpush3.bf16.xpose.msra.mxu0 %v17782_v47 }
 0xb3c   : > { %v2660_v13 = vadd.f32 %v2656_v1, %v17696_v12  ;;  %v2653_v25 = vmul.f32 %v16168_v26, %v2625_v37  ;;  %14313 = vmatprep.subr.bf16.mxu0 %v20397_v57 }
 0xb3e   : > { %12998 = vmatprep.mubr.f32.mxu0 %v2660_v13  ;;  %v2657_v15 = vmul.f32 %v2653_v25, %v17691_v7 }
 0xb40   : > { %v2661_v41 = vadd.f32 %v2657_v15, %v17696_v12 }
 0xb42   : > { %12999 = vmatmul.mubr.f32.gmra.mrb[38].mxu0 %v2661_v41 }
 0xb43   : > { %13026 = vmatprep.mubr.msk.f32.mxu0 %vm17038_vm0, %v20339_v59 }
 0xc0d   : > { %v12997_v5 = vpop.f32.mrb[36].mxu0 }
 0xc0e   : > { %v2728_v9 = vpop.f32.mrb[37].mxu0  ;;  %v2734_v3 = vadd.f32 %v12997_v5, %v17760_v60 }
 0xc0f   : > { %v2729_v30 = vadd.f32 %v2728_v9, %v17760_v60 }
 0xc11   : > { %13006 = vmatmul.mubr.f32.vlgmr.msra.gmra.mrb[32].mxu1 %v2729_v30 }
 0xc12   : > { %14300 = vmatpush3.bf16.xpose.msra.mxu1 %v17764_v11  ;;  %13012 = vmatprep.mubr.msk.f32.mxu1 %vm17038_vm0, %v20339_v59 }
 0xc13   : > { %14301 = vmatprep.subr.bf16.mxu1 %v20397_v57 }
 0xc15   : > { %v13000_v37 = vpop.f32.mrb[38].mxu0 }
 0xc16   : > { %v2744_v8 = vadd.f32 %v13000_v37, %v17760_v60  ;;  %v2738_v18 = vpop.f32.mrb[39].mxu0 }
 0xc17   : > { %v2739_v14 = vadd.f32 %v2738_v18, %v17760_v60 }
 0xc18   : > { %13027 = vmatmul.mubr.f32.vlgmr.msra.gmra.mrb[40].mxu0 %v2744_v8 }
 0xc19   : > { %13013 = vmatmul.mubr.f32.vlgmr.msra.gmra.mrb[34].mxu1 %v2734_v3  ;;  %14315 = vmatpush3.bf16.msra.mxu0 %v17775_v32 }
 0xc1a   : > { %14303 = vmatpush3.bf16.xpose.msra.mxu1 %v17773_v17  ;;  %13019 = vmatprep.mubr.msk.f32.mxu1 %vm17038_vm0, %v20339_v59 }
 0xc1b   : > { %14307 = vmatprep.subr.bf16.mxu1 %v20397_v57  ;;  %13047 = vmatprep.mubr.msk.f32.mxu0 %vm17038_vm0, %v20339_v59 }
 0xc1c   : > { %14320 = vmatprep.subr.bf16.mxu0 %v17815_v53 }
 0xc21   : > { %13020 = vmatmul.mubr.f32.vlgmr.msra.gmra.mrb[36].mxu1 %v2739_v14 }
 0xc22   : > { %14309 = vmatpush3.bf16.msra.mxu1 %v17754_v55  ;;  %13033 = vmatprep.mubr.msk.f32.mxu1 %vm17038_vm0, %v20339_v59 }
 0xc23   : > { %14310 = vmatprep.subr.bf16.mxu1 %v20397_v57 }
 0xce4   : > { %v2813_v10 = vpop.f32.mrb[32].mxu1 }
 0xce5   : > { %v3027_v33 = vmul.f32 0.088388346, %v2813_v10  ;;  %v13007_v16 = vpop.f32.mrb[33].mxu1 }
 0xce7   : > { %v3031_v20 = vadd.f32 %v3027_v33, %v17797_v52 }
 0xce9   : > { %v3035_v29 = vsel %vm1462_vm2, %v3031_v20, -inf }
 0xcea   : > { %v3036_v0 = vrot.slane %v3035_v29, 4 }
 0xceb   : > { %v3023_v1 = vpop.f32.mrb[40].mxu0 }
 0xcec   : > { %v3037_v26 = vmax.f32 %v3035_v29, %v3036_v0  ;;  %v2883_v13 = vpop.f32.mrb[34].mxu1  ;;  %v3030_v25 = vmul.f32 0.088388346, %v3023_v1  ;;  %v13028_v15 = vpop.f32.mrb[41].mxu0 }
 0xced   : > { %v3028_v41 = vmul.f32 0.088388346, %v2883_v13  ;;  %v13014_v5 = vpop.f32.mrb[35].mxu1 }
 0xcee   : > { %v3038_v9 = vrot.slane %v3037_v26, 2  ;;  %v3034_v30 = vadd.f32 %v3030_v25, %v17797_v52 }
 0xcef   : > { %v3032_v37 = vadd.f32 %v3028_v41, %v17797_v52 }
 0xcf0   : > { %v3039_v8 = vmax.f32 %v3037_v26, %v3038_v9  ;;  %v3056_v18 = vsel %vm1462_vm2, %v3034_v30, -inf }
 0xcf1   : > { %v3042_v3 = vsel %vm1462_vm2, %v3032_v37, -inf  ;;  %v3057_v14 = vrot.slane %v3056_v18, 4 }
 0xcf2   : > { %v3040_v10 = vrot.slane %v3039_v8, 1  ;;  %v3043_v33 = vrot.slane %v3042_v3, 4 }
 0xcf3   : > { %v3058_v16 = vmax.f32 %v3056_v18, %v3057_v14 }
 0xcf4   : > { %v3041_v29 = vmax.f32 %v3039_v8, %v3040_v10  ;;  %v3044_v0 = vmax.f32 %v3042_v3, %v3043_v33  ;;  %v2953_v1 = vpop.f32.mrb[36].mxu1 }
 0xcf5   : > { %v3059_v15 = vrot.slane %v3058_v16, 2  ;;  %v3029_v13 = vmul.f32 0.088388346, %v2953_v1  ;;  %v13021_v5 = vpop.f32.mrb[37].mxu1 }
 0xcf6   : > { %v3063_v55 = vsub.f32 %v3031_v20, %v3041_v29  ;;  %v3045_v53 = vrot.slane %v3044_v0, 2 }
 0xcf7   : > { %v3060_v25 = vmax.f32 %v3058_v16, %v3059_v15  ;;  %v3033_v41 = vadd.f32 %v3029_v13, %v17797_v52 }
 0xcf8   : > { %v3067_v26 = vmul.f32 1.442695, %v3063_v55  ;;  %v3046_v9 = vmax.f32 %v3044_v0, %v3045_v53 }
 0xcf9   : > { %v3061_v17 = vrot.slane %v3060_v25, 1  ;;  %v3049_v32 = vsel %vm1462_vm2, %v3033_v41, -inf }
 0xcfa   : > { %16169 = vpow2.f32 %v3067_v26  ;;  %v3047_v11 = vrot.slane %v3046_v9, 1  ;;  %v3050_v60 = vrot.slane %v3049_v32, 4 }
 0xcfb   : > { %v3062_v18 = vmax.f32 %v3060_v25, %v3061_v17 }
 0xcfc   : > { %v3048_v8 = vmax.f32 %v3046_v9, %v3047_v11  ;;  %v3051_v3 = vmax.f32 %v3049_v32, %v3050_v60 }
 0xcfd   : > { %v3066_v14 = vsub.f32 %v3034_v30, %v3062_v18 }
 0xcfe   : > { %v3064_v10 = vsub.f32 %v3032_v37, %v3048_v8  ;;  %v3052_v33 = vrot.slane %v3051_v3, 2 }
 0xcff   : > { %v3073_v1 = vmul.f32 1.442695, %v3066_v14 }
 0xd00   : > { %v3069_v20 = vmul.f32 1.442695, %v3064_v10  ;;  %v3053_v29 = vmax.f32 %v3051_v3, %v3052_v33 }
 0xd01   : > { %16171 = vpow2.f32 %v3073_v1 }
 0xd02   : > { %16173 = vpow2.f32 %v3069_v20  ;;  %v3054_v16 = vrot.slane %v3053_v29, 1 }
 0xd04   : > { %v16170_v55 = vpop.eup %16169  ;;  %v3055_v53 = vmax.f32 %v3053_v29, %v3054_v16 }
 0xd05   : > { %v3075_v0 = vsel %vm1462_vm2, %v16170_v55, 0.0 }
 0xd06   : > { %v3076_v15 = vrot.slane %v3075_v0, 4  ;;  %v3065_v13 = vsub.f32 %v3033_v41, %v3055_v53 }
 0xd08   : > { %v3077_v5 = vadd.f32 %v3076_v15, %v3075_v0  ;;  %v3071_v26 = vmul.f32 1.442695, %v3065_v13 }
 0xd0a   : > { %16175 = vpow2.f32 %v3071_v26  ;;  %v3078_v11 = vrot.slane %v3077_v5, 2 }
 0xd0b   : > { %v16172_v60 = vpop.eup %16171 }
 0xd0c   : > { %v16174_v17 = vpop.eup %16173  ;;  %v3096_v32 = vsel %vm1462_vm2, %v16172_v60, 0.0  ;;  %v3079_v30 = vadd.f32 %v3078_v11, %v3077_v5 }
 0xd0d   : > { %v3082_v37 = vsel %vm1462_vm2, %v16174_v17, 0.0  ;;  %v3097_v25 = vrot.slane %v3096_v32, 4 }
 0xd0e   : > { %v3083_v9 = vrot.slane %v3082_v37, 4  ;;  %v3080_v18 = vrot.slane %v3079_v30, 1 }
 0xd0f   : > { %v3098_v8 = vadd.f32 %v3097_v25, %v3096_v32 }
 0xd10   : > { %v3084_v3 = vadd.f32 %v3083_v9, %v3082_v37  ;;  %v3081_v14 = vadd.f32 %v3080_v18, %v3079_v30 }
 0xd11   : > { %v3099_v10 = vrot.slane %v3098_v8, 2 }
 0xd12   : > { %16177 = vrcp.f32 %v3081_v14  ;;  %v3085_v41 = vrot.slane %v3084_v3, 2 }
 0xd13   : > { %v3100_v33 = vadd.f32 %v3099_v10, %v3098_v8 }
 0xd14   : > { %v16176_v1 = vpop.eup %16175  ;;  %v3086_v20 = vadd.f32 %v3085_v41, %v3084_v3 }
 0xd15   : > { %v3089_v29 = vsel %vm1462_vm2, %v16176_v1, 0.0  ;;  %v3101_v16 = vrot.slane %v3100_v33, 1 }
 0xd16   : > { %v3090_v53 = vrot.slane %v3089_v29, 4  ;;  %v3087_v0 = vrot.slane %v3086_v20, 1 }
 0xd17   : > { %v3102_v15 = vadd.f32 %v3101_v16, %v3100_v33 }
 0xd18   : > { %v3091_v13 = vadd.f32 %v3090_v53, %v3089_v29  ;;  %v3088_v5 = vadd.f32 %v3087_v0, %v3086_v20 }
 0xd19   : > { %16179 = vrcp.f32 %v3102_v15 }
 0xd1a   : > { %16181 = vrcp.f32 %v3088_v5  ;;  %v3092_v26 = vrot.slane %v3091_v13, 2 }
 0xd1c   : > { %v16178_v11 = vpop.eup %16177  ;;  %v3093_v32 = vadd.f32 %v3092_v26, %v3091_v13 }
 0xd1d   : > { %v3104_v30 = vmul.f32 %v16178_v11, %v16170_v55 }
 0xd1e   : > { %v3094_v37 = vrot.slane %v3093_v32, 1 }
 0xd1f   : > { %v3111_v25 = vadd.f32 1e-08, %v3104_v30 }
 0xd20   : > { %v3095_v9 = vadd.f32 %v3094_v37, %v3093_v32 }
 0xd21   : > { %v3115_v18 = vsel %vm1462_vm2, %v3111_v25, 0.0 }
 0xd22   : > { %3116 = vadd.xlane.f32.xlu0 %v3115_v18  ;;  %16183 = vrcp.f32 %v3095_v9  ;;  %v20400_v9 = vld [vmem:[#allocation46_spill] sm:$0xff]  ;;  %v20401_v18 = vld [vmem:[#allocation40_spill] sm:$0xff] }
 0xd23   : > { %v16180_v8 = vpop.eup %16179 }
 0xd24   : > { %v16182_v3 = vpop.eup %16181  ;;  %v3110_v10 = vmul.f32 %v16180_v8, %v16172_v60  ;;  %v20402_v8 = vld [vmem:[#allocation41_spill] sm:$0xff] }
 0xd25   : > { %v3106_v14 = vmul.f32 %v16182_v3, %v16174_v17  ;;  %v20403_v3 = vld [vmem:[#allocation49_spill] sm:$0xff] }
 0xd26   : > { %v3114_v20 = vadd.f32 1e-08, %v3110_v10  ;;  %v20405_v10 = vld [vmem:[#allocation43_spill] sm:$0xff] }
 0xd27   : > { %v3112_v41 = vadd.f32 1e-08, %v3106_v14  ;;  %v20404_v14 = vld [vmem:[#allocation42_spill] sm:$0xff] }
 0xd28   : > { %v3124_v16 = vsel %vm1462_vm2, %v3114_v20, 0.0 }
 0xd29   : > { %v3118_v33 = vsel %vm1462_vm2, %v3112_v41, 0.0 }
 0xd2a   : > { %3119 = vadd.xlane.f32.xlu1 %v3118_v33  ;;  %v20407_v33 = vld [vmem:[#allocation44_spill] sm:$0xff] }
 0xd2c   : > { %v16184_v29 = vpop.eup %16183 }
 0xd2d   : > { %v3108_v55 = vmul.f32 %v16184_v29, %v16176_v1  ;;  %v20409_v29 = vld [vmem:[#allocation55_spill] sm:$0xff] }
 0xd2e   : > { %3125 = vadd.xlane.f32.xlu1 %v3124_v16  ;;  %v20410_v16 = vld [vmem:[#allocation47_spill] sm:$0xff] }
 0xd2f   : > { %v3113_v53 = vadd.f32 1e-08, %v3108_v55  ;;  %v20411_v55 = vld [vmem:[#allocation48_spill] sm:$0xff] }
 0xd31   : > { %v3121_v0 = vsel %vm1462_vm2, %v3113_v53, 0.0 }
 0xd32   : > { %3122 = vadd.xlane.f32.xlu0 %v3121_v0  ;;  %v20413_v0 = vld [vmem:[#allocation50_spill] sm:$0xff] }
 0xdaf   : > { %v3117_v15 = vpop.xlane.xlu0 %3116 }
 0xdb0   : > { %16185 = vrcp.f32 %v3117_v15  ;;  %v20414_v15 = vld [vmem:[#allocation51_spill] sm:$0xff] }
 0xdb7   : > { %v3120_v13 = vpop.xlane.xlu1 %3119 }
 0xdb8   : > { %16187 = vrcp.f32 %v3120_v13  ;;  %v20415_v13 = vld [vmem:[#allocation57_spill] sm:$0xff] }
 0xdba   : > { %v16186_v17 = vpop.eup %16185 }
 0xdbb   : > { %v3126_v60 = vpop.xlane.xlu1 %3125  ;;  %v3128_v5 = vmul.f32 %v16186_v17, %v3111_v25  ;;  %v20416_v17 = vld [vmem:[#allocation53_spill] sm:$0xff] }
 0xdbc   : > { %16189 = vrcp.f32 %v3126_v60  ;;  %v20417_v60 = vld [vmem:[#allocation54_spill] sm:$0xff] }
 0xdbd   : > { %13034 = vmatmul.mubr.msk.f32.vlgmr.msra.gmra.mrb[38].mxu1 %vm1462_vm2, %v3128_v5 }
 0xdbe   : > { %14312 = vmatpush3.bf16.msra.mxu1 %v17766_v23  ;;  %13040 = vmatprep.mubr.msk.f32.mxu1 %vm17038_vm0, %v20339_v59 }
 0xdbf   : > { %v3123_v1 = vpop.xlane.xlu0 %3122  ;;  %14316 = vmatprep.subr.bf16.mxu1 %v20397_v57 }
 0xdc0   : > { %16191 = vrcp.f32 %v3123_v1 }
 0xdc2   : > { %v16188_v26 = vpop.eup %16187 }
 0xdc3   : > { %v3130_v11 = vmul.f32 %v16188_v26, %v3112_v41  ;;  %v20406_v41 = vld [vmem:[#allocation52_spill] sm:$0xff]  ;;  %v20418_v26 = vld [vmem:[#allocation58_spill] sm:$0xff] }
 0xdc5   : > { %13041 = vmatmul.mubr.msk.f32.vlgmr.msra.gmra.mrb[40].mxu1 %vm1462_vm2, %v3130_v11  ;;  %v20419_v11 = vld [vmem:[#allocation59_spill] sm:$0xff] }
 0xdc6   : > { %v16190_v32 = vpop.eup %16189  ;;  %14318 = vmatpush3.bf16.msra.mxu1 %v17784_v58  ;;  %13054 = vmatprep.mubr.msk.f32.mxu1 %vm17038_vm0, %v20339_v59 }
 0xdc7   : > { %v3134_v30 = vmul.f32 %v16190_v32, %v3114_v20  ;;  %14352 = vmatprep.subr.bf16.mxu1 %v17823_v62  ;;  %v20408_v20 = vld [vmem:[#allocation45_spill] sm:$0xff]  ;;  %v20420_v32 = vld [vmem:[#allocation60_spill] sm:$0xff] }
 0xdc9   : > { %13055 = vmatmul.mubr.msk.f32.vlgmr.msra.gmra.mrb[42].mxu1 %vm1462_vm2, %v3134_v30  ;;  %v20421_v30 = vld [vmem:[#allocation61_spill] sm:$0xff] }
 0xdca   : > { %v16192_v37 = vpop.eup %16191  ;;  %14354 = vmatpush3.bf16.msra.mxu1 %v17823_v62 }
 0xdcb   : > { %v3132_v25 = vmul.f32 %v16192_v37, %v3113_v53  ;;  %14356 = vmatprep.subr.bf16.mxu1 %v17848_v63  ;;  %v20412_v53 = vld [vmem:[#allocation56_spill] sm:$0xff] }
 0xdcd   : > { %13048 = vmatmul.mubr.msk.f32.vlgmr.msra.gmra.mrb[42].mxu0 %vm1462_vm2, %v3132_v25 }
 0xdce   : > { %14322 = vmatpush1.bf16.msra.mxu0 %v17830_v44  ;;  %14358 = vmatpush3.bf16.msra.mxu1 %v17848_v63 }
 0xdcf   : > { %14324 = vmatprep.subr.bf16.mxu0 %v17832_v28  ;;  %14360 = vmatprep.subr.bf16.mxu1 %v17859_v31 }
 0xdd0   : > { %3491 = vmatprep.mubr.f32.mxu0 %v20339_v59 }
 0xdd2   : > { %14326 = vmatpush1.bf16.msra.mxu0 %v17836_v19  ;;  %14362 = vmatpush3.bf16.msra.mxu1 %v17859_v31 }
 0xdd3   : > { %14328 = vmatprep.subr.bf16.mxu0 %v17840_v56  ;;  %14364 = vmatprep.subr.bf16.mxu1 %v20400_v9 }
 0xdd6   : > { %14330 = vmatpush1.bf16.msra.mxu0 %v20401_v18  ;;  %14366 = vmatpush3.bf16.msra.mxu1 %v20400_v9 }
 0xdd7   : > { %14332 = vmatprep.subr.bf16.mxu0 %v20402_v8  ;;  %14368 = vmatprep.subr.bf16.mxu1 %v20403_v3 }
 0xdda   : > { %14334 = vmatpush1.bf16.msra.mxu0 %v20404_v14  ;;  %14370 = vmatpush3.bf16.msra.mxu1 %v20403_v3 }
 0xddb   : > { %14336 = vmatprep.subr.bf16.mxu0 %v20405_v10  ;;  %14372 = vmatprep.subr.bf16.mxu1 %v20406_v41 }
 0xdde   : > { %14338 = vmatpush1.bf16.msra.mxu0 %v20407_v33  ;;  %14374 = vmatpush3.bf16.msra.mxu1 %v20406_v41 }
 0xddf   : > { %14340 = vmatprep.subr.bf16.mxu0 %v20408_v20  ;;  %14376 = vmatprep.subr.bf16.mxu1 %v20409_v29 }
 0xde2   : > { %14342 = vmatpush1.bf16.msra.mxu0 %v20410_v16  ;;  %14378 = vmatpush3.bf16.msra.mxu1 %v20409_v29 }
 0xde3   : > { %14344 = vmatprep.subr.bf16.mxu0 %v20411_v55  ;;  %14380 = vmatprep.subr.bf16.mxu1 %v20412_v53 }
 0xde6   : > { %14346 = vmatpush1.bf16.msra.mxu0 %v20413_v0  ;;  %14382 = vmatpush3.bf16.msra.mxu1 %v20412_v53 }
 0xde7   : > { %14348 = vmatprep.subr.bf16.mxu0 %v20414_v15  ;;  %14416 = vmatprep.subr.bf16.mxu1 %v20415_v13 }
 0xdea   : > { %14350 = vmatpush1.bf16.msra.mxu0 %v20416_v17 }
 0xdeb   : > { %14384 = vmatprep.subr.bf16.mxu0 %v20417_v60  ;;  %v20422_v60 = vld [vmem:[#allocation62_spill] sm:$0xff] }
 0xe90   : > { %v3204_v5 = vpop.f32.mrb[38].mxu1 }
 0xe91   : > { %v13035_v1 = vpop.f32.mrb[39].mxu1  ;;  %3492 = vmatmul.mubr.f32.vlgmr.msra.gmra.mrb[44].mxu0 %v3204_v5  ;;  %13089 = vmatprep.mubr.f32.mxu1 %v3204_v5  ;;  %v20424_v5 = vld [vmem:[#allocation64_spill] sm:$0xff] }
 0xe92   : > { %14386 = vmatpush1.bf16.msra.mxu0 %v20418_v26  ;;  %3497 = vmatprep.mubr.f32.mxu0 %v20339_v59  ;;  %v20423_v1 = vld [vmem:[#allocation63_spill] sm:$0xff] }
 0xe93   : > { %14388 = vmatprep.subr.bf16.mxu0 %v20419_v11 }
 0xe96   : > { %14390 = vmatpush1.bf16.msra.mxu0 %v20420_v32  ;;  %v20425_v32 = vld [vmem:[#allocation65_spill] sm:$0xff] }
 0xe97   : > { %14392 = vmatprep.subr.bf16.mxu0 %v20421_v30  ;;  %v20426_v30 = vld [vmem:[#allocation66_spill] sm:$0xff] }
 0xe98   : > { %v3277_v37 = vpop.f32.mrb[40].mxu1 }
 0xe99   : > { %v13042_v25 = vpop.f32.mrb[41].mxu1  ;;  %3498 = vmatmul.mubr.f32.gmra.mrb[46].mxu0 %v3277_v37  ;;  %13090 = vmatmul.mubr.f32.vlgmr.msra.gmra.mrb[44].mxu1 %v3277_v37 }
 0xe9a   : > { %14418 = vmatpush3.bf16.msra.mxu1 %v20415_v13  ;;  %14394 = vmatpush1.bf16.msra.mxu0 %v20422_v60  ;;  %v20427_v25 = vld [vmem:[#allocation67_spill] sm:$0xff]  ;;  %v20428_v60 = vld [vmem:[#allocation68_spill] sm:$0xff] }
 0xe9b   : > { %14420 = vmatprep.subr.bf16.mxu1 %v20423_v1  ;;  %14396 = vmatprep.subr.bf16.mxu0 %v20424_v5  ;;  %v20436_v5 = vld [vmem:[#allocation76_spill] sm:$0xff] }
 0xe9c   : > { %v3423_v26 = vpop.f32.mrb[42].mxu1  ;;  %3503 = vmatprep.mubr.f32.mxu0 %v20339_v59 }
 0xe9d   : > { %v13056_v11 = vpop.f32.mrb[43].mxu1 }
 0xe9e   : > { %14422 = vmatpush3.bf16.msra.mxu1 %v20423_v1  ;;  %14398 = vmatpush1.bf16.msra.mxu0 %v20425_v32  ;;  %v20429_v11 = vld [vmem:[#allocation69_spill] sm:$0xff]  ;;  %v20430_v32 = vld [vmem:[#allocation70_spill] sm:$0xff] }
 0xe9f   : > { %14424 = vmatprep.subr.bf16.mxu1 %v20426_v30  ;;  %14400 = vmatprep.subr.bf16.mxu0 %v20427_v25  ;;  %v20431_v25 = vld [vmem:[#allocation71_spill] sm:$0xff] }
 0xea0   : > { %v3350_v37 = vpop.f32.mrb[42].mxu0 }
 0xea1   : > { %v13049_v17 = vpop.f32.mrb[43].mxu0  ;;  %3504 = vmatmul.mubr.f32.gmra.mrb[48].mxu0 %v3350_v37  ;;  %13092 = vmatprep.mubr.f32.mxu1 %v3350_v37  ;;  %v20433_v37 = vld [vmem:[#allocation73_spill] sm:$0xff] }
 0xea2   : > { %14426 = vmatpush3.bf16.msra.mxu1 %v20426_v30  ;;  %14402 = vmatpush1.bf16.msra.mxu0 %v20428_v60  ;;  %v20432_v17 = vld [vmem:[#allocation72_spill] sm:$0xff]  ;;  %v20434_v60 = vld [vmem:[#allocation74_spill] sm:$0xff]  ;;  %v20435_v30 = vld [vmem:[#allocation75_spill] sm:$0xff] }
 0xea3   : > { %13093 = vmatmul.mubr.f32.gmra.mrb[46].mxu1 %v3423_v26  ;;  %3509 = vmatprep.mubr.f32.mxu0 %v20339_v59 }
 0xea4   : > { %13127 = vmatprep.mubr.f32.mxu1 %v18256_v48  ;;  %14428 = vmatprep.subr.bf16.mxu1 %v20429_v11 }
 0xea5   : > { %3510 = vmatmul.mubr.f32.gmra.mrb[50].mxu0 %v3423_v26  ;;  %14404 = vmatprep.subr.bf16.mxu0 %v20430_v32  ;;  %v20437_v26 = vld [vmem:[#allocation77_spill] sm:$0xff]  ;;  %v20438_v32 = vld [vmem:[#allocation78_spill] sm:$0xff] }
 0xea6   : > { %14430 = vmatpush3.bf16.msra.mxu1 %v20429_v11  ;;  %14406 = vmatpush1.bf16.msra.mxu0 %v20431_v25 }
 0xea7   : > { %14432 = vmatprep.subr.bf16.mxu1 %v20432_v17  ;;  %14408 = vmatprep.subr.bf16.mxu0 %v20433_v37  ;;  %v20439_v37 = vld [vmem:[#allocation79_spill] sm:$0xff] }
 0xea8   : > { %3665 = vmatprep.mubr.f32.mxu0 %v20339_v59 }
 0xeaa   : > { %14434 = vmatpush3.bf16.msra.mxu1 %v20432_v17  ;;  %14410 = vmatpush1.bf16.msra.mxu0 %v20434_v60  ;;  %v20466_v60 = vld [vmem:[#allocation81_spill] sm:$0xff] }
 0xeab   : > { %14436 = vmatprep.subr.bf16.mxu1 %v20435_v30  ;;  %14412 = vmatprep.subr.bf16.mxu0 %v20436_v5  ;;  %v20453_v5 = vld [vmem:[#allocation96_spill] sm:$0xff] }
 0xeae   : > { %14438 = vmatpush3.bf16.msra.mxu1 %v20435_v30  ;;  %14414 = vmatpush1.bf16.msra.mxu0 %v20437_v26  ;;  %v20452_v26 = vld [vmem:[#allocation107_spill] sm:$0xff] }
 0xeaf   : > { %14440 = vmatprep.subr.bf16.mxu1 %v20438_v32  ;;  %14448 = vmatprep.subr.bf16.mxu0 %v18073_v50  ;;  %v20446_v50 = vld [vmem:[#allocation104_spill] sm:$0xff] }
 0xeb1   : > { %3666 = vmatmul.mubr.f32.vlgmr.msra.gmra.mrb[44].mxu0 %v18256_v48 }
 0xeb2   : > { %14442 = vmatpush3.bf16.msra.mxu1 %v20438_v32  ;;  %3671 = vmatprep.mubr.f32.mxu0 %v20339_v59  ;;  %v20451_v32 = vld [vmem:[#allocation95_spill] sm:$0xff] }
 0xeb3   : > { %14444 = vmatprep.subr.bf16.mxu1 %v20439_v37  ;;  %14450 = vmatpush1.bf16.msra.mxu0 %v18075_v6  ;;  %v20441_v6 = vld [vmem:[#allocation90_spill] sm:$0xff] }
 0xeb4   : > { %14452 = vmatprep.subr.bf16.mxu0 %v18077_v39  ;;  %v20440_v39 = vld [vmem:[#allocation101_spill] sm:$0xff] }
 0xeb5   : > { %3672 = vmatmul.mubr.f32.gmra.mrb[46].mxu0 %v18261_v2 }
 0xeb6   : > { %14446 = vmatpush3.bf16.msra.mxu1 %v20439_v37  ;;  %3677 = vmatprep.mubr.f32.mxu0 %v20339_v59  ;;  %v20442_v37 = vld [vmem:[#allocation102_spill] sm:$0xff] }
 0xeb7   : > { %14454 = vmatpush1.bf16.msra.mxu0 %v18081_v27  ;;  %14480 = vmatprep.subr.bf16.mxu1 %v18142_v40  ;;  %v20444_v40 = vld [vmem:[#allocation103_spill] sm:$0xff]  ;;  %v20445_v27 = vld [vmem:[#allocation92_spill] sm:$0xff] }
 0xeb8   : > { %14456 = vmatprep.subr.bf16.mxu0 %v18084_v4  ;;  %v20443_v4 = vld [vmem:[#allocation91_spill] sm:$0xff] }
 0xeb9   : > { %13128 = vmatmul.mubr.f32.vlgmr.msra.gmra.mrb[48].mxu1 %v18261_v2  ;;  %3678 = vmatmul.mubr.f32.gmra.mrb[48].mxu0 %v18266_v38 }
 0xeba   : > { %13130 = vmatprep.mubr.f32.mxu1 %v18266_v38  ;;  %3683 = vmatprep.mubr.f32.mxu0 %v20339_v59 }
 0xebb   : > { %14458 = vmatpush1.bf16.msra.mxu0 %v18087_v45  ;;  %14482 = vmatpush3.bf16.msra.mxu1 %v20440_v39  ;;  %v20447_v45 = vld [vmem:[#allocation93_spill] sm:$0xff] }
 0xebc   : > { %14460 = vmatprep.subr.bf16.mxu0 %v20441_v6  ;;  %14484 = vmatprep.subr.bf16.mxu1 %v20442_v37  ;;  %v20448_v39 = vld [vmem:[#allocation105_spill] sm:$0xff]  ;;  %v20449_v6 = vld [vmem:[#allocation94_spill] sm:$0xff] }
 0xebd   : > { %13131 = vmatmul.mubr.f32.gmra.mrb[50].mxu1 %v18271_v36  ;;  %3684 = vmatmul.mubr.f32.gmra.mrb[50].mxu0 %v18271_v36  ;;  %v20450_v37 = vld [vmem:[#allocation106_spill] sm:$0xff] }
 0xebe   : > { %3975 = vmatprep.mubr.f32.mxu0 %v20339_v59 }
 0xebf   : > { %14462 = vmatpush1.bf16.msra.mxu0 %v20443_v4  ;;  %14486 = vmatpush3.bf16.msra.mxu1 %v20444_v40  ;;  %v20454_v4 = vld [vmem:[#allocation108_spill] sm:$0xff]  ;;  %v20455_v40 = vld [vmem:[#allocation97_spill] sm:$0xff] }
 0xec0   : > { %14464 = vmatprep.subr.bf16.mxu0 %v20445_v27  ;;  %14488 = vmatprep.subr.bf16.mxu1 %v20446_v50  ;;  %v20456_v27 = vld [vmem:[#allocation109_spill] sm:$0xff]  ;;  %v20457_v50 = vld [vmem:[#allocation98_spill] sm:$0xff] }
 0xec3   : > { %14466 = vmatpush1.bf16.msra.mxu0 %v20447_v45  ;;  %14490 = vmatpush3.bf16.msra.mxu1 %v20448_v39  ;;  %v20458_v45 = vld [vmem:[#allocation110_spill] sm:$0xff]  ;;  %v20459_v39 = vld [vmem:[#allocation99_spill] sm:$0xff] }
 0xec4   : > { %14468 = vmatprep.subr.bf16.mxu0 %v20449_v6  ;;  %14492 = vmatprep.subr.bf16.mxu1 %v20450_v37  ;;  %v20460_v6 = vld [vmem:[#allocation111_spill] sm:$0xff]  ;;  %v20461_v37 = vld [vmem:[#allocation112_spill] sm:$0xff] }
 0xec7   : > { %14470 = vmatpush1.bf16.msra.mxu0 %v20451_v32  ;;  %14494 = vmatpush3.bf16.msra.mxu1 %v20452_v26  ;;  %v20462_v26 = vld [vmem:[#allocation113_spill] sm:$0xff] }
 0xec8   : > { %14472 = vmatprep.subr.bf16.mxu0 %v20453_v5  ;;  %14496 = vmatprep.subr.bf16.mxu1 %v20454_v4  ;;  %v20463_v5 = vld [vmem:[#allocation114_spill] sm:$0xff]  ;;  %v20464_v4 = vld [vmem:[#allocation115_spill] sm:$0xff] }
 0xecb   : > { %14474 = vmatpush1.bf16.msra.mxu0 %v20455_v40  ;;  %14498 = vmatpush3.bf16.msra.mxu1 %v20456_v27  ;;  %v20465_v40 = vld [vmem:[#allocation80_spill] sm:$0xff] }
 0xecc   : > { %14476 = vmatprep.subr.bf16.mxu0 %v20457_v50  ;;  %14500 = vmatprep.subr.bf16.mxu1 %v20458_v45 }
 0xecf   : > { %14478 = vmatpush1.bf16.msra.mxu0 %v20459_v39  ;;  %14502 = vmatpush3.bf16.msra.mxu1 %v20460_v6 }
 0xed0   : > { %14504 = vmatprep.subr.bf16.mxu1 %v20461_v37  ;;  %14512 = vmatprep.subr.bf16.mxu0 %v17574_v46 }
 0xed3   : > { %14506 = vmatpush3.bf16.msra.mxu1 %v20462_v26 }
 0xed4   : > { %14508 = vmatprep.subr.bf16.mxu1 %v20463_v5 }
 0xed7   : > { %14510 = vmatpush3.bf16.msra.mxu1 %v20464_v4 }
 0xed8   : > { %14543 = vmatprep.subr.bf16.mxu1 %v20397_v57 }
 0xf6c   : > { %v18451_v27 = vpop.f32.mrb[44].mxu1 }
 0xf6d   : > { %v3582_v50 = vpop.f32.mrb[45].mxu1 }
 0xf76   : > { %v18453_v45 = vpop.f32.mrb[46].mxu1 }
 0xf77   : > { %v18455_v39 = vpop.f32.mrb[47].mxu1 }
 0xf84   : > { %v3667_v6 = vpop.f32.mrb[44].mxu0 }
 0xf85   : > { %v15768_v37 = vadd.f32 %v20465_v40, %v3667_v6  ;;  %v3669_v32 = vpop.f32.mrb[45].mxu0 }
 0xf86   : > { %v15770_v26 = vadd.f32 %v20466_v60, %v3669_v32 }
 0xf87   : > { %v11820_v30 = vmul.f32 -1.442695, %v15768_v37 }
 0xf88   : > { %v3673_v17 = vpop.f32.mrb[46].mxu0  ;;  %v11824_v1 = vmul.f32 -1.442695, %v15770_v26 }
 0xf89   : > { %16193 = vpow2.f32 %v11820_v30  ;;  %v15772_v4 = vadd.f32 %v20465_v40, %v3673_v17  ;;  %v3675_v5 = vpop.f32.mrb[47].mxu0 }
 0xf8a   : > { %v15774_v11 = vadd.f32 %v20466_v60, %v3675_v5 }
 0xf8b   : > { %v11821_v25 = vmul.f32 -1.442695, %v15772_v4 }
 0xf8c   : > { %v13129_v13 = vpop.f32.mrb[48].mxu1  ;;  %v3679_v15 = vpop.f32.mrb[48].mxu0  ;;  %v11825_v55 = vmul.f32 -1.442695, %v15774_v11 }
 0xf8d   : > { %16195 = vpow2.f32 %v11821_v25  ;;  %v15776_v0 = vadd.f32 %v20465_v40, %v3679_v15  ;;  %v3756_v53 = vpop.f32.mrb[49].mxu1  ;;  %v3681_v6 = vpop.f32.mrb[49].mxu0 }
 0xf8e   : > { %v15778_v32 = vadd.f32 %v20466_v60, %v3681_v6  ;;  %16197 = vpow2.f32 %v11824_v1 }
 0xf8f   : > { %v11822_v37 = vmul.f32 -1.442695, %v15776_v0 }
 0xf90   : > { %v13132_v30 = vpop.f32.mrb[50].mxu1  ;;  %v3685_v16 = vpop.f32.mrb[50].mxu0  ;;  %v11826_v29 = vmul.f32 -1.442695, %v15778_v32  ;;  %v20467_v32 = vld [vmem:[#allocation82_spill] sm:$0xff] }
 0xf91   : > { %16199 = vpow2.f32 %v11822_v37  ;;  %v15780_v4 = vadd.f32 %v20465_v40, %v3685_v16  ;;  %v3766_v17 = vpop.f32.mrb[51].mxu1  ;;  %v3687_v5 = vpop.f32.mrb[51].mxu0 }
 0xf92   : > { %16201 = vpow2.f32 %v11825_v55  ;;  %v15782_v15 = vadd.f32 %v20466_v60, %v3687_v5 }
 0xf93   : > { %v16194_v26 = vpop.eup %16193  ;;  %v11823_v25 = vmul.f32 -1.442695, %v15780_v4  ;;  %v3757_v4 = vadd.f32 %v3756_v53, %v20467_v32 }
 0xf94   : > { %v3791_v20 = vadd.f32 1.0, %v16194_v26  ;;  %v11827_v11 = vmul.f32 -1.442695, %v15782_v15  ;;  %v3762_v15 = vadd.f32 %v13129_v13, %v20467_v32 }
 0xf95   : > { %16203 = vpow2.f32 %v11823_v25 }
 0xf96   : > { %16205 = vrcp.f32 %v3791_v20  ;;  %v20468_v20 = vld [vmem:[#allocation83_spill] sm:$0xff] }
 0xf97   : > { %v16196_v0 = vpop.eup %16195  ;;  %16207 = vpow2.f32 %v11826_v29  ;;  %v3583_v60 = vadd.f32 %v3582_v50, %v20468_v20 }
 0xf98   : > { %v3792_v1 = vadd.f32 1.0, %v16196_v0  ;;  %v16198_v6 = vpop.eup %16197 }
 0xf99   : > { %v3819_v33 = vadd.f32 1.0, %v16198_v6 }
 0xf9a   : > { %16209 = vrcp.f32 %v3792_v1 }
 0xf9b   : > { %v16200_v37 = vpop.eup %16199  ;;  %16211 = vpow2.f32 %v11827_v11 }
 0xf9c   : > { %v3793_v16 = vadd.f32 1.0, %v16200_v37  ;;  %v16202_v40 = vpop.eup %16201  ;;  %v3588_v37 = vadd.f32 %v18451_v27, %v20468_v20  ;;  %v3598_v27 = vadd.f32 %v18453_v45, %v20468_v20 }
 0xf9d   : > { %v3820_v5 = vadd.f32 1.0, %v16202_v40 }
 0xf9e   : > { %16213 = vrcp.f32 %v3793_v16  ;;  %v3767_v16 = vadd.f32 %v3766_v17, %v20467_v32 }
 0xf9f   : > { %v16204_v55 = vpop.eup %16203  ;;  %16215 = vrcp.f32 %v3819_v33 }
 0xfa0   : > { %v16206_v41 = vpop.eup %16205  ;;  %v3794_v26 = vadd.f32 1.0, %v16204_v55 }
 0xfa1   : > { %v16208_v25 = vpop.eup %16207  ;;  %v3831_v29 = vmul.f32 %v16206_v41, %v3757_v4  ;;  %v3593_v41 = vadd.f32 %v18455_v39, %v20468_v20 }
 0xfa2   : > { %16217 = vrcp.f32 %v3794_v26  ;;  %v3821_v1 = vadd.f32 1.0, %v16208_v25 }
 0xfa3   : > { %v3835_v0 = vadd.f32 %v3831_v29, %v3583_v60  ;;  %16219 = vrcp.f32 %v3820_v5  ;;  %v3772_v60 = vadd.f32 %v13132_v30, %v20467_v32 }
 0xfa4   : > { %v16210_v11 = vpop.eup %16209 }
 0xfa5   : > { %v16212_v6 = vpop.eup %16211  ;;  %v3832_v53 = vmul.f32 %v16210_v11, %v3762_v15  ;;  %16221 = vtanh.f32 %v3835_v0 }
 0xfa6   : > { %16223 = vrcp.f32 %v3821_v1  ;;  %v3822_v50 = vadd.f32 1.0, %v16212_v6 }
 0xfa7   : > { %v3836_v40 = vadd.f32 %v3832_v53, %v3588_v37 }
 0xfa8   : > { %v16214_v55 = vpop.eup %16213 }
 0xfa9   : > { %16225 = vtanh.f32 %v3836_v40  ;;  %v3833_v33 = vmul.f32 %v16214_v55, %v3767_v16  ;;  %v16216_v13 = vpop.eup %16215 }
 0xfaa   : > { %16227 = vrcp.f32 %v3822_v50  ;;  %v3843_v25 = vsub.f32 1.0, %v16216_v13  ;;  %v3851_v39 = vmul.f32 %v16216_v13, %v18256_v48 }
 0xfab   : > { %v3837_v4 = vadd.f32 %v3833_v33, %v3593_v41 }
 0xfac   : > { %v16218_v5 = vpop.eup %16217 }
 0xfad   : > { %v3834_v26 = vmul.f32 %v16218_v5, %v3772_v60  ;;  %16229 = vtanh.f32 %v3837_v4  ;;  %v16220_v17 = vpop.eup %16219 }
 0xfae   : > { %v3844_v30 = vsub.f32 1.0, %v16220_v17  ;;  %v3852_v45 = vmul.f32 %v16220_v17, %v18261_v2 }
 0xfaf   : > { %v16222_v29 = vpop.eup %16221  ;;  %v3838_v15 = vadd.f32 %v3834_v26, %v3598_v27 }
 0xfb0   : > { %v3847_v0 = vmul.f32 %v16222_v29, %v3843_v25  ;;  %v16224_v11 = vpop.eup %16223 }
 0xfb1   : > { %16231 = vtanh.f32 %v3838_v15  ;;  %v3845_v16 = vsub.f32 1.0, %v16224_v11  ;;  %v3853_v48 = vmul.f32 %v16224_v11, %v18266_v38 }
 0xfb2   : > { %v18477_v1 = vadd.f32 %v3851_v39, %v3847_v0 }
 0xfb3   : > { %v16226_v6 = vpop.eup %16225 }
 0xfb4   : > { %3859 = vadd.xlane.f32.xlu0 %v18477_v1  ;;  %v3848_v37 = vmul.f32 %v16226_v6, %v3844_v30  ;;  %v16228_v53 = vpop.eup %16227 }
 0xfb5   : > { %v3846_v33 = vsub.f32 1.0, %v16228_v53  ;;  %v3854_v4 = vmul.f32 %v16228_v53, %v18271_v36 }
 0xfb6   : > { %v18481_v40 = vadd.f32 %v3852_v45, %v3848_v37 }
 0xfb7   : > { %v16230_v55 = vpop.eup %16229 }
 0xfb8   : > { %3861 = vadd.xlane.f32.xlu1 %v18481_v40  ;;  %v3849_v50 = vmul.f32 %v16230_v55, %v3845_v16 }
 0xfba   : > { %v18485_v41 = vadd.f32 %v3853_v48, %v3849_v50 }
 0xfbb   : > { %v16232_v13 = vpop.eup %16231 }
 0xfbc   : > { %3863 = vadd.xlane.f32.xlu0 %v18485_v41  ;;  %v3850_v60 = vmul.f32 %v16232_v13, %v3846_v33 }
 0xfbe   : > { %v18489_v2 = vadd.f32 %v3854_v4, %v3850_v60 }
 0xfc0   : > { %3865 = vadd.xlane.f32.xlu1 %v18489_v2 }
0x1041   : > { %v3860_v5 = vpop.xlane.xlu0 %3859 }
0x1042   : > { %v3867_v27 = vmul.f32 0.0078125, %v3860_v5 }
0x1044   : > { %v3871_v26 = vsub.f32 %v18477_v1, %v3867_v27 }
0x1045   : > { %v3862_v17 = vpop.xlane.xlu1 %3861 }
0x1046   : > { %v3868_v25 = vmul.f32 0.0078125, %v3862_v17  ;;  %v3875_v38 = vmul.f32 %v3871_v26, %v3871_v26 }
0x1048   : > { %3879 = vadd.xlane.f32.xlu0 %v3875_v38  ;;  %v3872_v29 = vsub.f32 %v18481_v40, %v3868_v25 }
0x1049   : > { %v3864_v15 = vpop.xlane.xlu0 %3863 }
0x104a   : > { %v3869_v0 = vmul.f32 0.0078125, %v3864_v15  ;;  %v3876_v39 = vmul.f32 %v3872_v29, %v3872_v29 }
0x104c   : > { %3881 = vadd.xlane.f32.xlu1 %v3876_v39  ;;  %v3873_v36 = vsub.f32 %v18485_v41, %v3869_v0 }
0x104d   : > { %v3866_v11 = vpop.xlane.xlu1 %3865 }
0x104e   : > { %v3870_v30 = vmul.f32 0.0078125, %v3866_v11  ;;  %v3877_v6 = vmul.f32 %v3873_v36, %v3873_v36 }
0x1050   : > { %3883 = vadd.xlane.f32.xlu0 %v3877_v6  ;;  %v3874_v37 = vsub.f32 %v18489_v2, %v3870_v30 }
0x1052   : > { %v3878_v45 = vmul.f32 %v3874_v37, %v3874_v37 }
0x1054   : > { %3885 = vadd.xlane.f32.xlu1 %v3878_v45 }
0x10d5   : > { %v3880_v53 = vpop.xlane.xlu0 %3879 }
0x10d6   : > { %v3887_v16 = vmul.f32 0.0078125, %v3880_v53 }
0x10d8   : > { %v3891_v55 = vadd.f32 1e-05, %v3887_v16 }
0x10d9   : > { %v3882_v50 = vpop.xlane.xlu1 %3881 }
0x10da   : > { %16233 = vrsqrt.f32 %v3891_v55  ;;  %v3888_v48 = vmul.f32 0.0078125, %v3882_v50 }
0x10dc   : > { %v3892_v33 = vadd.f32 1e-05, %v3888_v48 }
0x10dd   : > { %v3884_v13 = vpop.xlane.xlu0 %3883 }
0x10de   : > { %16235 = vrsqrt.f32 %v3892_v33  ;;  %v3889_v60 = vmul.f32 0.0078125, %v3884_v13 }
0x10e0   : > { %v3893_v4 = vadd.f32 1e-05, %v3889_v60 }
0x10e1   : > { %v3886_v5 = vpop.xlane.xlu1 %3885 }
0x10e2   : > { %16237 = vrsqrt.f32 %v3893_v4  ;;  %v3890_v27 = vmul.f32 0.0078125, %v3886_v5 }
0x10e4   : > { %v16234_v17 = vpop.eup %16233  ;;  %v3894_v25 = vadd.f32 1e-05, %v3890_v27 }
0x10e5   : > { %v3899_v38 = vmul.f32 %v16234_v17, %v3871_v26 }
0x10e6   : > { %16239 = vrsqrt.f32 %v3894_v25 }
0x10e7   : > { %v3903_v15 = vmul.f32 %v3899_v38, %v18194_v24 }
0x10e8   : > { %v16236_v0 = vpop.eup %16235 }
0x10e9   : > { %v3907_v39 = vadd.f32 %v3903_v15, %v18198_v54  ;;  %v3900_v11 = vmul.f32 %v16236_v0, %v3872_v29  ;;  %v20469_v15 = vld [vmem:[#allocation32_spill] sm:$0xff] }
0x10eb   : > { %3976 = vmatmul.mubr.f32.vlgmr.msra.gmra.mrb[52].mxu0 %v3907_v39  ;;  %v3904_v30 = vmul.f32 %v3900_v11, %v18194_v24 }
0x10ec   : > { %v16238_v6 = vpop.eup %16237  ;;  %3981 = vmatprep.mubr.f32.mxu0 %v20339_v59  ;;  %14514 = vmatpush3.bf16.msra.mxu0 %v17574_v46 }
0x10ed   : > { %v3908_v45 = vadd.f32 %v3904_v30, %v18198_v54  ;;  %v3901_v53 = vmul.f32 %v16238_v6, %v3873_v36  ;;  %14516 = vmatprep.subr.bf16.mxu0 %v17626_v43 }
0x10ef   : > { %3982 = vmatmul.mubr.f32.gmra.mrb[54].mxu0 %v3908_v45  ;;  %v3905_v26 = vmul.f32 %v3901_v53, %v18194_v24 }
0x10f0   : > { %v16240_v16 = vpop.eup %16239  ;;  %3987 = vmatprep.mubr.f32.mxu0 %v20339_v59  ;;  %14518 = vmatpush3.bf16.msra.mxu0 %v17626_v43 }
0x10f1   : > { %v3909_v29 = vadd.f32 %v3905_v26, %v18198_v54  ;;  %v3902_v55 = vmul.f32 %v16240_v16, %v3874_v37  ;;  %14520 = vmatprep.subr.bf16.mxu0 %v17640_v61 }
0x10f3   : > { %3988 = vmatmul.mubr.f32.gmra.mrb[56].mxu0 %v3909_v29  ;;  %v3906_v50 = vmul.f32 %v3902_v55, %v18194_v24 }
0x10f4   : > { %3993 = vmatprep.mubr.f32.mxu0 %v20339_v59  ;;  %14522 = vmatpush3.bf16.msra.mxu0 %v17640_v61 }
0x10f5   : > { %v3910_v36 = vadd.f32 %v3906_v50, %v18198_v54  ;;  %14524 = vmatprep.subr.bf16.mxu0 %v17646_v21 }
0x10f7   : > { %3994 = vmatmul.mubr.f32.gmra.mrb[58].mxu0 %v3910_v36 }
0x10f8   : > { %14526 = vmatpush3.bf16.msra.mxu0 %v17646_v21 }
0x10f9   : > { %14528 = vmatprep.subr.bf16.mxu0 %v17650_v34 }
0x10fc   : > { %14530 = vmatpush3.bf16.msra.mxu0 %v17650_v34 }
0x10fd   : > { %14532 = vmatprep.subr.bf16.mxu0 %v17654_v42 }
0x1100   : > { %14534 = vmatpush3.bf16.msra.mxu0 %v17654_v42 }
0x1101   : > { %14536 = vmatprep.subr.bf16.mxu0 %v17659_v49 }
0x1104   : > { %14538 = vmatpush3.bf16.msra.mxu0 %v17659_v49 }
0x1105   : > { %14540 = vmatprep.subr.bf16.mxu0 %v17663_v51 }
0x1108   : > { %14542 = vmatpush3.bf16.msra.mxu0 %v17663_v51 }
0x1109   : > { %14552 = vmatprep.subr.bf16.mxu0 %v20397_v57 }
0x11be   : > { %v3977_v37 = vpop.f32.mrb[52].mxu0 }
0x11bf   : > { %v3978_v48 = vadd.f32 %v3977_v37, %v18233_v35  ;;  %v3979_v33 = vpop.f32.mrb[53].mxu0 }
0x11c0   : > { %v3980_v13 = vadd.f32 %v3979_v33, %v18236_v22 }
0x11c1   : > { %v4000_v5 = vmax.f32 %v3978_v48, 0.0 }
0x11c2   : > { %v4001_v60 = vmax.f32 %v3980_v13, 0.0  ;;  %v3983_v4 = vpop.f32.mrb[54].mxu0  ;;  %v20470_v13 = vld [vmem:[#allocation117_spill] sm:$0xff] }
0x11c3   : > { %v3984_v27 = vadd.f32 %v3983_v4, %v18233_v35  ;;  %v3985_v17 = vpop.f32.mrb[55].mxu0 }
0x11c4   : > { %v3986_v25 = vadd.f32 %v3985_v17, %v18236_v22  ;;  %4072 = vmatprep.mubr.f32.mxu1 %v4001_v60 }
0x11c5   : > { %4073 = vmatmul.mubr.f32.vlgmr.msra.gmra.mrb[52].mxu1 %v4000_v5  ;;  %v4002_v39 = vmax.f32 %v3984_v27, 0.0 }
0x11c6   : > { %v4003_v38 = vmax.f32 %v3986_v25, 0.0  ;;  %14545 = vmatpush3.bf16.xpose.msra.mxu1 %v20469_v15  ;;  %v3989_v0 = vpop.f32.mrb[56].mxu0 }
0x11c7   : > { %v3990_v11 = vadd.f32 %v3989_v0, %v18233_v35  ;;  %v3991_v30 = vpop.f32.mrb[57].mxu0  ;;  %14546 = vmatprep.subr.bf16.mxu1 %v20397_v57 }
0x11c8   : > { %v3992_v6 = vadd.f32 %v3991_v30, %v18236_v22  ;;  %4077 = vmatprep.mubr.f32.mxu1 %v4003_v38 }
0x11c9   : > { %4078 = vmatmul.mubr.f32.gmra.mrb[54].mxu1 %v4002_v39  ;;  %v4004_v26 = vmax.f32 %v3990_v11, 0.0 }
0x11ca   : > { %v4005_v45 = vmax.f32 %v3992_v6, 0.0  ;;  %v3995_v53 = vpop.f32.mrb[58].mxu0 }
0x11cb   : > { %v3996_v16 = vadd.f32 %v3995_v53, %v18233_v35  ;;  %v3997_v29 = vpop.f32.mrb[59].mxu0 }
0x11cc   : > { %v3998_v55 = vadd.f32 %v3997_v29, %v18236_v22  ;;  %4082 = vmatprep.mubr.f32.mxu1 %v4005_v45 }
0x11cd   : > { %4083 = vmatmul.mubr.f32.gmra.mrb[56].mxu1 %v4004_v26  ;;  %v4006_v36 = vmax.f32 %v3996_v16, 0.0 }
0x11ce   : > { %v4007_v50 = vmax.f32 %v3998_v55, 0.0 }
0x11d0   : > { %4087 = vmatprep.mubr.f32.mxu1 %v4007_v50 }
0x11d1   : > { %4088 = vmatmul.mubr.f32.gmra.mrb[58].mxu1 %v4006_v36 }
0x11d2   : > { %13175 = vmatprep.mubr.msk.f32.mxu1 %vm17038_vm0, %v20339_v59 }
0x1298   : > { %v12141_v37 = vpop.f32.mrb[52].mxu1 }
0x1299   : > { %v12142_v48 = vpop.f32.mrb[53].mxu1 }
0x129a   : > { %v12143_v33 = vadd.f32 %v12142_v48, %v12141_v37 }
0x129c   : > { %v4075_v60 = vadd.f32 %v12143_v33, %v20470_v13  ;;  %v12144_v4 = vpop.f32.mrb[54].mxu1 }
0x129d   : > { %v12145_v5 = vpop.f32.mrb[55].mxu1 }
0x129e   : > { %v18537_v27 = vadd.f32 %v4075_v60, %v18477_v1  ;;  %v12146_v17 = vadd.f32 %v12145_v5, %v12144_v4 }
0x12a0   : > { %v4080_v25 = vadd.f32 %v12146_v17, %v20470_v13  ;;  %4097 = vadd.xlane.f32.xlu0 %v18537_v27  ;;  %v12147_v38 = vpop.f32.mrb[56].mxu1 }
0x12a1   : > { %v12148_v0 = vpop.f32.mrb[57].mxu1 }
0x12a2   : > { %v18542_v39 = vadd.f32 %v4080_v25, %v18481_v40  ;;  %v12149_v11 = vadd.f32 %v12148_v0, %v12147_v38 }
0x12a4   : > { %v4085_v30 = vadd.f32 %v12149_v11, %v20470_v13  ;;  %4099 = vadd.xlane.f32.xlu1 %v18542_v39  ;;  %v12150_v6 = vpop.f32.mrb[58].mxu1 }
0x12a5   : > { %v12151_v45 = vpop.f32.mrb[59].mxu1 }
0x12a6   : > { %v18547_v1 = vadd.f32 %v4085_v30, %v18485_v41  ;;  %v12152_v53 = vadd.f32 %v12151_v45, %v12150_v6 }
0x12a8   : > { %v4090_v26 = vadd.f32 %v12152_v53, %v20470_v13  ;;  %4101 = vadd.xlane.f32.xlu0 %v18547_v1 }
0x12aa   : > { %v18552_v16 = vadd.f32 %v4090_v26, %v18489_v2 }
0x12ac   : > { %4103 = vadd.xlane.f32.xlu1 %v18552_v16 }
0x132d   : > { %v4098_v40 = vpop.xlane.xlu0 %4097 }
0x132e   : > { %v4105_v29 = vmul.f32 0.0078125, %v4098_v40 }
0x1330   : > { %v4109_v55 = vsub.f32 %v18537_v27, %v4105_v29 }
0x1331   : > { %v4100_v50 = vpop.xlane.xlu1 %4099 }
0x1332   : > { %v4106_v36 = vmul.f32 0.0078125, %v4100_v50  ;;  %v4113_v37 = vmul.f32 %v4109_v55, %v4109_v55 }
0x1334   : > { %4117 = vadd.xlane.f32.xlu0 %v4113_v37  ;;  %v4110_v41 = vsub.f32 %v18542_v39, %v4106_v36 }
0x1335   : > { %v4102_v48 = vpop.xlane.xlu0 %4101 }
0x1336   : > { %v4107_v33 = vmul.f32 0.0078125, %v4102_v48  ;;  %v4114_v60 = vmul.f32 %v4110_v41, %v4110_v41 }
0x1338   : > { %4119 = vadd.xlane.f32.xlu1 %v4114_v60  ;;  %v4111_v4 = vsub.f32 %v18547_v1, %v4107_v33 }
0x1339   : > { %v4104_v2 = vpop.xlane.xlu1 %4103 }
0x133a   : > { %v4108_v5 = vmul.f32 0.0078125, %v4104_v2  ;;  %v4115_v17 = vmul.f32 %v4111_v4, %v4111_v4 }
0x133c   : > { %4121 = vadd.xlane.f32.xlu0 %v4115_v17  ;;  %v4112_v25 = vsub.f32 %v18552_v16, %v4108_v5 }
0x133e   : > { %v4116_v38 = vmul.f32 %v4112_v25, %v4112_v25 }
0x1340   : > { %4123 = vadd.xlane.f32.xlu1 %v4116_v38 }
0x13c1   : > { %v4118_v0 = vpop.xlane.xlu0 %4117 }
0x13c2   : > { %v4125_v11 = vmul.f32 0.0078125, %v4118_v0 }
0x13c4   : > { %v4129_v30 = vadd.f32 1e-05, %v4125_v11 }
0x13c5   : > { %v4120_v6 = vpop.xlane.xlu1 %4119 }
0x13c6   : > { %16241 = vrsqrt.f32 %v4129_v30  ;;  %v4126_v45 = vmul.f32 0.0078125, %v4120_v6 }
0x13c8   : > { %v4130_v53 = vadd.f32 1e-05, %v4126_v45 }
0x13c9   : > { %v4122_v26 = vpop.xlane.xlu0 %4121 }
0x13ca   : > { %16243 = vrsqrt.f32 %v4130_v53  ;;  %v4127_v40 = vmul.f32 0.0078125, %v4122_v26 }
0x13cc   : > { %v4131_v29 = vadd.f32 1e-05, %v4127_v40 }
0x13cd   : > { %v4124_v50 = vpop.xlane.xlu1 %4123 }
0x13ce   : > { %16245 = vrsqrt.f32 %v4131_v29  ;;  %v4128_v36 = vmul.f32 0.0078125, %v4124_v50  ;;  %v20471_v29 = vld [vmem:[#allocation34_spill] sm:$0xff] }
0x13d0   : > { %v16242_v37 = vpop.eup %16241  ;;  %v4132_v48 = vadd.f32 1e-05, %v4128_v36  ;;  %v20472_v36 = vld [vmem:[#allocation35_spill] sm:$0xff] }
0x13d1   : > { %v4137_v33 = vmul.f32 %v16242_v37, %v4109_v55 }
0x13d2   : > { %16247 = vrsqrt.f32 %v4132_v48 }
0x13d3   : > { %v4141_v60 = vmul.f32 %v4137_v33, %v17691_v7 }
0x13d4   : > { %v16244_v2 = vpop.eup %16243 }
0x13d5   : > { %v4138_v5 = vmul.f32 %v16244_v2, %v4110_v41  ;;  %v4145_v17 = vadd.f32 %v4141_v60, %v17696_v12  ;;  %v20473_v60 = vld [vmem:[#allocation37_spill] sm:$0xff]  ;;  %v20474_v2 = vld [vmem:[#allocation36_spill] sm:$0xff] }
0x13d7   : > { %13165 = vmatprep.mubr.f32.mxu0 %v4145_v17  ;;  %v4142_v38 = vmul.f32 %v4138_v5, %v17691_v7  ;;  %v20475_v5 = vld [vmem:[#allocation39_spill] sm:$0xff] }
0x13d8   : > { %v16246_v0 = vpop.eup %16245 }
0x13d9   : > { %v4146_v11 = vadd.f32 %v4142_v38, %v17696_v12  ;;  %v4139_v30 = vmul.f32 %v16246_v0, %v4111_v4  ;;  %v20476_v38 = vld [vmem:[#allocation33_spill] sm:$0xff] }
0x13db   : > { %13166 = vmatmul.mubr.f32.vlgmr.msra.gmra.mrb[60].mxu0 %v4146_v11  ;;  %v4143_v6 = vmul.f32 %v4139_v30, %v17691_v7 }
0x13dc   : > { %v16248_v45 = vpop.eup %16247  ;;  %14554 = vmatpush3.bf16.xpose.msra.mxu0 %v17782_v47 }
0x13dd   : > { %v4147_v55 = vadd.f32 %v4143_v6, %v17696_v12  ;;  %v4140_v53 = vmul.f32 %v16248_v45, %v4112_v25  ;;  %14561 = vmatprep.subr.bf16.mxu0 %v20397_v57 }
0x13df   : > { %13168 = vmatprep.mubr.f32.mxu0 %v4147_v55  ;;  %v4144_v41 = vmul.f32 %v4140_v53, %v17691_v7 }
0x13e1   : > { %v4148_v26 = vadd.f32 %v4144_v41, %v17696_v12 }
0x13e3   : > { %13169 = vmatmul.mubr.f32.gmra.mrb[62].mxu0 %v4148_v26 }
0x13e4   : > { %13196 = vmatprep.mubr.msk.f32.mxu0 %vm17038_vm0, %v20339_v59 }
0x14ae   : > { %v13167_v4 = vpop.f32.mrb[60].mxu0 }
0x14af   : > { %v4215_v40 = vpop.f32.mrb[61].mxu0  ;;  %v4221_v33 = vadd.f32 %v13167_v4, %v20471_v29 }
0x14b0   : > { %v4216_v50 = vadd.f32 %v4215_v40, %v20471_v29 }
0x14b2   : > { %13176 = vmatmul.mubr.f32.vlgmr.msra.gmra.mrb[60].mxu1 %v4216_v50 }
0x14b3   : > { %14548 = vmatpush3.bf16.xpose.msra.mxu1 %v20472_v36  ;;  %13182 = vmatprep.mubr.msk.f32.mxu1 %vm17038_vm0, %v20339_v59 }
0x14b4   : > { %14549 = vmatprep.subr.bf16.mxu1 %v20397_v57 }
0x14b6   : > { %v13170_v25 = vpop.f32.mrb[62].mxu0 }
0x14b7   : > { %v4231_v37 = vadd.f32 %v13170_v25, %v20471_v29  ;;  %v4225_v48 = vpop.f32.mrb[63].mxu0 }
0x14b8   : > { %v4226_v17 = vadd.f32 %v4225_v48, %v20471_v29 }
0x14b9   : > { %13197 = vmatmul.mubr.f32.vlgmr.msra.gmra.mrb[64].mxu0 %v4231_v37 }
0x14ba   : > { %13183 = vmatmul.mubr.f32.vlgmr.msra.gmra.mrb[62].mxu1 %v4221_v33  ;;  %14563 = vmatpush3.bf16.msra.mxu0 %v20473_v60 }
0x14bb   : > { %14551 = vmatpush3.bf16.xpose.msra.mxu1 %v20474_v2  ;;  %13189 = vmatprep.mubr.msk.f32.mxu1 %vm17038_vm0, %v20339_v59 }
0x14bc   : > { %14555 = vmatprep.subr.bf16.mxu1 %v20397_v57  ;;  %13217 = vmatprep.mubr.msk.f32.mxu0 %vm17038_vm0, %v20339_v59 }
0x14bd   : > { %14568 = vmatprep.subr.bf16.mxu0 %v20475_v5 }
0x14c2   : > { %13190 = vmatmul.mubr.f32.vlgmr.msra.gmra.mrb[64].mxu1 %v4226_v17 }
0x14c3   : > { %14557 = vmatpush3.bf16.msra.mxu1 %v20476_v38  ;;  %13203 = vmatprep.mubr.msk.f32.mxu1 %vm17038_vm0, %v20339_v59 }
0x14c4   : > { %14558 = vmatprep.subr.bf16.mxu1 %v20397_v57 }
0x1585   : > { %v4300_v0 = vpop.f32.mrb[60].mxu1 }
0x1586   : > { %v4514_v11 = vmul.f32 0.088388346, %v4300_v0  ;;  %v13177_v30 = vpop.f32.mrb[61].mxu1 }
0x1588   : > { %v4518_v6 = vadd.f32 %v4514_v11, %v17797_v52 }
0x158a   : > { %v4522_v45 = vsel %vm1462_vm2, %v4518_v6, -inf }
0x158b   : > { %v4523_v55 = vrot.slane %v4522_v45, 4 }
0x158c   : > { %v4510_v53 = vpop.f32.mrb[64].mxu0 }
0x158d   : > { %v4524_v41 = vmax.f32 %v4522_v45, %v4523_v55  ;;  %v4370_v26 = vpop.f32.mrb[62].mxu1  ;;  %v4517_v4 = vmul.f32 0.088388346, %v4510_v53  ;;  %v13198_v40 = vpop.f32.mrb[65].mxu0 }
0x158e   : > { %v4515_v50 = vmul.f32 0.088388346, %v4370_v26  ;;  %v13184_v25 = vpop.f32.mrb[63].mxu1 }
0x158f   : > { %v4525_v37 = vrot.slane %v4524_v41, 2  ;;  %v4521_v48 = vadd.f32 %v4517_v4, %v17797_v52 }
0x1590   : > { %v4519_v33 = vadd.f32 %v4515_v50, %v17797_v52 }
0x1591   : > { %v4526_v17 = vmax.f32 %v4524_v41, %v4525_v37  ;;  %v4543_v0 = vsel %vm1462_vm2, %v4521_v48, -inf }
0x1592   : > { %v4529_v11 = vsel %vm1462_vm2, %v4519_v33, -inf  ;;  %v4544_v30 = vrot.slane %v4543_v0, 4 }
0x1593   : > { %v4527_v38 = vrot.slane %v4526_v17, 1  ;;  %v4530_v5 = vrot.slane %v4529_v11, 4 }
0x1594   : > { %v4545_v2 = vmax.f32 %v4543_v0, %v4544_v30 }
0x1595   : > { %v4528_v45 = vmax.f32 %v4526_v17, %v4527_v38  ;;  %v4531_v55 = vmax.f32 %v4529_v11, %v4530_v5  ;;  %v4440_v53 = vpop.f32.mrb[64].mxu1 }
0x1596   : > { %v4546_v40 = vrot.slane %v4545_v2, 2  ;;  %v4516_v26 = vmul.f32 0.088388346, %v4440_v53  ;;  %v13191_v25 = vpop.f32.mrb[65].mxu1 }
0x1597   : > { %v4550_v60 = vsub.f32 %v4518_v6, %v4528_v45  ;;  %v4532_v36 = vrot.slane %v4531_v55, 2 }
0x1598   : > { %v4547_v4 = vmax.f32 %v4545_v2, %v4546_v40  ;;  %v4520_v50 = vadd.f32 %v4516_v26, %v17797_v52 }
0x1599   : > { %v4554_v41 = vmul.f32 1.442695, %v4550_v60  ;;  %v4533_v37 = vmax.f32 %v4531_v55, %v4532_v36 }
0x159a   : > { %v4548_v29 = vrot.slane %v4547_v4, 1  ;;  %v4536_v47 = vsel %vm1462_vm2, %v4520_v50, -inf }
0x159b   : > { %16249 = vpow2.f32 %v4554_v41  ;;  %v4534_v12 = vrot.slane %v4533_v37, 1  ;;  %v4537_v7 = vrot.slane %v4536_v47, 4 }
0x159c   : > { %v4549_v0 = vmax.f32 %v4547_v4, %v4548_v29 }
0x159d   : > { %v4535_v38 = vmax.f32 %v4533_v37, %v4534_v12  ;;  %v4538_v5 = vmax.f32 %v4536_v47, %v4537_v7 }
0x159e   : > { %v4553_v17 = vsub.f32 %v4521_v48, %v4549_v0 }
0x159f   : > { %v4551_v11 = vsub.f32 %v4519_v33, %v4535_v38  ;;  %v4539_v30 = vrot.slane %v4538_v5, 2 }
0x15a0   : > { %v4560_v53 = vmul.f32 1.442695, %v4553_v17 }
0x15a1   : > { %v4556_v6 = vmul.f32 1.442695, %v4551_v11  ;;  %v4540_v45 = vmax.f32 %v4538_v5, %v4539_v30 }
0x15a2   : > { %16251 = vpow2.f32 %v4560_v53 }
0x15a3   : > { %16253 = vpow2.f32 %v4556_v6  ;;  %v4541_v2 = vrot.slane %v4540_v45, 1 }
0x15a5   : > { %v16250_v60 = vpop.eup %16249  ;;  %v4542_v36 = vmax.f32 %v4540_v45, %v4541_v2 }
0x15a6   : > { %v4562_v55 = vsel %vm1462_vm2, %v16250_v60, 0.0 }
0x15a7   : > { %v4563_v40 = vrot.slane %v4562_v55, 4  ;;  %v4552_v26 = vsub.f32 %v4520_v50, %v4542_v36 }
0x15a9   : > { %v4564_v25 = vadd.f32 %v4563_v40, %v4562_v55  ;;  %v4558_v41 = vmul.f32 1.442695, %v4552_v26 }
0x15ab   : > { %16255 = vpow2.f32 %v4558_v41  ;;  %v4565_v12 = vrot.slane %v4564_v25, 2 }
0x15ac   : > { %v16252_v7 = vpop.eup %16251 }
0x15ad   : > { %v16254_v47 = vpop.eup %16253  ;;  %v4583_v29 = vsel %vm1462_vm2, %v16252_v7, 0.0  ;;  %v4566_v48 = vadd.f32 %v4565_v12, %v4564_v25 }
0x15ae   : > { %v4569_v33 = vsel %vm1462_vm2, %v16254_v47, 0.0  ;;  %v4584_v4 = vrot.slane %v4583_v29, 4 }
0x15af   : > { %v4570_v37 = vrot.slane %v4569_v33, 4  ;;  %v4567_v0 = vrot.slane %v4566_v48, 1 }
0x15b0   : > { %v4585_v38 = vadd.f32 %v4584_v4, %v4583_v29 }
0x15b1   : > { %v4571_v5 = vadd.f32 %v4570_v37, %v4569_v33  ;;  %v4568_v17 = vadd.f32 %v4567_v0, %v4566_v48 }
0x15b2   : > { %v4586_v11 = vrot.slane %v4585_v38, 2 }
0x15b3   : > { %16257 = vrcp.f32 %v4568_v17  ;;  %v4572_v50 = vrot.slane %v4571_v5, 2 }
0x15b4   : > { %v4587_v30 = vadd.f32 %v4586_v11, %v4585_v38 }
0x15b5   : > { %v16256_v53 = vpop.eup %16255  ;;  %v4573_v6 = vadd.f32 %v4572_v50, %v4571_v5 }
0x15b6   : > { %v4576_v45 = vsel %vm1462_vm2, %v16256_v53, 0.0  ;;  %v4588_v2 = vrot.slane %v4587_v30, 1 }
0x15b7   : > { %v4577_v36 = vrot.slane %v4576_v45, 4  ;;  %v4574_v55 = vrot.slane %v4573_v6, 1 }
0x15b8   : > { %v4589_v40 = vadd.f32 %v4588_v2, %v4587_v30 }
0x15b9   : > { %v4578_v26 = vadd.f32 %v4577_v36, %v4576_v45  ;;  %v4575_v25 = vadd.f32 %v4574_v55, %v4573_v6 }
0x15ba   : > { %16259 = vrcp.f32 %v4589_v40 }
0x15bb   : > { %16261 = vrcp.f32 %v4575_v25  ;;  %v4579_v41 = vrot.slane %v4578_v26, 2 }
0x15bd   : > { %v16258_v12 = vpop.eup %16257  ;;  %v4580_v29 = vadd.f32 %v4579_v41, %v4578_v26 }
0x15be   : > { %v4591_v48 = vmul.f32 %v16258_v12, %v16250_v60 }
0x15bf   : > { %v4581_v33 = vrot.slane %v4580_v29, 1 }
0x15c0   : > { %v4598_v4 = vadd.f32 1e-08, %v4591_v48 }
0x15c1   : > { %v4582_v37 = vadd.f32 %v4581_v33, %v4580_v29 }
0x15c2   : > { %v4602_v0 = vsel %vm1462_vm2, %v4598_v4, 0.0 }
0x15c3   : > { %4603 = vadd.xlane.f32.xlu0 %v4602_v0  ;;  %16263 = vrcp.f32 %v4582_v37  ;;  %v20477_v37 = vld [vmem:[#allocation52_spill] sm:$0xff] }
0x15c4   : > { %v16260_v38 = vpop.eup %16259  ;;  %v20478_v0 = vld [vmem:[#allocation44_spill] sm:$0xff] }
0x15c5   : > { %v16262_v5 = vpop.eup %16261  ;;  %v4597_v11 = vmul.f32 %v16260_v38, %v16252_v7  ;;  %v20479_v38 = vld [vmem:[#allocation45_spill] sm:$0xff] }
0x15c6   : > { %v4593_v17 = vmul.f32 %v16262_v5, %v16254_v47  ;;  %v20480_v5 = vld [vmem:[#allocation55_spill] sm:$0xff] }
0x15c7   : > { %v4601_v6 = vadd.f32 1e-08, %v4597_v11  ;;  %v20482_v11 = vld [vmem:[#allocation48_spill] sm:$0xff] }
0x15c8   : > { %v4599_v50 = vadd.f32 1e-08, %v4593_v17  ;;  %v20481_v17 = vld [vmem:[#allocation47_spill] sm:$0xff] }
0x15c9   : > { %v4611_v2 = vsel %vm1462_vm2, %v4601_v6, 0.0 }
0x15ca   : > { %v4605_v30 = vsel %vm1462_vm2, %v4599_v50, 0.0 }
0x15cb   : > { %4606 = vadd.xlane.f32.xlu1 %v4605_v30  ;;  %v20484_v30 = vld [vmem:[#allocation50_spill] sm:$0xff] }
0x15cd   : > { %v16264_v45 = vpop.eup %16263 }
0x15ce   : > { %v4595_v60 = vmul.f32 %v16264_v45, %v16256_v53  ;;  %v20486_v45 = vld [vmem:[#allocation57_spill] sm:$0xff] }
0x15cf   : > { %4612 = vadd.xlane.f32.xlu1 %v4611_v2  ;;  %v20487_v2 = vld [vmem:[#allocation53_spill] sm:$0xff] }
0x15d0   : > { %v4600_v36 = vadd.f32 1e-08, %v4595_v60  ;;  %v20488_v60 = vld [vmem:[#allocation54_spill] sm:$0xff] }
0x15d2   : > { %v4608_v55 = vsel %vm1462_vm2, %v4600_v36, 0.0 }
0x15d3   : > { %4609 = vadd.xlane.f32.xlu0 %v4608_v55 }
0x1650   : > { %v4604_v40 = vpop.xlane.xlu0 %4603 }
0x1651   : > { %16265 = vrcp.f32 %v4604_v40  ;;  %v20489_v40 = vld [vmem:[#allocation58_spill] sm:$0xff] }
0x1658   : > { %v4607_v26 = vpop.xlane.xlu1 %4606 }
0x1659   : > { %16267 = vrcp.f32 %v4607_v26  ;;  %v20490_v26 = vld [vmem:[#allocation59_spill] sm:$0xff] }
0x165b   : > { %v16266_v47 = vpop.eup %16265 }
0x165c   : > { %v4615_v7 = vmul.f32 %v16266_v47, %v4598_v4  ;;  %v4613_v25 = vpop.xlane.xlu1 %4612  ;;  %v20491_v47 = vld [vmem:[#allocation60_spill] sm:$0xff] }
0x165d   : > { %16269 = vrcp.f32 %v4613_v25 }
0x165e   : > { %13204 = vmatmul.mubr.msk.f32.vlgmr.msra.gmra.mrb[66].mxu1 %vm1462_vm2, %v4615_v7  ;;  %v20492_v7 = vld [vmem:[#allocation61_spill] sm:$0xff] }
0x165f   : > { %14560 = vmatpush3.bf16.msra.mxu1 %v17766_v23  ;;  %13210 = vmatprep.mubr.msk.f32.mxu1 %vm17038_vm0, %v20339_v59 }
0x1660   : > { %v4610_v53 = vpop.xlane.xlu0 %4609  ;;  %14564 = vmatprep.subr.bf16.mxu1 %v20397_v57 }
0x1661   : > { %16271 = vrcp.f32 %v4610_v53 }
0x1663   : > { %v16268_v41 = vpop.eup %16267 }
0x1664   : > { %v4617_v12 = vmul.f32 %v16268_v41, %v4599_v50  ;;  %v20483_v50 = vld [vmem:[#allocation56_spill] sm:$0xff]  ;;  %v20493_v41 = vld [vmem:[#allocation62_spill] sm:$0xff] }
0x1666   : > { %13211 = vmatmul.mubr.msk.f32.vlgmr.msra.gmra.mrb[68].mxu1 %vm1462_vm2, %v4617_v12  ;;  %v20494_v12 = vld [vmem:[#allocation63_spill] sm:$0xff] }
0x1667   : > { %v16270_v29 = vpop.eup %16269  ;;  %14566 = vmatpush3.bf16.msra.mxu1 %v17784_v58  ;;  %13224 = vmatprep.mubr.msk.f32.mxu1 %vm17038_vm0, %v20339_v59 }
0x1668   : > { %v4621_v48 = vmul.f32 %v16270_v29, %v4601_v6  ;;  %14600 = vmatprep.subr.bf16.mxu1 %v17823_v62  ;;  %v20485_v6 = vld [vmem:[#allocation51_spill] sm:$0xff]  ;;  %v20495_v29 = vld [vmem:[#allocation64_spill] sm:$0xff] }
0x166a   : > { %13225 = vmatmul.mubr.msk.f32.vlgmr.msra.gmra.mrb[70].mxu1 %vm1462_vm2, %v4621_v48 }
0x166b   : > { %v16272_v33 = vpop.eup %16271  ;;  %14602 = vmatpush3.bf16.msra.mxu1 %v17823_v62 }
0x166c   : > { %v4619_v4 = vmul.f32 %v16272_v33, %v4600_v36  ;;  %14604 = vmatprep.subr.bf16.mxu1 %v17848_v63 }
0x166e   : > { %13218 = vmatmul.mubr.msk.f32.vlgmr.msra.gmra.mrb[66].mxu0 %vm1462_vm2, %v4619_v4  ;;  %v20496_v4 = vld [vmem:[#allocation65_spill] sm:$0xff] }
0x166f   : > { %14570 = vmatpush1.bf16.msra.mxu0 %v17830_v44  ;;  %14606 = vmatpush3.bf16.msra.mxu1 %v17848_v63 }
0x1670   : > { %14572 = vmatprep.subr.bf16.mxu0 %v17832_v28  ;;  %14608 = vmatprep.subr.bf16.mxu1 %v17859_v31 }
0x1671   : > { %4978 = vmatprep.mubr.f32.mxu0 %v20339_v59 }
0x1673   : > { %14574 = vmatpush1.bf16.msra.mxu0 %v17836_v19  ;;  %14610 = vmatpush3.bf16.msra.mxu1 %v17859_v31 }
0x1674   : > { %14576 = vmatprep.subr.bf16.mxu0 %v17840_v56  ;;  %14612 = vmatprep.subr.bf16.mxu1 %v20400_v9 }
0x1677   : > { %14578 = vmatpush1.bf16.msra.mxu0 %v20401_v18  ;;  %14614 = vmatpush3.bf16.msra.mxu1 %v20400_v9 }
0x1678   : > { %14580 = vmatprep.subr.bf16.mxu0 %v20402_v8  ;;  %14616 = vmatprep.subr.bf16.mxu1 %v20403_v3 }
0x167b   : > { %14582 = vmatpush1.bf16.msra.mxu0 %v20404_v14  ;;  %14618 = vmatpush3.bf16.msra.mxu1 %v20403_v3 }
0x167c   : > { %14584 = vmatprep.subr.bf16.mxu0 %v20405_v10  ;;  %14620 = vmatprep.subr.bf16.mxu1 %v20477_v37 }
0x167f   : > { %14586 = vmatpush1.bf16.msra.mxu0 %v20478_v0  ;;  %14622 = vmatpush3.bf16.msra.mxu1 %v20477_v37 }
0x1680   : > { %14588 = vmatprep.subr.bf16.mxu0 %v20479_v38  ;;  %14624 = vmatprep.subr.bf16.mxu1 %v20480_v5 }
0x1683   : > { %14590 = vmatpush1.bf16.msra.mxu0 %v20481_v17  ;;  %14626 = vmatpush3.bf16.msra.mxu1 %v20480_v5 }
0x1684   : > { %14592 = vmatprep.subr.bf16.mxu0 %v20482_v11  ;;  %14628 = vmatprep.subr.bf16.mxu1 %v20483_v50 }
0x1687   : > { %14594 = vmatpush1.bf16.msra.mxu0 %v20484_v30  ;;  %14630 = vmatpush3.bf16.msra.mxu1 %v20483_v50 }
0x1688   : > { %14596 = vmatprep.subr.bf16.mxu0 %v20485_v6  ;;  %14664 = vmatprep.subr.bf16.mxu1 %v20486_v45 }
0x168b   : > { %14598 = vmatpush1.bf16.msra.mxu0 %v20487_v2 }
0x168c   : > { %14632 = vmatprep.subr.bf16.mxu0 %v20488_v60 }
0x1731   : > { %v4691_v36 = vpop.f32.mrb[66].mxu1 }
0x1732   : > { %v13205_v55 = vpop.f32.mrb[67].mxu1  ;;  %4979 = vmatmul.mubr.f32.vlgmr.msra.gmra.mrb[68].mxu0 %v4691_v36  ;;  %13259 = vmatprep.mubr.f32.mxu1 %v4691_v36  ;;  %v20497_v36 = vld [vmem:[#allocation66_spill] sm:$0xff] }
0x1733   : > { %14634 = vmatpush1.bf16.msra.mxu0 %v20489_v40  ;;  %4984 = vmatprep.mubr.f32.mxu0 %v20339_v59  ;;  %v20498_v55 = vld [vmem:[#allocation67_spill] sm:$0xff] }
0x1734   : > { %14636 = vmatprep.subr.bf16.mxu0 %v20490_v26  ;;  %v20544_v26 = vld [vmem:[#allocation81_spill] sm:$0xff] }
0x1737   : > { %14638 = vmatpush1.bf16.msra.mxu0 %v20491_v47 }
0x1738   : > { %14640 = vmatprep.subr.bf16.mxu0 %v20492_v7  ;;  %v20531_v7 = vld [vmem:[#allocation96_spill] sm:$0xff] }
0x1739   : > { %v4764_v25 = vpop.f32.mrb[68].mxu1 }
0x173a   : > { %v13212_v53 = vpop.f32.mrb[69].mxu1  ;;  %4985 = vmatmul.mubr.f32.gmra.mrb[70].mxu0 %v4764_v25  ;;  %13260 = vmatmul.mubr.f32.vlgmr.msra.gmra.mrb[72].mxu1 %v4764_v25 }
0x173b   : > { %14666 = vmatpush3.bf16.msra.mxu1 %v20486_v45  ;;  %14642 = vmatpush1.bf16.msra.mxu0 %v20493_v41  ;;  %v20499_v41 = vld [vmem:[#allocation68_spill] sm:$0xff] }
0x173c   : > { %14668 = vmatprep.subr.bf16.mxu1 %v20494_v12  ;;  %14644 = vmatprep.subr.bf16.mxu0 %v20495_v29  ;;  %v20507_v29 = vld [vmem:[#allocation76_spill] sm:$0xff] }
0x173d   : > { %v4910_v48 = vpop.f32.mrb[70].mxu1  ;;  %4990 = vmatprep.mubr.f32.mxu0 %v20339_v59 }
0x173e   : > { %v13226_v33 = vpop.f32.mrb[71].mxu1 }
0x173f   : > { %14670 = vmatpush3.bf16.msra.mxu1 %v20494_v12  ;;  %14646 = vmatpush1.bf16.msra.mxu0 %v20496_v4  ;;  %v20500_v33 = vld [vmem:[#allocation69_spill] sm:$0xff]  ;;  %v20501_v4 = vld [vmem:[#allocation70_spill] sm:$0xff]  ;;  %v20530_v12 = vld [vmem:[#allocation107_spill] sm:$0xff] }
0x1740   : > { %14672 = vmatprep.subr.bf16.mxu1 %v20497_v36  ;;  %14648 = vmatprep.subr.bf16.mxu0 %v20498_v55  ;;  %v20502_v55 = vld [vmem:[#allocation71_spill] sm:$0xff] }
0x1741   : > { %v4837_v25 = vpop.f32.mrb[66].mxu0 }
0x1742   : > { %v13219_v53 = vpop.f32.mrb[67].mxu0  ;;  %4991 = vmatmul.mubr.f32.gmra.mrb[72].mxu0 %v4837_v25  ;;  %13262 = vmatprep.mubr.f32.mxu1 %v4837_v25  ;;  %v20504_v25 = vld [vmem:[#allocation73_spill] sm:$0xff] }
0x1743   : > { %14674 = vmatpush3.bf16.msra.mxu1 %v20497_v36  ;;  %14650 = vmatpush1.bf16.msra.mxu0 %v20499_v41  ;;  %v20503_v53 = vld [vmem:[#allocation72_spill] sm:$0xff]  ;;  %v20505_v41 = vld [vmem:[#allocation74_spill] sm:$0xff]  ;;  %v20506_v36 = vld [vmem:[#allocation75_spill] sm:$0xff] }
0x1744   : > { %13263 = vmatmul.mubr.f32.gmra.mrb[74].mxu1 %v4910_v48  ;;  %4996 = vmatprep.mubr.f32.mxu0 %v20339_v59 }
0x1745   : > { %13297 = vmatprep.mubr.f32.mxu1 %v18537_v27  ;;  %14676 = vmatprep.subr.bf16.mxu1 %v20500_v33 }
0x1746   : > { %4997 = vmatmul.mubr.f32.gmra.mrb[74].mxu0 %v4910_v48  ;;  %14652 = vmatprep.subr.bf16.mxu0 %v20501_v4  ;;  %v20508_v48 = vld [vmem:[#allocation77_spill] sm:$0xff]  ;;  %v20509_v4 = vld [vmem:[#allocation78_spill] sm:$0xff] }
0x1747   : > { %14678 = vmatpush3.bf16.msra.mxu1 %v20500_v33  ;;  %14654 = vmatpush1.bf16.msra.mxu0 %v20502_v55  ;;  %v20510_v55 = vld [vmem:[#allocation84_spill] sm:$0xff]  ;;  %v20529_v33 = vld [vmem:[#allocation95_spill] sm:$0xff] }
0x1748   : > { %14680 = vmatprep.subr.bf16.mxu1 %v20503_v53  ;;  %14656 = vmatprep.subr.bf16.mxu0 %v20504_v25  ;;  %v20511_v25 = vld [vmem:[#allocation79_spill] sm:$0xff] }
0x1749   : > { %5152 = vmatprep.mubr.f32.mxu0 %v20339_v59 }
0x174b   : > { %14682 = vmatpush3.bf16.msra.mxu1 %v20503_v53  ;;  %14658 = vmatpush1.bf16.msra.mxu0 %v20505_v41  ;;  %v20512_v41 = vld [vmem:[#allocation85_spill] sm:$0xff]  ;;  %v20513_v53 = vld [vmem:[#allocation86_spill] sm:$0xff] }
0x174c   : > { %14684 = vmatprep.subr.bf16.mxu1 %v20506_v36  ;;  %14660 = vmatprep.subr.bf16.mxu0 %v20507_v29  ;;  %v20516_v29 = vld [vmem:[#allocation88_spill] sm:$0xff] }
0x174f   : > { %14686 = vmatpush3.bf16.msra.mxu1 %v20506_v36  ;;  %14662 = vmatpush1.bf16.msra.mxu0 %v20508_v48  ;;  %v20514_v48 = vld [vmem:[#allocation87_spill] sm:$0xff]  ;;  %v20524_v36 = vld [vmem:[#allocation104_spill] sm:$0xff] }
0x1750   : > { %14688 = vmatprep.subr.bf16.mxu1 %v20509_v4  ;;  %14696 = vmatprep.subr.bf16.mxu0 %v20510_v55  ;;  %v20515_v55 = vld [vmem:[#allocation100_spill] sm:$0xff] }
0x1752   : > { %5153 = vmatmul.mubr.f32.vlgmr.msra.gmra.mrb[68].mxu0 %v18537_v27 }
0x1753   : > { %14690 = vmatpush3.bf16.msra.mxu1 %v20509_v4  ;;  %5158 = vmatprep.mubr.f32.mxu0 %v20339_v59  ;;  %v20520_v4 = vld [vmem:[#allocation102_spill] sm:$0xff] }
0x1754   : > { %14692 = vmatprep.subr.bf16.mxu1 %v20511_v25  ;;  %14698 = vmatpush1.bf16.msra.mxu0 %v20512_v41  ;;  %v20518_v41 = vld [vmem:[#allocation101_spill] sm:$0xff] }
0x1755   : > { %14700 = vmatprep.subr.bf16.mxu0 %v20513_v53  ;;  %v20517_v53 = vld [vmem:[#allocation89_spill] sm:$0xff] }
0x1756   : > { %5159 = vmatmul.mubr.f32.gmra.mrb[70].mxu0 %v18542_v39 }
0x1757   : > { %14694 = vmatpush3.bf16.msra.mxu1 %v20511_v25  ;;  %5164 = vmatprep.mubr.f32.mxu0 %v20339_v59  ;;  %v20519_v25 = vld [vmem:[#allocation90_spill] sm:$0xff] }
0x1758   : > { %14702 = vmatpush1.bf16.msra.mxu0 %v20514_v48  ;;  %14728 = vmatprep.subr.bf16.mxu1 %v20515_v55  ;;  %v20522_v55 = vld [vmem:[#allocation103_spill] sm:$0xff]  ;;  %v20523_v48 = vld [vmem:[#allocation92_spill] sm:$0xff] }
0x1759   : > { %14704 = vmatprep.subr.bf16.mxu0 %v20516_v29  ;;  %v20521_v29 = vld [vmem:[#allocation91_spill] sm:$0xff] }
0x175a   : > { %13298 = vmatmul.mubr.f32.vlgmr.msra.gmra.mrb[76].mxu1 %v18542_v39  ;;  %5165 = vmatmul.mubr.f32.gmra.mrb[72].mxu0 %v18547_v1 }
0x175b   : > { %13300 = vmatprep.mubr.f32.mxu1 %v18547_v1  ;;  %5170 = vmatprep.mubr.f32.mxu0 %v20339_v59 }
0x175c   : > { %14706 = vmatpush1.bf16.msra.mxu0 %v20517_v53  ;;  %14730 = vmatpush3.bf16.msra.mxu1 %v20518_v41  ;;  %v20525_v53 = vld [vmem:[#allocation93_spill] sm:$0xff] }
0x175d   : > { %14708 = vmatprep.subr.bf16.mxu0 %v20519_v25  ;;  %14732 = vmatprep.subr.bf16.mxu1 %v20520_v4  ;;  %v20526_v41 = vld [vmem:[#allocation105_spill] sm:$0xff]  ;;  %v20527_v25 = vld [vmem:[#allocation94_spill] sm:$0xff] }
0x175e   : > { %13301 = vmatmul.mubr.f32.gmra.mrb[78].mxu1 %v18552_v16  ;;  %5171 = vmatmul.mubr.f32.gmra.mrb[74].mxu0 %v18552_v16  ;;  %v20528_v4 = vld [vmem:[#allocation106_spill] sm:$0xff] }
0x175f   : > { %5462 = vmatprep.mubr.f32.mxu0 %v20339_v59 }
0x1760   : > { %14710 = vmatpush1.bf16.msra.mxu0 %v20521_v29  ;;  %14734 = vmatpush3.bf16.msra.mxu1 %v20522_v55  ;;  %v20532_v29 = vld [vmem:[#allocation108_spill] sm:$0xff]  ;;  %v20533_v55 = vld [vmem:[#allocation97_spill] sm:$0xff] }
0x1761   : > { %14712 = vmatprep.subr.bf16.mxu0 %v20523_v48  ;;  %14736 = vmatprep.subr.bf16.mxu1 %v20524_v36  ;;  %v20534_v48 = vld [vmem:[#allocation109_spill] sm:$0xff]  ;;  %v20535_v36 = vld [vmem:[#allocation98_spill] sm:$0xff] }
0x1764   : > { %14714 = vmatpush1.bf16.msra.mxu0 %v20525_v53  ;;  %14738 = vmatpush3.bf16.msra.mxu1 %v20526_v41  ;;  %v20536_v53 = vld [vmem:[#allocation110_spill] sm:$0xff]  ;;  %v20537_v41 = vld [vmem:[#allocation99_spill] sm:$0xff] }
0x1765   : > { %14716 = vmatprep.subr.bf16.mxu0 %v20527_v25  ;;  %14740 = vmatprep.subr.bf16.mxu1 %v20528_v4  ;;  %v20538_v25 = vld [vmem:[#allocation111_spill] sm:$0xff]  ;;  %v20539_v4 = vld [vmem:[#allocation112_spill] sm:$0xff] }
0x1768   : > { %14718 = vmatpush1.bf16.msra.mxu0 %v20529_v33  ;;  %14742 = vmatpush3.bf16.msra.mxu1 %v20530_v12  ;;  %v20540_v12 = vld [vmem:[#allocation113_spill] sm:$0xff] }
0x1769   : > { %14720 = vmatprep.subr.bf16.mxu0 %v20531_v7  ;;  %14744 = vmatprep.subr.bf16.mxu1 %v20532_v29  ;;  %v20541_v7 = vld [vmem:[#allocation114_spill] sm:$0xff]  ;;  %v20542_v29 = vld [vmem:[#allocation115_spill] sm:$0xff] }
0x176c   : > { %14722 = vmatpush1.bf16.msra.mxu0 %v20533_v55  ;;  %14746 = vmatpush3.bf16.msra.mxu1 %v20534_v48  ;;  %v20543_v55 = vld [vmem:[#allocation80_spill] sm:$0xff] }
0x176d   : > { %14724 = vmatprep.subr.bf16.mxu0 %v20535_v36  ;;  %14748 = vmatprep.subr.bf16.mxu1 %v20536_v53 }
0x1770   : > { %14726 = vmatpush1.bf16.msra.mxu0 %v20537_v41  ;;  %14750 = vmatpush3.bf16.msra.mxu1 %v20538_v25 }
0x1771   : > { %14752 = vmatprep.subr.bf16.mxu1 %v20539_v4  ;;  %14760 = vmatprep.subr.bf16.mxu0 %v17574_v46 }
0x1774   : > { %14754 = vmatpush3.bf16.msra.mxu1 %v20540_v12 }
0x1775   : > { %14756 = vmatprep.subr.bf16.mxu1 %v20541_v7 }
0x1778   : > { %14758 = vmatpush3.bf16.msra.mxu1 %v20542_v29 }
0x1779   : > { %14791 = vmatprep.subr.bf16.mxu1 %v20397_v57 }
0x180d   : > { %v18732_v48 = vpop.f32.mrb[72].mxu1 }
0x180e   : > { %v5069_v36 = vpop.f32.mrb[73].mxu1 }
0x1817   : > { %v18734_v53 = vpop.f32.mrb[74].mxu1 }
0x1818   : > { %v18736_v41 = vpop.f32.mrb[75].mxu1 }
0x1825   : > { %v5154_v25 = vpop.f32.mrb[68].mxu0 }
0x1826   : > { %v15784_v4 = vadd.f32 %v20543_v55, %v5154_v25  ;;  %v5156_v33 = vpop.f32.mrb[69].mxu0 }
0x1827   : > { %v15786_v12 = vadd.f32 %v20544_v26, %v5156_v33 }
0x1828   : > { %v11832_v47 = vmul.f32 -1.442695, %v15784_v4 }
0x1829   : > { %v5160_v40 = vpop.f32.mrb[70].mxu0  ;;  %v11836_v45 = vmul.f32 -1.442695, %v15786_v12 }
0x182a   : > { %16273 = vpow2.f32 %v11832_v47  ;;  %v15788_v29 = vadd.f32 %v20543_v55, %v5160_v40  ;;  %v5162_v7 = vpop.f32.mrb[71].mxu0 }
0x182b   : > { %v15790_v2 = vadd.f32 %v20544_v26, %v5162_v7 }
0x182c   : > { %v11833_v60 = vmul.f32 -1.442695, %v15788_v29 }
0x182d   : > { %v13299_v6 = vpop.f32.mrb[76].mxu1  ;;  %v5166_v30 = vpop.f32.mrb[72].mxu0  ;;  %v11837_v17 = vmul.f32 -1.442695, %v15790_v2 }
0x182e   : > { %16275 = vpow2.f32 %v11833_v60  ;;  %v15792_v50 = vadd.f32 %v20543_v55, %v5166_v30  ;;  %v5243_v11 = vpop.f32.mrb[77].mxu1  ;;  %v5168_v25 = vpop.f32.mrb[73].mxu0 }
0x182f   : > { %v15794_v33 = vadd.f32 %v20544_v26, %v5168_v25  ;;  %16277 = vpow2.f32 %v11836_v45 }
0x1830   : > { %v11834_v4 = vmul.f32 -1.442695, %v15792_v50 }
0x1831   : > { %v13302_v47 = vpop.f32.mrb[78].mxu1  ;;  %v5172_v5 = vpop.f32.mrb[74].mxu0  ;;  %v11838_v38 = vmul.f32 -1.442695, %v15794_v33  ;;  %v5244_v33 = vadd.f32 %v5243_v11, %v20467_v32 }
0x1832   : > { %16279 = vpow2.f32 %v11834_v4  ;;  %v15796_v40 = vadd.f32 %v20543_v55, %v5172_v5  ;;  %v5253_v29 = vpop.f32.mrb[79].mxu1  ;;  %v5174_v7 = vpop.f32.mrb[75].mxu0 }
0x1833   : > { %16281 = vpow2.f32 %v11837_v17  ;;  %v15798_v30 = vadd.f32 %v20544_v26, %v5174_v7 }
0x1834   : > { %v16274_v12 = vpop.eup %16273  ;;  %v11835_v60 = vmul.f32 -1.442695, %v15796_v40 }
0x1835   : > { %v5278_v0 = vadd.f32 1.0, %v16274_v12  ;;  %v11839_v2 = vmul.f32 -1.442695, %v15798_v30  ;;  %v5249_v30 = vadd.f32 %v13299_v6, %v20467_v32 }
0x1836   : > { %16283 = vpow2.f32 %v11835_v60 }
0x1837   : > { %16285 = vrcp.f32 %v5278_v0  ;;  %v5070_v0 = vadd.f32 %v5069_v36, %v20468_v20  ;;  %v5080_v36 = vadd.f32 %v18736_v41, %v20468_v20 }
0x1838   : > { %v16276_v50 = vpop.eup %16275  ;;  %16287 = vpow2.f32 %v11838_v38 }
0x1839   : > { %v5279_v45 = vadd.f32 1.0, %v16276_v50  ;;  %v16278_v25 = vpop.eup %16277 }
0x183a   : > { %v5306_v37 = vadd.f32 1.0, %v16278_v25 }
0x183b   : > { %16289 = vrcp.f32 %v5279_v45 }
0x183c   : > { %v16280_v4 = vpop.eup %16279  ;;  %16291 = vpow2.f32 %v11839_v2 }
0x183d   : > { %v5280_v5 = vadd.f32 1.0, %v16280_v4  ;;  %v16282_v55 = vpop.eup %16281  ;;  %v5075_v4 = vadd.f32 %v18732_v48, %v20468_v20  ;;  %v5085_v48 = vadd.f32 %v18734_v53, %v20468_v20 }
0x183e   : > { %v5307_v7 = vadd.f32 1.0, %v16282_v55 }
0x183f   : > { %16293 = vrcp.f32 %v5280_v5  ;;  %v5254_v5 = vadd.f32 %v5253_v29, %v20467_v32 }
0x1840   : > { %v16284_v17 = vpop.eup %16283  ;;  %16295 = vrcp.f32 %v5306_v37 }
0x1841   : > { %v16286_v40 = vpop.eup %16285  ;;  %v5281_v12 = vadd.f32 1.0, %v16284_v17 }
0x1842   : > { %v16288_v60 = vpop.eup %16287  ;;  %v5318_v38 = vmul.f32 %v16286_v40, %v5244_v33  ;;  %v5259_v40 = vadd.f32 %v13302_v47, %v20467_v32 }
0x1843   : > { %16297 = vrcp.f32 %v5281_v12  ;;  %v5308_v45 = vadd.f32 1.0, %v16288_v60 }
0x1844   : > { %v5322_v50 = vadd.f32 %v5318_v38, %v5070_v0  ;;  %16299 = vrcp.f32 %v5307_v7 }
0x1845   : > { %v16290_v2 = vpop.eup %16289 }
0x1846   : > { %v16292_v25 = vpop.eup %16291  ;;  %v5319_v11 = vmul.f32 %v16290_v2, %v5249_v30  ;;  %16301 = vtanh.f32 %v5322_v50 }
0x1847   : > { %16303 = vrcp.f32 %v5308_v45  ;;  %v5309_v37 = vadd.f32 1.0, %v16292_v25 }
0x1848   : > { %v5323_v55 = vadd.f32 %v5319_v11, %v5075_v4 }
0x1849   : > { %v16294_v17 = vpop.eup %16293 }
0x184a   : > { %16305 = vtanh.f32 %v5323_v55  ;;  %v5320_v6 = vmul.f32 %v16294_v17, %v5254_v5  ;;  %v16296_v33 = vpop.eup %16295 }
0x184b   : > { %16307 = vrcp.f32 %v5309_v37  ;;  %v5330_v0 = vsub.f32 1.0, %v16296_v33  ;;  %v5338_v41 = vmul.f32 %v16296_v33, %v18537_v27 }
0x184c   : > { %v5324_v7 = vadd.f32 %v5320_v6, %v5080_v36 }
0x184d   : > { %v16298_v12 = vpop.eup %16297 }
0x184e   : > { %v5321_v60 = vmul.f32 %v16298_v12, %v5259_v40  ;;  %16309 = vtanh.f32 %v5324_v7  ;;  %v16300_v29 = vpop.eup %16299 }
0x184f   : > { %v5331_v47 = vsub.f32 1.0, %v16300_v29  ;;  %v5339_v53 = vmul.f32 %v16300_v29, %v18542_v39 }
0x1850   : > { %v16302_v38 = vpop.eup %16301  ;;  %v5325_v30 = vadd.f32 %v5321_v60, %v5085_v48 }
0x1851   : > { %v5334_v50 = vmul.f32 %v16302_v38, %v5330_v0  ;;  %v16304_v2 = vpop.eup %16303 }
0x1852   : > { %16311 = vtanh.f32 %v5325_v30  ;;  %v5332_v5 = vsub.f32 1.0, %v16304_v2  ;;  %v5340_v27 = vmul.f32 %v16304_v2, %v18547_v1 }
0x1853   : > { %v18758_v45 = vadd.f32 %v5338_v41, %v5334_v50 }
0x1854   : > { %v16306_v25 = vpop.eup %16305 }
0x1855   : > { %5346 = vadd.xlane.f32.xlu0 %v18758_v45  ;;  %v5335_v4 = vmul.f32 %v16306_v25, %v5331_v47  ;;  %v16308_v11 = vpop.eup %16307 }
0x1856   : > { %v5333_v6 = vsub.f32 1.0, %v16308_v11  ;;  %v5341_v7 = vmul.f32 %v16308_v11, %v18552_v16 }
0x1857   : > { %v18762_v55 = vadd.f32 %v5339_v53, %v5335_v4 }
0x1858   : > { %v16310_v17 = vpop.eup %16309 }
0x1859   : > { %5348 = vadd.xlane.f32.xlu1 %v18762_v55  ;;  %v5336_v37 = vmul.f32 %v16310_v17, %v5332_v5 }
0x185b   : > { %v18766_v36 = vadd.f32 %v5340_v27, %v5336_v37 }
0x185c   : > { %v16312_v33 = vpop.eup %16311 }
0x185d   : > { %5350 = vadd.xlane.f32.xlu0 %v18766_v36  ;;  %v5337_v40 = vmul.f32 %v16312_v33, %v5333_v6 }
0x185f   : > { %v18770_v39 = vadd.f32 %v5341_v7, %v5337_v40 }
0x1861   : > { %5352 = vadd.xlane.f32.xlu1 %v18770_v39 }
0x18e2   : > { %v5347_v12 = vpop.xlane.xlu0 %5346 }
0x18e3   : > { %v5354_v48 = vmul.f32 0.0078125, %v5347_v12 }
0x18e5   : > { %v5358_v60 = vsub.f32 %v18758_v45, %v5354_v48 }
0x18e6   : > { %v5349_v29 = vpop.xlane.xlu1 %5348 }
0x18e7   : > { %v5355_v0 = vmul.f32 0.0078125, %v5349_v29  ;;  %v5362_v1 = vmul.f32 %v5358_v60, %v5358_v60 }
0x18e9   : > { %v5359_v38 = vsub.f32 %v18762_v55, %v5355_v0  ;;  %5366 = vadd.xlane.f32.xlu0 %v5362_v1 }
0x18ea   : > { %v5351_v30 = vpop.xlane.xlu0 %5350 }
0x18eb   : > { %v5356_v50 = vmul.f32 0.0078125, %v5351_v30  ;;  %v5363_v41 = vmul.f32 %v5359_v38, %v5359_v38 }
0x18ed   : > { %v5360_v2 = vsub.f32 %v18766_v36, %v5356_v50  ;;  %5368 = vadd.xlane.f32.xlu1 %v5363_v41 }
0x18ee   : > { %v5353_v16 = vpop.xlane.xlu1 %5352 }
0x18ef   : > { %v5357_v47 = vmul.f32 0.0078125, %v5353_v16  ;;  %v5364_v25 = vmul.f32 %v5360_v2, %v5360_v2 }
0x18f1   : > { %v5361_v4 = vsub.f32 %v18770_v39, %v5357_v47  ;;  %5370 = vadd.xlane.f32.xlu0 %v5364_v25 }
0x18f3   : > { %v5365_v53 = vmul.f32 %v5361_v4, %v5361_v4 }
0x18f5   : > { %5372 = vadd.xlane.f32.xlu1 %v5365_v53 }
0x1976   : > { %v5367_v11 = vpop.xlane.xlu0 %5366 }
0x1977   : > { %v5374_v5 = vmul.f32 0.0078125, %v5367_v11 }
0x1979   : > { %v5378_v17 = vadd.f32 1e-05, %v5374_v5 }
0x197a   : > { %v5369_v37 = vpop.xlane.xlu1 %5368 }
0x197b   : > { %16313 = vrsqrt.f32 %v5378_v17  ;;  %v5375_v27 = vmul.f32 0.0078125, %v5369_v37 }
0x197d   : > { %v5379_v6 = vadd.f32 1e-05, %v5375_v27 }
0x197e   : > { %v5371_v33 = vpop.xlane.xlu0 %5370 }
0x197f   : > { %16315 = vrsqrt.f32 %v5379_v6  ;;  %v5376_v40 = vmul.f32 0.0078125, %v5371_v33 }
0x1981   : > { %v5380_v7 = vadd.f32 1e-05, %v5376_v40 }
0x1982   : > { %v5373_v12 = vpop.xlane.xlu1 %5372 }
0x1983   : > { %16317 = vrsqrt.f32 %v5380_v7  ;;  %v5377_v48 = vmul.f32 0.0078125, %v5373_v12 }
0x1985   : > { %v16314_v29 = vpop.eup %16313  ;;  %v5381_v0 = vadd.f32 1e-05, %v5377_v48 }
0x1986   : > { %v5386_v1 = vmul.f32 %v16314_v29, %v5358_v60 }
0x1987   : > { %16319 = vrsqrt.f32 %v5381_v0 }
0x1988   : > { %v5390_v30 = vmul.f32 %v5386_v1, %v18194_v24 }
0x1989   : > { %v16316_v50 = vpop.eup %16315 }
0x198a   : > { %v5394_v41 = vadd.f32 %v5390_v30, %v18198_v54  ;;  %v5387_v16 = vmul.f32 %v16316_v50, %v5359_v38 }
0x198c   : > { %5463 = vmatmul.mubr.f32.vlgmr.msra.gmra.mrb[76].mxu0 %v5394_v41  ;;  %v5391_v47 = vmul.f32 %v5387_v16, %v18194_v24 }
0x198d   : > { %v16318_v25 = vpop.eup %16317  ;;  %5468 = vmatprep.mubr.f32.mxu0 %v20339_v59  ;;  %14762 = vmatpush3.bf16.msra.mxu0 %v17574_v46 }
0x198e   : > { %v5395_v53 = vadd.f32 %v5391_v47, %v18198_v54  ;;  %v5388_v11 = vmul.f32 %v16318_v25, %v5360_v2  ;;  %14764 = vmatprep.subr.bf16.mxu0 %v17626_v43 }
0x1990   : > { %5469 = vmatmul.mubr.f32.gmra.mrb[78].mxu0 %v5395_v53  ;;  %v5392_v60 = vmul.f32 %v5388_v11, %v18194_v24 }
0x1991   : > { %v16320_v5 = vpop.eup %16319  ;;  %5474 = vmatprep.mubr.f32.mxu0 %v20339_v59  ;;  %14766 = vmatpush3.bf16.msra.mxu0 %v17626_v43 }
0x1992   : > { %v5396_v38 = vadd.f32 %v5392_v60, %v18198_v54  ;;  %v5389_v17 = vmul.f32 %v16320_v5, %v5361_v4  ;;  %14768 = vmatprep.subr.bf16.mxu0 %v17640_v61 }
0x1994   : > { %5475 = vmatmul.mubr.f32.gmra.mrb[80].mxu0 %v5396_v38  ;;  %v5393_v37 = vmul.f32 %v5389_v17, %v18194_v24 }
0x1995   : > { %5480 = vmatprep.mubr.f32.mxu0 %v20339_v59  ;;  %14770 = vmatpush3.bf16.msra.mxu0 %v17640_v61 }
0x1996   : > { %v5397_v2 = vadd.f32 %v5393_v37, %v18198_v54  ;;  %14772 = vmatprep.subr.bf16.mxu0 %v17646_v21 }
0x1998   : > { %5481 = vmatmul.mubr.f32.gmra.mrb[82].mxu0 %v5397_v2 }
0x1999   : > { %14774 = vmatpush3.bf16.msra.mxu0 %v17646_v21 }
0x199a   : > { %14776 = vmatprep.subr.bf16.mxu0 %v17650_v34 }
0x199d   : > { %14778 = vmatpush3.bf16.msra.mxu0 %v17650_v34 }
0x199e   : > { %14780 = vmatprep.subr.bf16.mxu0 %v17654_v42 }
0x19a1   : > { %14782 = vmatpush3.bf16.msra.mxu0 %v17654_v42 }
0x19a2   : > { %14784 = vmatprep.subr.bf16.mxu0 %v17659_v49 }
0x19a5   : > { %14786 = vmatpush3.bf16.msra.mxu0 %v17659_v49 }
0x19a6   : > { %14788 = vmatprep.subr.bf16.mxu0 %v17663_v51 }
0x19a9   : > { %14790 = vmatpush3.bf16.msra.mxu0 %v17663_v51 }
0x19aa   : > { %14800 = vmatprep.subr.bf16.mxu0 %v20397_v57 }
0x1a5f   : > { %v5464_v4 = vpop.f32.mrb[76].mxu0 }
0x1a60   : > { %v5465_v27 = vadd.f32 %v5464_v4, %v18233_v35  ;;  %v5466_v6 = vpop.f32.mrb[77].mxu0 }
0x1a61   : > { %v5467_v33 = vadd.f32 %v5466_v6, %v18236_v22 }
0x1a62   : > { %v5487_v12 = vmax.f32 %v5465_v27, 0.0 }
0x1a63   : > { %v5488_v40 = vmax.f32 %v5467_v33, 0.0  ;;  %v5470_v7 = vpop.f32.mrb[78].mxu0 }
0x1a64   : > { %v5471_v48 = vadd.f32 %v5470_v7, %v18233_v35  ;;  %v5472_v29 = vpop.f32.mrb[79].mxu0 }
0x1a65   : > { %v5473_v0 = vadd.f32 %v5472_v29, %v18236_v22  ;;  %5559 = vmatprep.mubr.f32.mxu1 %v5488_v40 }
0x1a66   : > { %5560 = vmatmul.mubr.f32.vlgmr.msra.gmra.mrb[80].mxu1 %v5487_v12  ;;  %v5489_v50 = vmax.f32 %v5471_v48, 0.0 }
0x1a67   : > { %v5490_v1 = vmax.f32 %v5473_v0, 0.0  ;;  %14793 = vmatpush3.bf16.xpose.msra.mxu1 %v20469_v15  ;;  %v5476_v30 = vpop.f32.mrb[80].mxu0 }
0x1a68   : > { %v5477_v41 = vadd.f32 %v5476_v30, %v18233_v35  ;;  %v5478_v16 = vpop.f32.mrb[81].mxu0  ;;  %14794 = vmatprep.subr.bf16.mxu1 %v20397_v57 }
0x1a69   : > { %v5479_v47 = vadd.f32 %v5478_v16, %v18236_v22  ;;  %5564 = vmatprep.mubr.f32.mxu1 %v5490_v1 }
0x1a6a   : > { %5565 = vmatmul.mubr.f32.gmra.mrb[82].mxu1 %v5489_v50  ;;  %v5491_v11 = vmax.f32 %v5477_v41, 0.0 }
0x1a6b   : > { %v5492_v25 = vmax.f32 %v5479_v47, 0.0  ;;  %v5482_v53 = vpop.f32.mrb[82].mxu0 }
0x1a6c   : > { %v5483_v60 = vadd.f32 %v5482_v53, %v18233_v35  ;;  %v5484_v5 = vpop.f32.mrb[83].mxu0 }
0x1a6d   : > { %v5485_v38 = vadd.f32 %v5484_v5, %v18236_v22  ;;  %5569 = vmatprep.mubr.f32.mxu1 %v5492_v25 }
0x1a6e   : > { %5570 = vmatmul.mubr.f32.gmra.mrb[84].mxu1 %v5491_v11  ;;  %v5493_v37 = vmax.f32 %v5483_v60, 0.0 }
0x1a6f   : > { %v5494_v17 = vmax.f32 %v5485_v38, 0.0 }
0x1a71   : > { %5574 = vmatprep.mubr.f32.mxu1 %v5494_v17 }
0x1a72   : > { %5575 = vmatmul.mubr.f32.gmra.mrb[86].mxu1 %v5493_v37 }
0x1a73   : > { %13345 = vmatprep.mubr.msk.f32.mxu1 %vm17038_vm0, %v20339_v59 }
0x1b39   : > { %v12269_v2 = vpop.f32.mrb[80].mxu1 }
0x1b3a   : > { %v12270_v4 = vpop.f32.mrb[81].mxu1 }
0x1b3b   : > { %v12271_v27 = vadd.f32 %v12270_v4, %v12269_v2 }
0x1b3d   : > { %v5562_v6 = vadd.f32 %v12271_v27, %v20470_v13  ;;  %v12272_v33 = vpop.f32.mrb[82].mxu1 }
0x1b3e   : > { %v12273_v40 = vpop.f32.mrb[83].mxu1 }
0x1b3f   : > { %v18818_v7 = vadd.f32 %v5562_v6, %v18758_v45  ;;  %v12274_v12 = vadd.f32 %v12273_v40, %v12272_v33 }
0x1b41   : > { %v5567_v48 = vadd.f32 %v12274_v12, %v20470_v13  ;;  %5584 = vadd.xlane.f32.xlu0 %v18818_v7  ;;  %v12275_v29 = vpop.f32.mrb[84].mxu1 }
0x1b42   : > { %v12276_v0 = vpop.f32.mrb[85].mxu1 }
0x1b43   : > { %v18823_v1 = vadd.f32 %v5567_v48, %v18762_v55  ;;  %v12277_v30 = vadd.f32 %v12276_v0, %v12275_v29 }
0x1b45   : > { %v5572_v50 = vadd.f32 %v12277_v30, %v20470_v13  ;;  %5586 = vadd.xlane.f32.xlu1 %v18823_v1  ;;  %v12278_v41 = vpop.f32.mrb[86].mxu1 }
0x1b46   : > { %v12279_v16 = vpop.f32.mrb[87].mxu1 }
0x1b47   : > { %v18828_v45 = vadd.f32 %v5572_v50, %v18766_v36  ;;  %v12280_v47 = vadd.f32 %v12279_v16, %v12278_v41 }
0x1b49   : > { %v5577_v25 = vadd.f32 %v12280_v47, %v20470_v13  ;;  %5588 = vadd.xlane.f32.xlu0 %v18828_v45 }
0x1b4b   : > { %v18833_v53 = vadd.f32 %v5577_v25, %v18770_v39 }
0x1b4d   : > { %5590 = vadd.xlane.f32.xlu1 %v18833_v53 }
0x1bce   : > { %v5585_v55 = vpop.xlane.xlu0 %5584 }
0x1bcf   : > { %v5592_v11 = vmul.f32 0.0078125, %v5585_v55 }
0x1bd1   : > { %v5596_v60 = vsub.f32 %v18818_v7, %v5592_v11 }
0x1bd2   : > { %v5587_v5 = vpop.xlane.xlu1 %5586 }
0x1bd3   : > { %v5593_v38 = vmul.f32 0.0078125, %v5587_v5  ;;  %v5600_v17 = vmul.f32 %v5596_v60, %v5596_v60 }
0x1bd5   : > { %v5597_v36 = vsub.f32 %v18823_v1, %v5593_v38  ;;  %5604 = vadd.xlane.f32.xlu0 %v5600_v17 }
0x1bd6   : > { %v5589_v37 = vpop.xlane.xlu0 %5588 }
0x1bd7   : > { %v5594_v2 = vmul.f32 0.0078125, %v5589_v37  ;;  %v5601_v4 = vmul.f32 %v5597_v36, %v5597_v36  ;;  %v20545_v37 = vld [vmem:[#allocation30_spill] sm:$0xff] }
0x1bd9   : > { %v5598_v27 = vsub.f32 %v18828_v45, %v5594_v2  ;;  %5606 = vadd.xlane.f32.xlu1 %v5601_v4 }
0x1bda   : > { %v5591_v39 = vpop.xlane.xlu1 %5590 }
0x1bdb   : > { %v5595_v6 = vmul.f32 0.0078125, %v5591_v39  ;;  %v5602_v33 = vmul.f32 %v5598_v27, %v5598_v27 }
0x1bdd   : > { %v5599_v40 = vsub.f32 %v18833_v53, %v5595_v6  ;;  %5608 = vadd.xlane.f32.xlu0 %v5602_v33  ;;  %v20546_v6 = vld [vmem:[#allocation31_spill] sm:$0xff] }
0x1bdf   : > { %v5603_v12 = vmul.f32 %v5599_v40, %v5599_v40 }
0x1be1   : > { %5610 = vadd.xlane.f32.xlu1 %v5603_v12 }
0x1c62   : > { %v5605_v48 = vpop.xlane.xlu0 %5604 }
0x1c63   : > { %v5612_v29 = vmul.f32 0.0078125, %v5605_v48 }
0x1c65   : > { %v5616_v0 = vadd.f32 1e-05, %v5612_v29 }
0x1c66   : > { %v5607_v30 = vpop.xlane.xlu1 %5606 }
0x1c67   : > { %16321 = vrsqrt.f32 %v5616_v0  ;;  %v5613_v50 = vmul.f32 0.0078125, %v5607_v30 }
0x1c69   : > { %v5617_v41 = vadd.f32 1e-05, %v5613_v50 }
0x1c6a   : > { %v5609_v16 = vpop.xlane.xlu0 %5608 }
0x1c6b   : > { %16323 = vrsqrt.f32 %v5617_v41  ;;  %v5614_v47 = vmul.f32 0.0078125, %v5609_v16  ;;  %v20547_v41 = vld [vmem:[#allocation38_spill] sm:$0xff] }
0x1c6d   : > { %v5618_v25 = vadd.f32 1e-05, %v5614_v47 }
0x1c6e   : > { %v5611_v55 = vpop.xlane.xlu1 %5610 }
0x1c6f   : > { %16325 = vrsqrt.f32 %v5618_v25  ;;  %v5615_v11 = vmul.f32 0.0078125, %v5611_v55  ;;  %v20548_v55 = vld [vmem:[#allocation34_spill] sm:$0xff] }
0x1c71   : > { %v16322_v5 = vpop.eup %16321  ;;  %v5619_v38 = vadd.f32 1e-05, %v5615_v11 }
0x1c72   : > { %v5624_v17 = vmul.f32 %v16322_v5, %v5596_v60  ;;  %v20549_v5 = vld [vmem:[#allocation35_spill] sm:$0xff] }
0x1c73   : > { %16327 = vrsqrt.f32 %v5619_v38 }
0x1c74   : > { %v5628_v2 = vmul.f32 %v5624_v17, %v20545_v37 }
0x1c75   : > { %v16324_v4 = vpop.eup %16323 }
0x1c76   : > { %v5625_v39 = vmul.f32 %v16324_v4, %v5597_v36  ;;  %v5632_v33 = vadd.f32 %v5628_v2, %v20546_v6  ;;  %v20550_v4 = vld [vmem:[#allocation37_spill] sm:$0xff] }
0x1c78   : > { %13335 = vmatprep.mubr.f32.mxu0 %v5632_v33  ;;  %v5629_v12 = vmul.f32 %v5625_v39, %v20545_v37  ;;  %v20551_v39 = vld [vmem:[#allocation36_spill] sm:$0xff]  ;;  %v20552_v33 = vld [vmem:[#allocation39_spill] sm:$0xff] }
0x1c79   : > { %v16326_v48 = vpop.eup %16325 }
0x1c7a   : > { %v5633_v29 = vadd.f32 %v5629_v12, %v20546_v6  ;;  %v5626_v0 = vmul.f32 %v16326_v48, %v5598_v27  ;;  %v20553_v48 = vld [vmem:[#allocation33_spill] sm:$0xff] }
0x1c7c   : > { %13336 = vmatmul.mubr.f32.vlgmr.msra.gmra.mrb[84].mxu0 %v5633_v29  ;;  %v5630_v30 = vmul.f32 %v5626_v0, %v20545_v37 }
0x1c7d   : > { %v16328_v50 = vpop.eup %16327  ;;  %14802 = vmatpush3.bf16.xpose.msra.mxu0 %v20547_v41 }
0x1c7e   : > { %v5634_v60 = vadd.f32 %v5630_v30, %v20546_v6  ;;  %v5627_v16 = vmul.f32 %v16328_v50, %v5599_v40  ;;  %14809 = vmatprep.subr.bf16.mxu0 %v20397_v57 }
0x1c80   : > { %13338 = vmatprep.mubr.f32.mxu0 %v5634_v60  ;;  %v5631_v36 = vmul.f32 %v5627_v16, %v20545_v37 }
0x1c82   : > { %v5635_v47 = vadd.f32 %v5631_v36, %v20546_v6 }
0x1c84   : > { %13339 = vmatmul.mubr.f32.gmra.mrb[86].mxu0 %v5635_v47 }
0x1c85   : > { %13366 = vmatprep.mubr.msk.f32.mxu0 %vm17038_vm0, %v20339_v59 }
0x1d4f   : > { %v13337_v27 = vpop.f32.mrb[84].mxu0 }
0x1d50   : > { %v5702_v25 = vpop.f32.mrb[85].mxu0  ;;  %v5708_v2 = vadd.f32 %v13337_v27, %v20548_v55 }
0x1d51   : > { %v5703_v11 = vadd.f32 %v5702_v25, %v20548_v55 }
0x1d53   : > { %13346 = vmatmul.mubr.f32.vlgmr.msra.gmra.mrb[88].mxu1 %v5703_v11 }
0x1d54   : > { %14796 = vmatpush3.bf16.xpose.msra.mxu1 %v20549_v5  ;;  %13352 = vmatprep.mubr.msk.f32.mxu1 %vm17038_vm0, %v20339_v59 }
0x1d55   : > { %14797 = vmatprep.subr.bf16.mxu1 %v20397_v57 }
0x1d57   : > { %v13340_v40 = vpop.f32.mrb[86].mxu0 }
0x1d58   : > { %v5718_v38 = vadd.f32 %v13340_v40, %v20548_v55  ;;  %v5712_v17 = vpop.f32.mrb[87].mxu0 }
0x1d59   : > { %v5713_v12 = vadd.f32 %v5712_v17, %v20548_v55 }
0x1d5a   : > { %13367 = vmatmul.mubr.f32.vlgmr.msra.gmra.mrb[88].mxu0 %v5718_v38 }
0x1d5b   : > { %13353 = vmatmul.mubr.f32.vlgmr.msra.gmra.mrb[90].mxu1 %v5708_v2  ;;  %14811 = vmatpush3.bf16.msra.mxu0 %v20550_v4 }
0x1d5c   : > { %14799 = vmatpush3.bf16.xpose.msra.mxu1 %v20551_v39  ;;  %13359 = vmatprep.mubr.msk.f32.mxu1 %vm17038_vm0, %v20339_v59 }
0x1d5d   : > { %14803 = vmatprep.subr.bf16.mxu1 %v20397_v57  ;;  %13387 = vmatprep.mubr.msk.f32.mxu0 %vm17038_vm0, %v20339_v59 }
0x1d5e   : > { %14816 = vmatprep.subr.bf16.mxu0 %v20552_v33 }
0x1d63   : > { %13360 = vmatmul.mubr.f32.vlgmr.msra.gmra.mrb[92].mxu1 %v5713_v12 }
0x1d64   : > { %14805 = vmatpush3.bf16.msra.mxu1 %v20553_v48  ;;  %13373 = vmatprep.mubr.msk.f32.mxu1 %vm17038_vm0, %v20339_v59 }
0x1d65   : > { %14806 = vmatprep.subr.bf16.mxu1 %v20397_v57 }
0x1e26   : > { %v5787_v29 = vpop.f32.mrb[88].mxu1 }
0x1e27   : > { %v6001_v0 = vmul.f32 0.088388346, %v5787_v29  ;;  %v13347_v30 = vpop.f32.mrb[89].mxu1 }
0x1e29   : > { %v6005_v50 = vadd.f32 %v6001_v0, %v17797_v52 }
0x1e2b   : > { %v6009_v60 = vsel %vm1462_vm2, %v6005_v50, -inf }
0x1e2c   : > { %v6010_v16 = vrot.slane %v6009_v60, 4 }
0x1e2d   : > { %v5997_v36 = vpop.f32.mrb[88].mxu0 }
0x1e2e   : > { %v6011_v47 = vmax.f32 %v6009_v60, %v6010_v16  ;;  %v5857_v27 = vpop.f32.mrb[90].mxu1  ;;  %v6004_v25 = vmul.f32 0.088388346, %v5997_v36  ;;  %v13368_v11 = vpop.f32.mrb[89].mxu0 }
0x1e2f   : > { %v6002_v40 = vmul.f32 0.088388346, %v5857_v27  ;;  %v13354_v38 = vpop.f32.mrb[91].mxu1 }
0x1e30   : > { %v6012_v17 = vrot.slane %v6011_v47, 2  ;;  %v6008_v2 = vadd.f32 %v6004_v25, %v17797_v52 }
0x1e31   : > { %v6006_v12 = vadd.f32 %v6002_v40, %v17797_v52 }
0x1e32   : > { %v6013_v48 = vmax.f32 %v6011_v47, %v6012_v17  ;;  %v6030_v29 = vsel %vm1462_vm2, %v6008_v2, -inf }
0x1e33   : > { %v6016_v0 = vsel %vm1462_vm2, %v6006_v12, -inf  ;;  %v6031_v30 = vrot.slane %v6030_v29, 4 }
0x1e34   : > { %v6014_v33 = vrot.slane %v6013_v48, 1  ;;  %v6017_v39 = vrot.slane %v6016_v0, 4 }
0x1e35   : > { %v6032_v4 = vmax.f32 %v6030_v29, %v6031_v30 }
0x1e36   : > { %v6015_v60 = vmax.f32 %v6013_v48, %v6014_v33  ;;  %v6018_v16 = vmax.f32 %v6016_v0, %v6017_v39  ;;  %v5927_v36 = vpop.f32.mrb[92].mxu1 }
0x1e37   : > { %v6033_v11 = vrot.slane %v6032_v4, 2  ;;  %v6003_v27 = vmul.f32 0.088388346, %v5927_v36  ;;  %v13361_v38 = vpop.f32.mrb[93].mxu1 }
0x1e38   : > { %v6037_v5 = vsub.f32 %v6005_v50, %v6015_v60  ;;  %v6019_v55 = vrot.slane %v6018_v16, 2 }
0x1e39   : > { %v6034_v25 = vmax.f32 %v6032_v4, %v6033_v11  ;;  %v6007_v40 = vadd.f32 %v6003_v27, %v17797_v52 }
0x1e3a   : > { %v6041_v47 = vmul.f32 1.442695, %v6037_v5  ;;  %v6020_v17 = vmax.f32 %v6018_v16, %v6019_v55 }
0x1e3b   : > { %v6035_v41 = vrot.slane %v6034_v25, 1  ;;  %v6023_v6 = vsel %vm1462_vm2, %v6007_v40, -inf }
0x1e3c   : > { %16329 = vpow2.f32 %v6041_v47  ;;  %v6021_v37 = vrot.slane %v6020_v17, 1  ;;  %v6024_v13 = vrot.slane %v6023_v6, 4 }
0x1e3d   : > { %v6036_v29 = vmax.f32 %v6034_v25, %v6035_v41 }
0x1e3e   : > { %v6022_v33 = vmax.f32 %v6020_v17, %v6021_v37  ;;  %v6025_v39 = vmax.f32 %v6023_v6, %v6024_v13 }
0x1e3f   : > { %v6040_v48 = vsub.f32 %v6008_v2, %v6036_v29 }
0x1e40   : > { %v6038_v0 = vsub.f32 %v6006_v12, %v6022_v33  ;;  %v6026_v30 = vrot.slane %v6025_v39, 2 }
0x1e41   : > { %v6047_v36 = vmul.f32 1.442695, %v6040_v48 }
0x1e42   : > { %v6043_v50 = vmul.f32 1.442695, %v6038_v0  ;;  %v6027_v60 = vmax.f32 %v6025_v39, %v6026_v30 }
0x1e43   : > { %16331 = vpow2.f32 %v6047_v36 }
0x1e44   : > { %16333 = vpow2.f32 %v6043_v50  ;;  %v6028_v4 = vrot.slane %v6027_v60, 1 }
0x1e46   : > { %v16330_v5 = vpop.eup %16329  ;;  %v6029_v55 = vmax.f32 %v6027_v60, %v6028_v4 }
0x1e47   : > { %v6049_v16 = vsel %vm1462_vm2, %v16330_v5, 0.0 }
0x1e48   : > { %v6050_v11 = vrot.slane %v6049_v16, 4  ;;  %v6039_v27 = vsub.f32 %v6007_v40, %v6029_v55 }
0x1e4a   : > { %v6051_v38 = vadd.f32 %v6050_v11, %v6049_v16  ;;  %v6045_v47 = vmul.f32 1.442695, %v6039_v27 }
0x1e4c   : > { %16335 = vpow2.f32 %v6045_v47  ;;  %v6052_v37 = vrot.slane %v6051_v38, 2 }
0x1e4d   : > { %v16332_v13 = vpop.eup %16331 }
0x1e4e   : > { %v16334_v6 = vpop.eup %16333  ;;  %v6070_v41 = vsel %vm1462_vm2, %v16332_v13, 0.0  ;;  %v6053_v2 = vadd.f32 %v6052_v37, %v6051_v38 }
0x1e4f   : > { %v6056_v12 = vsel %vm1462_vm2, %v16334_v6, 0.0  ;;  %v6071_v25 = vrot.slane %v6070_v41, 4 }
0x1e50   : > { %v6057_v17 = vrot.slane %v6056_v12, 4  ;;  %v6054_v29 = vrot.slane %v6053_v2, 1 }
0x1e51   : > { %v6072_v33 = vadd.f32 %v6071_v25, %v6070_v41 }
0x1e52   : > { %v6058_v39 = vadd.f32 %v6057_v17, %v6056_v12  ;;  %v6055_v48 = vadd.f32 %v6054_v29, %v6053_v2 }
0x1e53   : > { %v6073_v0 = vrot.slane %v6072_v33, 2 }
0x1e54   : > { %16337 = vrcp.f32 %v6055_v48  ;;  %v6059_v40 = vrot.slane %v6058_v39, 2 }
0x1e55   : > { %v6074_v30 = vadd.f32 %v6073_v0, %v6072_v33 }
0x1e56   : > { %v16336_v36 = vpop.eup %16335  ;;  %v6060_v50 = vadd.f32 %v6059_v40, %v6058_v39 }
0x1e57   : > { %v6063_v60 = vsel %vm1462_vm2, %v16336_v36, 0.0  ;;  %v6075_v4 = vrot.slane %v6074_v30, 1 }
0x1e58   : > { %v6064_v55 = vrot.slane %v6063_v60, 4  ;;  %v6061_v16 = vrot.slane %v6060_v50, 1 }
0x1e59   : > { %v6076_v11 = vadd.f32 %v6075_v4, %v6074_v30 }
0x1e5a   : > { %v6065_v27 = vadd.f32 %v6064_v55, %v6063_v60  ;;  %v6062_v38 = vadd.f32 %v6061_v16, %v6060_v50 }
0x1e5b   : > { %16339 = vrcp.f32 %v6076_v11 }
0x1e5c   : > { %16341 = vrcp.f32 %v6062_v38  ;;  %v6066_v47 = vrot.slane %v6065_v27, 2 }
0x1e5e   : > { %v16338_v37 = vpop.eup %16337  ;;  %v6067_v41 = vadd.f32 %v6066_v47, %v6065_v27 }
0x1e5f   : > { %v6078_v2 = vmul.f32 %v16338_v37, %v16330_v5 }
0x1e60   : > { %v6068_v12 = vrot.slane %v6067_v41, 1 }
0x1e61   : > { %v6085_v25 = vadd.f32 1e-08, %v6078_v2 }
0x1e62   : > { %v6069_v17 = vadd.f32 %v6068_v12, %v6067_v41 }
0x1e63   : > { %v6089_v29 = vsel %vm1462_vm2, %v6085_v25, 0.0 }
0x1e64   : > { %6090 = vadd.xlane.f32.xlu0 %v6089_v29  ;;  %16343 = vrcp.f32 %v6069_v17  ;;  %v20554_v17 = vld [vmem:[#allocation52_spill] sm:$0xff] }
0x1e65   : > { %v16340_v33 = vpop.eup %16339  ;;  %v20555_v29 = vld [vmem:[#allocation44_spill] sm:$0xff] }
0x1e66   : > { %v16342_v39 = vpop.eup %16341  ;;  %v6084_v0 = vmul.f32 %v16340_v33, %v16332_v13  ;;  %v20556_v33 = vld [vmem:[#allocation45_spill] sm:$0xff] }
0x1e67   : > { %v6080_v48 = vmul.f32 %v16342_v39, %v16334_v6  ;;  %v20557_v39 = vld [vmem:[#allocation55_spill] sm:$0xff] }
0x1e68   : > { %v6088_v50 = vadd.f32 1e-08, %v6084_v0  ;;  %v20559_v0 = vld [vmem:[#allocation48_spill] sm:$0xff] }
0x1e69   : > { %v6086_v40 = vadd.f32 1e-08, %v6080_v48  ;;  %v20558_v48 = vld [vmem:[#allocation47_spill] sm:$0xff] }
0x1e6a   : > { %v6098_v4 = vsel %vm1462_vm2, %v6088_v50, 0.0 }
0x1e6b   : > { %v6092_v30 = vsel %vm1462_vm2, %v6086_v40, 0.0 }
0x1e6c   : > { %6093 = vadd.xlane.f32.xlu1 %v6092_v30  ;;  %v20561_v30 = vld [vmem:[#allocation50_spill] sm:$0xff] }
0x1e6e   : > { %v16344_v60 = vpop.eup %16343 }
0x1e6f   : > { %v6082_v5 = vmul.f32 %v16344_v60, %v16336_v36  ;;  %v20563_v60 = vld [vmem:[#allocation57_spill] sm:$0xff] }
0x1e70   : > { %6099 = vadd.xlane.f32.xlu1 %v6098_v4  ;;  %v20564_v4 = vld [vmem:[#allocation53_spill] sm:$0xff] }
0x1e71   : > { %v6087_v55 = vadd.f32 1e-08, %v6082_v5  ;;  %v20565_v5 = vld [vmem:[#allocation54_spill] sm:$0xff] }
0x1e73   : > { %v6095_v16 = vsel %vm1462_vm2, %v6087_v55, 0.0 }
0x1e74   : > { %6096 = vadd.xlane.f32.xlu0 %v6095_v16 }
0x1ef1   : > { %v6091_v11 = vpop.xlane.xlu0 %6090 }
0x1ef2   : > { %16345 = vrcp.f32 %v6091_v11  ;;  %v20566_v11 = vld [vmem:[#allocation58_spill] sm:$0xff] }
0x1ef9   : > { %v6094_v27 = vpop.xlane.xlu1 %6093 }
0x1efa   : > { %16347 = vrcp.f32 %v6094_v27  ;;  %v20567_v27 = vld [vmem:[#allocation59_spill] sm:$0xff] }
0x1efc   : > { %v16346_v6 = vpop.eup %16345 }
0x1efd   : > { %v6102_v13 = vmul.f32 %v16346_v6, %v6085_v25  ;;  %v6100_v38 = vpop.xlane.xlu1 %6099  ;;  %v20568_v6 = vld [vmem:[#allocation60_spill] sm:$0xff] }
0x1efe   : > { %16349 = vrcp.f32 %v6100_v38 }
0x1eff   : > { %13374 = vmatmul.mubr.msk.f32.vlgmr.msra.gmra.mrb[94].mxu1 %vm1462_vm2, %v6102_v13  ;;  %v20569_v13 = vld [vmem:[#allocation61_spill] sm:$0xff] }
0x1f00   : > { %14808 = vmatpush3.bf16.msra.mxu1 %v17766_v23  ;;  %13380 = vmatprep.mubr.msk.f32.mxu1 %vm17038_vm0, %v20339_v59 }
0x1f01   : > { %v6097_v36 = vpop.xlane.xlu0 %6096  ;;  %14812 = vmatprep.subr.bf16.mxu1 %v20397_v57 }
0x1f02   : > { %16351 = vrcp.f32 %v6097_v36 }
0x1f04   : > { %v16348_v47 = vpop.eup %16347 }
0x1f05   : > { %v6104_v37 = vmul.f32 %v16348_v47, %v6086_v40  ;;  %v20560_v40 = vld [vmem:[#allocation56_spill] sm:$0xff]  ;;  %v20570_v47 = vld [vmem:[#allocation62_spill] sm:$0xff] }
0x1f07   : > { %13381 = vmatmul.mubr.msk.f32.vlgmr.msra.gmra.mrb[96].mxu1 %vm1462_vm2, %v6104_v37  ;;  %v20571_v37 = vld [vmem:[#allocation63_spill] sm:$0xff] }
0x1f08   : > { %v16350_v41 = vpop.eup %16349  ;;  %14814 = vmatpush3.bf16.msra.mxu1 %v17784_v58  ;;  %13394 = vmatprep.mubr.msk.f32.mxu1 %vm17038_vm0, %v20339_v59 }
0x1f09   : > { %v6108_v2 = vmul.f32 %v16350_v41, %v6088_v50  ;;  %14848 = vmatprep.subr.bf16.mxu1 %v17823_v62  ;;  %v20562_v50 = vld [vmem:[#allocation51_spill] sm:$0xff]  ;;  %v20572_v41 = vld [vmem:[#allocation64_spill] sm:$0xff] }
0x1f0b   : > { %13395 = vmatmul.mubr.msk.f32.vlgmr.msra.gmra.mrb[98].mxu1 %vm1462_vm2, %v6108_v2 }
0x1f0c   : > { %v16352_v12 = vpop.eup %16351  ;;  %14850 = vmatpush3.bf16.msra.mxu1 %v17823_v62 }
0x1f0d   : > { %v6106_v25 = vmul.f32 %v16352_v12, %v6087_v55  ;;  %14852 = vmatprep.subr.bf16.mxu1 %v17848_v63 }
0x1f0f   : > { %13388 = vmatmul.mubr.msk.f32.vlgmr.msra.gmra.mrb[90].mxu0 %vm1462_vm2, %v6106_v25  ;;  %v20573_v25 = vld [vmem:[#allocation65_spill] sm:$0xff] }
0x1f10   : > { %14818 = vmatpush1.bf16.msra.mxu0 %v17830_v44  ;;  %14854 = vmatpush3.bf16.msra.mxu1 %v17848_v63 }
0x1f11   : > { %14820 = vmatprep.subr.bf16.mxu0 %v17832_v28  ;;  %14856 = vmatprep.subr.bf16.mxu1 %v17859_v31 }
0x1f12   : > { %6465 = vmatprep.mubr.f32.mxu0 %v20339_v59 }
0x1f14   : > { %14822 = vmatpush1.bf16.msra.mxu0 %v17836_v19  ;;  %14858 = vmatpush3.bf16.msra.mxu1 %v17859_v31 }
0x1f15   : > { %14824 = vmatprep.subr.bf16.mxu0 %v17840_v56  ;;  %14860 = vmatprep.subr.bf16.mxu1 %v20400_v9 }
0x1f18   : > { %14826 = vmatpush1.bf16.msra.mxu0 %v20401_v18  ;;  %14862 = vmatpush3.bf16.msra.mxu1 %v20400_v9 }
0x1f19   : > { %14828 = vmatprep.subr.bf16.mxu0 %v20402_v8  ;;  %14864 = vmatprep.subr.bf16.mxu1 %v20403_v3 }
0x1f1c   : > { %14830 = vmatpush1.bf16.msra.mxu0 %v20404_v14  ;;  %14866 = vmatpush3.bf16.msra.mxu1 %v20403_v3 }
0x1f1d   : > { %14832 = vmatprep.subr.bf16.mxu0 %v20405_v10  ;;  %14868 = vmatprep.subr.bf16.mxu1 %v20554_v17 }
0x1f20   : > { %14834 = vmatpush1.bf16.msra.mxu0 %v20555_v29  ;;  %14870 = vmatpush3.bf16.msra.mxu1 %v20554_v17 }
0x1f21   : > { %14836 = vmatprep.subr.bf16.mxu0 %v20556_v33  ;;  %14872 = vmatprep.subr.bf16.mxu1 %v20557_v39 }
0x1f24   : > { %14838 = vmatpush1.bf16.msra.mxu0 %v20558_v48  ;;  %14874 = vmatpush3.bf16.msra.mxu1 %v20557_v39 }
0x1f25   : > { %14840 = vmatprep.subr.bf16.mxu0 %v20559_v0  ;;  %14876 = vmatprep.subr.bf16.mxu1 %v20560_v40 }
0x1f28   : > { %14842 = vmatpush1.bf16.msra.mxu0 %v20561_v30  ;;  %14878 = vmatpush3.bf16.msra.mxu1 %v20560_v40 }
0x1f29   : > { %14844 = vmatprep.subr.bf16.mxu0 %v20562_v50  ;;  %14912 = vmatprep.subr.bf16.mxu1 %v20563_v60 }
0x1f2c   : > { %14846 = vmatpush1.bf16.msra.mxu0 %v20564_v4 }
0x1f2d   : > { %14880 = vmatprep.subr.bf16.mxu0 %v20565_v5 }
0x1fd2   : > { %v6178_v55 = vpop.f32.mrb[94].mxu1 }
0x1fd3   : > { %v13375_v16 = vpop.f32.mrb[95].mxu1  ;;  %6466 = vmatmul.mubr.f32.vlgmr.msra.gmra.mrb[92].mxu0 %v6178_v55  ;;  %13429 = vmatprep.mubr.f32.mxu1 %v6178_v55  ;;  %v20574_v55 = vld [vmem:[#allocation66_spill] sm:$0xff] }
0x1fd4   : > { %14882 = vmatpush1.bf16.msra.mxu0 %v20566_v11  ;;  %6471 = vmatprep.mubr.f32.mxu0 %v20339_v59  ;;  %v20575_v16 = vld [vmem:[#allocation67_spill] sm:$0xff] }
0x1fd5   : > { %14884 = vmatprep.subr.bf16.mxu0 %v20567_v27 }
0x1fd8   : > { %14886 = vmatpush1.bf16.msra.mxu0 %v20568_v6 }
0x1fd9   : > { %14888 = vmatprep.subr.bf16.mxu0 %v20569_v13  ;;  %v20608_v13 = vld [vmem:[#allocation96_spill] sm:$0xff] }
0x1fda   : > { %v6251_v38 = vpop.f32.mrb[96].mxu1 }
0x1fdb   : > { %v13382_v36 = vpop.f32.mrb[97].mxu1  ;;  %6472 = vmatmul.mubr.f32.gmra.mrb[94].mxu0 %v6251_v38  ;;  %13430 = vmatmul.mubr.f32.vlgmr.msra.gmra.mrb[100].mxu1 %v6251_v38 }
0x1fdc   : > { %14914 = vmatpush3.bf16.msra.mxu1 %v20563_v60  ;;  %14890 = vmatpush1.bf16.msra.mxu0 %v20570_v47  ;;  %v20576_v47 = vld [vmem:[#allocation68_spill] sm:$0xff] }
0x1fdd   : > { %14916 = vmatprep.subr.bf16.mxu1 %v20571_v37  ;;  %14892 = vmatprep.subr.bf16.mxu0 %v20572_v41  ;;  %v20584_v41 = vld [vmem:[#allocation76_spill] sm:$0xff] }
0x1fde   : > { %v6397_v2 = vpop.f32.mrb[98].mxu1  ;;  %6477 = vmatprep.mubr.f32.mxu0 %v20339_v59 }
0x1fdf   : > { %v13396_v12 = vpop.f32.mrb[99].mxu1 }
0x1fe0   : > { %14918 = vmatpush3.bf16.msra.mxu1 %v20571_v37  ;;  %14894 = vmatpush1.bf16.msra.mxu0 %v20573_v25  ;;  %v20577_v12 = vld [vmem:[#allocation69_spill] sm:$0xff]  ;;  %v20578_v25 = vld [vmem:[#allocation70_spill] sm:$0xff]  ;;  %v20607_v37 = vld [vmem:[#allocation107_spill] sm:$0xff] }
0x1fe1   : > { %14920 = vmatprep.subr.bf16.mxu1 %v20574_v55  ;;  %14896 = vmatprep.subr.bf16.mxu0 %v20575_v16  ;;  %v20579_v16 = vld [vmem:[#allocation71_spill] sm:$0xff] }
0x1fe2   : > { %v6324_v38 = vpop.f32.mrb[90].mxu0 }
0x1fe3   : > { %v13389_v36 = vpop.f32.mrb[91].mxu0  ;;  %6478 = vmatmul.mubr.f32.gmra.mrb[96].mxu0 %v6324_v38  ;;  %13432 = vmatprep.mubr.f32.mxu1 %v6324_v38  ;;  %v20581_v38 = vld [vmem:[#allocation73_spill] sm:$0xff] }
0x1fe4   : > { %14922 = vmatpush3.bf16.msra.mxu1 %v20574_v55  ;;  %14898 = vmatpush1.bf16.msra.mxu0 %v20576_v47  ;;  %v20580_v36 = vld [vmem:[#allocation72_spill] sm:$0xff]  ;;  %v20582_v47 = vld [vmem:[#allocation74_spill] sm:$0xff]  ;;  %v20583_v55 = vld [vmem:[#allocation75_spill] sm:$0xff] }
0x1fe5   : > { %13433 = vmatmul.mubr.f32.gmra.mrb[102].mxu1 %v6397_v2  ;;  %6483 = vmatprep.mubr.f32.mxu0 %v20339_v59 }
0x1fe6   : > { %13467 = vmatprep.mubr.f32.mxu1 %v18818_v7  ;;  %14924 = vmatprep.subr.bf16.mxu1 %v20577_v12 }
0x1fe7   : > { %6484 = vmatmul.mubr.f32.gmra.mrb[98].mxu0 %v6397_v2  ;;  %14900 = vmatprep.subr.bf16.mxu0 %v20578_v25  ;;  %v20585_v2 = vld [vmem:[#allocation77_spill] sm:$0xff]  ;;  %v20586_v25 = vld [vmem:[#allocation78_spill] sm:$0xff] }
0x1fe8   : > { %14926 = vmatpush3.bf16.msra.mxu1 %v20577_v12  ;;  %14902 = vmatpush1.bf16.msra.mxu0 %v20579_v16  ;;  %v20587_v16 = vld [vmem:[#allocation84_spill] sm:$0xff]  ;;  %v20606_v12 = vld [vmem:[#allocation95_spill] sm:$0xff] }
0x1fe9   : > { %14928 = vmatprep.subr.bf16.mxu1 %v20580_v36  ;;  %14904 = vmatprep.subr.bf16.mxu0 %v20581_v38  ;;  %v20588_v38 = vld [vmem:[#allocation79_spill] sm:$0xff] }
0x1fea   : > { %6639 = vmatprep.mubr.f32.mxu0 %v20339_v59 }
0x1fec   : > { %14930 = vmatpush3.bf16.msra.mxu1 %v20580_v36  ;;  %14906 = vmatpush1.bf16.msra.mxu0 %v20582_v47  ;;  %v20589_v47 = vld [vmem:[#allocation85_spill] sm:$0xff]  ;;  %v20590_v36 = vld [vmem:[#allocation86_spill] sm:$0xff] }
0x1fed   : > { %14932 = vmatprep.subr.bf16.mxu1 %v20583_v55  ;;  %14908 = vmatprep.subr.bf16.mxu0 %v20584_v41  ;;  %v20593_v41 = vld [vmem:[#allocation88_spill] sm:$0xff] }
0x1ff0   : > { %14934 = vmatpush3.bf16.msra.mxu1 %v20583_v55  ;;  %14910 = vmatpush1.bf16.msra.mxu0 %v20585_v2  ;;  %v20591_v2 = vld [vmem:[#allocation87_spill] sm:$0xff]  ;;  %v20601_v55 = vld [vmem:[#allocation104_spill] sm:$0xff] }
0x1ff1   : > { %14936 = vmatprep.subr.bf16.mxu1 %v20586_v25  ;;  %14944 = vmatprep.subr.bf16.mxu0 %v20587_v16  ;;  %v20592_v16 = vld [vmem:[#allocation100_spill] sm:$0xff] }
0x1ff3   : > { %6640 = vmatmul.mubr.f32.vlgmr.msra.gmra.mrb[92].mxu0 %v18818_v7 }
0x1ff4   : > { %14938 = vmatpush3.bf16.msra.mxu1 %v20586_v25  ;;  %6645 = vmatprep.mubr.f32.mxu0 %v20339_v59  ;;  %v20597_v25 = vld [vmem:[#allocation102_spill] sm:$0xff] }
0x1ff5   : > { %14940 = vmatprep.subr.bf16.mxu1 %v20588_v38  ;;  %14946 = vmatpush1.bf16.msra.mxu0 %v20589_v47  ;;  %v20595_v47 = vld [vmem:[#allocation101_spill] sm:$0xff] }
0x1ff6   : > { %14948 = vmatprep.subr.bf16.mxu0 %v20590_v36  ;;  %v20594_v36 = vld [vmem:[#allocation89_spill] sm:$0xff] }
0x1ff7   : > { %6646 = vmatmul.mubr.f32.gmra.mrb[94].mxu0 %v18823_v1 }
0x1ff8   : > { %14942 = vmatpush3.bf16.msra.mxu1 %v20588_v38  ;;  %6651 = vmatprep.mubr.f32.mxu0 %v20339_v59  ;;  %v20596_v38 = vld [vmem:[#allocation90_spill] sm:$0xff] }
0x1ff9   : > { %14950 = vmatpush1.bf16.msra.mxu0 %v20591_v2  ;;  %14976 = vmatprep.subr.bf16.mxu1 %v20592_v16  ;;  %v20599_v16 = vld [vmem:[#allocation103_spill] sm:$0xff]  ;;  %v20600_v2 = vld [vmem:[#allocation92_spill] sm:$0xff] }
0x1ffa   : > { %14952 = vmatprep.subr.bf16.mxu0 %v20593_v41  ;;  %v20598_v41 = vld [vmem:[#allocation91_spill] sm:$0xff] }
0x1ffb   : > { %13468 = vmatmul.mubr.f32.vlgmr.msra.gmra.mrb[104].mxu1 %v18823_v1  ;;  %6652 = vmatmul.mubr.f32.gmra.mrb[96].mxu0 %v18828_v45 }
0x1ffc   : > { %13470 = vmatprep.mubr.f32.mxu1 %v18828_v45  ;;  %6657 = vmatprep.mubr.f32.mxu0 %v20339_v59 }
0x1ffd   : > { %14954 = vmatpush1.bf16.msra.mxu0 %v20594_v36  ;;  %14978 = vmatpush3.bf16.msra.mxu1 %v20595_v47  ;;  %v20602_v36 = vld [vmem:[#allocation93_spill] sm:$0xff] }
0x1ffe   : > { %14956 = vmatprep.subr.bf16.mxu0 %v20596_v38  ;;  %14980 = vmatprep.subr.bf16.mxu1 %v20597_v25  ;;  %v20603_v47 = vld [vmem:[#allocation105_spill] sm:$0xff]  ;;  %v20604_v38 = vld [vmem:[#allocation94_spill] sm:$0xff] }
0x1fff   : > { %13471 = vmatmul.mubr.f32.gmra.mrb[106].mxu1 %v18833_v53  ;;  %6658 = vmatmul.mubr.f32.gmra.mrb[98].mxu0 %v18833_v53  ;;  %v20605_v25 = vld [vmem:[#allocation106_spill] sm:$0xff] }
0x2000   : > { %6949 = vmatprep.mubr.f32.mxu0 %v20339_v59 }
0x2001   : > { %14958 = vmatpush1.bf16.msra.mxu0 %v20598_v41  ;;  %14982 = vmatpush3.bf16.msra.mxu1 %v20599_v16  ;;  %v20609_v41 = vld [vmem:[#allocation108_spill] sm:$0xff]  ;;  %v20610_v16 = vld [vmem:[#allocation97_spill] sm:$0xff] }
0x2002   : > { %14960 = vmatprep.subr.bf16.mxu0 %v20600_v2  ;;  %14984 = vmatprep.subr.bf16.mxu1 %v20601_v55  ;;  %v20611_v2 = vld [vmem:[#allocation109_spill] sm:$0xff]  ;;  %v20612_v55 = vld [vmem:[#allocation98_spill] sm:$0xff] }
0x2005   : > { %14962 = vmatpush1.bf16.msra.mxu0 %v20602_v36  ;;  %14986 = vmatpush3.bf16.msra.mxu1 %v20603_v47  ;;  %v20613_v36 = vld [vmem:[#allocation110_spill] sm:$0xff]  ;;  %v20614_v47 = vld [vmem:[#allocation99_spill] sm:$0xff] }
0x2006   : > { %14964 = vmatprep.subr.bf16.mxu0 %v20604_v38  ;;  %14988 = vmatprep.subr.bf16.mxu1 %v20605_v25  ;;  %v20615_v38 = vld [vmem:[#allocation111_spill] sm:$0xff]  ;;  %v20616_v25 = vld [vmem:[#allocation112_spill] sm:$0xff] }
0x2009   : > { %14966 = vmatpush1.bf16.msra.mxu0 %v20606_v12  ;;  %14990 = vmatpush3.bf16.msra.mxu1 %v20607_v37  ;;  %v20617_v37 = vld [vmem:[#allocation113_spill] sm:$0xff] }
0x200a   : > { %14968 = vmatprep.subr.bf16.mxu0 %v20608_v13  ;;  %14992 = vmatprep.subr.bf16.mxu1 %v20609_v41  ;;  %v20618_v13 = vld [vmem:[#allocation114_spill] sm:$0xff]  ;;  %v20619_v41 = vld [vmem:[#allocation115_spill] sm:$0xff] }
0x200d   : > { %14970 = vmatpush1.bf16.msra.mxu0 %v20610_v16  ;;  %14994 = vmatpush3.bf16.msra.mxu1 %v20611_v2  ;;  %v20620_v16 = vld [vmem:[#allocation80_spill] sm:$0xff] }
0x200e   : > { %14972 = vmatprep.subr.bf16.mxu0 %v20612_v55  ;;  %14996 = vmatprep.subr.bf16.mxu1 %v20613_v36 }
0x2011   : > { %14974 = vmatpush1.bf16.msra.mxu0 %v20614_v47  ;;  %14998 = vmatpush3.bf16.msra.mxu1 %v20615_v38 }
0x2012   : > { %15000 = vmatprep.subr.bf16.mxu1 %v20616_v25  ;;  %15008 = vmatprep.subr.bf16.mxu0 %v17574_v46 }
0x2015   : > { %15002 = vmatpush3.bf16.msra.mxu1 %v20617_v37 }
0x2016   : > { %15004 = vmatprep.subr.bf16.mxu1 %v20618_v13 }
0x2019   : > { %15006 = vmatpush3.bf16.msra.mxu1 %v20619_v41 }
0x201a   : > { %15039 = vmatprep.subr.bf16.mxu1 %v20397_v57 }
0x20ae   : > { %v19013_v2 = vpop.f32.mrb[100].mxu1 }
0x20af   : > { %v6556_v55 = vpop.f32.mrb[101].mxu1 }
0x20b8   : > { %v19015_v36 = vpop.f32.mrb[102].mxu1 }
0x20b9   : > { %v19017_v47 = vpop.f32.mrb[103].mxu1 }
0x20c6   : > { %v6641_v38 = vpop.f32.mrb[92].mxu0 }
0x20c7   : > { %v15800_v25 = vadd.f32 %v20620_v16, %v6641_v38  ;;  %v6643_v12 = vpop.f32.mrb[93].mxu0 }
0x20c8   : > { %v15802_v37 = vadd.f32 %v20544_v26, %v6643_v12 }
0x20c9   : > { %v11844_v6 = vmul.f32 -1.442695, %v15800_v25 }
0x20ca   : > { %v6647_v27 = vpop.f32.mrb[94].mxu0  ;;  %v11848_v4 = vmul.f32 -1.442695, %v15802_v37 }
0x20cb   : > { %16353 = vpow2.f32 %v11844_v6  ;;  %v15804_v41 = vadd.f32 %v20620_v16, %v6647_v27  ;;  %v6649_v13 = vpop.f32.mrb[95].mxu0 }
0x20cc   : > { %v15806_v5 = vadd.f32 %v20544_v26, %v6649_v13 }
0x20cd   : > { %v11845_v11 = vmul.f32 -1.442695, %v15804_v41 }
0x20ce   : > { %v13469_v60 = vpop.f32.mrb[104].mxu1  ;;  %v6653_v50 = vpop.f32.mrb[96].mxu0  ;;  %v11849_v0 = vmul.f32 -1.442695, %v15806_v5 }
0x20cf   : > { %16355 = vpow2.f32 %v11845_v11  ;;  %v15808_v30 = vadd.f32 %v20620_v16, %v6653_v50  ;;  %v6730_v40 = vpop.f32.mrb[105].mxu1  ;;  %v6655_v38 = vpop.f32.mrb[97].mxu0 }
0x20d0   : > { %v15810_v12 = vadd.f32 %v20544_v26, %v6655_v38  ;;  %16357 = vpow2.f32 %v11848_v4 }
0x20d1   : > { %v11846_v25 = vmul.f32 -1.442695, %v15808_v30 }
0x20d2   : > { %v13472_v6 = vpop.f32.mrb[106].mxu1  ;;  %v6659_v48 = vpop.f32.mrb[98].mxu0  ;;  %v11850_v39 = vmul.f32 -1.442695, %v15810_v12  ;;  %v6731_v12 = vadd.f32 %v6730_v40, %v20467_v32 }
0x20d3   : > { %16359 = vpow2.f32 %v11846_v25  ;;  %v15812_v27 = vadd.f32 %v20620_v16, %v6659_v48  ;;  %v6740_v41 = vpop.f32.mrb[107].mxu1  ;;  %v6661_v13 = vpop.f32.mrb[99].mxu0 }
0x20d4   : > { %16361 = vpow2.f32 %v11849_v0  ;;  %v15814_v50 = vadd.f32 %v20544_v26, %v6661_v13 }
0x20d5   : > { %v16354_v37 = vpop.eup %16353  ;;  %v11847_v11 = vmul.f32 -1.442695, %v15812_v27 }
0x20d6   : > { %v6765_v33 = vadd.f32 1.0, %v16354_v37  ;;  %v11851_v5 = vmul.f32 -1.442695, %v15814_v50  ;;  %v6736_v50 = vadd.f32 %v13469_v60, %v20467_v32 }
0x20d7   : > { %16363 = vpow2.f32 %v11847_v11 }
0x20d8   : > { %16365 = vrcp.f32 %v6765_v33  ;;  %v6557_v33 = vadd.f32 %v6556_v55, %v20468_v20  ;;  %v6567_v55 = vadd.f32 %v19017_v47, %v20468_v20 }
0x20d9   : > { %v16356_v30 = vpop.eup %16355  ;;  %16367 = vpow2.f32 %v11850_v39 }
0x20da   : > { %v6766_v4 = vadd.f32 1.0, %v16356_v30  ;;  %v16358_v38 = vpop.eup %16357 }
0x20db   : > { %v6793_v29 = vadd.f32 1.0, %v16358_v38 }
0x20dc   : > { %16369 = vrcp.f32 %v6766_v4 }
0x20dd   : > { %v16360_v25 = vpop.eup %16359  ;;  %16371 = vpow2.f32 %v11851_v5 }
0x20de   : > { %v6767_v48 = vadd.f32 1.0, %v16360_v25  ;;  %v16362_v16 = vpop.eup %16361  ;;  %v6562_v25 = vadd.f32 %v19013_v2, %v20468_v20  ;;  %v6572_v2 = vadd.f32 %v19015_v36, %v20468_v20 }
0x20df   : > { %v6794_v13 = vadd.f32 1.0, %v16362_v16 }
0x20e0   : > { %16373 = vrcp.f32 %v6767_v48  ;;  %v6741_v48 = vadd.f32 %v6740_v41, %v20467_v32 }
0x20e1   : > { %v16364_v0 = vpop.eup %16363  ;;  %16375 = vrcp.f32 %v6793_v29 }
0x20e2   : > { %v16366_v27 = vpop.eup %16365  ;;  %v6768_v37 = vadd.f32 1.0, %v16364_v0 }
0x20e3   : > { %v16368_v11 = vpop.eup %16367  ;;  %v6805_v39 = vmul.f32 %v16366_v27, %v6731_v12  ;;  %v6746_v27 = vadd.f32 %v13472_v6, %v20467_v32 }
0x20e4   : > { %16377 = vrcp.f32 %v6768_v37  ;;  %v6795_v4 = vadd.f32 1.0, %v16368_v11 }
0x20e5   : > { %v6809_v30 = vadd.f32 %v6805_v39, %v6557_v33  ;;  %16379 = vrcp.f32 %v6794_v13 }
0x20e6   : > { %v16370_v5 = vpop.eup %16369 }
0x20e7   : > { %v16372_v38 = vpop.eup %16371  ;;  %v6806_v40 = vmul.f32 %v16370_v5, %v6736_v50  ;;  %16381 = vtanh.f32 %v6809_v30 }
0x20e8   : > { %16383 = vrcp.f32 %v6795_v4  ;;  %v6796_v29 = vadd.f32 1.0, %v16372_v38 }
0x20e9   : > { %v6810_v16 = vadd.f32 %v6806_v40, %v6562_v25 }
0x20ea   : > { %v16374_v0 = vpop.eup %16373 }
0x20eb   : > { %16385 = vtanh.f32 %v6810_v16  ;;  %v6807_v60 = vmul.f32 %v16374_v0, %v6741_v48  ;;  %v16376_v12 = vpop.eup %16375 }
0x20ec   : > { %16387 = vrcp.f32 %v6796_v29  ;;  %v6817_v33 = vsub.f32 1.0, %v16376_v12  ;;  %v6825_v47 = vmul.f32 %v16376_v12, %v18818_v7 }
0x20ed   : > { %v6811_v13 = vadd.f32 %v6807_v60, %v6567_v55 }
0x20ee   : > { %v16378_v37 = vpop.eup %16377 }
0x20ef   : > { %v6808_v11 = vmul.f32 %v16378_v37, %v6746_v27  ;;  %16389 = vtanh.f32 %v6811_v13  ;;  %v16380_v41 = vpop.eup %16379 }
0x20f0   : > { %v6818_v6 = vsub.f32 1.0, %v16380_v41  ;;  %v6826_v36 = vmul.f32 %v16380_v41, %v18823_v1 }
0x20f1   : > { %v16382_v39 = vpop.eup %16381  ;;  %v6812_v50 = vadd.f32 %v6808_v11, %v6572_v2 }
0x20f2   : > { %v6821_v30 = vmul.f32 %v16382_v39, %v6817_v33  ;;  %v16384_v5 = vpop.eup %16383 }
0x20f3   : > { %16391 = vtanh.f32 %v6812_v50  ;;  %v6819_v48 = vsub.f32 1.0, %v16384_v5  ;;  %v6827_v7 = vmul.f32 %v16384_v5, %v18828_v45 }
0x20f4   : > { %v19039_v4 = vadd.f32 %v6825_v47, %v6821_v30 }
0x20f5   : > { %v16386_v38 = vpop.eup %16385 }
0x20f6   : > { %6833 = vadd.xlane.f32.xlu0 %v19039_v4  ;;  %v6822_v25 = vmul.f32 %v16386_v38, %v6818_v6  ;;  %v16388_v40 = vpop.eup %16387 }
0x20f7   : > { %v6820_v60 = vsub.f32 1.0, %v16388_v40  ;;  %v6828_v13 = vmul.f32 %v16388_v40, %v18833_v53 }
0x20f8   : > { %v19043_v16 = vadd.f32 %v6826_v36, %v6822_v25 }
0x20f9   : > { %v16390_v0 = vpop.eup %16389 }
0x20fa   : > { %6835 = vadd.xlane.f32.xlu1 %v19043_v16  ;;  %v6823_v29 = vmul.f32 %v16390_v0, %v6819_v48 }
0x20fc   : > { %v19047_v55 = vadd.f32 %v6827_v7, %v6823_v29 }
0x20fd   : > { %v16392_v12 = vpop.eup %16391 }
0x20fe   : > { %6837 = vadd.xlane.f32.xlu0 %v19047_v55  ;;  %v6824_v27 = vmul.f32 %v16392_v12, %v6820_v60 }
0x2100   : > { %v19051_v1 = vadd.f32 %v6828_v13, %v6824_v27 }
0x2102   : > { %6839 = vadd.xlane.f32.xlu1 %v19051_v1 }
0x2183   : > { %v6834_v37 = vpop.xlane.xlu0 %6833 }
0x2184   : > { %v6841_v2 = vmul.f32 0.0078125, %v6834_v37 }
0x2186   : > { %v6845_v11 = vsub.f32 %v19039_v4, %v6841_v2 }
0x2187   : > { %v6836_v41 = vpop.xlane.xlu1 %6835 }
0x2188   : > { %v6842_v33 = vmul.f32 0.0078125, %v6836_v41  ;;  %v6849_v45 = vmul.f32 %v6845_v11, %v6845_v11 }
0x218a   : > { %v6846_v39 = vsub.f32 %v19043_v16, %v6842_v33  ;;  %6853 = vadd.xlane.f32.xlu0 %v6849_v45 }
0x218b   : > { %v6838_v50 = vpop.xlane.xlu0 %6837 }
0x218c   : > { %v6843_v30 = vmul.f32 0.0078125, %v6838_v50  ;;  %v6850_v47 = vmul.f32 %v6846_v39, %v6846_v39 }
0x218e   : > { %v6847_v5 = vsub.f32 %v19047_v55, %v6843_v30  ;;  %6855 = vadd.xlane.f32.xlu1 %v6850_v47 }
0x218f   : > { %v6840_v53 = vpop.xlane.xlu1 %6839 }
0x2190   : > { %v6844_v6 = vmul.f32 0.0078125, %v6840_v53  ;;  %v6851_v38 = vmul.f32 %v6847_v5, %v6847_v5 }
0x2192   : > { %v6848_v25 = vsub.f32 %v19051_v1, %v6844_v6  ;;  %6857 = vadd.xlane.f32.xlu0 %v6851_v38 }
0x2194   : > { %v6852_v36 = vmul.f32 %v6848_v25, %v6848_v25 }
0x2196   : > { %6859 = vadd.xlane.f32.xlu1 %v6852_v36 }
0x2217   : > { %v6854_v40 = vpop.xlane.xlu0 %6853 }
0x2218   : > { %v6861_v48 = vmul.f32 0.0078125, %v6854_v40 }
0x221a   : > { %v6865_v0 = vadd.f32 1e-05, %v6861_v48 }
0x221b   : > { %v6856_v29 = vpop.xlane.xlu1 %6855 }
0x221c   : > { %16393 = vrsqrt.f32 %v6865_v0  ;;  %v6862_v7 = vmul.f32 0.0078125, %v6856_v29 }
0x221e   : > { %v6866_v60 = vadd.f32 1e-05, %v6862_v7 }
0x221f   : > { %v6858_v12 = vpop.xlane.xlu0 %6857 }
0x2220   : > { %16395 = vrsqrt.f32 %v6866_v60  ;;  %v6863_v27 = vmul.f32 0.0078125, %v6858_v12 }
0x2222   : > { %v6867_v13 = vadd.f32 1e-05, %v6863_v27 }
0x2223   : > { %v6860_v37 = vpop.xlane.xlu1 %6859 }
0x2224   : > { %16397 = vrsqrt.f32 %v6867_v13  ;;  %v6864_v2 = vmul.f32 0.0078125, %v6860_v37 }
0x2226   : > { %v16394_v41 = vpop.eup %16393  ;;  %v6868_v33 = vadd.f32 1e-05, %v6864_v2 }
0x2227   : > { %v6873_v45 = vmul.f32 %v16394_v41, %v6845_v11 }
0x2228   : > { %16399 = vrsqrt.f32 %v6868_v33 }
0x2229   : > { %v6877_v50 = vmul.f32 %v6873_v45, %v18194_v24 }
0x222a   : > { %v16396_v30 = vpop.eup %16395 }
0x222b   : > { %v6881_v47 = vadd.f32 %v6877_v50, %v18198_v54  ;;  %v6874_v53 = vmul.f32 %v16396_v30, %v6846_v39 }
0x222d   : > { %6950 = vmatmul.mubr.f32.vlgmr.msra.gmra.mrb[100].mxu0 %v6881_v47  ;;  %v6878_v6 = vmul.f32 %v6874_v53, %v18194_v24 }
0x222e   : > { %v16398_v38 = vpop.eup %16397  ;;  %6955 = vmatprep.mubr.f32.mxu0 %v20339_v59  ;;  %15010 = vmatpush3.bf16.msra.mxu0 %v17574_v46 }
0x222f   : > { %v6882_v36 = vadd.f32 %v6878_v6, %v18198_v54  ;;  %v6875_v40 = vmul.f32 %v16398_v38, %v6847_v5  ;;  %15012 = vmatprep.subr.bf16.mxu0 %v17626_v43 }
0x2231   : > { %6956 = vmatmul.mubr.f32.gmra.mrb[102].mxu0 %v6882_v36  ;;  %v6879_v11 = vmul.f32 %v6875_v40, %v18194_v24 }
0x2232   : > { %v16400_v48 = vpop.eup %16399  ;;  %6961 = vmatprep.mubr.f32.mxu0 %v20339_v59  ;;  %15014 = vmatpush3.bf16.msra.mxu0 %v17626_v43 }
0x2233   : > { %v6883_v39 = vadd.f32 %v6879_v11, %v18198_v54  ;;  %v6876_v0 = vmul.f32 %v16400_v48, %v6848_v25  ;;  %15016 = vmatprep.subr.bf16.mxu0 %v17640_v61 }
0x2235   : > { %6962 = vmatmul.mubr.f32.gmra.mrb[104].mxu0 %v6883_v39  ;;  %v6880_v29 = vmul.f32 %v6876_v0, %v18194_v24 }
0x2236   : > { %6967 = vmatprep.mubr.f32.mxu0 %v20339_v59  ;;  %15018 = vmatpush3.bf16.msra.mxu0 %v17640_v61 }
0x2237   : > { %v6884_v5 = vadd.f32 %v6880_v29, %v18198_v54  ;;  %15020 = vmatprep.subr.bf16.mxu0 %v17646_v21 }
0x2239   : > { %6968 = vmatmul.mubr.f32.gmra.mrb[106].mxu0 %v6884_v5 }
0x223a   : > { %15022 = vmatpush3.bf16.msra.mxu0 %v17646_v21 }
0x223b   : > { %15024 = vmatprep.subr.bf16.mxu0 %v17650_v34 }
0x223e   : > { %15026 = vmatpush3.bf16.msra.mxu0 %v17650_v34 }
0x223f   : > { %15028 = vmatprep.subr.bf16.mxu0 %v17654_v42 }
0x2242   : > { %15030 = vmatpush3.bf16.msra.mxu0 %v17654_v42 }
0x2243   : > { %15032 = vmatprep.subr.bf16.mxu0 %v17659_v49 }
0x2246   : > { %15034 = vmatpush3.bf16.msra.mxu0 %v17659_v49 }
0x2247   : > { %15036 = vmatprep.subr.bf16.mxu0 %v17663_v51 }
0x224a   : > { %15038 = vmatpush3.bf16.msra.mxu0 %v17663_v51 }
0x224b   : > { %15048 = vmatprep.subr.bf16.mxu0 %v20397_v57 }
0x2300   : > { %v6951_v25 = vpop.f32.mrb[100].mxu0 }
0x2301   : > { %v6952_v7 = vadd.f32 %v6951_v25, %v18233_v35  ;;  %v6953_v60 = vpop.f32.mrb[101].mxu0 }
0x2302   : > { %v6954_v12 = vadd.f32 %v6953_v60, %v18236_v22  ;;  %v20621_v60 = vld [vmem:[#allocation117_spill] sm:$0xff] }
0x2303   : > { %v6974_v37 = vmax.f32 %v6952_v7, 0.0 }
0x2304   : > { %v6975_v27 = vmax.f32 %v6954_v12, 0.0  ;;  %v6957_v13 = vpop.f32.mrb[102].mxu0 }
0x2305   : > { %v6958_v2 = vadd.f32 %v6957_v13, %v18233_v35  ;;  %v6959_v41 = vpop.f32.mrb[103].mxu0 }
0x2306   : > { %v6960_v33 = vadd.f32 %v6959_v41, %v18236_v22  ;;  %7046 = vmatprep.mubr.f32.mxu1 %v6975_v27 }
0x2307   : > { %7047 = vmatmul.mubr.f32.vlgmr.msra.gmra.mrb[108].mxu1 %v6974_v37  ;;  %v6976_v30 = vmax.f32 %v6958_v2, 0.0 }
0x2308   : > { %v6977_v45 = vmax.f32 %v6960_v33, 0.0  ;;  %15041 = vmatpush3.bf16.xpose.msra.mxu1 %v20469_v15  ;;  %v6963_v50 = vpop.f32.mrb[104].mxu0 }
0x2309   : > { %v6964_v47 = vadd.f32 %v6963_v50, %v18233_v35  ;;  %v6965_v53 = vpop.f32.mrb[105].mxu0  ;;  %15042 = vmatprep.subr.bf16.mxu1 %v20397_v57 }
0x230a   : > { %v6966_v6 = vadd.f32 %v6965_v53, %v18236_v22  ;;  %7051 = vmatprep.mubr.f32.mxu1 %v6977_v45 }
0x230b   : > { %7052 = vmatmul.mubr.f32.gmra.mrb[110].mxu1 %v6976_v30  ;;  %v6978_v40 = vmax.f32 %v6964_v47, 0.0 }
0x230c   : > { %v6979_v38 = vmax.f32 %v6966_v6, 0.0  ;;  %v6969_v36 = vpop.f32.mrb[106].mxu0 }
0x230d   : > { %v6970_v11 = vadd.f32 %v6969_v36, %v18233_v35  ;;  %v6971_v48 = vpop.f32.mrb[107].mxu0 }
0x230e   : > { %v6972_v39 = vadd.f32 %v6971_v48, %v18236_v22  ;;  %7056 = vmatprep.mubr.f32.mxu1 %v6979_v38 }
0x230f   : > { %7057 = vmatmul.mubr.f32.gmra.mrb[112].mxu1 %v6978_v40  ;;  %v6980_v29 = vmax.f32 %v6970_v11, 0.0 }
0x2310   : > { %v6981_v0 = vmax.f32 %v6972_v39, 0.0 }
0x2312   : > { %7061 = vmatprep.mubr.f32.mxu1 %v6981_v0 }
0x2313   : > { %7062 = vmatmul.mubr.f32.gmra.mrb[114].mxu1 %v6980_v29 }
0x2314   : > { %13515 = vmatprep.mubr.msk.f32.mxu1 %vm17038_vm0, %v20339_v59 }
0x23da   : > { %v12397_v5 = vpop.f32.mrb[108].mxu1 }
0x23db   : > { %v12398_v25 = vpop.f32.mrb[109].mxu1 }
0x23dc   : > { %v12399_v7 = vadd.f32 %v12398_v25, %v12397_v5 }
0x23de   : > { %v7049_v12 = vadd.f32 %v12399_v7, %v20621_v60  ;;  %v12400_v27 = vpop.f32.mrb[110].mxu1 }
0x23df   : > { %v12401_v13 = vpop.f32.mrb[111].mxu1 }
0x23e0   : > { %v19099_v37 = vadd.f32 %v7049_v12, %v19039_v4  ;;  %v12402_v2 = vadd.f32 %v12401_v13, %v12400_v27 }
0x23e2   : > { %v7054_v41 = vadd.f32 %v12402_v2, %v20621_v60  ;;  %7071 = vadd.xlane.f32.xlu0 %v19099_v37  ;;  %v12403_v33 = vpop.f32.mrb[112].mxu1 }
0x23e3   : > { %v12404_v45 = vpop.f32.mrb[113].mxu1 }
0x23e4   : > { %v19104_v50 = vadd.f32 %v7054_v41, %v19043_v16  ;;  %v12405_v30 = vadd.f32 %v12404_v45, %v12403_v33 }
0x23e6   : > { %v7059_v47 = vadd.f32 %v12405_v30, %v20621_v60  ;;  %7073 = vadd.xlane.f32.xlu1 %v19104_v50  ;;  %v12406_v53 = vpop.f32.mrb[114].mxu1 }
0x23e7   : > { %v12407_v6 = vpop.f32.mrb[115].mxu1 }
0x23e8   : > { %v19109_v4 = vadd.f32 %v7059_v47, %v19047_v55  ;;  %v12408_v38 = vadd.f32 %v12407_v6, %v12406_v53 }
0x23ea   : > { %v7064_v36 = vadd.f32 %v12408_v38, %v20621_v60  ;;  %7075 = vadd.xlane.f32.xlu0 %v19109_v4 }
0x23ec   : > { %v19114_v40 = vadd.f32 %v7064_v36, %v19051_v1 }
0x23ee   : > { %7077 = vadd.xlane.f32.xlu1 %v19114_v40 }
0x246f   : > { %v7072_v16 = vpop.xlane.xlu0 %7071 }
0x2470   : > { %v7079_v11 = vmul.f32 0.0078125, %v7072_v16 }
0x2472   : > { %v7083_v48 = vsub.f32 %v19099_v37, %v7079_v11 }
0x2473   : > { %v7074_v39 = vpop.xlane.xlu1 %7073 }
0x2474   : > { %v7080_v0 = vmul.f32 0.0078125, %v7074_v39  ;;  %v7087_v29 = vmul.f32 %v7083_v48, %v7083_v48 }
0x2476   : > { %v7084_v55 = vsub.f32 %v19104_v50, %v7080_v0  ;;  %7091 = vadd.xlane.f32.xlu0 %v7087_v29 }
0x2477   : > { %v7076_v5 = vpop.xlane.xlu0 %7075 }
0x2478   : > { %v7081_v25 = vmul.f32 0.0078125, %v7076_v5  ;;  %v7088_v7 = vmul.f32 %v7084_v55, %v7084_v55 }
0x247a   : > { %v7085_v12 = vsub.f32 %v19109_v4, %v7081_v25  ;;  %7093 = vadd.xlane.f32.xlu1 %v7088_v7  ;;  %v20622_v25 = vld [vmem:[#allocation30_spill] sm:$0xff] }
0x247b   : > { %v7078_v1 = vpop.xlane.xlu1 %7077 }
0x247c   : > { %v7082_v27 = vmul.f32 0.0078125, %v7078_v1  ;;  %v7089_v13 = vmul.f32 %v7085_v12, %v7085_v12 }
0x247e   : > { %v7086_v2 = vsub.f32 %v19114_v40, %v7082_v27  ;;  %7095 = vadd.xlane.f32.xlu0 %v7089_v13  ;;  %v20623_v13 = vld [vmem:[#allocation31_spill] sm:$0xff] }
0x2480   : > { %v7090_v41 = vmul.f32 %v7086_v2, %v7086_v2 }
0x2482   : > { %7097 = vadd.xlane.f32.xlu1 %v7090_v41 }
0x2503   : > { %v7092_v33 = vpop.xlane.xlu0 %7091 }
0x2504   : > { %v7099_v45 = vmul.f32 0.0078125, %v7092_v33 }
0x2506   : > { %v7103_v30 = vadd.f32 1e-05, %v7099_v45 }
0x2507   : > { %v7094_v47 = vpop.xlane.xlu1 %7093 }
0x2508   : > { %16401 = vrsqrt.f32 %v7103_v30  ;;  %v7100_v53 = vmul.f32 0.0078125, %v7094_v47 }
0x250a   : > { %v7104_v6 = vadd.f32 1e-05, %v7100_v53 }
0x250b   : > { %v7096_v38 = vpop.xlane.xlu0 %7095 }
0x250c   : > { %16403 = vrsqrt.f32 %v7104_v6  ;;  %v7101_v36 = vmul.f32 0.0078125, %v7096_v38  ;;  %v20624_v38 = vld [vmem:[#allocation38_spill] sm:$0xff] }
0x250e   : > { %v7105_v16 = vadd.f32 1e-05, %v7101_v36 }
0x250f   : > { %v7098_v11 = vpop.xlane.xlu1 %7097 }
0x2510   : > { %16405 = vrsqrt.f32 %v7105_v16  ;;  %v7102_v39 = vmul.f32 0.0078125, %v7098_v11 }
0x2512   : > { %v16402_v0 = vpop.eup %16401  ;;  %v7106_v29 = vadd.f32 1e-05, %v7102_v39  ;;  %v20625_v39 = vld [vmem:[#allocation34_spill] sm:$0xff] }
0x2513   : > { %v7111_v5 = vmul.f32 %v16402_v0, %v7083_v48 }
0x2514   : > { %16407 = vrsqrt.f32 %v7106_v29  ;;  %v20626_v29 = vld [vmem:[#allocation35_spill] sm:$0xff] }
0x2515   : > { %v7115_v7 = vmul.f32 %v7111_v5, %v20622_v25 }
0x2516   : > { %v16404_v1 = vpop.eup %16403 }
0x2517   : > { %v7112_v27 = vmul.f32 %v16404_v1, %v7084_v55  ;;  %v7119_v41 = vadd.f32 %v7115_v7, %v20623_v13 }
0x2519   : > { %13505 = vmatprep.mubr.f32.mxu0 %v7119_v41  ;;  %v7116_v33 = vmul.f32 %v7112_v27, %v20622_v25  ;;  %v20627_v27 = vld [vmem:[#allocation37_spill] sm:$0xff]  ;;  %v20628_v41 = vld [vmem:[#allocation36_spill] sm:$0xff] }
0x251a   : > { %v16406_v45 = vpop.eup %16405 }
0x251b   : > { %v7120_v30 = vadd.f32 %v7116_v33, %v20623_v13  ;;  %v7113_v47 = vmul.f32 %v16406_v45, %v7085_v12  ;;  %v20629_v33 = vld [vmem:[#allocation39_spill] sm:$0xff] }
0x251d   : > { %13506 = vmatmul.mubr.f32.vlgmr.msra.gmra.mrb[108].mxu0 %v7120_v30  ;;  %v7117_v53 = vmul.f32 %v7113_v47, %v20622_v25  ;;  %v20630_v30 = vld [vmem:[#allocation33_spill] sm:$0xff] }
0x251e   : > { %v16408_v6 = vpop.eup %16407  ;;  %15050 = vmatpush3.bf16.xpose.msra.mxu0 %v20624_v38 }
0x251f   : > { %v7121_v48 = vadd.f32 %v7117_v53, %v20623_v13  ;;  %v7114_v36 = vmul.f32 %v16408_v6, %v7086_v2  ;;  %15057 = vmatprep.subr.bf16.mxu0 %v20397_v57 }
0x2521   : > { %13508 = vmatprep.mubr.f32.mxu0 %v7121_v48  ;;  %v7118_v55 = vmul.f32 %v7114_v36, %v20622_v25 }
0x2523   : > { %v7122_v16 = vadd.f32 %v7118_v55, %v20623_v13 }
0x2525   : > { %13509 = vmatmul.mubr.f32.gmra.mrb[110].mxu0 %v7122_v16 }
0x2526   : > { %13536 = vmatprep.mubr.msk.f32.mxu0 %vm17038_vm0, %v20339_v59 }
0x25f0   : > { %v13507_v12 = vpop.f32.mrb[108].mxu0 }
0x25f1   : > { %v7189_v11 = vpop.f32.mrb[109].mxu0  ;;  %v7195_v1 = vadd.f32 %v13507_v12, %v20625_v39 }
0x25f2   : > { %v7190_v0 = vadd.f32 %v7189_v11, %v20625_v39 }
0x25f4   : > { %13516 = vmatmul.mubr.f32.vlgmr.msra.gmra.mrb[116].mxu1 %v7190_v0 }
0x25f5   : > { %15044 = vmatpush3.bf16.xpose.msra.mxu1 %v20626_v29  ;;  %13522 = vmatprep.mubr.msk.f32.mxu1 %vm17038_vm0, %v20339_v59 }
0x25f6   : > { %15045 = vmatprep.subr.bf16.mxu1 %v20397_v57 }
0x25f8   : > { %v13510_v2 = vpop.f32.mrb[110].mxu0 }
0x25f9   : > { %v7205_v5 = vadd.f32 %v13510_v2, %v20625_v39  ;;  %v7199_v7 = vpop.f32.mrb[111].mxu0 }
0x25fa   : > { %v7200_v45 = vadd.f32 %v7199_v7, %v20625_v39 }
0x25fb   : > { %13537 = vmatmul.mubr.f32.vlgmr.msra.gmra.mrb[112].mxu0 %v7205_v5 }
0x25fc   : > { %13523 = vmatmul.mubr.f32.vlgmr.msra.gmra.mrb[118].mxu1 %v7195_v1  ;;  %15059 = vmatpush3.bf16.msra.mxu0 %v20627_v27 }
0x25fd   : > { %15047 = vmatpush3.bf16.xpose.msra.mxu1 %v20628_v41  ;;  %13529 = vmatprep.mubr.msk.f32.mxu1 %vm17038_vm0, %v20339_v59 }
0x25fe   : > { %15051 = vmatprep.subr.bf16.mxu1 %v20397_v57  ;;  %13557 = vmatprep.mubr.msk.f32.mxu0 %vm17038_vm0, %v20339_v59 }
0x25ff   : > { %15064 = vmatprep.subr.bf16.mxu0 %v20629_v33 }
0x2604   : > { %13530 = vmatmul.mubr.f32.vlgmr.msra.gmra.mrb[120].mxu1 %v7200_v45 }
0x2605   : > { %15053 = vmatpush3.bf16.msra.mxu1 %v20630_v30  ;;  %13543 = vmatprep.mubr.msk.f32.mxu1 %vm17038_vm0, %v20339_v59 }
0x2606   : > { %15054 = vmatprep.subr.bf16.mxu1 %v20397_v57 }
0x26c7   : > { %v7274_v47 = vpop.f32.mrb[116].mxu1 }
0x26c8   : > { %v7488_v53 = vmul.f32 0.088388346, %v7274_v47  ;;  %v13517_v6 = vpop.f32.mrb[117].mxu1 }
0x26ca   : > { %v7492_v48 = vadd.f32 %v7488_v53, %v17797_v52 }
0x26cc   : > { %v7496_v36 = vsel %vm1462_vm2, %v7492_v48, -inf }
0x26cd   : > { %v7497_v55 = vrot.slane %v7496_v36, 4 }
0x26ce   : > { %v7484_v16 = vpop.f32.mrb[112].mxu0 }
0x26cf   : > { %v7498_v12 = vmax.f32 %v7496_v36, %v7497_v55  ;;  %v7344_v11 = vpop.f32.mrb[118].mxu1  ;;  %v7491_v0 = vmul.f32 0.088388346, %v7484_v16  ;;  %v13538_v2 = vpop.f32.mrb[113].mxu0 }
0x26d0   : > { %v7489_v5 = vmul.f32 0.088388346, %v7344_v11  ;;  %v13524_v7 = vpop.f32.mrb[119].mxu1 }
0x26d1   : > { %v7499_v1 = vrot.slane %v7498_v12, 2  ;;  %v7495_v45 = vadd.f32 %v7491_v0, %v17797_v52 }
0x26d2   : > { %v7493_v30 = vadd.f32 %v7489_v5, %v17797_v52 }
0x26d3   : > { %v7500_v33 = vmax.f32 %v7498_v12, %v7499_v1  ;;  %v7517_v47 = vsel %vm1462_vm2, %v7495_v45, -inf }
0x26d4   : > { %v7503_v53 = vsel %vm1462_vm2, %v7493_v30, -inf  ;;  %v7518_v6 = vrot.slane %v7517_v47, 4 }
0x26d5   : > { %v7501_v41 = vrot.slane %v7500_v33, 1  ;;  %v7504_v27 = vrot.slane %v7503_v53, 4 }
0x26d6   : > { %v7519_v29 = vmax.f32 %v7517_v47, %v7518_v6 }
0x26d7   : > { %v7502_v36 = vmax.f32 %v7500_v33, %v7501_v41  ;;  %v7505_v55 = vmax.f32 %v7503_v53, %v7504_v27  ;;  %v7414_v16 = vpop.f32.mrb[120].mxu1 }
0x26d8   : > { %v7520_v2 = vrot.slane %v7519_v29, 2  ;;  %v7490_v11 = vmul.f32 0.088388346, %v7414_v16  ;;  %v13531_v7 = vpop.f32.mrb[121].mxu1 }
0x26d9   : > { %v7524_v39 = vsub.f32 %v7492_v48, %v7502_v36  ;;  %v7506_v38 = vrot.slane %v7505_v55, 2 }
0x26da   : > { %v7521_v0 = vmax.f32 %v7519_v29, %v7520_v2  ;;  %v7494_v5 = vadd.f32 %v7490_v11, %v17797_v52 }
0x26db   : > { %v7528_v12 = vmul.f32 1.442695, %v7524_v39  ;;  %v7507_v1 = vmax.f32 %v7505_v55, %v7506_v38 }
0x26dc   : > { %v7522_v13 = vrot.slane %v7521_v0, 1  ;;  %v7510_v25 = vsel %vm1462_vm2, %v7494_v5, -inf }
0x26dd   : > { %16409 = vpow2.f32 %v7528_v12  ;;  %v7508_v60 = vrot.slane %v7507_v1, 1  ;;  %v7511_v15 = vrot.slane %v7510_v25, 4 }
0x26de   : > { %v7523_v47 = vmax.f32 %v7521_v0, %v7522_v13 }
0x26df   : > { %v7509_v41 = vmax.f32 %v7507_v1, %v7508_v60  ;;  %v7512_v27 = vmax.f32 %v7510_v25, %v7511_v15 }
0x26e0   : > { %v7527_v33 = vsub.f32 %v7495_v45, %v7523_v47 }
0x26e1   : > { %v7525_v53 = vsub.f32 %v7493_v30, %v7509_v41  ;;  %v7513_v6 = vrot.slane %v7512_v27, 2 }
0x26e2   : > { %v7534_v16 = vmul.f32 1.442695, %v7527_v33 }
0x26e3   : > { %v7530_v48 = vmul.f32 1.442695, %v7525_v53  ;;  %v7514_v36 = vmax.f32 %v7512_v27, %v7513_v6 }
0x26e4   : > { %16411 = vpow2.f32 %v7534_v16 }
0x26e5   : > { %16413 = vpow2.f32 %v7530_v48  ;;  %v7515_v29 = vrot.slane %v7514_v36, 1 }
0x26e7   : > { %v16410_v39 = vpop.eup %16409  ;;  %v7516_v38 = vmax.f32 %v7514_v36, %v7515_v29 }
0x26e8   : > { %v7536_v55 = vsel %vm1462_vm2, %v16410_v39, 0.0 }
0x26e9   : > { %v7537_v2 = vrot.slane %v7536_v55, 4  ;;  %v7526_v11 = vsub.f32 %v7494_v5, %v7516_v38 }
0x26eb   : > { %v7538_v7 = vadd.f32 %v7537_v2, %v7536_v55  ;;  %v7532_v12 = vmul.f32 1.442695, %v7526_v11 }
0x26ed   : > { %v7539_v13 = vrot.slane %v7538_v7, 2  ;;  %16415 = vpow2.f32 %v7532_v12 }
0x26ee   : > { %v16412_v15 = vpop.eup %16411 }
0x26ef   : > { %v16414_v60 = vpop.eup %16413  ;;  %v7557_v25 = vsel %vm1462_vm2, %v16412_v15, 0.0  ;;  %v7540_v30 = vadd.f32 %v7539_v13, %v7538_v7 }
0x26f0   : > { %v7543_v45 = vsel %vm1462_vm2, %v16414_v60, 0.0  ;;  %v7558_v0 = vrot.slane %v7557_v25, 4 }
0x26f1   : > { %v7544_v1 = vrot.slane %v7543_v45, 4  ;;  %v7541_v47 = vrot.slane %v7540_v30, 1 }
0x26f2   : > { %v7559_v41 = vadd.f32 %v7558_v0, %v7557_v25 }
0x26f3   : > { %v7545_v27 = vadd.f32 %v7544_v1, %v7543_v45  ;;  %v7542_v33 = vadd.f32 %v7541_v47, %v7540_v30 }
0x26f4   : > { %v7560_v53 = vrot.slane %v7559_v41, 2 }
0x26f5   : > { %v7546_v6 = vrot.slane %v7545_v27, 2  ;;  %16417 = vrcp.f32 %v7542_v33 }
0x26f6   : > { %v7561_v5 = vadd.f32 %v7560_v53, %v7559_v41 }
0x26f7   : > { %v16416_v16 = vpop.eup %16415  ;;  %v7547_v48 = vadd.f32 %v7546_v6, %v7545_v27 }
0x26f8   : > { %v7550_v36 = vsel %vm1462_vm2, %v16416_v16, 0.0  ;;  %v7562_v29 = vrot.slane %v7561_v5, 1 }
0x26f9   : > { %v7551_v38 = vrot.slane %v7550_v36, 4  ;;  %v7548_v55 = vrot.slane %v7547_v48, 1 }
0x26fa   : > { %v7563_v2 = vadd.f32 %v7562_v29, %v7561_v5 }
0x26fb   : > { %v7552_v11 = vadd.f32 %v7551_v38, %v7550_v36  ;;  %v7549_v7 = vadd.f32 %v7548_v55, %v7547_v48 }
0x26fc   : > { %16419 = vrcp.f32 %v7563_v2 }
0x26fd   : > { %v7553_v12 = vrot.slane %v7552_v11, 2  ;;  %16421 = vrcp.f32 %v7549_v7 }
0x26ff   : > { %v16418_v13 = vpop.eup %16417  ;;  %v7554_v25 = vadd.f32 %v7553_v12, %v7552_v11 }
0x2700   : > { %v7565_v30 = vmul.f32 %v16418_v13, %v16410_v39 }
0x2701   : > { %v7555_v45 = vrot.slane %v7554_v25, 1 }
0x2702   : > { %v7572_v0 = vadd.f32 1e-08, %v7565_v30 }
0x2703   : > { %v7556_v1 = vadd.f32 %v7555_v45, %v7554_v25 }
0x2704   : > { %v7576_v47 = vsel %vm1462_vm2, %v7572_v0, 0.0 }
0x2705   : > { %7577 = vadd.xlane.f32.xlu0 %v7576_v47  ;;  %16423 = vrcp.f32 %v7556_v1  ;;  %v20631_v1 = vld [vmem:[#allocation44_spill] sm:$0xff]  ;;  %v20632_v47 = vld [vmem:[#allocation45_spill] sm:$0xff] }
0x2706   : > { %v16420_v41 = vpop.eup %16419 }
0x2707   : > { %v16422_v27 = vpop.eup %16421  ;;  %v7571_v53 = vmul.f32 %v16420_v41, %v16412_v15  ;;  %v20633_v41 = vld [vmem:[#allocation55_spill] sm:$0xff] }
0x2708   : > { %v7567_v33 = vmul.f32 %v16422_v27, %v16414_v60  ;;  %v20634_v27 = vld [vmem:[#allocation47_spill] sm:$0xff] }
0x2709   : > { %v7575_v48 = vadd.f32 1e-08, %v7571_v53  ;;  %v20636_v53 = vld [vmem:[#allocation56_spill] sm:$0xff] }
0x270a   : > { %v7573_v6 = vadd.f32 1e-08, %v7567_v33  ;;  %v20635_v33 = vld [vmem:[#allocation48_spill] sm:$0xff] }
0x270b   : > { %v7585_v29 = vsel %vm1462_vm2, %v7575_v48, 0.0 }
0x270c   : > { %v7579_v5 = vsel %vm1462_vm2, %v7573_v6, 0.0 }
0x270d   : > { %7580 = vadd.xlane.f32.xlu1 %v7579_v5  ;;  %v20638_v5 = vld [vmem:[#allocation51_spill] sm:$0xff] }
0x270f   : > { %v16424_v36 = vpop.eup %16423 }
0x2710   : > { %v7569_v39 = vmul.f32 %v16424_v36, %v16416_v16  ;;  %v20640_v36 = vld [vmem:[#allocation53_spill] sm:$0xff] }
0x2711   : > { %7586 = vadd.xlane.f32.xlu1 %v7585_v29  ;;  %v20641_v29 = vld [vmem:[#allocation54_spill] sm:$0xff] }
0x2712   : > { %v7574_v38 = vadd.f32 1e-08, %v7569_v39 }
0x2714   : > { %v7582_v55 = vsel %vm1462_vm2, %v7574_v38, 0.0 }
0x2715   : > { %7583 = vadd.xlane.f32.xlu0 %v7582_v55  ;;  %v20642_v55 = vld [vmem:[#allocation58_spill] sm:$0xff] }
0x2792   : > { %v7578_v2 = vpop.xlane.xlu0 %7577 }
0x2793   : > { %16425 = vrcp.f32 %v7578_v2  ;;  %v20643_v2 = vld [vmem:[#allocation59_spill] sm:$0xff] }
0x279a   : > { %v7581_v11 = vpop.xlane.xlu1 %7580 }
0x279b   : > { %16427 = vrcp.f32 %v7581_v11  ;;  %v20644_v11 = vld [vmem:[#allocation60_spill] sm:$0xff] }
0x279d   : > { %v16426_v60 = vpop.eup %16425 }
0x279e   : > { %v7589_v15 = vmul.f32 %v16426_v60, %v7572_v0  ;;  %v7587_v7 = vpop.xlane.xlu1 %7586  ;;  %v20645_v60 = vld [vmem:[#allocation61_spill] sm:$0xff] }
0x279f   : > { %16429 = vrcp.f32 %v7587_v7 }
0x27a0   : > { %13544 = vmatmul.mubr.msk.f32.vlgmr.msra.gmra.mrb[122].mxu1 %vm1462_vm2, %v7589_v15 }
0x27a1   : > { %15056 = vmatpush3.bf16.msra.mxu1 %v17766_v23  ;;  %13550 = vmatprep.mubr.msk.f32.mxu1 %vm17038_vm0, %v20339_v59 }
0x27a2   : > { %v7584_v16 = vpop.xlane.xlu0 %7583  ;;  %15060 = vmatprep.subr.bf16.mxu1 %v20397_v57 }
0x27a3   : > { %16431 = vrcp.f32 %v7584_v16  ;;  %v20646_v16 = vld [vmem:[#allocation62_spill] sm:$0xff] }
0x27a5   : > { %v16428_v12 = vpop.eup %16427 }
0x27a6   : > { %v7591_v13 = vmul.f32 %v16428_v12, %v7573_v6  ;;  %v20637_v6 = vld [vmem:[#allocation50_spill] sm:$0xff]  ;;  %v20647_v12 = vld [vmem:[#allocation63_spill] sm:$0xff] }
0x27a8   : > { %13551 = vmatmul.mubr.msk.f32.vlgmr.msra.gmra.mrb[124].mxu1 %vm1462_vm2, %v7591_v13  ;;  %v20648_v13 = vld [vmem:[#allocation64_spill] sm:$0xff] }
0x27a9   : > { %v16430_v25 = vpop.eup %16429  ;;  %15062 = vmatpush3.bf16.msra.mxu1 %v17784_v58  ;;  %13564 = vmatprep.mubr.msk.f32.mxu1 %vm17038_vm0, %v20339_v59 }
0x27aa   : > { %v7595_v30 = vmul.f32 %v16430_v25, %v7575_v48  ;;  %15096 = vmatprep.subr.bf16.mxu1 %v17823_v62  ;;  %v20639_v48 = vld [vmem:[#allocation57_spill] sm:$0xff] }
0x27ac   : > { %13565 = vmatmul.mubr.msk.f32.vlgmr.msra.gmra.mrb[126].mxu1 %vm1462_vm2, %v7595_v30 }
0x27ad   : > { %v16432_v45 = vpop.eup %16431  ;;  %15098 = vmatpush3.bf16.msra.mxu1 %v17823_v62 }
0x27ae   : > { %v7593_v0 = vmul.f32 %v16432_v45, %v7574_v38  ;;  %15100 = vmatprep.subr.bf16.mxu1 %v17848_v63  ;;  %v20649_v45 = vld [vmem:[#allocation65_spill] sm:$0xff] }
0x27b0   : > { %13558 = vmatmul.mubr.msk.f32.vlgmr.msra.gmra.mrb[114].mxu0 %vm1462_vm2, %v7593_v0  ;;  %v20650_v0 = vld [vmem:[#allocation66_spill] sm:$0xff] }
0x27b1   : > { %15066 = vmatpush1.bf16.msra.mxu0 %v17830_v44  ;;  %15102 = vmatpush3.bf16.msra.mxu1 %v17848_v63 }
0x27b2   : > { %15068 = vmatprep.subr.bf16.mxu0 %v17832_v28  ;;  %15104 = vmatprep.subr.bf16.mxu1 %v17859_v31 }
0x27b3   : > { %7952 = vmatprep.mubr.f32.mxu0 %v20339_v59 }
0x27b5   : > { %15070 = vmatpush1.bf16.msra.mxu0 %v17836_v19  ;;  %15106 = vmatpush3.bf16.msra.mxu1 %v17859_v31 }
0x27b6   : > { %15072 = vmatprep.subr.bf16.mxu0 %v17840_v56  ;;  %15108 = vmatprep.subr.bf16.mxu1 %v20400_v9 }
0x27b9   : > { %15074 = vmatpush1.bf16.msra.mxu0 %v20401_v18  ;;  %15110 = vmatpush3.bf16.msra.mxu1 %v20400_v9 }
0x27ba   : > { %15076 = vmatprep.subr.bf16.mxu0 %v20402_v8  ;;  %15112 = vmatprep.subr.bf16.mxu1 %v20403_v3 }
0x27bd   : > { %15078 = vmatpush1.bf16.msra.mxu0 %v20404_v14  ;;  %15114 = vmatpush3.bf16.msra.mxu1 %v20403_v3 }
0x27be   : > { %15080 = vmatprep.subr.bf16.mxu0 %v20405_v10  ;;  %15116 = vmatprep.subr.bf16.mxu1 %v20554_v17 }
0x27c1   : > { %15082 = vmatpush1.bf16.msra.mxu0 %v20631_v1  ;;  %15118 = vmatpush3.bf16.msra.mxu1 %v20554_v17 }
0x27c2   : > { %15084 = vmatprep.subr.bf16.mxu0 %v20632_v47  ;;  %15120 = vmatprep.subr.bf16.mxu1 %v20633_v41 }
0x27c5   : > { %15086 = vmatpush1.bf16.msra.mxu0 %v20634_v27  ;;  %15122 = vmatpush3.bf16.msra.mxu1 %v20633_v41 }
0x27c6   : > { %15088 = vmatprep.subr.bf16.mxu0 %v20635_v33  ;;  %15124 = vmatprep.subr.bf16.mxu1 %v20636_v53 }
0x27c9   : > { %15090 = vmatpush1.bf16.msra.mxu0 %v20637_v6  ;;  %15126 = vmatpush3.bf16.msra.mxu1 %v20636_v53 }
0x27ca   : > { %15092 = vmatprep.subr.bf16.mxu0 %v20638_v5  ;;  %15160 = vmatprep.subr.bf16.mxu1 %v20639_v48 }
0x27cd   : > { %15094 = vmatpush1.bf16.msra.mxu0 %v20640_v36 }
0x27ce   : > { %15128 = vmatprep.subr.bf16.mxu0 %v20641_v29 }
0x2873   : > { %v7665_v39 = vpop.f32.mrb[122].mxu1 }
0x2874   : > { %v13545_v38 = vpop.f32.mrb[123].mxu1  ;;  %7953 = vmatmul.mubr.f32.vlgmr.msra.gmra.mrb[116].mxu0 %v7665_v39  ;;  %13599 = vmatprep.mubr.f32.mxu1 %v7665_v39  ;;  %v20651_v39 = vld [vmem:[#allocation67_spill] sm:$0xff] }
0x2875   : > { %15130 = vmatpush1.bf16.msra.mxu0 %v20642_v55  ;;  %7958 = vmatprep.mubr.f32.mxu0 %v20339_v59 }
0x2876   : > { %15132 = vmatprep.subr.bf16.mxu0 %v20643_v2 }
0x2879   : > { %15134 = vmatpush1.bf16.msra.mxu0 %v20644_v11 }
0x287a   : > { %15136 = vmatprep.subr.bf16.mxu0 %v20645_v60 }
0x287b   : > { %v7738_v15 = vpop.f32.mrb[124].mxu1 }
0x287c   : > { %v13552_v7 = vpop.f32.mrb[125].mxu1  ;;  %7959 = vmatmul.mubr.f32.gmra.mrb[118].mxu0 %v7738_v15  ;;  %13600 = vmatmul.mubr.f32.vlgmr.msra.gmra.mrb[128].mxu1 %v7738_v15 }
0x287d   : > { %15162 = vmatpush3.bf16.msra.mxu1 %v20639_v48  ;;  %15138 = vmatpush1.bf16.msra.mxu0 %v20646_v16  ;;  %v20652_v7 = vld [vmem:[#allocation68_spill] sm:$0xff] }
0x287e   : > { %15164 = vmatprep.subr.bf16.mxu1 %v20647_v12  ;;  %15140 = vmatprep.subr.bf16.mxu0 %v20648_v13  ;;  %v20660_v13 = vld [vmem:[#allocation76_spill] sm:$0xff] }
0x287f   : > { %v7884_v25 = vpop.f32.mrb[126].mxu1  ;;  %7964 = vmatprep.mubr.f32.mxu0 %v20339_v59  ;;  %v20684_v16 = vld [vmem:[#allocation96_spill] sm:$0xff] }
0x2880   : > { %v13566_v30 = vpop.f32.mrb[127].mxu1 }
0x2881   : > { %15166 = vmatpush3.bf16.msra.mxu1 %v20647_v12  ;;  %15142 = vmatpush1.bf16.msra.mxu0 %v20649_v45  ;;  %v20653_v30 = vld [vmem:[#allocation69_spill] sm:$0xff]  ;;  %v20654_v45 = vld [vmem:[#allocation70_spill] sm:$0xff]  ;;  %v20683_v12 = vld [vmem:[#allocation107_spill] sm:$0xff] }
0x2882   : > { %15168 = vmatprep.subr.bf16.mxu1 %v20650_v0  ;;  %15144 = vmatprep.subr.bf16.mxu0 %v20651_v39  ;;  %v20655_v39 = vld [vmem:[#allocation71_spill] sm:$0xff] }
0x2883   : > { %v7811_v38 = vpop.f32.mrb[114].mxu0 }
0x2884   : > { %v13559_v15 = vpop.f32.mrb[115].mxu0  ;;  %7965 = vmatmul.mubr.f32.gmra.mrb[120].mxu0 %v7811_v38  ;;  %13602 = vmatprep.mubr.f32.mxu1 %v7811_v38  ;;  %v20657_v38 = vld [vmem:[#allocation73_spill] sm:$0xff] }
0x2885   : > { %15170 = vmatpush3.bf16.msra.mxu1 %v20650_v0  ;;  %15146 = vmatpush1.bf16.msra.mxu0 %v20652_v7  ;;  %v20656_v15 = vld [vmem:[#allocation72_spill] sm:$0xff]  ;;  %v20658_v7 = vld [vmem:[#allocation74_spill] sm:$0xff]  ;;  %v20659_v0 = vld [vmem:[#allocation75_spill] sm:$0xff] }
0x2886   : > { %13603 = vmatmul.mubr.f32.gmra.mrb[130].mxu1 %v7884_v25  ;;  %7970 = vmatprep.mubr.f32.mxu0 %v20339_v59 }
0x2887   : > { %13637 = vmatprep.mubr.f32.mxu1 %v19099_v37  ;;  %15172 = vmatprep.subr.bf16.mxu1 %v20653_v30 }
0x2888   : > { %7971 = vmatmul.mubr.f32.gmra.mrb[122].mxu0 %v7884_v25  ;;  %15148 = vmatprep.subr.bf16.mxu0 %v20654_v45  ;;  %v20661_v25 = vld [vmem:[#allocation77_spill] sm:$0xff]  ;;  %v20662_v45 = vld [vmem:[#allocation78_spill] sm:$0xff] }
0x2889   : > { %15174 = vmatpush3.bf16.msra.mxu1 %v20653_v30  ;;  %15150 = vmatpush1.bf16.msra.mxu0 %v20655_v39  ;;  %v20663_v39 = vld [vmem:[#allocation84_spill] sm:$0xff]  ;;  %v20682_v30 = vld [vmem:[#allocation95_spill] sm:$0xff] }
0x288a   : > { %15176 = vmatprep.subr.bf16.mxu1 %v20656_v15  ;;  %15152 = vmatprep.subr.bf16.mxu0 %v20657_v38  ;;  %v20664_v38 = vld [vmem:[#allocation79_spill] sm:$0xff] }
0x288b   : > { %8126 = vmatprep.mubr.f32.mxu0 %v20339_v59 }
0x288d   : > { %15178 = vmatpush3.bf16.msra.mxu1 %v20656_v15  ;;  %15154 = vmatpush1.bf16.msra.mxu0 %v20658_v7  ;;  %v20665_v7 = vld [vmem:[#allocation85_spill] sm:$0xff]  ;;  %v20666_v15 = vld [vmem:[#allocation86_spill] sm:$0xff] }
0x288e   : > { %15180 = vmatprep.subr.bf16.mxu1 %v20659_v0  ;;  %15156 = vmatprep.subr.bf16.mxu0 %v20660_v13  ;;  %v20669_v13 = vld [vmem:[#allocation88_spill] sm:$0xff] }
0x2891   : > { %15182 = vmatpush3.bf16.msra.mxu1 %v20659_v0  ;;  %15158 = vmatpush1.bf16.msra.mxu0 %v20661_v25  ;;  %v20667_v25 = vld [vmem:[#allocation87_spill] sm:$0xff]  ;;  %v20677_v0 = vld [vmem:[#allocation104_spill] sm:$0xff] }
0x2892   : > { %15184 = vmatprep.subr.bf16.mxu1 %v20662_v45  ;;  %15192 = vmatprep.subr.bf16.mxu0 %v20663_v39  ;;  %v20668_v39 = vld [vmem:[#allocation100_spill] sm:$0xff] }
0x2894   : > { %8127 = vmatmul.mubr.f32.vlgmr.msra.gmra.mrb[116].mxu0 %v19099_v37 }
0x2895   : > { %15186 = vmatpush3.bf16.msra.mxu1 %v20662_v45  ;;  %8132 = vmatprep.mubr.f32.mxu0 %v20339_v59  ;;  %v20673_v45 = vld [vmem:[#allocation102_spill] sm:$0xff] }
0x2896   : > { %15188 = vmatprep.subr.bf16.mxu1 %v20664_v38  ;;  %15194 = vmatpush1.bf16.msra.mxu0 %v20665_v7  ;;  %v20671_v7 = vld [vmem:[#allocation101_spill] sm:$0xff] }
0x2897   : > { %15196 = vmatprep.subr.bf16.mxu0 %v20666_v15  ;;  %v20670_v15 = vld [vmem:[#allocation89_spill] sm:$0xff] }
0x2898   : > { %8133 = vmatmul.mubr.f32.gmra.mrb[118].mxu0 %v19104_v50 }
0x2899   : > { %15190 = vmatpush3.bf16.msra.mxu1 %v20664_v38  ;;  %8138 = vmatprep.mubr.f32.mxu0 %v20339_v59  ;;  %v20672_v38 = vld [vmem:[#allocation90_spill] sm:$0xff] }
0x289a   : > { %15198 = vmatpush1.bf16.msra.mxu0 %v20667_v25  ;;  %15224 = vmatprep.subr.bf16.mxu1 %v20668_v39  ;;  %v20675_v39 = vld [vmem:[#allocation103_spill] sm:$0xff]  ;;  %v20676_v25 = vld [vmem:[#allocation92_spill] sm:$0xff] }
0x289b   : > { %15200 = vmatprep.subr.bf16.mxu0 %v20669_v13  ;;  %v20674_v13 = vld [vmem:[#allocation91_spill] sm:$0xff] }
0x289c   : > { %13638 = vmatmul.mubr.f32.vlgmr.msra.gmra.mrb[132].mxu1 %v19104_v50  ;;  %8139 = vmatmul.mubr.f32.gmra.mrb[120].mxu0 %v19109_v4 }
0x289d   : > { %13640 = vmatprep.mubr.f32.mxu1 %v19109_v4  ;;  %8144 = vmatprep.mubr.f32.mxu0 %v20339_v59 }
0x289e   : > { %15202 = vmatpush1.bf16.msra.mxu0 %v20670_v15  ;;  %15226 = vmatpush3.bf16.msra.mxu1 %v20671_v7  ;;  %v20678_v15 = vld [vmem:[#allocation93_spill] sm:$0xff] }
0x289f   : > { %15204 = vmatprep.subr.bf16.mxu0 %v20672_v38  ;;  %15228 = vmatprep.subr.bf16.mxu1 %v20673_v45  ;;  %v20679_v7 = vld [vmem:[#allocation105_spill] sm:$0xff]  ;;  %v20680_v38 = vld [vmem:[#allocation94_spill] sm:$0xff] }
0x28a0   : > { %13641 = vmatmul.mubr.f32.gmra.mrb[134].mxu1 %v19114_v40  ;;  %8145 = vmatmul.mubr.f32.gmra.mrb[122].mxu0 %v19114_v40  ;;  %v20681_v45 = vld [vmem:[#allocation106_spill] sm:$0xff] }
0x28a1   : > { %8436 = vmatprep.mubr.f32.mxu0 %v20339_v59 }
0x28a2   : > { %15206 = vmatpush1.bf16.msra.mxu0 %v20674_v13  ;;  %15230 = vmatpush3.bf16.msra.mxu1 %v20675_v39  ;;  %v20685_v13 = vld [vmem:[#allocation108_spill] sm:$0xff]  ;;  %v20686_v39 = vld [vmem:[#allocation97_spill] sm:$0xff] }
0x28a3   : > { %15208 = vmatprep.subr.bf16.mxu0 %v20676_v25  ;;  %15232 = vmatprep.subr.bf16.mxu1 %v20677_v0  ;;  %v20687_v25 = vld [vmem:[#allocation109_spill] sm:$0xff]  ;;  %v20688_v0 = vld [vmem:[#allocation98_spill] sm:$0xff] }
0x28a6   : > { %15210 = vmatpush1.bf16.msra.mxu0 %v20678_v15  ;;  %15234 = vmatpush3.bf16.msra.mxu1 %v20679_v7  ;;  %v20689_v15 = vld [vmem:[#allocation110_spill] sm:$0xff]  ;;  %v20690_v7 = vld [vmem:[#allocation99_spill] sm:$0xff] }
0x28a7   : > { %15212 = vmatprep.subr.bf16.mxu0 %v20680_v38  ;;  %15236 = vmatprep.subr.bf16.mxu1 %v20681_v45  ;;  %v20691_v38 = vld [vmem:[#allocation111_spill] sm:$0xff]  ;;  %v20692_v45 = vld [vmem:[#allocation112_spill] sm:$0xff] }
0x28aa   : > { %15214 = vmatpush1.bf16.msra.mxu0 %v20682_v30  ;;  %15238 = vmatpush3.bf16.msra.mxu1 %v20683_v12  ;;  %v20693_v12 = vld [vmem:[#allocation113_spill] sm:$0xff] }
0x28ab   : > { %15216 = vmatprep.subr.bf16.mxu0 %v20684_v16  ;;  %15240 = vmatprep.subr.bf16.mxu1 %v20685_v13  ;;  %v20694_v16 = vld [vmem:[#allocation114_spill] sm:$0xff]  ;;  %v20695_v13 = vld [vmem:[#allocation115_spill] sm:$0xff] }
0x28ae   : > { %15218 = vmatpush1.bf16.msra.mxu0 %v20686_v39  ;;  %15242 = vmatpush3.bf16.msra.mxu1 %v20687_v25  ;;  %v20696_v39 = vld [vmem:[#allocation80_spill] sm:$0xff] }
0x28af   : > { %15220 = vmatprep.subr.bf16.mxu0 %v20688_v0  ;;  %15244 = vmatprep.subr.bf16.mxu1 %v20689_v15 }
0x28b2   : > { %15222 = vmatpush1.bf16.msra.mxu0 %v20690_v7  ;;  %15246 = vmatpush3.bf16.msra.mxu1 %v20691_v38 }
0x28b3   : > { %15248 = vmatprep.subr.bf16.mxu1 %v20692_v45  ;;  %15256 = vmatprep.subr.bf16.mxu0 %v17574_v46 }
0x28b6   : > { %15250 = vmatpush3.bf16.msra.mxu1 %v20693_v12 }
0x28b7   : > { %15252 = vmatprep.subr.bf16.mxu1 %v20694_v16 }
0x28ba   : > { %15254 = vmatpush3.bf16.msra.mxu1 %v20695_v13 }
0x28bb   : > { %15287 = vmatprep.subr.bf16.mxu1 %v20397_v57 }
0x294f   : > { %v19294_v25 = vpop.f32.mrb[128].mxu1 }
0x2950   : > { %v8043_v0 = vpop.f32.mrb[129].mxu1 }
0x2959   : > { %v19296_v15 = vpop.f32.mrb[130].mxu1 }
0x295a   : > { %v19298_v7 = vpop.f32.mrb[131].mxu1 }
0x2967   : > { %v8128_v38 = vpop.f32.mrb[116].mxu0 }
0x2968   : > { %v15816_v45 = vadd.f32 %v20696_v39, %v8128_v38  ;;  %v8130_v30 = vpop.f32.mrb[117].mxu0 }
0x2969   : > { %v15818_v12 = vadd.f32 %v20544_v26, %v8130_v30 }
0x296a   : > { %v11856_v60 = vmul.f32 -1.442695, %v15816_v45 }
0x296b   : > { %v8134_v11 = vpop.f32.mrb[118].mxu0  ;;  %v11860_v29 = vmul.f32 -1.442695, %v15818_v12 }
0x296c   : > { %16433 = vpow2.f32 %v11856_v60  ;;  %v15820_v13 = vadd.f32 %v20696_v39, %v8134_v11  ;;  %v8136_v16 = vpop.f32.mrb[119].mxu0 }
0x296d   : > { %v15822_v55 = vadd.f32 %v20544_v26, %v8136_v16 }
0x296e   : > { %v11857_v2 = vmul.f32 -1.442695, %v15820_v13 }
0x296f   : > { %v13639_v36 = vpop.f32.mrb[132].mxu1  ;;  %v8140_v48 = vpop.f32.mrb[120].mxu0  ;;  %v11861_v53 = vmul.f32 -1.442695, %v15822_v55 }
0x2970   : > { %16435 = vpow2.f32 %v11857_v2  ;;  %v15824_v5 = vadd.f32 %v20696_v39, %v8140_v48  ;;  %v8217_v6 = vpop.f32.mrb[133].mxu1  ;;  %v8142_v38 = vpop.f32.mrb[121].mxu0 }
0x2971   : > { %v15826_v30 = vadd.f32 %v20544_v26, %v8142_v38  ;;  %16437 = vpow2.f32 %v11860_v29 }
0x2972   : > { %v11858_v45 = vmul.f32 -1.442695, %v15824_v5 }
0x2973   : > { %v13642_v60 = vpop.f32.mrb[134].mxu1  ;;  %v8146_v33 = vpop.f32.mrb[122].mxu0  ;;  %v11862_v27 = vmul.f32 -1.442695, %v15826_v30  ;;  %v8218_v30 = vadd.f32 %v8217_v6, %v20467_v32 }
0x2974   : > { %16439 = vpow2.f32 %v11858_v45  ;;  %v15828_v11 = vadd.f32 %v20696_v39, %v8146_v33  ;;  %v8227_v13 = vpop.f32.mrb[135].mxu1  ;;  %v8148_v16 = vpop.f32.mrb[123].mxu0 }
0x2975   : > { %16441 = vpow2.f32 %v11861_v53  ;;  %v15830_v48 = vadd.f32 %v20544_v26, %v8148_v16 }
0x2976   : > { %v16434_v12 = vpop.eup %16433  ;;  %v11859_v2 = vmul.f32 -1.442695, %v15828_v11 }
0x2977   : > { %v8252_v41 = vadd.f32 1.0, %v16434_v12  ;;  %v11863_v55 = vmul.f32 -1.442695, %v15830_v48  ;;  %v8223_v48 = vadd.f32 %v13639_v36, %v20467_v32 }
0x2978   : > { %16443 = vpow2.f32 %v11859_v2 }
0x2979   : > { %16445 = vrcp.f32 %v8252_v41  ;;  %v8044_v41 = vadd.f32 %v8043_v0, %v20468_v20  ;;  %v8054_v0 = vadd.f32 %v19298_v7, %v20468_v20 }
0x297a   : > { %v16436_v5 = vpop.eup %16435  ;;  %16447 = vpow2.f32 %v11862_v27 }
0x297b   : > { %v8253_v29 = vadd.f32 1.0, %v16436_v5  ;;  %v16438_v38 = vpop.eup %16437 }
0x297c   : > { %v8280_v47 = vadd.f32 1.0, %v16438_v38 }
0x297d   : > { %16449 = vrcp.f32 %v8253_v29 }
0x297e   : > { %v16440_v45 = vpop.eup %16439  ;;  %16451 = vpow2.f32 %v11863_v55 }
0x297f   : > { %v8254_v33 = vadd.f32 1.0, %v16440_v45  ;;  %v16442_v39 = vpop.eup %16441  ;;  %v8049_v45 = vadd.f32 %v19294_v25, %v20468_v20  ;;  %v8059_v25 = vadd.f32 %v19296_v15, %v20468_v20 }
0x2980   : > { %v8281_v16 = vadd.f32 1.0, %v16442_v39 }
0x2981   : > { %16453 = vrcp.f32 %v8254_v33  ;;  %v8228_v33 = vadd.f32 %v8227_v13, %v20467_v32 }
0x2982   : > { %v16444_v53 = vpop.eup %16443  ;;  %16455 = vrcp.f32 %v8280_v47 }
0x2983   : > { %v16446_v11 = vpop.eup %16445  ;;  %v8255_v12 = vadd.f32 1.0, %v16444_v53 }
0x2984   : > { %v16448_v2 = vpop.eup %16447  ;;  %v8292_v27 = vmul.f32 %v16446_v11, %v8218_v30  ;;  %v8233_v11 = vadd.f32 %v13642_v60, %v20467_v32 }
0x2985   : > { %16457 = vrcp.f32 %v8255_v12  ;;  %v8282_v29 = vadd.f32 1.0, %v16448_v2 }
0x2986   : > { %v8296_v5 = vadd.f32 %v8292_v27, %v8044_v41  ;;  %16459 = vrcp.f32 %v8281_v16 }
0x2987   : > { %v16450_v55 = vpop.eup %16449 }
0x2988   : > { %v16452_v38 = vpop.eup %16451  ;;  %v8293_v6 = vmul.f32 %v16450_v55, %v8223_v48  ;;  %16461 = vtanh.f32 %v8296_v5 }
0x2989   : > { %16463 = vrcp.f32 %v8282_v29  ;;  %v8283_v47 = vadd.f32 1.0, %v16452_v38 }
0x298a   : > { %v8297_v39 = vadd.f32 %v8293_v6, %v8049_v45 }
0x298b   : > { %v16454_v53 = vpop.eup %16453 }
0x298c   : > { %16465 = vtanh.f32 %v8297_v39  ;;  %v8294_v36 = vmul.f32 %v16454_v53, %v8228_v33  ;;  %v16456_v30 = vpop.eup %16455 }
0x298d   : > { %16467 = vrcp.f32 %v8283_v47  ;;  %v8304_v41 = vsub.f32 1.0, %v16456_v30  ;;  %v8312_v7 = vmul.f32 %v16456_v30, %v19099_v37 }
0x298e   : > { %v8298_v16 = vadd.f32 %v8294_v36, %v8054_v0 }
0x298f   : > { %v16458_v12 = vpop.eup %16457 }
0x2990   : > { %v8295_v2 = vmul.f32 %v16458_v12, %v8233_v11  ;;  %16469 = vtanh.f32 %v8298_v16  ;;  %v16460_v13 = vpop.eup %16459 }
0x2991   : > { %v8305_v60 = vsub.f32 1.0, %v16460_v13  ;;  %v8313_v15 = vmul.f32 %v16460_v13, %v19104_v50 }
0x2992   : > { %v16462_v27 = vpop.eup %16461  ;;  %v8299_v48 = vadd.f32 %v8295_v2, %v8059_v25 }
0x2993   : > { %v8308_v5 = vmul.f32 %v16462_v27, %v8304_v41  ;;  %v16464_v55 = vpop.eup %16463 }
0x2994   : > { %16471 = vtanh.f32 %v8299_v48  ;;  %v8306_v33 = vsub.f32 1.0, %v16464_v55  ;;  %v8314_v37 = vmul.f32 %v16464_v55, %v19109_v4 }
0x2995   : > { %v19320_v29 = vadd.f32 %v8312_v7, %v8308_v5 }
0x2996   : > { %v16466_v38 = vpop.eup %16465 }
0x2997   : > { %8320 = vadd.xlane.f32.xlu0 %v19320_v29  ;;  %v8309_v45 = vmul.f32 %v16466_v38, %v8305_v60  ;;  %v16468_v6 = vpop.eup %16467 }
0x2998   : > { %v8307_v36 = vsub.f32 1.0, %v16468_v6  ;;  %v8315_v16 = vmul.f32 %v16468_v6, %v19114_v40 }
0x2999   : > { %v19324_v39 = vadd.f32 %v8313_v15, %v8309_v45 }
0x299a   : > { %v16470_v53 = vpop.eup %16469 }
0x299b   : > { %8322 = vadd.xlane.f32.xlu1 %v19324_v39  ;;  %v8310_v47 = vmul.f32 %v16470_v53, %v8306_v33 }
0x299d   : > { %v19328_v0 = vadd.f32 %v8314_v37, %v8310_v47 }
0x299e   : > { %v16472_v30 = vpop.eup %16471 }
0x299f   : > { %8324 = vadd.xlane.f32.xlu0 %v19328_v0  ;;  %v8311_v11 = vmul.f32 %v16472_v30, %v8307_v36 }
0x29a1   : > { %v19332_v50 = vadd.f32 %v8315_v16, %v8311_v11 }
0x29a3   : > { %8326 = vadd.xlane.f32.xlu1 %v19332_v50 }
0x2a24   : > { %v8321_v12 = vpop.xlane.xlu0 %8320 }
0x2a25   : > { %v8328_v25 = vmul.f32 0.0078125, %v8321_v12 }
0x2a27   : > { %v8332_v2 = vsub.f32 %v19320_v29, %v8328_v25 }
0x2a28   : > { %v8323_v13 = vpop.xlane.xlu1 %8322 }
0x2a29   : > { %v8329_v41 = vmul.f32 0.0078125, %v8323_v13  ;;  %v8336_v4 = vmul.f32 %v8332_v2, %v8332_v2 }
0x2a2b   : > { %v8333_v27 = vsub.f32 %v19324_v39, %v8329_v41  ;;  %8340 = vadd.xlane.f32.xlu0 %v8336_v4 }
0x2a2c   : > { %v8325_v48 = vpop.xlane.xlu0 %8324 }
0x2a2d   : > { %v8330_v5 = vmul.f32 0.0078125, %v8325_v48  ;;  %v8337_v7 = vmul.f32 %v8333_v27, %v8333_v27 }
0x2a2f   : > { %v8334_v55 = vsub.f32 %v19328_v0, %v8330_v5  ;;  %8342 = vadd.xlane.f32.xlu1 %v8337_v7 }
0x2a30   : > { %v8327_v40 = vpop.xlane.xlu1 %8326 }
0x2a31   : > { %v8331_v60 = vmul.f32 0.0078125, %v8327_v40  ;;  %v8338_v38 = vmul.f32 %v8334_v55, %v8334_v55 }
0x2a33   : > { %v8335_v45 = vsub.f32 %v19332_v50, %v8331_v60  ;;  %8344 = vadd.xlane.f32.xlu0 %v8338_v38 }
0x2a35   : > { %v8339_v15 = vmul.f32 %v8335_v45, %v8335_v45 }
0x2a37   : > { %8346 = vadd.xlane.f32.xlu1 %v8339_v15 }
0x2ab8   : > { %v8341_v6 = vpop.xlane.xlu0 %8340 }
0x2ab9   : > { %v8348_v33 = vmul.f32 0.0078125, %v8341_v6 }
0x2abb   : > { %v8352_v53 = vadd.f32 1e-05, %v8348_v33 }
0x2abc   : > { %v8343_v47 = vpop.xlane.xlu1 %8342 }
0x2abd   : > { %16473 = vrsqrt.f32 %v8352_v53  ;;  %v8349_v37 = vmul.f32 0.0078125, %v8343_v47 }
0x2abf   : > { %v8353_v36 = vadd.f32 1e-05, %v8349_v37 }
0x2ac0   : > { %v8345_v30 = vpop.xlane.xlu0 %8344 }
0x2ac1   : > { %16475 = vrsqrt.f32 %v8353_v36  ;;  %v8350_v11 = vmul.f32 0.0078125, %v8345_v30 }
0x2ac3   : > { %v8354_v16 = vadd.f32 1e-05, %v8350_v11 }
0x2ac4   : > { %v8347_v12 = vpop.xlane.xlu1 %8346 }
0x2ac5   : > { %16477 = vrsqrt.f32 %v8354_v16  ;;  %v8351_v25 = vmul.f32 0.0078125, %v8347_v12 }
0x2ac7   : > { %v16474_v13 = vpop.eup %16473  ;;  %v8355_v41 = vadd.f32 1e-05, %v8351_v25 }
0x2ac8   : > { %v8360_v4 = vmul.f32 %v16474_v13, %v8332_v2 }
0x2ac9   : > { %16479 = vrsqrt.f32 %v8355_v41 }
0x2aca   : > { %v8364_v48 = vmul.f32 %v8360_v4, %v18194_v24 }
0x2acb   : > { %v16476_v5 = vpop.eup %16475 }
0x2acc   : > { %v8368_v7 = vadd.f32 %v8364_v48, %v18198_v54  ;;  %v8361_v40 = vmul.f32 %v16476_v5, %v8333_v27  ;;  %v20697_v48 = vld [vmem:[#allocation32_spill] sm:$0xff] }
0x2ace   : > { %8437 = vmatmul.mubr.f32.vlgmr.msra.gmra.mrb[124].mxu0 %v8368_v7  ;;  %v8365_v60 = vmul.f32 %v8361_v40, %v18194_v24 }
0x2acf   : > { %v16478_v38 = vpop.eup %16477  ;;  %8442 = vmatprep.mubr.f32.mxu0 %v20339_v59  ;;  %15258 = vmatpush3.bf16.msra.mxu0 %v17574_v46 }
0x2ad0   : > { %v8369_v15 = vadd.f32 %v8365_v60, %v18198_v54  ;;  %v8362_v6 = vmul.f32 %v16478_v38, %v8334_v55  ;;  %15260 = vmatprep.subr.bf16.mxu0 %v17626_v43 }
0x2ad2   : > { %8443 = vmatmul.mubr.f32.gmra.mrb[126].mxu0 %v8369_v15  ;;  %v8366_v2 = vmul.f32 %v8362_v6, %v18194_v24 }
0x2ad3   : > { %v16480_v33 = vpop.eup %16479  ;;  %8448 = vmatprep.mubr.f32.mxu0 %v20339_v59  ;;  %15262 = vmatpush3.bf16.msra.mxu0 %v17626_v43 }
0x2ad4   : > { %v8370_v27 = vadd.f32 %v8366_v2, %v18198_v54  ;;  %v8363_v53 = vmul.f32 %v16480_v33, %v8335_v45  ;;  %15264 = vmatprep.subr.bf16.mxu0 %v17640_v61 }
0x2ad6   : > { %8449 = vmatmul.mubr.f32.gmra.mrb[128].mxu0 %v8370_v27  ;;  %v8367_v47 = vmul.f32 %v8363_v53, %v18194_v24 }
0x2ad7   : > { %8454 = vmatprep.mubr.f32.mxu0 %v20339_v59  ;;  %15266 = vmatpush3.bf16.msra.mxu0 %v17640_v61 }
0x2ad8   : > { %v8371_v55 = vadd.f32 %v8367_v47, %v18198_v54  ;;  %15268 = vmatprep.subr.bf16.mxu0 %v17646_v21 }
0x2ada   : > { %8455 = vmatmul.mubr.f32.gmra.mrb[130].mxu0 %v8371_v55 }
0x2adb   : > { %15270 = vmatpush3.bf16.msra.mxu0 %v17646_v21 }
0x2adc   : > { %15272 = vmatprep.subr.bf16.mxu0 %v17650_v34 }
0x2adf   : > { %15274 = vmatpush3.bf16.msra.mxu0 %v17650_v34 }
0x2ae0   : > { %15276 = vmatprep.subr.bf16.mxu0 %v17654_v42 }
0x2ae3   : > { %15278 = vmatpush3.bf16.msra.mxu0 %v17654_v42 }
0x2ae4   : > { %15280 = vmatprep.subr.bf16.mxu0 %v17659_v49 }
0x2ae7   : > { %15282 = vmatpush3.bf16.msra.mxu0 %v17659_v49 }
0x2ae8   : > { %15284 = vmatprep.subr.bf16.mxu0 %v17663_v51 }
0x2aeb   : > { %15286 = vmatpush3.bf16.msra.mxu0 %v17663_v51 }
0x2aec   : > { %15296 = vmatprep.subr.bf16.mxu0 %v20397_v57 }
0x2ba1   : > { %v8438_v45 = vpop.f32.mrb[124].mxu0 }
0x2ba2   : > { %v8439_v37 = vadd.f32 %v8438_v45, %v18233_v35  ;;  %v8440_v36 = vpop.f32.mrb[125].mxu0 }
0x2ba3   : > { %v8441_v30 = vadd.f32 %v8440_v36, %v18236_v22 }
0x2ba4   : > { %v8461_v12 = vmax.f32 %v8439_v37, 0.0 }
0x2ba5   : > { %v8462_v11 = vmax.f32 %v8441_v30, 0.0  ;;  %v8444_v16 = vpop.f32.mrb[126].mxu0  ;;  %v20698_v30 = vld [vmem:[#allocation117_spill] sm:$0xff] }
0x2ba6   : > { %v8445_v25 = vadd.f32 %v8444_v16, %v18233_v35  ;;  %v8446_v13 = vpop.f32.mrb[127].mxu0 }
0x2ba7   : > { %v8447_v41 = vadd.f32 %v8446_v13, %v18236_v22  ;;  %8533 = vmatprep.mubr.f32.mxu1 %v8462_v11 }
0x2ba8   : > { %8534 = vmatmul.mubr.f32.vlgmr.msra.gmra.mrb[136].mxu1 %v8461_v12  ;;  %v8463_v7 = vmax.f32 %v8445_v25, 0.0 }
0x2ba9   : > { %v8464_v4 = vmax.f32 %v8447_v41, 0.0  ;;  %15289 = vmatpush3.bf16.xpose.msra.mxu1 %v20697_v48  ;;  %v8450_v5 = vpop.f32.mrb[128].mxu0 }
0x2baa   : > { %v8451_v40 = vadd.f32 %v8450_v5, %v18233_v35  ;;  %v8452_v60 = vpop.f32.mrb[129].mxu0  ;;  %15290 = vmatprep.subr.bf16.mxu1 %v20397_v57 }
0x2bab   : > { %v8453_v38 = vadd.f32 %v8452_v60, %v18236_v22  ;;  %8538 = vmatprep.mubr.f32.mxu1 %v8464_v4 }
0x2bac   : > { %8539 = vmatmul.mubr.f32.gmra.mrb[138].mxu1 %v8463_v7  ;;  %v8465_v2 = vmax.f32 %v8451_v40, 0.0 }
0x2bad   : > { %v8466_v15 = vmax.f32 %v8453_v38, 0.0  ;;  %v8456_v6 = vpop.f32.mrb[130].mxu0 }
0x2bae   : > { %v8457_v33 = vadd.f32 %v8456_v6, %v18233_v35  ;;  %v8458_v27 = vpop.f32.mrb[131].mxu0 }
0x2baf   : > { %v8459_v53 = vadd.f32 %v8458_v27, %v18236_v22  ;;  %8543 = vmatprep.mubr.f32.mxu1 %v8466_v15 }
0x2bb0   : > { %8544 = vmatmul.mubr.f32.gmra.mrb[140].mxu1 %v8465_v2  ;;  %v8467_v55 = vmax.f32 %v8457_v33, 0.0 }
0x2bb1   : > { %v8468_v47 = vmax.f32 %v8459_v53, 0.0 }
0x2bb3   : > { %8548 = vmatprep.mubr.f32.mxu1 %v8468_v47 }
0x2bb4   : > { %8549 = vmatmul.mubr.f32.gmra.mrb[142].mxu1 %v8467_v55 }
0x2bb5   : > { %13685 = vmatprep.mubr.msk.f32.mxu1 %vm17038_vm0, %v20339_v59 }
0x2c7b   : > { %v12525_v45 = vpop.f32.mrb[136].mxu1 }
0x2c7c   : > { %v12526_v37 = vpop.f32.mrb[137].mxu1 }
0x2c7d   : > { %v12527_v36 = vadd.f32 %v12526_v37, %v12525_v45 }
0x2c7f   : > { %v8536_v11 = vadd.f32 %v12527_v36, %v20698_v30  ;;  %v12528_v16 = vpop.f32.mrb[138].mxu1 }
0x2c80   : > { %v12529_v12 = vpop.f32.mrb[139].mxu1 }
0x2c81   : > { %v19380_v25 = vadd.f32 %v8536_v11, %v19320_v29  ;;  %v12530_v13 = vadd.f32 %v12529_v12, %v12528_v16 }
0x2c83   : > { %v8541_v41 = vadd.f32 %v12530_v13, %v20698_v30  ;;  %8558 = vadd.xlane.f32.xlu0 %v19380_v25  ;;  %v12531_v4 = vpop.f32.mrb[140].mxu1 }
0x2c84   : > { %v12532_v5 = vpop.f32.mrb[141].mxu1 }
0x2c85   : > { %v19385_v7 = vadd.f32 %v8541_v41, %v19324_v39  ;;  %v12533_v40 = vadd.f32 %v12532_v5, %v12531_v4 }
0x2c87   : > { %v8546_v60 = vadd.f32 %v12533_v40, %v20698_v30  ;;  %8560 = vadd.xlane.f32.xlu1 %v19385_v7  ;;  %v12534_v38 = vpop.f32.mrb[142].mxu1 }
0x2c88   : > { %v12535_v15 = vpop.f32.mrb[143].mxu1 }
0x2c89   : > { %v19390_v29 = vadd.f32 %v8546_v60, %v19328_v0  ;;  %v12536_v6 = vadd.f32 %v12535_v15, %v12534_v38 }
0x2c8b   : > { %v8551_v2 = vadd.f32 %v12536_v6, %v20698_v30  ;;  %8562 = vadd.xlane.f32.xlu0 %v19390_v29 }
0x2c8d   : > { %v19395_v33 = vadd.f32 %v8551_v2, %v19332_v50 }
0x2c8f   : > { %8564 = vadd.xlane.f32.xlu1 %v19395_v33 }
0x2d10   : > { %v8559_v39 = vpop.xlane.xlu0 %8558 }
0x2d11   : > { %v8566_v27 = vmul.f32 0.0078125, %v8559_v39 }
0x2d13   : > { %v8570_v53 = vsub.f32 %v19380_v25, %v8566_v27 }
0x2d14   : > { %v8561_v47 = vpop.xlane.xlu1 %8560 }
0x2d15   : > { %v8567_v55 = vmul.f32 0.0078125, %v8561_v47  ;;  %v8574_v45 = vmul.f32 %v8570_v53, %v8570_v53 }
0x2d17   : > { %v8571_v0 = vsub.f32 %v19385_v7, %v8567_v55  ;;  %8578 = vadd.xlane.f32.xlu0 %v8574_v45 }
0x2d18   : > { %v8563_v37 = vpop.xlane.xlu0 %8562 }
0x2d19   : > { %v8568_v36 = vmul.f32 0.0078125, %v8563_v37  ;;  %v8575_v11 = vmul.f32 %v8571_v0, %v8571_v0 }
0x2d1b   : > { %v8572_v16 = vsub.f32 %v19390_v29, %v8568_v36  ;;  %8580 = vadd.xlane.f32.xlu1 %v8575_v11  ;;  %v20699_v11 = vld [vmem:[#allocation30_spill] sm:$0xff] }
0x2d1c   : > { %v8565_v50 = vpop.xlane.xlu1 %8564 }
0x2d1d   : > { %v8569_v12 = vmul.f32 0.0078125, %v8565_v50  ;;  %v8576_v13 = vmul.f32 %v8572_v16, %v8572_v16 }
0x2d1f   : > { %v8573_v41 = vsub.f32 %v19395_v33, %v8569_v12  ;;  %8582 = vadd.xlane.f32.xlu0 %v8576_v13 }
0x2d21   : > { %v8577_v4 = vmul.f32 %v8573_v41, %v8573_v41 }
0x2d23   : > { %8584 = vadd.xlane.f32.xlu1 %v8577_v4  ;;  %v20700_v4 = vld [vmem:[#allocation31_spill] sm:$0xff] }
0x2da4   : > { %v8579_v5 = vpop.xlane.xlu0 %8578 }
0x2da5   : > { %v8586_v40 = vmul.f32 0.0078125, %v8579_v5 }
0x2da7   : > { %v8590_v60 = vadd.f32 1e-05, %v8586_v40 }
0x2da8   : > { %v8581_v38 = vpop.xlane.xlu1 %8580 }
0x2da9   : > { %16481 = vrsqrt.f32 %v8590_v60  ;;  %v8587_v15 = vmul.f32 0.0078125, %v8581_v38 }
0x2dab   : > { %v8591_v6 = vadd.f32 1e-05, %v8587_v15 }
0x2dac   : > { %v8583_v2 = vpop.xlane.xlu0 %8582 }
0x2dad   : > { %16483 = vrsqrt.f32 %v8591_v6  ;;  %v8588_v39 = vmul.f32 0.0078125, %v8583_v2 }
0x2daf   : > { %v8592_v27 = vadd.f32 1e-05, %v8588_v39  ;;  %v20701_v39 = vld [vmem:[#allocation38_spill] sm:$0xff] }
0x2db0   : > { %v8585_v47 = vpop.xlane.xlu1 %8584 }
0x2db1   : > { %16485 = vrsqrt.f32 %v8592_v27  ;;  %v8589_v55 = vmul.f32 0.0078125, %v8585_v47 }
0x2db3   : > { %v16482_v45 = vpop.eup %16481  ;;  %v8593_v37 = vadd.f32 1e-05, %v8589_v55 }
0x2db4   : > { %v8598_v36 = vmul.f32 %v16482_v45, %v8570_v53  ;;  %v20702_v45 = vld [vmem:[#allocation34_spill] sm:$0xff] }
0x2db5   : > { %16487 = vrsqrt.f32 %v8593_v37 }
0x2db6   : > { %v8602_v50 = vmul.f32 %v8598_v36, %v20699_v11  ;;  %v20703_v36 = vld [vmem:[#allocation35_spill] sm:$0xff] }
0x2db7   : > { %v16484_v12 = vpop.eup %16483 }
0x2db8   : > { %v8599_v13 = vmul.f32 %v16484_v12, %v8571_v0  ;;  %v8606_v5 = vadd.f32 %v8602_v50, %v20700_v4 }
0x2dba   : > { %13675 = vmatprep.mubr.f32.mxu0 %v8606_v5  ;;  %v8603_v40 = vmul.f32 %v8599_v13, %v20699_v11  ;;  %v20704_v5 = vld [vmem:[#allocation37_spill] sm:$0xff] }
0x2dbb   : > { %v16486_v60 = vpop.eup %16485 }
0x2dbc   : > { %v8607_v38 = vadd.f32 %v8603_v40, %v20700_v4  ;;  %v8600_v15 = vmul.f32 %v16486_v60, %v8572_v16  ;;  %v20705_v40 = vld [vmem:[#allocation36_spill] sm:$0xff]  ;;  %v20706_v60 = vld [vmem:[#allocation39_spill] sm:$0xff] }
0x2dbe   : > { %13676 = vmatmul.mubr.f32.vlgmr.msra.gmra.mrb[132].mxu0 %v8607_v38  ;;  %v8604_v6 = vmul.f32 %v8600_v15, %v20699_v11  ;;  %v20707_v15 = vld [vmem:[#allocation33_spill] sm:$0xff] }
0x2dbf   : > { %v16488_v2 = vpop.eup %16487  ;;  %15298 = vmatpush3.bf16.xpose.msra.mxu0 %v20701_v39 }
0x2dc0   : > { %v8608_v53 = vadd.f32 %v8604_v6, %v20700_v4  ;;  %v8601_v27 = vmul.f32 %v16488_v2, %v8573_v41  ;;  %15305 = vmatprep.subr.bf16.mxu0 %v20397_v57 }
0x2dc2   : > { %13678 = vmatprep.mubr.f32.mxu0 %v8608_v53  ;;  %v8605_v0 = vmul.f32 %v8601_v27, %v20699_v11 }
0x2dc4   : > { %v8609_v47 = vadd.f32 %v8605_v0, %v20700_v4 }
0x2dc6   : > { %13679 = vmatmul.mubr.f32.gmra.mrb[134].mxu0 %v8609_v47 }
0x2dc7   : > { %13706 = vmatprep.mubr.msk.f32.mxu0 %vm17038_vm0, %v20339_v59 }
0x2e91   : > { %v13677_v16 = vpop.f32.mrb[132].mxu0 }
0x2e92   : > { %v8676_v55 = vpop.f32.mrb[133].mxu0  ;;  %v8682_v13 = vadd.f32 %v13677_v16, %v20702_v45 }
0x2e93   : > { %v8677_v37 = vadd.f32 %v8676_v55, %v20702_v45 }
0x2e95   : > { %13686 = vmatmul.mubr.f32.vlgmr.msra.gmra.mrb[144].mxu1 %v8677_v37 }
0x2e96   : > { %15292 = vmatpush3.bf16.xpose.msra.mxu1 %v20703_v36  ;;  %13692 = vmatprep.mubr.msk.f32.mxu1 %vm17038_vm0, %v20339_v59 }
0x2e97   : > { %15293 = vmatprep.subr.bf16.mxu1 %v20397_v57 }
0x2e99   : > { %v13680_v41 = vpop.f32.mrb[134].mxu0 }
0x2e9a   : > { %v8692_v50 = vadd.f32 %v13680_v41, %v20702_v45  ;;  %v8686_v12 = vpop.f32.mrb[135].mxu0 }
0x2e9b   : > { %v8687_v38 = vadd.f32 %v8686_v12, %v20702_v45 }
0x2e9c   : > { %13707 = vmatmul.mubr.f32.vlgmr.msra.gmra.mrb[136].mxu0 %v8692_v50 }
0x2e9d   : > { %13693 = vmatmul.mubr.f32.vlgmr.msra.gmra.mrb[146].mxu1 %v8682_v13  ;;  %15307 = vmatpush3.bf16.msra.mxu0 %v20704_v5 }
0x2e9e   : > { %15295 = vmatpush3.bf16.xpose.msra.mxu1 %v20705_v40  ;;  %13699 = vmatprep.mubr.msk.f32.mxu1 %vm17038_vm0, %v20339_v59 }
0x2e9f   : > { %15299 = vmatprep.subr.bf16.mxu1 %v20397_v57  ;;  %13727 = vmatprep.mubr.msk.f32.mxu0 %vm17038_vm0, %v20339_v59 }
0x2ea0   : > { %15312 = vmatprep.subr.bf16.mxu0 %v20706_v60 }
0x2ea5   : > { %13700 = vmatmul.mubr.f32.vlgmr.msra.gmra.mrb[148].mxu1 %v8687_v38 }
0x2ea6   : > { %15301 = vmatpush3.bf16.msra.mxu1 %v20707_v15  ;;  %13713 = vmatprep.mubr.msk.f32.mxu1 %vm17038_vm0, %v20339_v59 }
0x2ea7   : > { %15302 = vmatprep.subr.bf16.mxu1 %v20397_v57 }
0x2f68   : > { %v8761_v6 = vpop.f32.mrb[144].mxu1 }
0x2f69   : > { %v8975_v2 = vmul.f32 0.088388346, %v8761_v6  ;;  %v13687_v53 = vpop.f32.mrb[145].mxu1 }
0x2f6b   : > { %v8979_v27 = vadd.f32 %v8975_v2, %v17797_v52 }
0x2f6d   : > { %v8983_v0 = vsel %vm1462_vm2, %v8979_v27, -inf }
0x2f6e   : > { %v8984_v47 = vrot.slane %v8983_v0, 4 }
0x2f6f   : > { %v8971_v16 = vpop.f32.mrb[136].mxu0 }
0x2f70   : > { %v8985_v55 = vmax.f32 %v8983_v0, %v8984_v47  ;;  %v8831_v37 = vpop.f32.mrb[146].mxu1  ;;  %v8978_v41 = vmul.f32 0.088388346, %v8971_v16  ;;  %v13708_v50 = vpop.f32.mrb[137].mxu0 }
0x2f71   : > { %v8976_v12 = vmul.f32 0.088388346, %v8831_v37  ;;  %v13694_v13 = vpop.f32.mrb[147].mxu1 }
0x2f72   : > { %v8986_v38 = vrot.slane %v8985_v55, 2  ;;  %v8982_v15 = vadd.f32 %v8978_v41, %v17797_v52 }
0x2f73   : > { %v8980_v60 = vadd.f32 %v8976_v12, %v17797_v52 }
0x2f74   : > { %v8987_v40 = vmax.f32 %v8985_v55, %v8986_v38  ;;  %v9004_v6 = vsel %vm1462_vm2, %v8982_v15, -inf }
0x2f75   : > { %v8990_v2 = vsel %vm1462_vm2, %v8980_v60, -inf  ;;  %v9005_v53 = vrot.slane %v9004_v6, 4 }
0x2f76   : > { %v8988_v5 = vrot.slane %v8987_v40, 1  ;;  %v8991_v36 = vrot.slane %v8990_v2, 4 }
0x2f77   : > { %v9006_v45 = vmax.f32 %v9004_v6, %v9005_v53 }
0x2f78   : > { %v8989_v0 = vmax.f32 %v8987_v40, %v8988_v5  ;;  %v8992_v47 = vmax.f32 %v8990_v2, %v8991_v36  ;;  %v8901_v16 = vpop.f32.mrb[148].mxu1 }
0x2f79   : > { %v9007_v50 = vrot.slane %v9006_v45, 2  ;;  %v8977_v37 = vmul.f32 0.088388346, %v8901_v16  ;;  %v13701_v13 = vpop.f32.mrb[149].mxu1 }
0x2f7a   : > { %v9011_v39 = vsub.f32 %v8979_v27, %v8989_v0  ;;  %v8993_v4 = vrot.slane %v8992_v47, 2 }
0x2f7b   : > { %v9008_v41 = vmax.f32 %v9006_v45, %v9007_v50  ;;  %v8981_v12 = vadd.f32 %v8977_v37, %v17797_v52 }
0x2f7c   : > { %v9015_v55 = vmul.f32 1.442695, %v9011_v39  ;;  %v8994_v38 = vmax.f32 %v8992_v47, %v8993_v4 }
0x2f7d   : > { %v9009_v11 = vrot.slane %v9008_v41, 1  ;;  %v8997_v30 = vsel %vm1462_vm2, %v8981_v12, -inf }
0x2f7e   : > { %16489 = vpow2.f32 %v9015_v55  ;;  %v8995_v48 = vrot.slane %v8994_v38, 1  ;;  %v8998_v22 = vrot.slane %v8997_v30, 4 }
0x2f7f   : > { %v9010_v6 = vmax.f32 %v9008_v41, %v9009_v11 }
0x2f80   : > { %v8996_v5 = vmax.f32 %v8994_v38, %v8995_v48  ;;  %v8999_v36 = vmax.f32 %v8997_v30, %v8998_v22 }
0x2f81   : > { %v9014_v40 = vsub.f32 %v8982_v15, %v9010_v6 }
0x2f82   : > { %v9012_v2 = vsub.f32 %v8980_v60, %v8996_v5  ;;  %v9000_v53 = vrot.slane %v8999_v36, 2 }
0x2f83   : > { %v9021_v16 = vmul.f32 1.442695, %v9014_v40 }
0x2f84   : > { %v9017_v27 = vmul.f32 1.442695, %v9012_v2  ;;  %v9001_v0 = vmax.f32 %v8999_v36, %v9000_v53 }
0x2f85   : > { %16491 = vpow2.f32 %v9021_v16 }
0x2f86   : > { %16493 = vpow2.f32 %v9017_v27  ;;  %v9002_v45 = vrot.slane %v9001_v0, 1 }
0x2f88   : > { %v16490_v39 = vpop.eup %16489  ;;  %v9003_v4 = vmax.f32 %v9001_v0, %v9002_v45 }
0x2f89   : > { %v9023_v47 = vsel %vm1462_vm2, %v16490_v39, 0.0 }
0x2f8a   : > { %v9024_v50 = vrot.slane %v9023_v47, 4  ;;  %v9013_v37 = vsub.f32 %v8981_v12, %v9003_v4 }
0x2f8c   : > { %v9025_v13 = vadd.f32 %v9024_v50, %v9023_v47  ;;  %v9019_v55 = vmul.f32 1.442695, %v9013_v37 }
0x2f8e   : > { %v9026_v11 = vrot.slane %v9025_v13, 2  ;;  %16495 = vpow2.f32 %v9019_v55 }
0x2f8f   : > { %v16492_v22 = vpop.eup %16491 }
0x2f90   : > { %v16494_v48 = vpop.eup %16493  ;;  %v9044_v30 = vsel %vm1462_vm2, %v16492_v22, 0.0  ;;  %v9027_v60 = vadd.f32 %v9026_v11, %v9025_v13 }
0x2f91   : > { %v9030_v15 = vsel %vm1462_vm2, %v16494_v48, 0.0  ;;  %v9045_v41 = vrot.slane %v9044_v30, 4 }
0x2f92   : > { %v9031_v38 = vrot.slane %v9030_v15, 4  ;;  %v9028_v6 = vrot.slane %v9027_v60, 1 }
0x2f93   : > { %v9046_v5 = vadd.f32 %v9045_v41, %v9044_v30 }
0x2f94   : > { %v9032_v36 = vadd.f32 %v9031_v38, %v9030_v15  ;;  %v9029_v40 = vadd.f32 %v9028_v6, %v9027_v60 }
0x2f95   : > { %v9047_v2 = vrot.slane %v9046_v5, 2 }
0x2f96   : > { %v9033_v53 = vrot.slane %v9032_v36, 2  ;;  %16497 = vrcp.f32 %v9029_v40 }
0x2f97   : > { %v9048_v12 = vadd.f32 %v9047_v2, %v9046_v5 }
0x2f98   : > { %v16496_v16 = vpop.eup %16495  ;;  %v9034_v27 = vadd.f32 %v9033_v53, %v9032_v36 }
0x2f99   : > { %v9037_v0 = vsel %vm1462_vm2, %v16496_v16, 0.0  ;;  %v9049_v45 = vrot.slane %v9048_v12, 1 }
0x2f9a   : > { %v9038_v4 = vrot.slane %v9037_v0, 4  ;;  %v9035_v47 = vrot.slane %v9034_v27, 1 }
0x2f9b   : > { %v9050_v50 = vadd.f32 %v9049_v45, %v9048_v12 }
0x2f9c   : > { %v9039_v37 = vadd.f32 %v9038_v4, %v9037_v0  ;;  %v9036_v13 = vadd.f32 %v9035_v47, %v9034_v27 }
0x2f9d   : > { %16499 = vrcp.f32 %v9050_v50 }
0x2f9e   : > { %v9040_v55 = vrot.slane %v9039_v37, 2  ;;  %16501 = vrcp.f32 %v9036_v13 }
0x2fa0   : > { %v16498_v11 = vpop.eup %16497  ;;  %v9041_v30 = vadd.f32 %v9040_v55, %v9039_v37 }
0x2fa1   : > { %v9052_v60 = vmul.f32 %v16498_v11, %v16490_v39 }
0x2fa2   : > { %v9042_v15 = vrot.slane %v9041_v30, 1 }
0x2fa3   : > { %v9059_v41 = vadd.f32 1e-08, %v9052_v60 }
0x2fa4   : > { %v9043_v38 = vadd.f32 %v9042_v15, %v9041_v30 }
0x2fa5   : > { %v9063_v6 = vsel %vm1462_vm2, %v9059_v41, 0.0 }
0x2fa6   : > { %9064 = vadd.xlane.f32.xlu0 %v9063_v6  ;;  %16503 = vrcp.f32 %v9043_v38  ;;  %v20708_v38 = vld [vmem:[#allocation45_spill] sm:$0xff]  ;;  %v20709_v6 = vld [vmem:[#allocation55_spill] sm:$0xff] }
0x2fa7   : > { %v16500_v5 = vpop.eup %16499 }
0x2fa8   : > { %v16502_v36 = vpop.eup %16501  ;;  %v9058_v2 = vmul.f32 %v16500_v5, %v16492_v22  ;;  %v20710_v5 = vld [vmem:[#allocation47_spill] sm:$0xff] }
0x2fa9   : > { %v9054_v40 = vmul.f32 %v16502_v36, %v16494_v48  ;;  %v20711_v36 = vld [vmem:[#allocation48_spill] sm:$0xff] }
0x2faa   : > { %v9062_v27 = vadd.f32 1e-08, %v9058_v2  ;;  %v20713_v2 = vld [vmem:[#allocation50_spill] sm:$0xff] }
0x2fab   : > { %v9060_v53 = vadd.f32 1e-08, %v9054_v40  ;;  %v20712_v40 = vld [vmem:[#allocation56_spill] sm:$0xff] }
0x2fac   : > { %v9072_v45 = vsel %vm1462_vm2, %v9062_v27, 0.0 }
0x2fad   : > { %v9066_v12 = vsel %vm1462_vm2, %v9060_v53, 0.0 }
0x2fae   : > { %9067 = vadd.xlane.f32.xlu1 %v9066_v12  ;;  %v20715_v12 = vld [vmem:[#allocation57_spill] sm:$0xff] }
0x2fb0   : > { %v16504_v0 = vpop.eup %16503 }
0x2fb1   : > { %v9056_v39 = vmul.f32 %v16504_v0, %v16496_v16  ;;  %v20717_v0 = vld [vmem:[#allocation54_spill] sm:$0xff] }
0x2fb2   : > { %9073 = vadd.xlane.f32.xlu1 %v9072_v45 }
0x2fb3   : > { %v9061_v4 = vadd.f32 1e-08, %v9056_v39 }
0x2fb5   : > { %v9069_v47 = vsel %vm1462_vm2, %v9061_v4, 0.0 }
0x2fb6   : > { %9070 = vadd.xlane.f32.xlu0 %v9069_v47  ;;  %v20719_v47 = vld [vmem:[#allocation59_spill] sm:$0xff] }
0x3033   : > { %v9065_v50 = vpop.xlane.xlu0 %9064 }
0x3034   : > { %16505 = vrcp.f32 %v9065_v50  ;;  %v20720_v50 = vld [vmem:[#allocation60_spill] sm:$0xff] }
0x303b   : > { %v9068_v37 = vpop.xlane.xlu1 %9067 }
0x303c   : > { %16507 = vrcp.f32 %v9068_v37  ;;  %v20721_v37 = vld [vmem:[#allocation61_spill] sm:$0xff] }
0x303e   : > { %v16506_v48 = vpop.eup %16505 }
0x303f   : > { %v9076_v22 = vmul.f32 %v16506_v48, %v9059_v41  ;;  %v9074_v13 = vpop.xlane.xlu1 %9073 }
0x3040   : > { %16509 = vrcp.f32 %v9074_v13  ;;  %v20722_v13 = vld [vmem:[#allocation62_spill] sm:$0xff] }
0x3041   : > { %13714 = vmatmul.mubr.msk.f32.vlgmr.msra.gmra.mrb[150].mxu1 %vm1462_vm2, %v9076_v22 }
0x3042   : > { %15304 = vmatpush3.bf16.msra.mxu1 %v17766_v23  ;;  %13720 = vmatprep.mubr.msk.f32.mxu1 %vm17038_vm0, %v20339_v59 }
0x3043   : > { %v9071_v16 = vpop.xlane.xlu0 %9070  ;;  %15308 = vmatprep.subr.bf16.mxu1 %v20397_v57 }
0x3044   : > { %16511 = vrcp.f32 %v9071_v16  ;;  %v20723_v16 = vld [vmem:[#allocation63_spill] sm:$0xff] }
0x3046   : > { %v16508_v55 = vpop.eup %16507 }
0x3047   : > { %v9078_v11 = vmul.f32 %v16508_v55, %v9060_v53  ;;  %v20714_v53 = vld [vmem:[#allocation51_spill] sm:$0xff]  ;;  %v20724_v55 = vld [vmem:[#allocation64_spill] sm:$0xff] }
0x3049   : > { %13721 = vmatmul.mubr.msk.f32.vlgmr.msra.gmra.mrb[152].mxu1 %vm1462_vm2, %v9078_v11 }
0x304a   : > { %v16510_v30 = vpop.eup %16509  ;;  %15310 = vmatpush3.bf16.msra.mxu1 %v17784_v58  ;;  %13734 = vmatprep.mubr.msk.f32.mxu1 %vm17038_vm0, %v20339_v59 }
0x304b   : > { %v9082_v60 = vmul.f32 %v16510_v30, %v9062_v27  ;;  %15344 = vmatprep.subr.bf16.mxu1 %v17823_v62  ;;  %v20716_v27 = vld [vmem:[#allocation53_spill] sm:$0xff] }
0x304d   : > { %13735 = vmatmul.mubr.msk.f32.vlgmr.msra.gmra.mrb[154].mxu1 %vm1462_vm2, %v9082_v60  ;;  %v20725_v60 = vld [vmem:[#allocation65_spill] sm:$0xff] }
0x304e   : > { %v16512_v15 = vpop.eup %16511  ;;  %15346 = vmatpush3.bf16.msra.mxu1 %v17823_v62 }
0x304f   : > { %v9080_v41 = vmul.f32 %v16512_v15, %v9061_v4  ;;  %15348 = vmatprep.subr.bf16.mxu1 %v17848_v63  ;;  %v20718_v4 = vld [vmem:[#allocation58_spill] sm:$0xff] }
0x3050   : > { %v20726_v15 = vld [vmem:[#allocation66_spill] sm:$0xff] }
0x3051   : > { %13728 = vmatmul.mubr.msk.f32.vlgmr.msra.gmra.mrb[138].mxu0 %vm1462_vm2, %v9080_v41  ;;  %v20727_v41 = vld [vmem:[#allocation67_spill] sm:$0xff] }
0x3052   : > { %15314 = vmatpush1.bf16.msra.mxu0 %v17830_v44  ;;  %15350 = vmatpush3.bf16.msra.mxu1 %v17848_v63 }
0x3053   : > { %15316 = vmatprep.subr.bf16.mxu0 %v17832_v28  ;;  %15352 = vmatprep.subr.bf16.mxu1 %v17859_v31 }
0x3054   : > { %9439 = vmatprep.mubr.f32.mxu0 %v20339_v59 }
0x3056   : > { %15318 = vmatpush1.bf16.msra.mxu0 %v17836_v19  ;;  %15354 = vmatpush3.bf16.msra.mxu1 %v17859_v31 }
0x3057   : > { %15320 = vmatprep.subr.bf16.mxu0 %v17840_v56  ;;  %15356 = vmatprep.subr.bf16.mxu1 %v20400_v9 }
0x305a   : > { %15322 = vmatpush1.bf16.msra.mxu0 %v20401_v18  ;;  %15358 = vmatpush3.bf16.msra.mxu1 %v20400_v9 }
0x305b   : > { %15324 = vmatprep.subr.bf16.mxu0 %v20402_v8  ;;  %15360 = vmatprep.subr.bf16.mxu1 %v20403_v3 }
0x305e   : > { %15326 = vmatpush1.bf16.msra.mxu0 %v20404_v14  ;;  %15362 = vmatpush3.bf16.msra.mxu1 %v20403_v3 }
0x305f   : > { %15328 = vmatprep.subr.bf16.mxu0 %v20405_v10  ;;  %15364 = vmatprep.subr.bf16.mxu1 %v20554_v17 }
0x3062   : > { %15330 = vmatpush1.bf16.msra.mxu0 %v20631_v1  ;;  %15366 = vmatpush3.bf16.msra.mxu1 %v20554_v17 }
0x3063   : > { %15332 = vmatprep.subr.bf16.mxu0 %v20708_v38  ;;  %15368 = vmatprep.subr.bf16.mxu1 %v20709_v6 }
0x3066   : > { %15334 = vmatpush1.bf16.msra.mxu0 %v20710_v5  ;;  %15370 = vmatpush3.bf16.msra.mxu1 %v20709_v6 }
0x3067   : > { %15336 = vmatprep.subr.bf16.mxu0 %v20711_v36  ;;  %15372 = vmatprep.subr.bf16.mxu1 %v20712_v40 }
0x306a   : > { %15338 = vmatpush1.bf16.msra.mxu0 %v20713_v2  ;;  %15374 = vmatpush3.bf16.msra.mxu1 %v20712_v40 }
0x306b   : > { %15340 = vmatprep.subr.bf16.mxu0 %v20714_v53  ;;  %15408 = vmatprep.subr.bf16.mxu1 %v20715_v12 }
0x306e   : > { %15342 = vmatpush1.bf16.msra.mxu0 %v20716_v27 }
0x306f   : > { %15376 = vmatprep.subr.bf16.mxu0 %v20717_v0 }
0x3114   : > { %v9152_v45 = vpop.f32.mrb[150].mxu1 }
0x3115   : > { %v13715_v39 = vpop.f32.mrb[151].mxu1  ;;  %9440 = vmatmul.mubr.f32.vlgmr.msra.gmra.mrb[140].mxu0 %v9152_v45  ;;  %13769 = vmatprep.mubr.f32.mxu1 %v9152_v45 }
0x3116   : > { %15378 = vmatpush1.bf16.msra.mxu0 %v20718_v4  ;;  %9445 = vmatprep.mubr.f32.mxu0 %v20339_v59 }
0x3117   : > { %15380 = vmatprep.subr.bf16.mxu0 %v20719_v47 }
0x311a   : > { %15382 = vmatpush1.bf16.msra.mxu0 %v20720_v50 }
0x311b   : > { %15384 = vmatprep.subr.bf16.mxu0 %v20721_v37 }
0x311c   : > { %v9225_v48 = vpop.f32.mrb[152].mxu1 }
0x311d   : > { %v13722_v22 = vpop.f32.mrb[153].mxu1  ;;  %9446 = vmatmul.mubr.f32.gmra.mrb[142].mxu0 %v9225_v48  ;;  %13770 = vmatmul.mubr.f32.vlgmr.msra.gmra.mrb[156].mxu1 %v9225_v48  ;;  %v20728_v48 = vld [vmem:[#allocation68_spill] sm:$0xff] }
0x311e   : > { %15410 = vmatpush3.bf16.msra.mxu1 %v20715_v12  ;;  %15386 = vmatpush1.bf16.msra.mxu0 %v20722_v13  ;;  %v20729_v22 = vld [vmem:[#allocation69_spill] sm:$0xff] }
0x311f   : > { %15412 = vmatprep.subr.bf16.mxu1 %v20723_v16  ;;  %15388 = vmatprep.subr.bf16.mxu0 %v20724_v55  ;;  %v20759_v55 = vld [vmem:[#allocation107_spill] sm:$0xff] }
0x3120   : > { %v9371_v11 = vpop.f32.mrb[154].mxu1  ;;  %9451 = vmatprep.mubr.f32.mxu0 %v20339_v59 }
0x3121   : > { %v13736_v30 = vpop.f32.mrb[155].mxu1 }
0x3122   : > { %15414 = vmatpush3.bf16.msra.mxu1 %v20723_v16  ;;  %15390 = vmatpush1.bf16.msra.mxu0 %v20725_v60  ;;  %v20730_v30 = vld [vmem:[#allocation70_spill] sm:$0xff]  ;;  %v20736_v60 = vld [vmem:[#allocation76_spill] sm:$0xff] }
0x3123   : > { %15416 = vmatprep.subr.bf16.mxu1 %v20726_v15  ;;  %15392 = vmatprep.subr.bf16.mxu0 %v20727_v41  ;;  %v20731_v41 = vld [vmem:[#allocation71_spill] sm:$0xff]  ;;  %v20760_v16 = vld [vmem:[#allocation96_spill] sm:$0xff] }
0x3124   : > { %v9298_v45 = vpop.f32.mrb[138].mxu0 }
0x3125   : > { %v13729_v39 = vpop.f32.mrb[139].mxu0  ;;  %9452 = vmatmul.mubr.f32.gmra.mrb[144].mxu0 %v9298_v45  ;;  %13772 = vmatprep.mubr.f32.mxu1 %v9298_v45  ;;  %v20733_v45 = vld [vmem:[#allocation73_spill] sm:$0xff] }
0x3126   : > { %15418 = vmatpush3.bf16.msra.mxu1 %v20726_v15  ;;  %15394 = vmatpush1.bf16.msra.mxu0 %v20728_v48  ;;  %v20732_v39 = vld [vmem:[#allocation72_spill] sm:$0xff]  ;;  %v20734_v48 = vld [vmem:[#allocation74_spill] sm:$0xff]  ;;  %v20735_v15 = vld [vmem:[#allocation75_spill] sm:$0xff] }
0x3127   : > { %13773 = vmatmul.mubr.f32.gmra.mrb[158].mxu1 %v9371_v11  ;;  %9457 = vmatprep.mubr.f32.mxu0 %v20339_v59 }
0x3128   : > { %13807 = vmatprep.mubr.f32.mxu1 %v19380_v25  ;;  %15420 = vmatprep.subr.bf16.mxu1 %v20729_v22 }
0x3129   : > { %9458 = vmatmul.mubr.f32.gmra.mrb[146].mxu0 %v9371_v11  ;;  %15396 = vmatprep.subr.bf16.mxu0 %v20730_v30  ;;  %v20737_v11 = vld [vmem:[#allocation77_spill] sm:$0xff]  ;;  %v20738_v30 = vld [vmem:[#allocation78_spill] sm:$0xff] }
0x312a   : > { %15422 = vmatpush3.bf16.msra.mxu1 %v20729_v22  ;;  %15398 = vmatpush1.bf16.msra.mxu0 %v20731_v41  ;;  %v20739_v41 = vld [vmem:[#allocation84_spill] sm:$0xff]  ;;  %v20758_v22 = vld [vmem:[#allocation95_spill] sm:$0xff] }
0x312b   : > { %15424 = vmatprep.subr.bf16.mxu1 %v20732_v39  ;;  %15400 = vmatprep.subr.bf16.mxu0 %v20733_v45  ;;  %v20740_v45 = vld [vmem:[#allocation79_spill] sm:$0xff] }
0x312c   : > { %9613 = vmatprep.mubr.f32.mxu0 %v20339_v59 }
0x312e   : > { %15426 = vmatpush3.bf16.msra.mxu1 %v20732_v39  ;;  %15402 = vmatpush1.bf16.msra.mxu0 %v20734_v48  ;;  %v20741_v48 = vld [vmem:[#allocation85_spill] sm:$0xff]  ;;  %v20742_v39 = vld [vmem:[#allocation86_spill] sm:$0xff] }
0x312f   : > { %15428 = vmatprep.subr.bf16.mxu1 %v20735_v15  ;;  %15404 = vmatprep.subr.bf16.mxu0 %v20736_v60  ;;  %v20745_v60 = vld [vmem:[#allocation88_spill] sm:$0xff] }
0x3132   : > { %15430 = vmatpush3.bf16.msra.mxu1 %v20735_v15  ;;  %15406 = vmatpush1.bf16.msra.mxu0 %v20737_v11  ;;  %v20743_v11 = vld [vmem:[#allocation87_spill] sm:$0xff]  ;;  %v20753_v15 = vld [vmem:[#allocation104_spill] sm:$0xff] }
0x3133   : > { %15432 = vmatprep.subr.bf16.mxu1 %v20738_v30  ;;  %15440 = vmatprep.subr.bf16.mxu0 %v20739_v41  ;;  %v20744_v41 = vld [vmem:[#allocation100_spill] sm:$0xff] }
0x3135   : > { %9614 = vmatmul.mubr.f32.vlgmr.msra.gmra.mrb[140].mxu0 %v19380_v25 }
0x3136   : > { %15434 = vmatpush3.bf16.msra.mxu1 %v20738_v30  ;;  %9619 = vmatprep.mubr.f32.mxu0 %v20339_v59  ;;  %v20749_v30 = vld [vmem:[#allocation102_spill] sm:$0xff] }
0x3137   : > { %15436 = vmatprep.subr.bf16.mxu1 %v20740_v45  ;;  %15442 = vmatpush1.bf16.msra.mxu0 %v20741_v48  ;;  %v20747_v48 = vld [vmem:[#allocation101_spill] sm:$0xff] }
0x3138   : > { %15444 = vmatprep.subr.bf16.mxu0 %v20742_v39  ;;  %v20746_v39 = vld [vmem:[#allocation89_spill] sm:$0xff] }
0x3139   : > { %9620 = vmatmul.mubr.f32.gmra.mrb[142].mxu0 %v19385_v7 }
0x313a   : > { %15438 = vmatpush3.bf16.msra.mxu1 %v20740_v45  ;;  %9625 = vmatprep.mubr.f32.mxu0 %v20339_v59  ;;  %v20748_v45 = vld [vmem:[#allocation90_spill] sm:$0xff] }
0x313b   : > { %15446 = vmatpush1.bf16.msra.mxu0 %v20743_v11  ;;  %15472 = vmatprep.subr.bf16.mxu1 %v20744_v41  ;;  %v20751_v41 = vld [vmem:[#allocation103_spill] sm:$0xff]  ;;  %v20752_v11 = vld [vmem:[#allocation92_spill] sm:$0xff] }
0x313c   : > { %15448 = vmatprep.subr.bf16.mxu0 %v20745_v60  ;;  %v20750_v60 = vld [vmem:[#allocation91_spill] sm:$0xff] }
0x313d   : > { %13808 = vmatmul.mubr.f32.vlgmr.msra.gmra.mrb[160].mxu1 %v19385_v7  ;;  %9626 = vmatmul.mubr.f32.gmra.mrb[144].mxu0 %v19390_v29 }
0x313e   : > { %13810 = vmatprep.mubr.f32.mxu1 %v19390_v29  ;;  %9631 = vmatprep.mubr.f32.mxu0 %v20339_v59 }
0x313f   : > { %15450 = vmatpush1.bf16.msra.mxu0 %v20746_v39  ;;  %15474 = vmatpush3.bf16.msra.mxu1 %v20747_v48  ;;  %v20754_v39 = vld [vmem:[#allocation93_spill] sm:$0xff] }
0x3140   : > { %15452 = vmatprep.subr.bf16.mxu0 %v20748_v45  ;;  %15476 = vmatprep.subr.bf16.mxu1 %v20749_v30  ;;  %v20755_v48 = vld [vmem:[#allocation105_spill] sm:$0xff]  ;;  %v20756_v45 = vld [vmem:[#allocation94_spill] sm:$0xff] }
0x3141   : > { %13811 = vmatmul.mubr.f32.gmra.mrb[162].mxu1 %v19395_v33  ;;  %9632 = vmatmul.mubr.f32.gmra.mrb[146].mxu0 %v19395_v33  ;;  %v20757_v30 = vld [vmem:[#allocation106_spill] sm:$0xff] }
0x3142   : > { %9923 = vmatprep.mubr.f32.mxu0 %v20339_v59 }
0x3143   : > { %15454 = vmatpush1.bf16.msra.mxu0 %v20750_v60  ;;  %15478 = vmatpush3.bf16.msra.mxu1 %v20751_v41  ;;  %v20761_v60 = vld [vmem:[#allocation108_spill] sm:$0xff]  ;;  %v20762_v41 = vld [vmem:[#allocation97_spill] sm:$0xff] }
0x3144   : > { %15456 = vmatprep.subr.bf16.mxu0 %v20752_v11  ;;  %15480 = vmatprep.subr.bf16.mxu1 %v20753_v15  ;;  %v20763_v11 = vld [vmem:[#allocation109_spill] sm:$0xff]  ;;  %v20764_v15 = vld [vmem:[#allocation98_spill] sm:$0xff] }
0x3147   : > { %15458 = vmatpush1.bf16.msra.mxu0 %v20754_v39  ;;  %15482 = vmatpush3.bf16.msra.mxu1 %v20755_v48  ;;  %v20765_v39 = vld [vmem:[#allocation110_spill] sm:$0xff]  ;;  %v20766_v48 = vld [vmem:[#allocation99_spill] sm:$0xff] }
0x3148   : > { %15460 = vmatprep.subr.bf16.mxu0 %v20756_v45  ;;  %15484 = vmatprep.subr.bf16.mxu1 %v20757_v30  ;;  %v20767_v45 = vld [vmem:[#allocation111_spill] sm:$0xff]  ;;  %v20768_v30 = vld [vmem:[#allocation112_spill] sm:$0xff] }
0x314b   : > { %15462 = vmatpush1.bf16.msra.mxu0 %v20758_v22  ;;  %15486 = vmatpush3.bf16.msra.mxu1 %v20759_v55  ;;  %v20769_v55 = vld [vmem:[#allocation113_spill] sm:$0xff] }
0x314c   : > { %15464 = vmatprep.subr.bf16.mxu0 %v20760_v16  ;;  %15488 = vmatprep.subr.bf16.mxu1 %v20761_v60  ;;  %v20770_v16 = vld [vmem:[#allocation114_spill] sm:$0xff]  ;;  %v20771_v60 = vld [vmem:[#allocation115_spill] sm:$0xff] }
0x314f   : > { %15466 = vmatpush1.bf16.msra.mxu0 %v20762_v41  ;;  %15490 = vmatpush3.bf16.msra.mxu1 %v20763_v11  ;;  %v20772_v41 = vld [vmem:[#allocation80_spill] sm:$0xff] }
0x3150   : > { %15468 = vmatprep.subr.bf16.mxu0 %v20764_v15  ;;  %15492 = vmatprep.subr.bf16.mxu1 %v20765_v39 }
0x3153   : > { %15470 = vmatpush1.bf16.msra.mxu0 %v20766_v48  ;;  %15494 = vmatpush3.bf16.msra.mxu1 %v20767_v45 }
0x3154   : > { %15496 = vmatprep.subr.bf16.mxu1 %v20768_v30  ;;  %15504 = vmatprep.subr.bf16.mxu0 %v17574_v46 }
0x3157   : > { %15498 = vmatpush3.bf16.msra.mxu1 %v20769_v55 }
0x3158   : > { %15500 = vmatprep.subr.bf16.mxu1 %v20770_v16 }
0x315b   : > { %15502 = vmatpush3.bf16.msra.mxu1 %v20771_v60 }
0x315c   : > { %15535 = vmatprep.subr.bf16.mxu1 %v20397_v57 }
0x31f0   : > { %v19575_v11 = vpop.f32.mrb[156].mxu1 }
0x31f1   : > { %v9530_v15 = vpop.f32.mrb[157].mxu1 }
0x31fa   : > { %v19577_v39 = vpop.f32.mrb[158].mxu1 }
0x31fb   : > { %v19579_v48 = vpop.f32.mrb[159].mxu1 }
0x3208   : > { %v9615_v45 = vpop.f32.mrb[140].mxu0 }
0x3209   : > { %v15832_v30 = vadd.f32 %v20772_v41, %v9615_v45  ;;  %v9617_v22 = vpop.f32.mrb[141].mxu0 }
0x320a   : > { %v15834_v55 = vadd.f32 %v20544_v26, %v9617_v22 }
0x320b   : > { %v11868_v13 = vmul.f32 -1.442695, %v15832_v30 }
0x320c   : > { %v9621_v37 = vpop.f32.mrb[142].mxu0  ;;  %v11872_v4 = vmul.f32 -1.442695, %v15834_v55 }
0x320d   : > { %16513 = vpow2.f32 %v11868_v13  ;;  %v15836_v60 = vadd.f32 %v20772_v41, %v9621_v37  ;;  %v9623_v16 = vpop.f32.mrb[143].mxu0 }
0x320e   : > { %v15838_v47 = vadd.f32 %v20544_v26, %v9623_v16 }
0x320f   : > { %v11869_v50 = vmul.f32 -1.442695, %v15836_v60 }
0x3210   : > { %v13809_v0 = vpop.f32.mrb[160].mxu1  ;;  %v9627_v27 = vpop.f32.mrb[144].mxu0  ;;  %v11873_v2 = vmul.f32 -1.442695, %v15838_v47 }
0x3211   : > { %16515 = vpow2.f32 %v11869_v50  ;;  %v15840_v12 = vadd.f32 %v20772_v41, %v9627_v27  ;;  %v9704_v53 = vpop.f32.mrb[161].mxu1  ;;  %v9629_v45 = vpop.f32.mrb[145].mxu0 }
0x3212   : > { %v15842_v22 = vadd.f32 %v20544_v26, %v9629_v45  ;;  %16517 = vpow2.f32 %v11872_v4 }
0x3213   : > { %v11870_v30 = vmul.f32 -1.442695, %v15840_v12 }
0x3214   : > { %v13812_v13 = vpop.f32.mrb[162].mxu1  ;;  %v9633_v40 = vpop.f32.mrb[146].mxu0  ;;  %v11874_v36 = vmul.f32 -1.442695, %v15842_v22  ;;  %v9705_v22 = vadd.f32 %v9704_v53, %v20467_v32 }
0x3215   : > { %16519 = vpow2.f32 %v11870_v30  ;;  %v15844_v37 = vadd.f32 %v20772_v41, %v9633_v40  ;;  %v9714_v60 = vpop.f32.mrb[163].mxu1  ;;  %v9635_v16 = vpop.f32.mrb[147].mxu0 }
0x3216   : > { %16521 = vpow2.f32 %v11873_v2  ;;  %v15846_v27 = vadd.f32 %v20544_v26, %v9635_v16 }
0x3217   : > { %v16514_v55 = vpop.eup %16513  ;;  %v11871_v50 = vmul.f32 -1.442695, %v15844_v37 }
0x3218   : > { %v9739_v5 = vadd.f32 1.0, %v16514_v55  ;;  %v11875_v47 = vmul.f32 -1.442695, %v15846_v27  ;;  %v9710_v27 = vadd.f32 %v13809_v0, %v20467_v32 }
0x3219   : > { %16523 = vpow2.f32 %v11871_v50 }
0x321a   : > { %16525 = vrcp.f32 %v9739_v5  ;;  %v9531_v5 = vadd.f32 %v9530_v15, %v20468_v20  ;;  %v9541_v15 = vadd.f32 %v19579_v48, %v20468_v20 }
0x321b   : > { %v16516_v12 = vpop.eup %16515  ;;  %16527 = vpow2.f32 %v11874_v36 }
0x321c   : > { %v9740_v4 = vadd.f32 1.0, %v16516_v12  ;;  %v16518_v45 = vpop.eup %16517 }
0x321d   : > { %v9767_v6 = vadd.f32 1.0, %v16518_v45 }
0x321e   : > { %16529 = vrcp.f32 %v9740_v4 }
0x321f   : > { %v16520_v30 = vpop.eup %16519  ;;  %16531 = vpow2.f32 %v11875_v47 }
0x3220   : > { %v9741_v40 = vadd.f32 1.0, %v16520_v30  ;;  %v16522_v41 = vpop.eup %16521  ;;  %v9536_v30 = vadd.f32 %v19575_v11, %v20468_v20  ;;  %v9546_v11 = vadd.f32 %v19577_v39, %v20468_v20 }
0x3221   : > { %v9768_v16 = vadd.f32 1.0, %v16522_v41 }
0x3222   : > { %16533 = vrcp.f32 %v9741_v40  ;;  %v9715_v40 = vadd.f32 %v9714_v60, %v20467_v32 }
0x3223   : > { %v16524_v2 = vpop.eup %16523  ;;  %16535 = vrcp.f32 %v9767_v6 }
0x3224   : > { %v16526_v37 = vpop.eup %16525  ;;  %v9742_v55 = vadd.f32 1.0, %v16524_v2 }
0x3225   : > { %v16528_v50 = vpop.eup %16527  ;;  %v9779_v36 = vmul.f32 %v16526_v37, %v9705_v22  ;;  %v9720_v37 = vadd.f32 %v13812_v13, %v20467_v32 }
0x3226   : > { %16537 = vrcp.f32 %v9742_v55  ;;  %v9769_v4 = vadd.f32 1.0, %v16528_v50 }
0x3227   : > { %v9783_v12 = vadd.f32 %v9779_v36, %v9531_v5  ;;  %16539 = vrcp.f32 %v9768_v16 }
0x3228   : > { %v16530_v47 = vpop.eup %16529 }
0x3229   : > { %v16532_v45 = vpop.eup %16531  ;;  %v9780_v53 = vmul.f32 %v16530_v47, %v9710_v27  ;;  %16541 = vtanh.f32 %v9783_v12 }
0x322a   : > { %16543 = vrcp.f32 %v9769_v4  ;;  %v9770_v6 = vadd.f32 1.0, %v16532_v45 }
0x322b   : > { %v9784_v41 = vadd.f32 %v9780_v53, %v9536_v30 }
0x322c   : > { %v16534_v2 = vpop.eup %16533 }
0x322d   : > { %16545 = vtanh.f32 %v9784_v41  ;;  %v9781_v0 = vmul.f32 %v16534_v2, %v9715_v40  ;;  %v16536_v22 = vpop.eup %16535 }
0x322e   : > { %16547 = vrcp.f32 %v9770_v6  ;;  %v9791_v5 = vsub.f32 1.0, %v16536_v22  ;;  %v9799_v48 = vmul.f32 %v16536_v22, %v19380_v25 }
0x322f   : > { %v9785_v16 = vadd.f32 %v9781_v0, %v9541_v15 }
0x3230   : > { %v16538_v55 = vpop.eup %16537 }
0x3231   : > { %v9782_v50 = vmul.f32 %v16538_v55, %v9720_v37  ;;  %16549 = vtanh.f32 %v9785_v16  ;;  %v16540_v60 = vpop.eup %16539 }
0x3232   : > { %v9792_v13 = vsub.f32 1.0, %v16540_v60  ;;  %v9800_v39 = vmul.f32 %v16540_v60, %v19385_v7 }
0x3233   : > { %v16542_v36 = vpop.eup %16541  ;;  %v9786_v27 = vadd.f32 %v9782_v50, %v9546_v11 }
0x3234   : > { %v9795_v12 = vmul.f32 %v16542_v36, %v9791_v5  ;;  %v16544_v47 = vpop.eup %16543 }
0x3235   : > { %16551 = vtanh.f32 %v9786_v27  ;;  %v9793_v40 = vsub.f32 1.0, %v16544_v47  ;;  %v9801_v25 = vmul.f32 %v16544_v47, %v19390_v29 }
0x3236   : > { %v19601_v4 = vadd.f32 %v9799_v48, %v9795_v12 }
0x3237   : > { %v16546_v45 = vpop.eup %16545 }
0x3238   : > { %9807 = vadd.xlane.f32.xlu0 %v19601_v4  ;;  %v9796_v30 = vmul.f32 %v16546_v45, %v9792_v13  ;;  %v16548_v53 = vpop.eup %16547 }
0x3239   : > { %v9794_v0 = vsub.f32 1.0, %v16548_v53  ;;  %v9802_v16 = vmul.f32 %v16548_v53, %v19395_v33 }
0x323a   : > { %v19605_v41 = vadd.f32 %v9800_v39, %v9796_v30 }
0x323b   : > { %v16550_v2 = vpop.eup %16549 }
0x323c   : > { %9809 = vadd.xlane.f32.xlu1 %v19605_v41  ;;  %v9797_v6 = vmul.f32 %v16550_v2, %v9793_v40 }
0x323e   : > { %v19609_v15 = vadd.f32 %v9801_v25, %v9797_v6 }
0x323f   : > { %v16552_v22 = vpop.eup %16551 }
0x3240   : > { %9811 = vadd.xlane.f32.xlu0 %v19609_v15  ;;  %v9798_v37 = vmul.f32 %v16552_v22, %v9794_v0 }
0x3242   : > { %v19613_v7 = vadd.f32 %v9802_v16, %v9798_v37 }
0x3244   : > { %9813 = vadd.xlane.f32.xlu1 %v19613_v7 }
0x32c5   : > { %v9808_v55 = vpop.xlane.xlu0 %9807 }
0x32c6   : > { %v9815_v11 = vmul.f32 0.0078125, %v9808_v55 }
0x32c8   : > { %v9819_v50 = vsub.f32 %v19601_v4, %v9815_v11 }
0x32c9   : > { %v9810_v60 = vpop.xlane.xlu1 %9809 }
0x32ca   : > { %v9816_v5 = vmul.f32 0.0078125, %v9810_v60  ;;  %v9823_v29 = vmul.f32 %v9819_v50, %v9819_v50 }
0x32cc   : > { %v9820_v36 = vsub.f32 %v19605_v41, %v9816_v5  ;;  %9827 = vadd.xlane.f32.xlu0 %v9823_v29 }
0x32cd   : > { %v9812_v27 = vpop.xlane.xlu0 %9811 }
0x32ce   : > { %v9817_v12 = vmul.f32 0.0078125, %v9812_v27  ;;  %v9824_v48 = vmul.f32 %v9820_v36, %v9820_v36 }
0x32d0   : > { %v9821_v47 = vsub.f32 %v19609_v15, %v9817_v12  ;;  %9829 = vadd.xlane.f32.xlu1 %v9824_v48 }
0x32d1   : > { %v9814_v33 = vpop.xlane.xlu1 %9813 }
0x32d2   : > { %v9818_v13 = vmul.f32 0.0078125, %v9814_v33  ;;  %v9825_v45 = vmul.f32 %v9821_v47, %v9821_v47 }
0x32d4   : > { %v9822_v30 = vsub.f32 %v19613_v7, %v9818_v13  ;;  %9831 = vadd.xlane.f32.xlu0 %v9825_v45 }
0x32d6   : > { %v9826_v39 = vmul.f32 %v9822_v30, %v9822_v30 }
0x32d8   : > { %9833 = vadd.xlane.f32.xlu1 %v9826_v39 }
0x3359   : > { %v9828_v53 = vpop.xlane.xlu0 %9827 }
0x335a   : > { %v9835_v40 = vmul.f32 0.0078125, %v9828_v53 }
0x335c   : > { %v9839_v2 = vadd.f32 1e-05, %v9835_v40 }
0x335d   : > { %v9830_v6 = vpop.xlane.xlu1 %9829 }
0x335e   : > { %16553 = vrsqrt.f32 %v9839_v2  ;;  %v9836_v25 = vmul.f32 0.0078125, %v9830_v6 }
0x3360   : > { %v9840_v0 = vadd.f32 1e-05, %v9836_v25 }
0x3361   : > { %v9832_v22 = vpop.xlane.xlu0 %9831 }
0x3362   : > { %16555 = vrsqrt.f32 %v9840_v0  ;;  %v9837_v37 = vmul.f32 0.0078125, %v9832_v22 }
0x3364   : > { %v9841_v16 = vadd.f32 1e-05, %v9837_v37 }
0x3365   : > { %v9834_v55 = vpop.xlane.xlu1 %9833 }
0x3366   : > { %16557 = vrsqrt.f32 %v9841_v16  ;;  %v9838_v11 = vmul.f32 0.0078125, %v9834_v55 }
0x3368   : > { %v16554_v60 = vpop.eup %16553  ;;  %v9842_v5 = vadd.f32 1e-05, %v9838_v11 }
0x3369   : > { %v9847_v29 = vmul.f32 %v16554_v60, %v9819_v50 }
0x336a   : > { %16559 = vrsqrt.f32 %v9842_v5 }
0x336b   : > { %v9851_v27 = vmul.f32 %v9847_v29, %v18194_v24 }
0x336c   : > { %v16556_v12 = vpop.eup %16555 }
0x336d   : > { %v9855_v48 = vadd.f32 %v9851_v27, %v18198_v54  ;;  %v9848_v33 = vmul.f32 %v16556_v12, %v9820_v36 }
0x336f   : > { %9924 = vmatmul.mubr.f32.vlgmr.msra.gmra.mrb[148].mxu0 %v9855_v48  ;;  %v9852_v13 = vmul.f32 %v9848_v33, %v18194_v24 }
0x3370   : > { %v16558_v45 = vpop.eup %16557  ;;  %9929 = vmatprep.mubr.f32.mxu0 %v20339_v59  ;;  %15506 = vmatpush3.bf16.msra.mxu0 %v17574_v46 }
0x3371   : > { %v9856_v39 = vadd.f32 %v9852_v13, %v18198_v54  ;;  %v9849_v53 = vmul.f32 %v16558_v45, %v9821_v47  ;;  %15508 = vmatprep.subr.bf16.mxu0 %v17626_v43 }
0x3373   : > { %9930 = vmatmul.mubr.f32.gmra.mrb[150].mxu0 %v9856_v39  ;;  %v9853_v50 = vmul.f32 %v9849_v53, %v18194_v24 }
0x3374   : > { %v16560_v40 = vpop.eup %16559  ;;  %9935 = vmatprep.mubr.f32.mxu0 %v20339_v59  ;;  %15510 = vmatpush3.bf16.msra.mxu0 %v17626_v43 }
0x3375   : > { %v9857_v36 = vadd.f32 %v9853_v50, %v18198_v54  ;;  %v9850_v2 = vmul.f32 %v16560_v40, %v9822_v30  ;;  %15512 = vmatprep.subr.bf16.mxu0 %v17640_v61  ;;  %v20773_v30 = vld [vmem:[#allocation116_spill] sm:$0xff] }
0x3377   : > { %9936 = vmatmul.mubr.f32.gmra.mrb[152].mxu0 %v9857_v36  ;;  %v9854_v46 = vmul.f32 %v9850_v2, %v18194_v24  ;;  %v20775_v36 = vld [vmem:[#allocation117_spill] sm:$0xff] }
0x3378   : > { %9941 = vmatprep.mubr.f32.mxu0 %v20339_v59  ;;  %15514 = vmatpush3.bf16.msra.mxu0 %v17640_v61 }
0x3379   : > { %v9858_v47 = vadd.f32 %v9854_v46, %v18198_v54  ;;  %15516 = vmatprep.subr.bf16.mxu0 %v17646_v21 }
0x337b   : > { %9942 = vmatmul.mubr.f32.gmra.mrb[154].mxu0 %v9858_v47 }
0x337c   : > { %15518 = vmatpush3.bf16.msra.mxu0 %v17646_v21 }
0x337d   : > { %15520 = vmatprep.subr.bf16.mxu0 %v17650_v34 }
0x3380   : > { %15522 = vmatpush3.bf16.msra.mxu0 %v17650_v34 }
0x3381   : > { %15524 = vmatprep.subr.bf16.mxu0 %v17654_v42 }
0x3384   : > { %15526 = vmatpush3.bf16.msra.mxu0 %v17654_v42 }
0x3385   : > { %15528 = vmatprep.subr.bf16.mxu0 %v17659_v49 }
0x3388   : > { %15530 = vmatpush3.bf16.msra.mxu0 %v17659_v49 }
0x3389   : > { %15532 = vmatprep.subr.bf16.mxu0 %v17663_v51 }
0x338c   : > { %15534 = vmatpush3.bf16.msra.mxu0 %v17663_v51  ;;  %v20774_v51 = vld [vmem:[#allocation32_spill] sm:$0xff] }
0x338d   : > { %15544 = vmatprep.subr.bf16.mxu0 %v20397_v57 }
0x3442   : > { %v9925_v43 = vpop.f32.mrb[148].mxu0 }
0x3443   : > { %v9926_v61 = vadd.f32 %v9925_v43, %v18233_v35  ;;  %v9927_v21 = vpop.f32.mrb[149].mxu0 }
0x3444   : > { %v9928_v34 = vadd.f32 %v9927_v21, %v20773_v30 }
0x3445   : > { %v9948_v0 = vmax.f32 %v9926_v61, 0.0 }
0x3446   : > { %v9949_v6 = vmax.f32 %v9928_v34, 0.0  ;;  %v9931_v25 = vpop.f32.mrb[150].mxu0 }
0x3447   : > { %v9932_v42 = vadd.f32 %v9931_v25, %v18233_v35  ;;  %v9933_v22 = vpop.f32.mrb[151].mxu0 }
0x3448   : > { %v9934_v49 = vadd.f32 %v9933_v22, %v20773_v30  ;;  %10020 = vmatprep.mubr.f32.mxu1 %v9949_v6 }
0x3449   : > { %10021 = vmatmul.mubr.f32.vlgmr.msra.gmra.mrb[164].mxu1 %v9948_v0  ;;  %v9950_v55 = vmax.f32 %v9932_v42, 0.0 }
0x344a   : > { %v9951_v37 = vmax.f32 %v9934_v49, 0.0  ;;  %15537 = vmatpush3.bf16.xpose.msra.mxu1 %v20774_v51  ;;  %v9937_v16 = vpop.f32.mrb[152].mxu0 }
0x344b   : > { %v9938_v11 = vadd.f32 %v9937_v16, %v18233_v35  ;;  %v9939_v60 = vpop.f32.mrb[153].mxu0  ;;  %15538 = vmatprep.subr.bf16.mxu1 %v20397_v57 }
0x344c   : > { %v9940_v5 = vadd.f32 %v9939_v60, %v20773_v30  ;;  %10025 = vmatprep.mubr.f32.mxu1 %v9951_v37 }
0x344d   : > { %10026 = vmatmul.mubr.f32.gmra.mrb[166].mxu1 %v9950_v55  ;;  %v9952_v12 = vmax.f32 %v9938_v11, 0.0 }
0x344e   : > { %v9953_v29 = vmax.f32 %v9940_v5, 0.0  ;;  %v9943_v27 = vpop.f32.mrb[154].mxu0 }
0x344f   : > { %v9944_v48 = vadd.f32 %v9943_v27, %v18233_v35  ;;  %v9945_v33 = vpop.f32.mrb[155].mxu0 }
0x3450   : > { %v9946_v13 = vadd.f32 %v9945_v33, %v20773_v30  ;;  %10030 = vmatprep.mubr.f32.mxu1 %v9953_v29 }
0x3451   : > { %10031 = vmatmul.mubr.f32.gmra.mrb[168].mxu1 %v9952_v12  ;;  %v9954_v39 = vmax.f32 %v9944_v48, 0.0 }
0x3452   : > { %v9955_v45 = vmax.f32 %v9946_v13, 0.0 }
0x3454   : > { %10035 = vmatprep.mubr.f32.mxu1 %v9955_v45 }
0x3455   : > { %10036 = vmatmul.mubr.f32.gmra.mrb[170].mxu1 %v9954_v39 }
0x3456   : > { %13855 = vmatprep.mubr.msk.f32.mxu1 %vm17038_vm0, %v20339_v59 }
0x351c   : > { %v12653_v53 = vpop.f32.mrb[164].mxu1 }
0x351d   : > { %v12654_v50 = vpop.f32.mrb[165].mxu1 }
0x351e   : > { %v12655_v40 = vadd.f32 %v12654_v50, %v12653_v53 }
0x3520   : > { %v10023_v2 = vadd.f32 %v12655_v40, %v20775_v36  ;;  %v12656_v46 = vpop.f32.mrb[166].mxu1 }
0x3521   : > { %v12657_v47 = vpop.f32.mrb[167].mxu1 }
0x3522   : > { %v19661_v43 = vadd.f32 %v10023_v2, %v19601_v4  ;;  %v12658_v61 = vadd.f32 %v12657_v47, %v12656_v46 }
0x3524   : > { %v10028_v21 = vadd.f32 %v12658_v61, %v20775_v36  ;;  %10045 = vadd.xlane.f32.xlu0 %v19661_v43  ;;  %v12659_v34 = vpop.f32.mrb[168].mxu1 }
0x3525   : > { %v12660_v6 = vpop.f32.mrb[169].mxu1 }
0x3526   : > { %v19666_v25 = vadd.f32 %v10028_v21, %v19605_v41  ;;  %v12661_v0 = vadd.f32 %v12660_v6, %v12659_v34 }
0x3528   : > { %v10033_v42 = vadd.f32 %v12661_v0, %v20775_v36  ;;  %10047 = vadd.xlane.f32.xlu1 %v19666_v25  ;;  %v12662_v22 = vpop.f32.mrb[170].mxu1 }
0x3529   : > { %v12663_v49 = vpop.f32.mrb[171].mxu1 }
0x352a   : > { %v19671_v4 = vadd.f32 %v10033_v42, %v19609_v15  ;;  %v12664_v37 = vadd.f32 %v12663_v49, %v12662_v22 }
0x352c   : > { %v10038_v51 = vadd.f32 %v12664_v37, %v20775_v36  ;;  %10049 = vadd.xlane.f32.xlu0 %v19671_v4 }
0x352e   : > { %v19676_v16 = vadd.f32 %v10038_v51, %v19613_v7  ;;  %v20776_v51 = vld [vmem:[#allocation30_spill] sm:$0xff] }
0x3530   : > { %10051 = vadd.xlane.f32.xlu1 %v19676_v16 }
0x35b1   : > { %v10046_v41 = vpop.xlane.xlu0 %10045 }
0x35b2   : > { %v10053_v55 = vmul.f32 0.0078125, %v10046_v41 }
0x35b4   : > { %v10057_v11 = vsub.f32 %v19661_v43, %v10053_v55 }
0x35b5   : > { %v10048_v60 = vpop.xlane.xlu1 %10047 }
0x35b6   : > { %v10054_v5 = vmul.f32 0.0078125, %v10048_v60  ;;  %v10061_v29 = vmul.f32 %v10057_v11, %v10057_v11 }
0x35b8   : > { %v10058_v15 = vsub.f32 %v19666_v25, %v10054_v5  ;;  %10065 = vadd.xlane.f32.xlu0 %v10061_v29  ;;  %v20777_v5 = vld [vmem:[#allocation31_spill] sm:$0xff] }
0x35b9   : > { %v10050_v27 = vpop.xlane.xlu0 %10049 }
0x35ba   : > { %v10055_v12 = vmul.f32 0.0078125, %v10050_v27  ;;  %v10062_v48 = vmul.f32 %v10058_v15, %v10058_v15 }
0x35bc   : > { %v10059_v33 = vsub.f32 %v19671_v4, %v10055_v12  ;;  %10067 = vadd.xlane.f32.xlu1 %v10062_v48 }
0x35bd   : > { %v10052_v7 = vpop.xlane.xlu1 %10051 }
0x35be   : > { %v10056_v13 = vmul.f32 0.0078125, %v10052_v7  ;;  %v10063_v45 = vmul.f32 %v10059_v33, %v10059_v33 }
0x35c0   : > { %v10060_v39 = vsub.f32 %v19676_v16, %v10056_v13  ;;  %10069 = vadd.xlane.f32.xlu0 %v10063_v45 }
0x35c2   : > { %v10064_v53 = vmul.f32 %v10060_v39, %v10060_v39 }
0x35c4   : > { %10071 = vadd.xlane.f32.xlu1 %v10064_v53  ;;  %v20778_v53 = vld [vmem:[#allocation38_spill] sm:$0xff] }
0x3645   : > { %v10066_v50 = vpop.xlane.xlu0 %10065 }
0x3646   : > { %v10073_v40 = vmul.f32 0.0078125, %v10066_v50 }
0x3648   : > { %v10077_v2 = vadd.f32 1e-05, %v10073_v40 }
0x3649   : > { %v10068_v46 = vpop.xlane.xlu1 %10067 }
0x364a   : > { %16561 = vrsqrt.f32 %v10077_v2  ;;  %v10074_v47 = vmul.f32 0.0078125, %v10068_v46  ;;  %v20779_v46 = vld [vmem:[#allocation34_spill] sm:$0xff] }
0x364c   : > { %v10078_v61 = vadd.f32 1e-05, %v10074_v47 }
0x364d   : > { %v10070_v21 = vpop.xlane.xlu0 %10069 }
0x364e   : > { %16563 = vrsqrt.f32 %v10078_v61  ;;  %v10075_v34 = vmul.f32 0.0078125, %v10070_v21  ;;  %v20780_v61 = vld [vmem:[#allocation35_spill] sm:$0xff] }
0x3650   : > { %v10079_v6 = vadd.f32 1e-05, %v10075_v34 }
0x3651   : > { %v10072_v0 = vpop.xlane.xlu1 %10071 }
0x3652   : > { %16565 = vrsqrt.f32 %v10079_v6  ;;  %v10076_v42 = vmul.f32 0.0078125, %v10072_v0  ;;  %v20781_v0 = vld [vmem:[#allocation37_spill] sm:$0xff] }
0x3654   : > { %v16562_v22 = vpop.eup %16561  ;;  %v10080_v49 = vadd.f32 1e-05, %v10076_v42  ;;  %v20782_v42 = vld [vmem:[#allocation36_spill] sm:$0xff] }
0x3655   : > { %v10085_v37 = vmul.f32 %v16562_v22, %v10057_v11  ;;  %v20783_v22 = vld [vmem:[#allocation39_spill] sm:$0xff] }
0x3656   : > { %16567 = vrsqrt.f32 %v10080_v49 }
0x3657   : > { %v10089_v41 = vmul.f32 %v10085_v37, %v20776_v51  ;;  %v20784_v37 = vld [vmem:[#allocation33_spill] sm:$0xff] }
0x3658   : > { %v16564_v55 = vpop.eup %16563 }
0x3659   : > { %v10086_v60 = vmul.f32 %v16564_v55, %v10058_v15  ;;  %v10093_v29 = vadd.f32 %v10089_v41, %v20777_v5 }
0x365b   : > { %13845 = vmatprep.mubr.f32.mxu0 %v10093_v29  ;;  %v10090_v27 = vmul.f32 %v10086_v60, %v20776_v51 }
0x365c   : > { %v16566_v12 = vpop.eup %16565 }
0x365d   : > { %v10094_v48 = vadd.f32 %v10090_v27, %v20777_v5  ;;  %v10087_v7 = vmul.f32 %v16566_v12, %v10059_v33 }
0x365f   : > { %13846 = vmatmul.mubr.f32.vlgmr.msra.gmra.mrb[156].mxu0 %v10094_v48  ;;  %v10091_v13 = vmul.f32 %v10087_v7, %v20776_v51 }
0x3660   : > { %v16568_v45 = vpop.eup %16567  ;;  %15546 = vmatpush3.bf16.xpose.msra.mxu0 %v20778_v53 }
0x3661   : > { %v10095_v11 = vadd.f32 %v10091_v13, %v20777_v5  ;;  %v10088_v50 = vmul.f32 %v16568_v45, %v10060_v39  ;;  %15553 = vmatprep.subr.bf16.mxu0 %v20397_v57 }
0x3663   : > { %13848 = vmatprep.mubr.f32.mxu0 %v10095_v11  ;;  %v10092_v15 = vmul.f32 %v10088_v50, %v20776_v51 }
0x3665   : > { %v10096_v40 = vadd.f32 %v10092_v15, %v20777_v5 }
0x3667   : > { %13849 = vmatmul.mubr.f32.gmra.mrb[158].mxu0 %v10096_v40 }
0x3668   : > { %13876 = vmatprep.mubr.msk.f32.mxu0 %vm17038_vm0, %v20339_v59 }
0x3732   : > { %v13847_v33 = vpop.f32.mrb[156].mxu0 }
0x3733   : > { %v10163_v2 = vpop.f32.mrb[157].mxu0  ;;  %v10169_v6 = vadd.f32 %v13847_v33, %v20779_v46 }
0x3734   : > { %v10164_v47 = vadd.f32 %v10163_v2, %v20779_v46 }
0x3736   : > { %13856 = vmatmul.mubr.f32.vlgmr.msra.gmra.mrb[172].mxu1 %v10164_v47 }
0x3737   : > { %15540 = vmatpush3.bf16.xpose.msra.mxu1 %v20780_v61  ;;  %13862 = vmatprep.mubr.msk.f32.mxu1 %vm17038_vm0, %v20339_v59 }
0x3738   : > { %15541 = vmatprep.subr.bf16.mxu1 %v20397_v57 }
0x373a   : > { %v13850_v39 = vpop.f32.mrb[158].mxu0 }
0x373b   : > { %v10179_v21 = vadd.f32 %v13850_v39, %v20779_v46  ;;  %v10173_v34 = vpop.f32.mrb[159].mxu0 }
0x373c   : > { %v10174_v49 = vadd.f32 %v10173_v34, %v20779_v46 }
0x373d   : > { %13877 = vmatmul.mubr.f32.vlgmr.msra.gmra.mrb[160].mxu0 %v10179_v21 }
0x373e   : > { %13863 = vmatmul.mubr.f32.vlgmr.msra.gmra.mrb[174].mxu1 %v10169_v6  ;;  %15555 = vmatpush3.bf16.msra.mxu0 %v20781_v0 }
0x373f   : > { %15543 = vmatpush3.bf16.xpose.msra.mxu1 %v20782_v42  ;;  %13869 = vmatprep.mubr.msk.f32.mxu1 %vm17038_vm0, %v20339_v59 }
0x3740   : > { %15547 = vmatprep.subr.bf16.mxu1 %v20397_v57  ;;  %13897 = vmatprep.mubr.msk.f32.mxu0 %vm17038_vm0, %v20339_v59 }
0x3741   : > { %15560 = vmatprep.subr.bf16.mxu0 %v20783_v22 }
0x3746   : > { %13870 = vmatmul.mubr.f32.vlgmr.msra.gmra.mrb[176].mxu1 %v10174_v49 }
0x3747   : > { %15549 = vmatpush3.bf16.msra.mxu1 %v20784_v37  ;;  %13883 = vmatprep.mubr.msk.f32.mxu1 %vm17038_vm0, %v20339_v59 }
0x3748   : > { %15550 = vmatprep.subr.bf16.mxu1 %v20397_v57 }
0x3809   : > { %v10248_v51 = vpop.f32.mrb[172].mxu1 }
0x380a   : > { %v10462_v41 = vmul.f32 0.088388346, %v10248_v51  ;;  %v13857_v55 = vpop.f32.mrb[173].mxu1 }
0x380c   : > { %v10466_v60 = vadd.f32 %v10462_v41, %v17797_v52 }
0x380e   : > { %v10470_v5 = vsel %vm1462_vm2, %v10466_v60, -inf }
0x380f   : > { %v10471_v29 = vrot.slane %v10470_v5, 4 }
0x3810   : > { %v10458_v27 = vpop.f32.mrb[160].mxu0 }
0x3811   : > { %v10472_v12 = vmax.f32 %v10470_v5, %v10471_v29  ;;  %v10318_v48 = vpop.f32.mrb[174].mxu1  ;;  %v10465_v7 = vmul.f32 0.088388346, %v10458_v27  ;;  %v13878_v13 = vpop.f32.mrb[161].mxu0 }
0x3812   : > { %v10463_v45 = vmul.f32 0.088388346, %v10318_v48  ;;  %v13864_v53 = vpop.f32.mrb[175].mxu1 }
0x3813   : > { %v10473_v11 = vrot.slane %v10472_v12, 2  ;;  %v10469_v50 = vadd.f32 %v10465_v7, %v17797_v52 }
0x3814   : > { %v10467_v15 = vadd.f32 %v10463_v45, %v17797_v52 }
0x3815   : > { %v10474_v40 = vmax.f32 %v10472_v12, %v10473_v11  ;;  %v10491_v33 = vsel %vm1462_vm2, %v10469_v50, -inf }
0x3816   : > { %v10477_v2 = vsel %vm1462_vm2, %v10467_v15, -inf  ;;  %v10492_v46 = vrot.slane %v10491_v33, 4 }
0x3817   : > { %v10475_v47 = vrot.slane %v10474_v40, 1  ;;  %v10478_v61 = vrot.slane %v10477_v2, 4 }
0x3818   : > { %v10493_v39 = vmax.f32 %v10491_v33, %v10492_v46 }
0x3819   : > { %v10476_v21 = vmax.f32 %v10474_v40, %v10475_v47  ;;  %v10479_v34 = vmax.f32 %v10477_v2, %v10478_v61  ;;  %v10388_v6 = vpop.f32.mrb[176].mxu1 }
0x381a   : > { %v10494_v0 = vrot.slane %v10493_v39, 2  ;;  %v10464_v42 = vmul.f32 0.088388346, %v10388_v6  ;;  %v13871_v22 = vpop.f32.mrb[177].mxu1 }
0x381b   : > { %v10498_v49 = vsub.f32 %v10466_v60, %v10476_v21  ;;  %v10480_v37 = vrot.slane %v10479_v34, 2 }
0x381c   : > { %v10495_v51 = vmax.f32 %v10493_v39, %v10494_v0  ;;  %v10468_v41 = vadd.f32 %v10464_v42, %v17797_v52 }
0x381d   : > { %v10502_v55 = vmul.f32 1.442695, %v10498_v49  ;;  %v10481_v5 = vmax.f32 %v10479_v34, %v10480_v37 }
0x381e   : > { %v10496_v29 = vrot.slane %v10495_v51, 1  ;;  %v10484_v27 = vsel %vm1462_vm2, %v10468_v41, -inf }
0x381f   : > { %16569 = vpow2.f32 %v10502_v55  ;;  %v10482_v12 = vrot.slane %v10481_v5, 1  ;;  %v10485_v48 = vrot.slane %v10484_v27, 4 }
0x3820   : > { %v10497_v7 = vmax.f32 %v10495_v51, %v10496_v29 }
0x3821   : > { %v10483_v13 = vmax.f32 %v10481_v5, %v10482_v12  ;;  %v10486_v45 = vmax.f32 %v10484_v27, %v10485_v48 }
0x3822   : > { %v10501_v53 = vsub.f32 %v10469_v50, %v10497_v7 }
0x3823   : > { %v10499_v11 = vsub.f32 %v10467_v15, %v10483_v13  ;;  %v10487_v40 = vrot.slane %v10486_v45, 2 }
0x3824   : > { %v10508_v33 = vmul.f32 1.442695, %v10501_v53 }
0x3825   : > { %v10504_v60 = vmul.f32 1.442695, %v10499_v11  ;;  %v10488_v2 = vmax.f32 %v10486_v45, %v10487_v40 }
0x3826   : > { %16571 = vpow2.f32 %v10508_v33 }
0x3827   : > { %16573 = vpow2.f32 %v10504_v60  ;;  %v10489_v52 = vrot.slane %v10488_v2, 1 }
0x3829   : > { %v16570_v46 = vpop.eup %16569  ;;  %v10490_v47 = vmax.f32 %v10488_v2, %v10489_v52 }
0x382a   : > { %v10510_v61 = vsel %vm1462_vm2, %v16570_v46, 0.0 }
0x382b   : > { %v10511_v39 = vrot.slane %v10510_v61, 4  ;;  %v10500_v21 = vsub.f32 %v10468_v41, %v10490_v47 }
0x382d   : > { %v10512_v34 = vadd.f32 %v10511_v39, %v10510_v61  ;;  %v10506_v6 = vmul.f32 1.442695, %v10500_v21 }
0x382f   : > { %v10513_v0 = vrot.slane %v10512_v34, 2  ;;  %16575 = vpow2.f32 %v10506_v6 }
0x3830   : > { %v16572_v42 = vpop.eup %16571 }
0x3831   : > { %v16574_v50 = vpop.eup %16573  ;;  %v10531_v15 = vsel %vm1462_vm2, %v16572_v42, 0.0  ;;  %v10514_v22 = vadd.f32 %v10513_v0, %v10512_v34 }
0x3832   : > { %v10517_v49 = vsel %vm1462_vm2, %v16574_v50, 0.0  ;;  %v10532_v37 = vrot.slane %v10531_v15, 4 }
0x3833   : > { %v10518_v51 = vrot.slane %v10517_v49, 4  ;;  %v10515_v55 = vrot.slane %v10514_v22, 1 }
0x3834   : > { %v10533_v5 = vadd.f32 %v10532_v37, %v10531_v15 }
0x3835   : > { %v10519_v29 = vadd.f32 %v10518_v51, %v10517_v49  ;;  %v10516_v27 = vadd.f32 %v10515_v55, %v10514_v22 }
0x3836   : > { %v10534_v12 = vrot.slane %v10533_v5, 2 }
0x3837   : > { %v10520_v48 = vrot.slane %v10519_v29, 2  ;;  %16577 = vrcp.f32 %v10516_v27 }
0x3838   : > { %v10535_v41 = vadd.f32 %v10534_v12, %v10533_v5 }
0x3839   : > { %v16576_v7 = vpop.eup %16575  ;;  %v10521_v13 = vadd.f32 %v10520_v48, %v10519_v29 }
0x383a   : > { %v10524_v45 = vsel %vm1462_vm2, %v16576_v7, 0.0  ;;  %v10536_v53 = vrot.slane %v10535_v41, 1 }
0x383b   : > { %v10525_v11 = vrot.slane %v10524_v45, 4  ;;  %v10522_v40 = vrot.slane %v10521_v13, 1 }
0x383c   : > { %v10537_v33 = vadd.f32 %v10536_v53, %v10535_v41 }
0x383d   : > { %v10526_v60 = vadd.f32 %v10525_v11, %v10524_v45  ;;  %v10523_v2 = vadd.f32 %v10522_v40, %v10521_v13 }
0x383e   : > { %16579 = vrcp.f32 %v10537_v33 }
0x383f   : > { %v10527_v52 = vrot.slane %v10526_v60, 2  ;;  %16581 = vrcp.f32 %v10523_v2  ;;  %v20799_v2 = vld [vmem:[#allocation63_spill] sm:$0xff] }
0x3841   : > { %v16578_v47 = vpop.eup %16577  ;;  %v10528_v61 = vadd.f32 %v10527_v52, %v10526_v60  ;;  %v20798_v60 = vld [vmem:[#allocation62_spill] sm:$0xff]  ;;  %v20800_v52 = vld [vmem:[#allocation64_spill] sm:$0xff] }
0x3842   : > { %v10539_v39 = vmul.f32 %v16578_v47, %v16570_v46 }
0x3843   : > { %v10529_v21 = vrot.slane %v10528_v61, 1 }
0x3844   : > { %v10546_v34 = vadd.f32 1e-08, %v10539_v39  ;;  %v20801_v39 = vld [vmem:[#allocation65_spill] sm:$0xff] }
0x3845   : > { %v10530_v6 = vadd.f32 %v10529_v21, %v10528_v61  ;;  %v20802_v21 = vld [vmem:[#allocation66_spill] sm:$0xff] }
0x3846   : > { %v10550_v0 = vsel %vm1462_vm2, %v10546_v34, 0.0 }
0x3847   : > { %10551 = vadd.xlane.f32.xlu0 %v10550_v0  ;;  %16583 = vrcp.f32 %v10530_v6 }
0x3848   : > { %v16580_v15 = vpop.eup %16579 }
0x3849   : > { %v16582_v22 = vpop.eup %16581  ;;  %v10545_v37 = vmul.f32 %v16580_v15, %v16572_v42  ;;  %v20804_v15 = vld [vmem:[#allocation68_spill] sm:$0xff] }
0x384a   : > { %v10541_v49 = vmul.f32 %v16582_v22, %v16574_v50  ;;  %v20805_v22 = vld [vmem:[#allocation69_spill] sm:$0xff] }
0x384b   : > { %v10549_v5 = vadd.f32 1e-08, %v10545_v37  ;;  %v20807_v37 = vld [vmem:[#allocation71_spill] sm:$0xff] }
0x384c   : > { %v10547_v51 = vadd.f32 1e-08, %v10541_v49  ;;  %v20806_v49 = vld [vmem:[#allocation70_spill] sm:$0xff] }
0x384d   : > { %v10559_v27 = vsel %vm1462_vm2, %v10549_v5, 0.0 }
0x384e   : > { %v10553_v55 = vsel %vm1462_vm2, %v10547_v51, 0.0 }
0x384f   : > { %10554 = vadd.xlane.f32.xlu1 %v10553_v55  ;;  %v20809_v55 = vld [vmem:[#allocation73_spill] sm:$0xff] }
0x3851   : > { %v16584_v29 = vpop.eup %16583 }
0x3852   : > { %v10543_v46 = vmul.f32 %v16584_v29, %v16576_v7  ;;  %v20811_v29 = vld [vmem:[#allocation75_spill] sm:$0xff] }
0x3853   : > { %10560 = vadd.xlane.f32.xlu1 %v10559_v27  ;;  %v20812_v27 = vld [vmem:[#allocation76_spill] sm:$0xff] }
0x3854   : > { %v10548_v12 = vadd.f32 1e-08, %v10543_v46  ;;  %v20813_v46 = vld [vmem:[#allocation77_spill] sm:$0xff] }
0x3856   : > { %v10556_v48 = vsel %vm1462_vm2, %v10548_v12, 0.0 }
0x3857   : > { %10557 = vadd.xlane.f32.xlu0 %v10556_v48  ;;  %v20815_v48 = vld [vmem:[#allocation84_spill] sm:$0xff] }
0x38d4   : > { %v10552_v41 = vpop.xlane.xlu0 %10551 }
0x38d5   : > { %16585 = vrcp.f32 %v10552_v41  ;;  %v20816_v41 = vld [vmem:[#allocation79_spill] sm:$0xff] }
0x38dc   : > { %v10555_v13 = vpop.xlane.xlu1 %10554 }
0x38dd   : > { %16587 = vrcp.f32 %v10555_v13  ;;  %v20817_v13 = vld [vmem:[#allocation85_spill] sm:$0xff] }
0x38df   : > { %v16586_v50 = vpop.eup %16585 }
0x38e0   : > { %v10563_v42 = vmul.f32 %v16586_v50, %v10546_v34  ;;  %v10561_v45 = vpop.xlane.xlu1 %10560  ;;  %v20803_v34 = vld [vmem:[#allocation67_spill] sm:$0xff]  ;;  %v20818_v50 = vld [vmem:[#allocation86_spill] sm:$0xff] }
0x38e1   : > { %16589 = vrcp.f32 %v10561_v45  ;;  %v20820_v45 = vld [vmem:[#allocation100_spill] sm:$0xff] }
0x38e2   : > { %13884 = vmatmul.mubr.msk.f32.vlgmr.msra.gmra.mrb[178].mxu1 %vm1462_vm2, %v10563_v42  ;;  %v20819_v42 = vld [vmem:[#allocation87_spill] sm:$0xff] }
0x38e3   : > { %15552 = vmatpush3.bf16.msra.mxu1 %v17766_v23  ;;  %13890 = vmatprep.mubr.msk.f32.mxu1 %vm17038_vm0, %v20339_v59 }
0x38e4   : > { %v10558_v7 = vpop.xlane.xlu0 %10557  ;;  %15556 = vmatprep.subr.bf16.mxu1 %v20397_v57 }
0x38e5   : > { %16591 = vrcp.f32 %v10558_v7  ;;  %v20821_v7 = vld [vmem:[#allocation88_spill] sm:$0xff] }
0x38e7   : > { %v16588_v53 = vpop.eup %16587 }
0x38e8   : > { %v10565_v11 = vmul.f32 %v16588_v53, %v10547_v51  ;;  %v20808_v51 = vld [vmem:[#allocation72_spill] sm:$0xff]  ;;  %v20822_v53 = vld [vmem:[#allocation89_spill] sm:$0xff] }
0x38ea   : > { %13891 = vmatmul.mubr.msk.f32.vlgmr.msra.gmra.mrb[180].mxu1 %vm1462_vm2, %v10565_v11  ;;  %v20823_v11 = vld [vmem:[#allocation101_spill] sm:$0xff] }
0x38eb   : > { %v16590_v40 = vpop.eup %16589  ;;  %15558 = vmatpush3.bf16.msra.mxu1 %v17784_v58  ;;  %13904 = vmatprep.mubr.msk.f32.mxu1 %vm17038_vm0, %v20339_v59  ;;  %v20785_v58 = vld [vmem:[#allocation55_spill] sm:$0xff] }
0x38ec   : > { %v10569_v33 = vmul.f32 %v16590_v40, %v10549_v5  ;;  %15592 = vmatprep.subr.bf16.mxu1 %v17823_v62  ;;  %v20810_v5 = vld [vmem:[#allocation74_spill] sm:$0xff] }
0x38ed   : > { %v20824_v40 = vld [vmem:[#allocation90_spill] sm:$0xff] }
0x38ee   : > { %13905 = vmatmul.mubr.msk.f32.vlgmr.msra.gmra.mrb[182].mxu1 %vm1462_vm2, %v10569_v33  ;;  %v20825_v33 = vld [vmem:[#allocation102_spill] sm:$0xff] }
0x38ef   : > { %v16592_v23 = vpop.eup %16591  ;;  %15594 = vmatpush3.bf16.msra.mxu1 %v17823_v62  ;;  %v20786_v62 = vld [vmem:[#allocation47_spill] sm:$0xff] }
0x38f0   : > { %v10567_v57 = vmul.f32 %v16592_v23, %v10548_v12  ;;  %15596 = vmatprep.subr.bf16.mxu1 %v17848_v63  ;;  %v20814_v12 = vld [vmem:[#allocation78_spill] sm:$0xff]  ;;  %v20826_v23 = vld [vmem:[#allocation91_spill] sm:$0xff] }
0x38f2   : > { %13898 = vmatmul.mubr.msk.f32.vlgmr.msra.gmra.mrb[162].mxu0 %vm1462_vm2, %v10567_v57  ;;  %v20827_v57 = vld [vmem:[#allocation103_spill] sm:$0xff] }
0x38f3   : > { %15562 = vmatpush1.bf16.msra.mxu0 %v17830_v44  ;;  %15598 = vmatpush3.bf16.msra.mxu1 %v17848_v63  ;;  %v20787_v44 = vld [vmem:[#allocation48_spill] sm:$0xff]  ;;  %v20791_v63 = vld [vmem:[#allocation57_spill] sm:$0xff] }
0x38f4   : > { %15564 = vmatprep.subr.bf16.mxu0 %v17832_v28  ;;  %15600 = vmatprep.subr.bf16.mxu1 %v17859_v31  ;;  %v20788_v28 = vld [vmem:[#allocation56_spill] sm:$0xff] }
0x38f5   : > { %10926 = vmatprep.mubr.f32.mxu0 %v20339_v59 }
0x38f7   : > { %15566 = vmatpush1.bf16.msra.mxu0 %v17836_v19  ;;  %15602 = vmatpush3.bf16.msra.mxu1 %v17859_v31  ;;  %v20789_v19 = vld [vmem:[#allocation50_spill] sm:$0xff]  ;;  %v20792_v31 = vld [vmem:[#allocation53_spill] sm:$0xff] }
0x38f8   : > { %15568 = vmatprep.subr.bf16.mxu0 %v17840_v56  ;;  %15604 = vmatprep.subr.bf16.mxu1 %v20400_v9  ;;  %v20790_v56 = vld [vmem:[#allocation51_spill] sm:$0xff] }
0x38fb   : > { %15570 = vmatpush1.bf16.msra.mxu0 %v20401_v18  ;;  %15606 = vmatpush3.bf16.msra.mxu1 %v20400_v9  ;;  %v20793_v9 = vld [vmem:[#allocation54_spill] sm:$0xff] }
0x38fc   : > { %15572 = vmatprep.subr.bf16.mxu0 %v20402_v8  ;;  %15608 = vmatprep.subr.bf16.mxu1 %v20403_v3 }
0x38ff   : > { %15574 = vmatpush1.bf16.msra.mxu0 %v20404_v14  ;;  %15610 = vmatpush3.bf16.msra.mxu1 %v20403_v3  ;;  %v20794_v3 = vld [vmem:[#allocation58_spill] sm:$0xff]  ;;  %v20795_v14 = vld [vmem:[#allocation59_spill] sm:$0xff] }
0x3900   : > { %15576 = vmatprep.subr.bf16.mxu0 %v20405_v10  ;;  %15612 = vmatprep.subr.bf16.mxu1 %v20554_v17  ;;  %v20796_v10 = vld [vmem:[#allocation60_spill] sm:$0xff] }
0x3903   : > { %15578 = vmatpush1.bf16.msra.mxu0 %v20631_v1  ;;  %15614 = vmatpush3.bf16.msra.mxu1 %v20554_v17  ;;  %v20797_v17 = vld [vmem:[#allocation61_spill] sm:$0xff] }
0x3904   : > { %15580 = vmatprep.subr.bf16.mxu0 %v20708_v38  ;;  %15616 = vmatprep.subr.bf16.mxu1 %v20785_v58 }
0x3907   : > { %15582 = vmatpush1.bf16.msra.mxu0 %v20786_v62  ;;  %15618 = vmatpush3.bf16.msra.mxu1 %v20785_v58  ;;  %v20828_v58 = vld [vmem:[#allocation92_spill] sm:$0xff] }
0x3908   : > { %15584 = vmatprep.subr.bf16.mxu0 %v20787_v44  ;;  %15620 = vmatprep.subr.bf16.mxu1 %v20788_v28  ;;  %v20829_v62 = vld [vmem:[#allocation104_spill] sm:$0xff]  ;;  %v20830_v44 = vld [vmem:[#allocation93_spill] sm:$0xff] }
0x390b   : > { %15586 = vmatpush1.bf16.msra.mxu0 %v20789_v19  ;;  %15622 = vmatpush3.bf16.msra.mxu1 %v20788_v28  ;;  %v20831_v28 = vld [vmem:[#allocation105_spill] sm:$0xff]  ;;  %v20832_v19 = vld [vmem:[#allocation94_spill] sm:$0xff] }
0x390c   : > { %15588 = vmatprep.subr.bf16.mxu0 %v20790_v56  ;;  %15656 = vmatprep.subr.bf16.mxu1 %v20791_v63  ;;  %v20833_v56 = vld [vmem:[#allocation106_spill] sm:$0xff] }
0x390f   : > { %15590 = vmatpush1.bf16.msra.mxu0 %v20792_v31  ;;  %v20835_v31 = vld [vmem:[#allocation107_spill] sm:$0xff] }
0x3910   : > { %15624 = vmatprep.subr.bf16.mxu0 %v20793_v9  ;;  %v20836_v9 = vld [vmem:[#allocation96_spill] sm:$0xff] }
0x39b5   : > { %v10639_v18 = vpop.f32.mrb[178].mxu1 }
0x39b6   : > { %v13885_v8 = vpop.f32.mrb[179].mxu1  ;;  %10927 = vmatmul.mubr.f32.vlgmr.msra.gmra.mrb[164].mxu0 %v10639_v18  ;;  %13939 = vmatprep.mubr.f32.mxu1 %v10639_v18  ;;  %v20837_v18 = vld [vmem:[#allocation108_spill] sm:$0xff] }
0x39b7   : > { %15626 = vmatpush1.bf16.msra.mxu0 %v20794_v3  ;;  %10932 = vmatprep.mubr.f32.mxu0 %v20339_v59  ;;  %v20838_v8 = vld [vmem:[#allocation97_spill] sm:$0xff] }
0x39b8   : > { %15628 = vmatprep.subr.bf16.mxu0 %v20795_v14  ;;  %v20839_v3 = vld [vmem:[#allocation109_spill] sm:$0xff]  ;;  %v20840_v14 = vld [vmem:[#allocation98_spill] sm:$0xff] }
0x39bb   : > { %15630 = vmatpush1.bf16.msra.mxu0 %v20796_v10  ;;  %v20841_v10 = vld [vmem:[#allocation110_spill] sm:$0xff] }
0x39bc   : > { %15632 = vmatprep.subr.bf16.mxu0 %v20797_v17  ;;  %v20842_v17 = vld [vmem:[#allocation99_spill] sm:$0xff] }
0x39bd   : > { %v10712_v1 = vpop.f32.mrb[180].mxu1 }
0x39be   : > { %v13892_v38 = vpop.f32.mrb[181].mxu1  ;;  %10933 = vmatmul.mubr.f32.gmra.mrb[166].mxu0 %v10712_v1  ;;  %13940 = vmatmul.mubr.f32.vlgmr.msra.gmra.mrb[184].mxu1 %v10712_v1  ;;  %v20843_v1 = vld [vmem:[#allocation111_spill] sm:$0xff] }
0x39bf   : > { %15658 = vmatpush3.bf16.msra.mxu1 %v20791_v63  ;;  %15634 = vmatpush1.bf16.msra.mxu0 %v20798_v60  ;;  %v20834_v63 = vld [vmem:[#allocation95_spill] sm:$0xff]  ;;  %v20844_v38 = vld [vmem:[#allocation112_spill] sm:$0xff]  ;;  %v20845_v60 = vld [vmem:[#allocation113_spill] sm:$0xff] }
0x39c0   : > { %15660 = vmatprep.subr.bf16.mxu1 %v20799_v2  ;;  %15636 = vmatprep.subr.bf16.mxu0 %v20800_v52  ;;  %v20847_v52 = vld [vmem:[#allocation115_spill] sm:$0xff] }
0x39c1   : > { %v10858_v47 = vpop.f32.mrb[182].mxu1  ;;  %10938 = vmatprep.mubr.f32.mxu0 %v20339_v59 }
0x39c2   : > { %v13906_v61 = vpop.f32.mrb[183].mxu1 }
0x39c3   : > { %15662 = vmatpush3.bf16.msra.mxu1 %v20799_v2  ;;  %15638 = vmatpush1.bf16.msra.mxu0 %v20801_v39  ;;  %v20846_v2 = vld [vmem:[#allocation114_spill] sm:$0xff] }
0x39c4   : > { %15664 = vmatprep.subr.bf16.mxu1 %v20802_v21  ;;  %15640 = vmatprep.subr.bf16.mxu0 %v20803_v34 }
0x39c5   : > { %v10785_v6 = vpop.f32.mrb[162].mxu0 }
0x39c6   : > { %v13899_v0 = vpop.f32.mrb[163].mxu0  ;;  %10939 = vmatmul.mubr.f32.gmra.mrb[168].mxu0 %v10785_v6  ;;  %13942 = vmatprep.mubr.f32.mxu1 %v10785_v6  ;;  %v20848_v6 = vld [vmem:[#allocation80_spill] sm:$0xff] }
0x39c7   : > { %15666 = vmatpush3.bf16.msra.mxu1 %v20802_v21  ;;  %15642 = vmatpush1.bf16.msra.mxu0 %v20804_v15 }
0x39c8   : > { %13943 = vmatmul.mubr.f32.gmra.mrb[186].mxu1 %v10858_v47  ;;  %10944 = vmatprep.mubr.f32.mxu0 %v20339_v59 }
0x39c9   : > { %13977 = vmatprep.mubr.f32.mxu1 %v19661_v43  ;;  %15668 = vmatprep.subr.bf16.mxu1 %v20805_v22 }
0x39ca   : > { %10945 = vmatmul.mubr.f32.gmra.mrb[170].mxu0 %v10858_v47  ;;  %15644 = vmatprep.subr.bf16.mxu0 %v20806_v49 }
0x39cb   : > { %15670 = vmatpush3.bf16.msra.mxu1 %v20805_v22  ;;  %15646 = vmatpush1.bf16.msra.mxu0 %v20807_v37 }
0x39cc   : > { %15672 = vmatprep.subr.bf16.mxu1 %v20808_v51  ;;  %15648 = vmatprep.subr.bf16.mxu0 %v20809_v55 }
0x39cd   : > { %11100 = vmatprep.mubr.f32.mxu0 %v20339_v59 }
0x39cf   : > { %15674 = vmatpush3.bf16.msra.mxu1 %v20808_v51  ;;  %15650 = vmatpush1.bf16.msra.mxu0 %v20810_v5 }
0x39d0   : > { %15676 = vmatprep.subr.bf16.mxu1 %v20811_v29  ;;  %15652 = vmatprep.subr.bf16.mxu0 %v20812_v27 }
0x39d3   : > { %15678 = vmatpush3.bf16.msra.mxu1 %v20811_v29  ;;  %15654 = vmatpush1.bf16.msra.mxu0 %v20813_v46 }
0x39d4   : > { %15680 = vmatprep.subr.bf16.mxu1 %v20814_v12  ;;  %15688 = vmatprep.subr.bf16.mxu0 %v20815_v48 }
0x39d6   : > { %11101 = vmatmul.mubr.f32.vlgmr.msra.gmra.mrb[164].mxu0 %v19661_v43 }
0x39d7   : > { %15682 = vmatpush3.bf16.msra.mxu1 %v20814_v12  ;;  %11106 = vmatprep.mubr.f32.mxu0 %v20339_v59 }
0x39d8   : > { %15684 = vmatprep.subr.bf16.mxu1 %v20816_v41  ;;  %15690 = vmatpush1.bf16.msra.mxu0 %v20817_v13 }
0x39d9   : > { %15692 = vmatprep.subr.bf16.mxu0 %v20818_v50 }
0x39da   : > { %11107 = vmatmul.mubr.f32.gmra.mrb[166].mxu0 %v19666_v25 }
0x39db   : > { %15686 = vmatpush3.bf16.msra.mxu1 %v20816_v41  ;;  %11112 = vmatprep.mubr.f32.mxu0 %v20339_v59 }
0x39dc   : > { %15694 = vmatpush1.bf16.msra.mxu0 %v20819_v42  ;;  %15720 = vmatprep.subr.bf16.mxu1 %v20820_v45 }
0x39dd   : > { %15696 = vmatprep.subr.bf16.mxu0 %v20821_v7 }
0x39de   : > { %13978 = vmatmul.mubr.f32.vlgmr.msra.gmra.mrb[188].mxu1 %v19666_v25  ;;  %11113 = vmatmul.mubr.f32.gmra.mrb[168].mxu0 %v19671_v4 }
0x39df   : > { %13980 = vmatprep.mubr.f32.mxu1 %v19671_v4  ;;  %11118 = vmatprep.mubr.f32.mxu0 %v20339_v59 }
0x39e0   : > { %15698 = vmatpush1.bf16.msra.mxu0 %v20822_v53  ;;  %15722 = vmatpush3.bf16.msra.mxu1 %v20823_v11 }
0x39e1   : > { %15700 = vmatprep.subr.bf16.mxu0 %v20824_v40  ;;  %15724 = vmatprep.subr.bf16.mxu1 %v20825_v33 }
0x39e2   : > { %13981 = vmatmul.mubr.f32.gmra.mrb[190].mxu1 %v19676_v16  ;;  %11119 = vmatmul.mubr.f32.gmra.mrb[170].mxu0 %v19676_v16 }
0x39e3   : > { %11410 = vmatprep.mubr.f32.mxu0 %v20339_v59 }
0x39e4   : > { %15702 = vmatpush1.bf16.msra.mxu0 %v20826_v23  ;;  %15726 = vmatpush3.bf16.msra.mxu1 %v20827_v57 }
0x39e5   : > { %15704 = vmatprep.subr.bf16.mxu0 %v20828_v58  ;;  %15728 = vmatprep.subr.bf16.mxu1 %v20829_v62 }
0x39e8   : > { %15706 = vmatpush1.bf16.msra.mxu0 %v20830_v44  ;;  %15730 = vmatpush3.bf16.msra.mxu1 %v20831_v28 }
0x39e9   : > { %15708 = vmatprep.subr.bf16.mxu0 %v20832_v19  ;;  %15732 = vmatprep.subr.bf16.mxu1 %v20833_v56 }
0x39ec   : > { %15710 = vmatpush1.bf16.msra.mxu0 %v20834_v63  ;;  %15734 = vmatpush3.bf16.msra.mxu1 %v20835_v31 }
0x39ed   : > { %15712 = vmatprep.subr.bf16.mxu0 %v20836_v9  ;;  %15736 = vmatprep.subr.bf16.mxu1 %v20837_v18 }
0x39f0   : > { %15714 = vmatpush1.bf16.msra.mxu0 %v20838_v8  ;;  %15738 = vmatpush3.bf16.msra.mxu1 %v20839_v3 }
0x39f1   : > { %15716 = vmatprep.subr.bf16.mxu0 %v20840_v14  ;;  %15740 = vmatprep.subr.bf16.mxu1 %v20841_v10 }
0x39f4   : > { %15718 = vmatpush1.bf16.msra.mxu0 %v20842_v17  ;;  %15742 = vmatpush3.bf16.msra.mxu1 %v20843_v1 }
0x39f5   : > { %15744 = vmatprep.subr.bf16.mxu1 %v20844_v38 }
0x39f8   : > { %15746 = vmatpush3.bf16.msra.mxu1 %v20845_v60 }
0x39f9   : > { %15748 = vmatprep.subr.bf16.mxu1 %v20846_v2 }
0x39fc   : > { %15750 = vmatpush3.bf16.msra.mxu1 %v20847_v52 }
0x3a91   : > { %v19854_v47 = vpop.f32.mrb[184].mxu1 }
0x3a92   : > { %v11017_v61 = vpop.f32.mrb[185].mxu1 }
0x3a93   : > { %v11018_v38 = vadd.f32 %v11017_v61, %v20468_v20 }
0x3a9b   : > { %v19856_v39 = vpop.f32.mrb[186].mxu1 }
0x3a9c   : > { %v19858_v21 = vpop.f32.mrb[187].mxu1 }
0x3aa9   : > { %v11102_v34 = vpop.f32.mrb[164].mxu0 }
0x3aaa   : > { %v15848_v0 = vadd.f32 %v20848_v6, %v11102_v34  ;;  %v11104_v15 = vpop.f32.mrb[165].mxu0 }
0x3aab   : > { %v15850_v49 = vadd.f32 %v20544_v26, %v11104_v15  ;;  %v11023_v15 = vadd.f32 %v19854_v47, %v20468_v20  ;;  %v11033_v47 = vadd.f32 %v19856_v39, %v20468_v20 }
0x3aac   : > { %v11880_v22 = vmul.f32 -1.442695, %v15848_v0 }
0x3aad   : > { %v11108_v37 = vpop.f32.mrb[166].mxu0  ;;  %v11884_v27 = vmul.f32 -1.442695, %v15850_v49 }
0x3aae   : > { %16593 = vpow2.f32 %v11880_v22  ;;  %v15852_v51 = vadd.f32 %v20848_v6, %v11108_v37  ;;  %v11110_v55 = vpop.f32.mrb[167].mxu0 }
0x3aaf   : > { %v15854_v29 = vadd.f32 %v20544_v26, %v11110_v55  ;;  %v11028_v55 = vadd.f32 %v19858_v21, %v20468_v20 }
0x3ab0   : > { %v11881_v5 = vmul.f32 -1.442695, %v15852_v51 }
0x3ab1   : > { %v13979_v46 = vpop.f32.mrb[188].mxu1  ;;  %v11114_v12 = vpop.f32.mrb[168].mxu0  ;;  %v11885_v50 = vmul.f32 -1.442695, %v15854_v29 }
0x3ab2   : > { %16595 = vpow2.f32 %v11881_v5  ;;  %v15856_v48 = vadd.f32 %v20848_v6, %v11114_v12  ;;  %v11191_v41 = vpop.f32.mrb[189].mxu1  ;;  %v11116_v13 = vpop.f32.mrb[169].mxu0  ;;  %v11197_v2 = vadd.f32 %v13979_v46, %v20467_v32 }
0x3ab3   : > { %v15858_v45 = vadd.f32 %v20544_v26, %v11116_v13  ;;  %16597 = vpow2.f32 %v11884_v27  ;;  %v11192_v14 = vadd.f32 %v11191_v41, %v20467_v32 }
0x3ab4   : > { %v11882_v42 = vmul.f32 -1.442695, %v15856_v48 }
0x3ab5   : > { %v13982_v7 = vpop.f32.mrb[190].mxu1  ;;  %v11120_v53 = vpop.f32.mrb[170].mxu0  ;;  %v11886_v57 = vmul.f32 -1.442695, %v15858_v45 }
0x3ab6   : > { %16599 = vpow2.f32 %v11882_v42  ;;  %v15860_v11 = vadd.f32 %v20848_v6, %v11120_v53  ;;  %v11201_v40 = vpop.f32.mrb[191].mxu1  ;;  %v11122_v33 = vpop.f32.mrb[171].mxu0  ;;  %v11207_v27 = vadd.f32 %v13982_v7, %v20467_v32 }
0x3ab7   : > { %16601 = vpow2.f32 %v11885_v50  ;;  %v15862_v62 = vadd.f32 %v20544_v26, %v11122_v33  ;;  %v11202_v37 = vadd.f32 %v11201_v40, %v20467_v32 }
0x3ab8   : > { %v16594_v23 = vpop.eup %16593  ;;  %v11883_v58 = vmul.f32 -1.442695, %v15860_v11 }
0x3ab9   : > { %v11226_v44 = vadd.f32 1.0, %v16594_v23  ;;  %v11887_v19 = vmul.f32 -1.442695, %v15862_v62 }
0x3aba   : > { %16603 = vpow2.f32 %v11883_v58 }
0x3abb   : > { %16605 = vrcp.f32 %v11226_v44 }
0x3abc   : > { %v16596_v28 = vpop.eup %16595  ;;  %16607 = vpow2.f32 %v11886_v57 }
0x3abd   : > { %v11227_v56 = vadd.f32 1.0, %v16596_v28  ;;  %v16598_v63 = vpop.eup %16597 }
0x3abe   : > { %v11254_v8 = vadd.f32 1.0, %v16598_v63 }
0x3abf   : > { %16609 = vrcp.f32 %v11227_v56 }
0x3ac0   : > { %v16600_v31 = vpop.eup %16599  ;;  %16611 = vpow2.f32 %v11887_v19 }
0x3ac1   : > { %v11228_v9 = vadd.f32 1.0, %v16600_v31  ;;  %v16602_v18 = vpop.eup %16601 }
0x3ac2   : > { %v11255_v26 = vadd.f32 1.0, %v16602_v18 }
0x3ac3   : > { %16613 = vrcp.f32 %v11228_v9 }
0x3ac4   : > { %v16604_v3 = vpop.eup %16603  ;;  %16615 = vrcp.f32 %v11254_v8 }
0x3ac5   : > { %v16606_v10 = vpop.eup %16605  ;;  %v11229_v17 = vadd.f32 1.0, %v16604_v3 }
0x3ac6   : > { %v16608_v1 = vpop.eup %16607  ;;  %v11266_v60 = vmul.f32 %v16606_v10, %v11192_v14 }
0x3ac7   : > { %16617 = vrcp.f32 %v11229_v17  ;;  %v11256_v6 = vadd.f32 1.0, %v16608_v1 }
0x3ac8   : > { %v11270_v52 = vadd.f32 %v11266_v60, %v11018_v38  ;;  %16619 = vrcp.f32 %v11255_v26 }
0x3ac9   : > { %v16610_v34 = vpop.eup %16609 }
0x3aca   : > { %v16612_v0 = vpop.eup %16611  ;;  %v11267_v22 = vmul.f32 %v16610_v34, %v11197_v2  ;;  %16621 = vtanh.f32 %v11270_v52 }
0x3acb   : > { %16623 = vrcp.f32 %v11256_v6  ;;  %v11257_v61 = vadd.f32 1.0, %v16612_v0 }
0x3acc   : > { %v11271_v49 = vadd.f32 %v11267_v22, %v11023_v15 }
0x3acd   : > { %v16614_v51 = vpop.eup %16613 }
0x3ace   : > { %16625 = vtanh.f32 %v11271_v49  ;;  %v11268_v5 = vmul.f32 %v16614_v51, %v11202_v37  ;;  %v16616_v29 = vpop.eup %16615 }
0x3acf   : > { %16627 = vrcp.f32 %v11257_v61  ;;  %v11278_v13 = vsub.f32 1.0, %v16616_v29  ;;  %v11286_v21 = vmul.f32 %v16616_v29, %v19661_v43 }
0x3ad0   : > { %v11272_v46 = vadd.f32 %v11268_v5, %v11028_v55 }
0x3ad1   : > { %v16618_v12 = vpop.eup %16617 }
0x3ad2   : > { %v11269_v48 = vmul.f32 %v16618_v12, %v11207_v27  ;;  %16629 = vtanh.f32 %v11272_v46  ;;  %v16620_v41 = vpop.eup %16619 }
0x3ad3   : > { %v11279_v32 = vsub.f32 1.0, %v16620_v41  ;;  %v11287_v20 = vmul.f32 %v16620_v41, %v19666_v25 }
0x3ad4   : > { %v16622_v50 = vpop.eup %16621  ;;  %v11273_v42 = vadd.f32 %v11269_v48, %v11033_v47 }
0x3ad5   : > { %v11282_v45 = vmul.f32 %v16622_v50, %v11278_v13  ;;  %v16624_v53 = vpop.eup %16623 }
0x3ad6   : > { %16631 = vtanh.f32 %v11273_v42  ;;  %v11280_v23 = vsub.f32 1.0, %v16624_v53  ;;  %v11288_v43 = vmul.f32 %v16624_v53, %v19671_v4 }
0x3ad7   : > { %v19880_v11 = vadd.f32 %v11286_v21, %v11282_v45 }
0x3ad8   : > { %v16626_v7 = vpop.eup %16625 }
0x3ad9   : > { %11294 = vadd.xlane.f32.xlu0 %v19880_v11  ;;  %v11283_v40 = vmul.f32 %v16626_v7, %v11279_v32  ;;  %v16628_v39 = vpop.eup %16627 }
0x3ada   : > { %v11281_v44 = vsub.f32 1.0, %v16628_v39  ;;  %v11289_v56 = vmul.f32 %v16628_v39, %v19676_v16 }
0x3adb   : > { %v19884_v33 = vadd.f32 %v11287_v20, %v11283_v40 }
0x3adc   : > { %v16630_v57 = vpop.eup %16629 }
0x3add   : > { %11296 = vadd.xlane.f32.xlu1 %v19884_v33  ;;  %v11284_v58 = vmul.f32 %v16630_v57, %v11280_v23 }
0x3adf   : > { %v19888_v62 = vadd.f32 %v11288_v43, %v11284_v58 }
0x3ae0   : > { %v16632_v28 = vpop.eup %16631 }
0x3ae1   : > { %11298 = vadd.xlane.f32.xlu0 %v19888_v62  ;;  %v11285_v19 = vmul.f32 %v16632_v28, %v11281_v44 }
0x3ae3   : > { %v19892_v25 = vadd.f32 %v11289_v56, %v11285_v19 }
0x3ae5   : > { %11300 = vadd.xlane.f32.xlu1 %v19892_v25 }
0x3b66   : > { %v11295_v63 = vpop.xlane.xlu0 %11294 }
0x3b67   : > { %v11302_v31 = vmul.f32 0.0078125, %v11295_v63 }
0x3b69   : > { %v11306_v9 = vsub.f32 %v19880_v11, %v11302_v31 }
0x3b6a   : > { %v11297_v18 = vpop.xlane.xlu1 %11296 }
0x3b6b   : > { %v11303_v8 = vmul.f32 0.0078125, %v11297_v18  ;;  %v11310_v4 = vmul.f32 %v11306_v9, %v11306_v9 }
0x3b6d   : > { %v11307_v3 = vsub.f32 %v19884_v33, %v11303_v8  ;;  %11314 = vadd.xlane.f32.xlu0 %v11310_v4 }
0x3b6e   : > { %v11299_v14 = vpop.xlane.xlu0 %11298 }
0x3b6f   : > { %v11304_v10 = vmul.f32 0.0078125, %v11299_v14  ;;  %v11311_v26 = vmul.f32 %v11307_v3, %v11307_v3 }
0x3b71   : > { %v11308_v17 = vsub.f32 %v19888_v62, %v11304_v10  ;;  %11316 = vadd.xlane.f32.xlu1 %v11311_v26 }
0x3b72   : > { %v11301_v16 = vpop.xlane.xlu1 %11300 }
0x3b73   : > { %v11305_v1 = vmul.f32 0.0078125, %v11301_v16  ;;  %v11312_v38 = vmul.f32 %v11308_v17, %v11308_v17  ;;  %v16643_v16 = vld [vmem:[#allocation16 + $0x8] sm:$0xf] }
0x3b75   : > { %v11309_v60 = vsub.f32 %v19892_v25, %v11305_v1  ;;  %11318 = vadd.xlane.f32.xlu0 %v11312_v38  ;;  %v11549_v1 = vrot.slane %v16643_v16, 3 }
0x3b77   : > { %v11313_v2 = vmul.f32 %v11309_v60, %v11309_v60  ;;  %15919 = vpush %v11549_v1 }
0x3b79   : > { %11320 = vadd.xlane.f32.xlu1 %v11313_v2 }
0x3ba8   : > { %s15920_s28 = spop %15919 }
0x3bfa   : > { %v11315_v52 = vpop.xlane.xlu0 %11314 }
0x3bfb   : > { %v11322_v34 = vmul.f32 0.0078125, %v11315_v52 }
0x3bfd   : > { %v11326_v6 = vadd.f32 1e-05, %v11322_v34 }
0x3bfe   : > { %v11317_v0 = vpop.xlane.xlu1 %11316 }
0x3bff   : > { %16633 = vrsqrt.f32 %v11326_v6  ;;  %v11323_v15 = vmul.f32 0.0078125, %v11317_v0  ;;  %v20849_v6 = vld [vmem:[#allocation29_spill] sm:$0xff] }
0x3c01   : > { %v11327_v22 = vadd.f32 1e-05, %v11323_v15 }
0x3c02   : > { %v11319_v49 = vpop.xlane.xlu0 %11318 }
0x3c03   : > { %16635 = vrsqrt.f32 %v11327_v22  ;;  %v11324_v37 = vmul.f32 0.0078125, %v11319_v49 }
0x3c05   : > { %v11328_v51 = vadd.f32 1e-05, %v11324_v37 }
0x3c06   : > { %v11321_v61 = vpop.xlane.xlu1 %11320 }
0x3c07   : > { %16637 = vrsqrt.f32 %v11328_v51  ;;  %v11325_v55 = vmul.f32 0.0078125, %v11321_v61 }
0x3c09   : > { %v16634_v5 = vpop.eup %16633  ;;  %v11329_v29 = vadd.f32 1e-05, %v11325_v55 }
0x3c0a   : > { %v11334_v27 = vmul.f32 %v16634_v5, %v11306_v9 }
0x3c0b   : > { %16639 = vrsqrt.f32 %v11329_v29 }
0x3c0c   : > { %v11338_v46 = vmul.f32 %v11334_v27, %v18194_v24 }
0x3c0d   : > { %v16636_v12 = vpop.eup %16635 }
0x3c0e   : > { %v11342_v47 = vadd.f32 %v11338_v46, %v18198_v54  ;;  %v11335_v48 = vmul.f32 %v16636_v12, %v11307_v3 }
0x3c10   : > { %11411 = vmatmul.mubr.f32.vlgmr.msra.gmra.mrb[172].mxu0 %v11342_v47  ;;  %v11339_v41 = vmul.f32 %v11335_v48, %v18194_v24 }
0x3c11   : > { %v16638_v13 = vpop.eup %16637  ;;  %11416 = vmatprep.mubr.f32.mxu0 %v20339_v59 }
0x3c12   : > { %v11343_v50 = vadd.f32 %v11339_v41, %v18198_v54  ;;  %v11336_v42 = vmul.f32 %v16638_v13, %v11308_v17 }
0x3c14   : > { %11417 = vmatmul.mubr.f32.gmra.mrb[174].mxu0 %v11343_v50  ;;  %v11340_v45 = vmul.f32 %v11336_v42, %v18194_v24  ;;  %v11551_v42 = vstv %s15920_s28 }
0x3c15   : > { %v16640_v21 = vpop.eup %16639  ;;  %11422 = vmatprep.mubr.f32.mxu0 %v20339_v59 }
0x3c16   : > { %v11344_v53 = vadd.f32 %v11340_v45, %v18198_v54  ;;  %v11337_v32 = vmul.f32 %v16640_v21, %v11309_v60  ;;  %v20851_v45 = vld [vmem:[#allocation28_spill] sm:$0xff] }
0x3c18   : > { %11423 = vmatmul.mubr.f32.gmra.mrb[176].mxu0 %v11344_v53  ;;  %v11341_v7 = vmul.f32 %v11337_v32, %v18194_v24 }
0x3c19   : > { %11428 = vmatprep.mubr.f32.mxu0 %v20339_v59 }
0x3c1a   : > { %v11345_v40 = vadd.f32 %v11341_v7, %v18198_v54 }
0x3c1c   : > { %11429 = vmatmul.mubr.f32.gmra.mrb[178].mxu0 %v11345_v40 }
0x3ce3   : > { %v11412_v20 = vpop.f32.mrb[172].mxu0 }
0x3ce4   : > { %v11413_v39 = vadd.f32 %v11412_v20, %v18233_v35  ;;  %v11414_v23 = vpop.f32.mrb[173].mxu0 }
0x3ce5   : > { %v11415_v57 = vadd.f32 %v11414_v23, %v20773_v30 }
0x3ce6   : > { %v11435_v44 = vmax.f32 %v11413_v39, 0.0 }
0x3ce7   : > { %v11436_v58 = vmax.f32 %v11415_v57, 0.0  ;;  %v11418_v43 = vpop.f32.mrb[174].mxu0 }
0x3ce8   : > { %v11419_v28 = vadd.f32 %v11418_v43, %v18233_v35  ;;  %v11420_v19 = vpop.f32.mrb[175].mxu0 }
0x3ce9   : > { %v11421_v56 = vadd.f32 %v11420_v19, %v20773_v30  ;;  %11507 = vmatprep.mubr.f32.mxu1 %v11436_v58 }
0x3cea   : > { %11508 = vmatmul.mubr.f32.vlgmr.msra.gmra.mrb[192].mxu1 %v11435_v44  ;;  %v11437_v54 = vmax.f32 %v11419_v28, 0.0 }
0x3ceb   : > { %v11438_v59 = vmax.f32 %v11421_v56, 0.0  ;;  %v11424_v24 = vpop.f32.mrb[176].mxu0 }
0x3cec   : > { %v11425_v63 = vadd.f32 %v11424_v24, %v18233_v35  ;;  %v11426_v31 = vpop.f32.mrb[177].mxu0 }
0x3ced   : > { %v11427_v9 = vadd.f32 %v11426_v31, %v20773_v30  ;;  %11512 = vmatprep.mubr.f32.mxu1 %v11438_v59 }
0x3cee   : > { %11513 = vmatmul.mubr.f32.gmra.mrb[194].mxu1 %v11437_v54  ;;  %v11439_v4 = vmax.f32 %v11425_v63, 0.0 }
0x3cef   : > { %v11440_v18 = vmax.f32 %v11427_v9, 0.0  ;;  %v11430_v8 = vpop.f32.mrb[178].mxu0 }
0x3cf0   : > { %v11431_v3 = vadd.f32 %v11430_v8, %v18233_v35  ;;  %v11432_v14 = vpop.f32.mrb[179].mxu0  ;;  %v11535_v35 = vrot.slane %v16643_v16, %v20849_v6 }
0x3cf1   : > { %v11433_v10 = vadd.f32 %v11432_v14, %v20773_v30  ;;  %11517 = vmatprep.mubr.f32.mxu1 %v11440_v18 }
0x3cf2   : > { %11518 = vmatmul.mubr.f32.gmra.mrb[196].mxu1 %v11439_v4  ;;  %v11441_v17 = vmax.f32 %v11431_v3, 0.0 }
0x3cf3   : > { %v11442_v26 = vmax.f32 %v11433_v10, 0.0 }
0x3cf5   : > { %11522 = vmatprep.mubr.f32.mxu1 %v11442_v26 }
0x3cf6   : > { %11523 = vmatmul.mubr.f32.gmra.mrb[198].mxu1 %v11441_v17 }
0x3dbd   : > { %v12781_v38 = vpop.f32.mrb[192].mxu1 }
0x3dbe   : > { %v12782_v60 = vpop.f32.mrb[193].mxu1 }
0x3dbf   : > { %v12783_v2 = vadd.f32 %v12782_v60, %v12781_v38 }
0x3dc1   : > { %v11510_v52 = vadd.f32 %v12783_v2, %v20775_v36  ;;  %v12784_v34 = vpop.f32.mrb[194].mxu1 }
0x3dc2   : > { %v12785_v0 = vpop.f32.mrb[195].mxu1 }
0x3dc3   : > { %v11528_v30 = vadd.f32 %v11510_v52, %v19880_v11  ;;  %v12786_v15 = vadd.f32 %v12785_v0, %v12784_v34 }
0x3dc5   : > { %v11515_v22 = vadd.f32 %v12786_v15, %v20775_v36  ;;  %v12787_v49 = vpop.f32.mrb[196].mxu1  ;;  %v11536_v37 = vmul.f32 %v11535_v35, %v11528_v30 }
0x3dc6   : > { %v12788_v51 = vpop.f32.mrb[197].mxu1 }
0x3dc7   : > { %v11529_v61 = vadd.f32 %v11515_v22, %v19884_v33  ;;  %v12789_v55 = vadd.f32 %v12788_v51, %v12787_v49  ;;  %11540 = vadd.xlane.f32.xlu0 %v11536_v37  ;;  %v20850_v33 = vlaneseq }
0x3dc9   : > { %v11520_v5 = vadd.f32 %v12789_v55, %v20775_v36  ;;  %v12790_v29 = vpop.f32.mrb[198].mxu1  ;;  %v11537_v27 = vmul.f32 %v11535_v35, %v11529_v61  ;;  %v11562_v50 = vand.u32 127, %v20850_v33 }
0x3dca   : > { %v12791_v46 = vpop.f32.mrb[199].mxu1 }
0x3dcb   : > { %v11530_v12 = vadd.f32 %v11520_v5, %v19888_v62  ;;  %v12792_v47 = vadd.f32 %v12791_v46, %v12790_v29  ;;  %11542 = vadd.xlane.f32.xlu1 %v11537_v27  ;;  %v11565_v21 = vsub.s32 %v11562_v50, %v20851_v45 }
0x3dcd   : > { %v11525_v11 = vadd.f32 %v12792_v47, %v20775_v36  ;;  %v11538_v48 = vmul.f32 %v11535_v35, %v11530_v12 }
0x3dcf   : > { %v11531_v41 = vadd.f32 %v11525_v11, %v19892_v25  ;;  %11544 = vadd.xlane.f32.xlu0 %v11538_v48 }
0x3dd1   : > { %v11539_v13 = vmul.f32 %v11535_v35, %v11531_v41 }
0x3dd3   : > { %11546 = vadd.xlane.f32.xlu1 %v11539_v13 }
0x3e54   : > { %v11541_v53 = vpop.xlane.xlu0 %11540 }
0x3e55   : > { %v11553_v62 = vadd.f32 %v11551_v42, %v11541_v53 }
0x3e57   : > { %v11566_v32 = vrot.slane %v11553_v62, %v11565_v21 }
0x3e58   : > { %v11543_v7 = vpop.xlane.xlu1 %11542 }
0x3e59   : > { %11584 = vst.msk [vmem:[%s532_s23] sm:$0x1] %vm11583_vm3, %v11566_v32  ;;  %v11554_v36 = vadd.f32 %v11551_v42, %v11543_v7 }
0x3e5b   : > { %v11570_v25 = vrot.slane %v11554_v36, %v11565_v21 }
0x3e5c   : > { %v11545_v40 = vpop.xlane.xlu0 %11544 }
0x3e5d   : > { %11585 = vst.msk [vmem:[%s532_s23 + $0x1] sm:$0x1] %vm11583_vm3, %v11570_v25  ;;  %v11555_v20 = vadd.f32 %v11551_v42, %v11545_v40 }
0x3e5f   : > { %v11574_v39 = vrot.slane %v11555_v20, %v11565_v21 }
0x3e60   : > { %v11547_v23 = vpop.xlane.xlu1 %11546 }
0x3e61   : > { %11586 = vst.msk [vmem:[%s532_s23 + $0x2] sm:$0x1] %vm11583_vm3, %v11574_v39  ;;  %v11556_v57 = vadd.f32 %v11551_v42, %v11547_v23 }
0x3e63   : > { %v11578_v58 = vrot.slane %v11556_v57, %v11565_v21 }
0x3e65   : > { %11587 = vst.msk [vmem:[%s532_s23 + $0x3] sm:$0x1] %vm11583_vm3, %v11578_v58 }
0x3e66   : > { %16941 = shalt.err (!%p16938_p1)
}
0x3e67   : > { %s16942_s2 = scalar_lea.hbm %s19939_s26, 64  ;;  %s16946_s24 = scalar_lea.hbm %s20852_s5, 128 }
0x3e68   : > { %p16943_p11 = scmp.ne.s32.totalorder %s19939_s26, %s16942_s2  ;;  %p16947_p13 = scmp.lt.u32.totalorder %s19939_s26, %s20852_s5 }
0x3e69   : > { %p16948_p7 = scmp.lt.u32.totalorder %s16946_s24, %s16942_s2  ;;  %p16950_p0 = scmp.lt.u32.totalorder %s16942_s2, %s19939_s26 }
0x3e6a   : > { %p16944_p12 = pnand %p16943_p11, %p20853_p2 }
0x3e6b   : > { %p16949_p9 = por %p16948_p7, %p16947_p13 }
0x3e6c   : > { %p16945_p6 = pneg %p16944_p12 }
0x3e6d   : > { %p16951_p5 = por %p16950_p0, %p16949_p9 }
0x3e6f   : > { %p16952_p8 = pnand %p16951_p5, %p16945_p6 }
0x3e71   : > { %16955 = shalt.err (!%p16952_p8)
}
0x3e72   : > { %s17041_s30 = smov 16   ;;  %s17042_s23 = smov 1  }
0x3e73   : > { %15957 = dma.vmem_to_hbm [thread:$0]  (%p20853_p2), %s19933_s25, 64, %s19939_s26, %s11589_s4, %s17041_s30, %s17041_s30, %s17042_s23  }
0x3e74 PF: > { %s11617_s17 = sand.u32 1, %s17006_s13   ;;  %p20854_p4 = scmp.ne.s32.totalorder %s20291_s27, 0 }
0x3e75   : > { %p20855_p3 = scmp.ge.s32.totalorder %s17018_s16, 2  ;;  %s11618_s22 = scalar_lea.sflag [#allocation4], %s11617_s17 }
0x3e77   : > { %p15992_p10 = pnand %p20855_p3, %p20854_p4 }
0x3e79   : > { %17001 = dma.done.wait (!%p15992_p10), %s11618_s22, 64  }
0x3e7a   : > { %17003 = vsyncadd (!%p15992_p10), %s11618_s22, 4294967232  ;;  %p30_p1 = scmp.ge.s32.totalorder %s17345_s29, 4   ;;  %s20856_s13 = smov %s17010_s14 }
0x3e7b   : > { %s20857_s14 = smov %s17014_s15  ;;  %s20858_s15 = smov %s17356_s18 }
0x3e7c   : > { %s20859_s16 = smov %s17345_s29  ;;  %32 = sbr.rel (!%p30_p1) target bundleno = 20 (0x14), region = 150 }
0x3e83   :  { %11623 = vsyncpa [#allocation3], 1 }
0x3e84   :  { %11625 = vsyncpa [#allocation3 + $0x1], 1 }
0x3e85   :  { %11626 = vsyncpa [#allocation6], 1 }
0x3e86   :  { %11628 = vsyncpa [#allocation6 + $0x1], 1 }
0x3e87   :  { %11629 = vsyncpa [#allocation9], 1 }
0x3e88   :  { %11630 = vsyncpa [#allocation12], 1 }
0x3e89   :  { %11631 = vsyncpa [#allocation15], 1 }
0x3e8a   :  { %11632 = vsyncpa [#allocation18], 1 }
0x3e8b   :  { %11633 = vsyncpa [#allocation4], 1 }
0x3e8c   :  { %11635 = vsyncpa [#allocation4 + $0x1], 1 }

</bundles_post_ra>
